<compile_context>
chip_gen: v7x
topology: tpu7x:2x2x1
jax: 0.10.0
libtpu: 0.0.40
codegen_flags: <defaults>
</compile_context>

<pallas_src>
import math

import jax
import jax.numpy as jnp
from jax.experimental import pallas as pl
from jax.experimental.pallas import tpu as pltpu

# ----------------------------- configuration --------------------------------
IN_CH = 4                      # in_ch
IMG = 16                       # img_size
PATCH = 4                      # patch
DIM = 32                       # dim
DEPTH = 2                      # depth
HEADS = 4                      # heads
HEAD_DIM = DIM // HEADS
N_PATCH = (IMG // PATCH) ** 2  # 16 patches
P_FLAT = IN_CH * PATCH * PATCH # 64 flattened patch size
FF = 4 * DIM                   # 128
EPS = 1e-5                     # nn.LayerNorm default eps
B_BLK = 8                      # batch elements per grid step -> 128 rows per matmul


# ------------------------------- kernel helpers -------------------------------
def _layernorm(x, gamma, beta):
    mu = jnp.mean(x, axis=-1, keepdims=True)
    var = jnp.mean(jnp.square(x - mu), axis=-1, keepdims=True)
    return (x - mu) * jax.lax.rsqrt(var + EPS) * gamma + beta


def _gelu_exact(x):
    # nn.GELU default is exact erf-based GELU (approximate='none').
    return 0.5 * x * (1.0 + jax.lax.erf(x * (1.0 / math.sqrt(2.0))))


# --------------------------------- fused kernel -------------------------------
def mini_swin_kernel(p_ref, wp_ref, posb_ref, vec_ref, wqkv_ref, bqkv_ref,
                     wout_ref, w1_ref, bf1_ref, w2_ref, o_ref):
    """Full _MiniSwin forward for one batch chunk.

    p_ref   : (B_BLK, N_PATCH, P_FLAT)   flattened patches
    wp_ref  : (P_FLAT, DIM)              patch-embed projection
    posb_ref: (N_PATCH, DIM)             positional embedding + conv bias
    vec_ref : (DEPTH*6, 1, DIM)          [g1, b1, g2, b2, out_bias, ff2_bias] per depth
    wqkv_ref: (DEPTH*3*HEADS, DIM, HEAD_DIM)   per-head Q/K/V projection weights
    bqkv_ref: (DEPTH*3*HEADS, 1, HEAD_DIM)     per-head Q/K/V biases
    wout_ref: (DEPTH*HEADS, HEAD_DIM, DIM)     per-head slices of out_proj weight
    w1_ref  : (DEPTH, DIM, FF), bf1_ref: (DEPTH, 1, FF)
    w2_ref  : (DEPTH, FF, DIM)
    o_ref   : (B_BLK, DIM)               mean-pooled output
    """
    f32 = jnp.float32
    b_blk = p_ref.shape[0]
    rows = b_blk * N_PATCH

    # ---- patch embedding: (rows, P) @ (P, D), then + (conv bias + pos) ----
    patches = p_ref[...].astype(f32).reshape(rows, P_FLAT)
    x = jnp.dot(patches, wp_ref[...], preferred_element_type=f32)        # (rows, D)
    x = (x.reshape(b_blk, N_PATCH, DIM) + posb_ref[...]).reshape(rows, DIM)

    scale = 1.0 / math.sqrt(HEAD_DIM)
    for l in range(DEPTH):                                               # static unroll
        g1 = vec_ref[l * 6 + 0]
        be1 = vec_ref[l * 6 + 1]
        g2 = vec_ref[l * 6 + 2]
        be2 = vec_ref[l * 6 + 3]
        b_out = vec_ref[l * 6 + 4]
        b_ff2 = vec_ref[l * 6 + 5]

        # ---- pre-norm multi-head self attention ----
        xn = _layernorm(x, g1, be1)                                      # (rows, D)
        attn = jnp.zeros((rows, DIM), f32)
        for h in range(HEADS):                                           # static unroll
            qi = (l * 3 + 0) * HEADS + h
            ki = (l * 3 + 1) * HEADS + h
            vi = (l * 3 + 2) * HEADS + h
            qh = jnp.dot(xn, wqkv_ref[qi], preferred_element_type=f32) + bqkv_ref[qi]
            kh = jnp.dot(xn, wqkv_ref[ki], preferred_element_type=f32) + bqkv_ref[ki]
            vh = jnp.dot(xn, wqkv_ref[vi], preferred_element_type=f32) + bqkv_ref[vi]
            q3 = qh.reshape(b_blk, N_PATCH, HEAD_DIM)
            k3 = kh.reshape(b_blk, N_PATCH, HEAD_DIM)
            v3 = vh.reshape(b_blk, N_PATCH, HEAD_DIM)
            # attention restricted to each batch element (batched over b)
            s = jnp.einsum("bnd,bmd->bnm", q3, k3, preferred_element_type=f32) * scale
            s = s - jnp.max(s, axis=-1, keepdims=True)
            p = jnp.exp(s)
            p = p / jnp.sum(p, axis=-1, keepdims=True)
            oh = jnp.einsum("bnm,bmd->bnd", p, v3, preferred_element_type=f32)
            # fold per-head out-projection into the accumulator (no concat)
            attn = attn + jnp.dot(oh.reshape(rows, HEAD_DIM), wout_ref[l * HEADS + h],
                                  preferred_element_type=f32)
        x = x + attn + b_out

        # ---- pre-norm feed-forward (Linear -> GELU -> Linear) ----
        xn2 = _layernorm(x, g2, be2)
        hid = jnp.dot(xn2, w1_ref[l], preferred_element_type=f32) + bf1_ref[l]
        hid = _gelu_exact(hid)
        x = x + jnp.dot(hid, w2_ref[l], preferred_element_type=f32) + b_ff2

    # ---- mean pool over the patch axis, single slab store ----
    o_ref[...] = jnp.mean(x.reshape(b_blk, N_PATCH, DIM), axis=1).astype(o_ref.dtype)


# --------------------------------- wrappers ------------------------------------
def _const_spec(shape):
    return pl.BlockSpec(shape, lambda c: (0,) * len(shape))


def extract_patches(x):
    """NCHW -> (B, N, C*p*p); matches Conv2d(kernel=stride=patch) then flatten(2).transpose(1,2)."""
    B, C, H, W = x.shape
    gh, gw = H // PATCH, W // PATCH
    x = x.reshape(B, C, gh, PATCH, gw, PATCH)
    x = x.transpose(0, 2, 4, 1, 3, 5)          # (B, gh, gw, C, p, p)
    return x.reshape(B, gh * gw, C * PATCH * PATCH)


def mini_swin_forward(x, params):
    B = x.shape[0]
    patches = extract_patches(x)                                   # (B, N, P_FLAT)

    n_chunks = pl.cdiv(B, B_BLK)
    B_pad = n_chunks * B_BLK
    if B_pad != B:
        patches = jnp.pad(patches, ((0, B_pad - B), (0, 0), (0, 0)))

    out = pl.pallas_call(
        mini_swin_kernel,
        out_shape=jax.ShapeDtypeStruct((B_pad, DIM), jnp.float32),
        grid=(n_chunks,),
        in_specs=[
            pl.BlockSpec((B_BLK, N_PATCH, P_FLAT), lambda c: (c, 0, 0)),
            _const_spec((P_FLAT, DIM)),
            _const_spec((N_PATCH, DIM)),
            _const_spec((DEPTH * 6, 1, DIM)),
            _const_spec((DEPTH * 3 * HEADS, DIM, HEAD_DIM)),
            _const_spec((DEPTH * 3 * HEADS, 1, HEAD_DIM)),
            _const_spec((DEPTH * HEADS, HEAD_DIM, DIM)),
            _const_spec((DEPTH, DIM, FF)),
            _const_spec((DEPTH, 1, FF)),
            _const_spec((DEPTH, FF, DIM)),
        ],
        out_specs=pl.BlockSpec((B_BLK, DIM), lambda c: (c, 0)),
        compiler_params=pltpu.CompilerParams(dimension_semantics=("parallel",)),
    )(patches, params["wp"], params["posb"], params["vec"], params["wqkv"],
      params["bqkv"], params["wout"], params["w1"], params["bf1"], params["w2"])
    return out[:B]


# ----------------------------- parameter init / pack ---------------------------
def init_raw_params(key):
    """Parameters in PyTorch-equivalent shapes."""
    ks = jax.random.split(key, 2 + 4 * DEPTH)
    it = iter(ks)
    raw = {
        "conv_w": 0.02 * jax.random.normal(next(it), (DIM, IN_CH, PATCH, PATCH), jnp.float32),
        "conv_b": 0.02 * jax.random.normal(next(it), (DIM,), jnp.float32),
        "pos": jnp.zeros((1, N_PATCH, DIM), jnp.float32),   # nn.Parameter(torch.zeros(...))
        "blocks": [],
    }
    for _ in range(DEPTH):
        k1, k2, k3, k4 = next(it), next(it), next(it), next(it)
        raw["blocks"].append(dict(
            ln1_w=jnp.ones((DIM,), jnp.float32), ln1_b=jnp.zeros((DIM,), jnp.float32),
            in_w=0.02 * jax.random.normal(k1, (3 * DIM, DIM), jnp.float32),  # in_proj_weight
            in_b=jnp.zeros((3 * DIM,), jnp.float32),
            out_w=0.02 * jax.random.normal(k2, (DIM, DIM), jnp.float32),     # out_proj.weight
            out_b=jnp.zeros((DIM,), jnp.float32),
            ln2_w=jnp.ones((DIM,), jnp.float32), ln2_b=jnp.zeros((DIM,), jnp.float32),
            ff1_w=0.02 * jax.random.normal(k3, (FF, DIM), jnp.float32),
            ff1_b=jnp.zeros((FF,), jnp.float32),
            ff2_w=0.02 * jax.random.normal(k4, (DIM, FF), jnp.float32),
            ff2_b=jnp.zeros((DIM,), jnp.float32),
        ))
    return raw


def pack_params(raw):
    """Re-layout PyTorch-shaped params into the packed arrays the fused kernel expects."""
    wp = raw["conv_w"].reshape(DIM, P_FLAT).T                       # (P_FLAT, DIM)
    posb = raw["pos"][0] + raw["conv_b"][None, :]                   # conv bias folded into pos

    vec, wqkv, bqkv, wout, w1, bf1, w2 = [], [], [], [], [], [], []
    for blk in raw["blocks"]:
        vec += [blk["ln1_w"], blk["ln1_b"], blk["ln2_w"], blk["ln2_b"],
                blk["out_b"], blk["ff2_b"]]
        for t in range(3):                                          # q, k, v
            wt = blk["in_w"][t * DIM:(t + 1) * DIM, :].T            # (DIM, DIM): x @ W_t^T
            bt = blk["in_b"][t * DIM:(t + 1) * DIM]
            for h in range(HEADS):
                wqkv.append(wt[:, h * HEAD_DIM:(h + 1) * HEAD_DIM]) # (DIM, HEAD_DIM)
                bqkv.append(bt[h * HEAD_DIM:(h + 1) * HEAD_DIM][None, :])
        w_o_t = blk["out_w"].T                                      # (DIM, DIM): cat @ W_out^T
        for h in range(HEADS):
            wout.append(w_o_t[h * HEAD_DIM:(h + 1) * HEAD_DIM, :])  # (HEAD_DIM, DIM)
        w1.append(blk["ff1_w"].T)                                   # (DIM, FF)
        bf1.append(blk["ff1_b"][None, :])                           # (1, FF)
        w2.append(blk["ff2_w"].T)                                   # (FF, DIM)

    return dict(
        wp=wp,
        posb=posb,
        vec=jnp.stack([v[None, :] for v in vec]),                   # (DEPTH*6, 1, DIM)
        wqkv=jnp.stack(wqkv),                                       # (DEPTH*3*H, DIM, Dh)
        bqkv=jnp.stack(bqkv),                                       # (DEPTH*3*H, 1, Dh)
        wout=jnp.stack(wout),                                       # (DEPTH*H, Dh, DIM)
        w1=jnp.stack(w1),
        bf1=jnp.stack(bf1),
        w2=jnp.stack(w2),
    )


# ---------------------------------- main ---------------------------------------
if __name__ == "__main__":
    key = jax.random.PRNGKey(0)
    kx, kp = jax.random.split(key)

    B = 2
    x = jax.random.normal(kx, (B, IN_CH, IMG, IMG), jnp.float32)   # NCHW, like PyTorch
    params = pack_params(init_raw_params(kp))

    fwd = jax.jit(mini_swin_forward)
    out = fwd(x, params)
    out = jax.block_until_ready(out)
    assert out.shape == (B, DIM), out.shape
    assert bool(jnp.all(jnp.isfinite(out)))
    print("KERNEL_OK")
</pallas_src>

<mosaic_0001>
module attributes {stable_mosaic.version = 11 : i64} {
  func.func @mini_swin_kernel(%arg0: i32, %arg1: memref<8x16x64xf32, #tpu.memory_space<vmem>>, %arg2: memref<64x32xf32, #tpu.memory_space<vmem>>, %arg3: memref<16x32xf32, #tpu.memory_space<vmem>>, %arg4: memref<12x1x32xf32, #tpu.memory_space<vmem>>, %arg5: memref<24x32x8xf32, #tpu.memory_space<vmem>>, %arg6: memref<24x1x8xf32, #tpu.memory_space<vmem>>, %arg7: memref<8x8x32xf32, #tpu.memory_space<vmem>>, %arg8: memref<2x32x128xf32, #tpu.memory_space<vmem>>, %arg9: memref<2x1x128xf32, #tpu.memory_space<vmem>>, %arg10: memref<2x128x32xf32, #tpu.memory_space<vmem>>, %arg11: memref<8x32xf32, #tpu.memory_space<vmem>>) attributes {dimension_semantics = [#tpu.dimension_semantics<parallel>], iteration_bounds = array<i64: 1>, scalar_prefetch = 0 : i64, scratch_operands = 0 : i64, tpu.core_type = #tpu.core_type<tc>, window_params = [{transform_indices = @transform_0, window_bounds = array<i64: 8, 16, 64>}, {pipeline_mode = #tpu.pipeline_mode<synchronous>, transform_indices = @transform_1, window_bounds = array<i64: 64, 32>}, {pipeline_mode = #tpu.pipeline_mode<synchronous>, transform_indices = @transform_2, window_bounds = array<i64: 16, 32>}, {pipeline_mode = #tpu.pipeline_mode<synchronous>, transform_indices = @transform_3, window_bounds = array<i64: 12, 1, 32>}, {pipeline_mode = #tpu.pipeline_mode<synchronous>, transform_indices = @transform_4, window_bounds = array<i64: 24, 32, 8>}, {pipeline_mode = #tpu.pipeline_mode<synchronous>, transform_indices = @transform_5, window_bounds = array<i64: 24, 1, 8>}, {pipeline_mode = #tpu.pipeline_mode<synchronous>, transform_indices = @transform_6, window_bounds = array<i64: 8, 8, 32>}, {pipeline_mode = #tpu.pipeline_mode<synchronous>, transform_indices = @transform_7, window_bounds = array<i64: 2, 32, 128>}, {pipeline_mode = #tpu.pipeline_mode<synchronous>, transform_indices = @transform_8, window_bounds = array<i64: 2, 1, 128>}, {pipeline_mode = #tpu.pipeline_mode<synchronous>, transform_indices = @transform_9, window_bounds = array<i64: 2, 128, 32>}, {transform_indices = @transform_10, window_bounds = array<i64: 8, 32>}]} {
    %c0 = arith.constant 0 : index
    %c0_0 = arith.constant 0 : index
    %c0_1 = arith.constant 0 : index
    %0 = vector.load %arg1[%c0, %c0_0, %c0_1] : memref<8x16x64xf32, #tpu.memory_space<vmem>>, vector<8x16x64xf32>
    %1 = vector.shape_cast %0 : vector<8x16x64xf32> to vector<128x64xf32>
    %c0_2 = arith.constant 0 : index
    %c0_3 = arith.constant 0 : index
    %2 = vector.load %arg2[%c0_2, %c0_3] : memref<64x32xf32, #tpu.memory_space<vmem>>, vector<64x32xf32>
    %cst = arith.constant dense<0.000000e+00> : vector<128x32xf32>
    %3 = tpu.matmul %1, %2, %cst {dimension_numbers = #tpu.dot_dimension_numbers<[1], [0], [0], [1], [0, 0, 1, 1], [], []>} : vector<128x64xf32>, vector<64x32xf32>, vector<128x32xf32> -> vector<128x32xf32>
    %4 = vector.shape_cast %3 : vector<128x32xf32> to vector<8x16x32xf32>
    %c0_4 = arith.constant 0 : index
    %c0_5 = arith.constant 0 : index
    %5 = vector.load %arg3[%c0_4, %c0_5] : memref<16x32xf32, #tpu.memory_space<vmem>>, vector<16x32xf32>
    %6 = vector.shape_cast %5 : vector<16x32xf32> to vector<1x16x32xf32>
    %7 = vector.broadcast %6 : vector<1x16x32xf32> to vector<8x16x32xf32>
    %8 = arith.addf %4, %7 : vector<8x16x32xf32>
    %9 = vector.shape_cast %8 : vector<8x16x32xf32> to vector<128x32xf32>
    %c0_6 = arith.constant 0 : index
    %c0_7 = arith.constant 0 : index
    %c0_8 = arith.constant 0 : index
    %10 = vector.load %arg4[%c0_6, %c0_7, %c0_8] : memref<12x1x32xf32, #tpu.memory_space<vmem>>, vector<1x1x32xf32>
    %11 = vector.shape_cast %10 : vector<1x1x32xf32> to vector<1x32xf32>
    %c1 = arith.constant 1 : index
    %c0_9 = arith.constant 0 : index
    %c0_10 = arith.constant 0 : index
    %12 = vector.load %arg4[%c1, %c0_9, %c0_10] : memref<12x1x32xf32, #tpu.memory_space<vmem>>, vector<1x1x32xf32>
    %13 = vector.shape_cast %12 : vector<1x1x32xf32> to vector<1x32xf32>
    %c2 = arith.constant 2 : index
    %c0_11 = arith.constant 0 : index
    %c0_12 = arith.constant 0 : index
    %14 = vector.load %arg4[%c2, %c0_11, %c0_12] : memref<12x1x32xf32, #tpu.memory_space<vmem>>, vector<1x1x32xf32>
    %15 = vector.shape_cast %14 : vector<1x1x32xf32> to vector<1x32xf32>
    %c3 = arith.constant 3 : index
    %c0_13 = arith.constant 0 : index
    %c0_14 = arith.constant 0 : index
    %16 = vector.load %arg4[%c3, %c0_13, %c0_14] : memref<12x1x32xf32, #tpu.memory_space<vmem>>, vector<1x1x32xf32>
    %17 = vector.shape_cast %16 : vector<1x1x32xf32> to vector<1x32xf32>
    %c4 = arith.constant 4 : index
    %c0_15 = arith.constant 0 : index
    %c0_16 = arith.constant 0 : index
    %18 = vector.load %arg4[%c4, %c0_15, %c0_16] : memref<12x1x32xf32, #tpu.memory_space<vmem>>, vector<1x1x32xf32>
    %19 = vector.shape_cast %18 : vector<1x1x32xf32> to vector<1x32xf32>
    %c5 = arith.constant 5 : index
    %c0_17 = arith.constant 0 : index
    %c0_18 = arith.constant 0 : index
    %20 = vector.load %arg4[%c5, %c0_17, %c0_18] : memref<12x1x32xf32, #tpu.memory_space<vmem>>, vector<1x1x32xf32>
    %21 = vector.shape_cast %20 : vector<1x1x32xf32> to vector<1x32xf32>
    %cst_19 = arith.constant dense<0.000000e+00> : vector<128xf32>
    %22 = vector.multi_reduction <add>, %9, %cst_19 [1] : vector<128x32xf32> to vector<128xf32>
    %23 = vector.shape_cast %22 : vector<128xf32> to vector<128x1xf32>
    %cst_20 = arith.constant 3.200000e+01 : f32
    %24 = vector.broadcast %cst_20 : f32 to vector<128x1xf32>
    %25 = arith.divf %23, %24 : vector<128x1xf32>
    %26 = vector.broadcast %25 : vector<128x1xf32> to vector<128x32xf32>
    %27 = arith.subf %9, %26 : vector<128x32xf32>
    %28 = arith.mulf %27, %27 : vector<128x32xf32>
    %cst_21 = arith.constant dense<0.000000e+00> : vector<128xf32>
    %29 = vector.multi_reduction <add>, %28, %cst_21 [1] : vector<128x32xf32> to vector<128xf32>
    %30 = vector.shape_cast %29 : vector<128xf32> to vector<128x1xf32>
    %cst_22 = arith.constant 3.200000e+01 : f32
    %31 = vector.broadcast %cst_22 : f32 to vector<128x1xf32>
    %32 = arith.divf %30, %31 : vector<128x1xf32>
    %33 = vector.broadcast %25 : vector<128x1xf32> to vector<128x32xf32>
    %34 = arith.subf %9, %33 : vector<128x32xf32>
    %cst_23 = arith.constant 9.99999974E-6 : f32
    %35 = vector.broadcast %cst_23 : f32 to vector<128x1xf32>
    %36 = arith.addf %32, %35 : vector<128x1xf32>
    %37 = math.rsqrt %36 : vector<128x1xf32>
    %38 = vector.broadcast %37 : vector<128x1xf32> to vector<128x32xf32>
    %39 = arith.mulf %34, %38 : vector<128x32xf32>
    %40 = vector.broadcast %11 : vector<1x32xf32> to vector<128x32xf32>
    %41 = arith.mulf %39, %40 : vector<128x32xf32>
    %42 = vector.broadcast %13 : vector<1x32xf32> to vector<128x32xf32>
    %43 = arith.addf %41, %42 : vector<128x32xf32>
    %cst_24 = arith.constant 0.000000e+00 : f32
    %44 = vector.broadcast %cst_24 : f32 to vector<128x32xf32>
    %c0_25 = arith.constant 0 : index
    %c0_26 = arith.constant 0 : index
    %c0_27 = arith.constant 0 : index
    %45 = vector.load %arg5[%c0_25, %c0_26, %c0_27] : memref<24x32x8xf32, #tpu.memory_space<vmem>>, vector<1x32x8xf32>
    %46 = vector.shape_cast %45 : vector<1x32x8xf32> to vector<32x8xf32>
    %cst_28 = arith.constant dense<0.000000e+00> : vector<128x8xf32>
    %47 = tpu.matmul %43, %46, %cst_28 {dimension_numbers = #tpu.dot_dimension_numbers<[1], [0], [0], [1], [0, 0, 1, 1], [], []>} : vector<128x32xf32>, vector<32x8xf32>, vector<128x8xf32> -> vector<128x8xf32>
    %c0_29 = arith.constant 0 : index
    %c0_30 = arith.constant 0 : index
    %c0_31 = arith.constant 0 : index
    %48 = vector.load %arg6[%c0_29, %c0_30, %c0_31] : memref<24x1x8xf32, #tpu.memory_space<vmem>>, vector<1x1x8xf32>
    %49 = vector.shape_cast %48 : vector<1x1x8xf32> to vector<1x8xf32>
    %50 = vector.broadcast %49 : vector<1x8xf32> to vector<128x8xf32>
    %51 = arith.addf %47, %50 : vector<128x8xf32>
    %c4_32 = arith.constant 4 : index
    %c0_33 = arith.constant 0 : index
    %c0_34 = arith.constant 0 : index
    %52 = vector.load %arg5[%c4_32, %c0_33, %c0_34] : memref<24x32x8xf32, #tpu.memory_space<vmem>>, vector<1x32x8xf32>
    %53 = vector.shape_cast %52 : vector<1x32x8xf32> to vector<32x8xf32>
    %cst_35 = arith.constant dense<0.000000e+00> : vector<128x8xf32>
    %54 = tpu.matmul %43, %53, %cst_35 {dimension_numbers = #tpu.dot_dimension_numbers<[1], [0], [0], [1], [0, 0, 1, 1], [], []>} : vector<128x32xf32>, vector<32x8xf32>, vector<128x8xf32> -> vector<128x8xf32>
    %c4_36 = arith.constant 4 : index
    %c0_37 = arith.constant 0 : index
    %c0_38 = arith.constant 0 : index
    %55 = vector.load %arg6[%c4_36, %c0_37, %c0_38] : memref<24x1x8xf32, #tpu.memory_space<vmem>>, vector<1x1x8xf32>
    %56 = vector.shape_cast %55 : vector<1x1x8xf32> to vector<1x8xf32>
    %57 = vector.broadcast %56 : vector<1x8xf32> to vector<128x8xf32>
    %58 = arith.addf %54, %57 : vector<128x8xf32>
    %c8 = arith.constant 8 : index
    %c0_39 = arith.constant 0 : index
    %c0_40 = arith.constant 0 : index
    %59 = vector.load %arg5[%c8, %c0_39, %c0_40] : memref<24x32x8xf32, #tpu.memory_space<vmem>>, vector<1x32x8xf32>
    %60 = vector.shape_cast %59 : vector<1x32x8xf32> to vector<32x8xf32>
    %cst_41 = arith.constant dense<0.000000e+00> : vector<128x8xf32>
    %61 = tpu.matmul %43, %60, %cst_41 {dimension_numbers = #tpu.dot_dimension_numbers<[1], [0], [0], [1], [0, 0, 1, 1], [], []>} : vector<128x32xf32>, vector<32x8xf32>, vector<128x8xf32> -> vector<128x8xf32>
    %c8_42 = arith.constant 8 : index
    %c0_43 = arith.constant 0 : index
    %c0_44 = arith.constant 0 : index
    %62 = vector.load %arg6[%c8_42, %c0_43, %c0_44] : memref<24x1x8xf32, #tpu.memory_space<vmem>>, vector<1x1x8xf32>
    %63 = vector.shape_cast %62 : vector<1x1x8xf32> to vector<1x8xf32>
    %64 = vector.broadcast %63 : vector<1x8xf32> to vector<128x8xf32>
    %65 = arith.addf %61, %64 : vector<128x8xf32>
    %66 = vector.shape_cast %51 : vector<128x8xf32> to vector<8x16x8xf32>
    %67 = vector.shape_cast %58 : vector<128x8xf32> to vector<8x16x8xf32>
    %68 = vector.shape_cast %65 : vector<128x8xf32> to vector<8x16x8xf32>
    "tpu.trace_start"() <{level = 10 : i32, message = "bnd,bmd->bnm"}> : () -> ()
    %cst_45 = arith.constant dense<0.000000e+00> : vector<8x16x16xf32>
    %69 = tpu.matmul %66, %67, %cst_45 {dimension_numbers = #tpu.dot_dimension_numbers<[2], [2], [1], [1], [0, 0, 0, 1, 1, 1], [0], [0]>} : vector<8x16x8xf32>, vector<8x16x8xf32>, vector<8x16x16xf32> -> vector<8x16x16xf32>
    "tpu.trace_stop"() : () -> ()
    %cst_46 = arith.constant 0.353553385 : f32
    %70 = vector.broadcast %cst_46 : f32 to vector<8x16x16xf32>
    %71 = arith.mulf %69, %70 : vector<8x16x16xf32>
    %cst_47 = arith.constant dense<0xFF800000> : vector<8x16xf32>
    %72 = vector.multi_reduction <maximumf>, %71, %cst_47 [2] : vector<8x16x16xf32> to vector<8x16xf32>
    %73 = vector.shape_cast %72 : vector<8x16xf32> to vector<8x16x1xf32>
    %74 = vector.broadcast %73 : vector<8x16x1xf32> to vector<8x16x16xf32>
    %75 = arith.subf %71, %74 : vector<8x16x16xf32>
    %76 = math.exp %75 : vector<8x16x16xf32>
    %cst_48 = arith.constant dense<0.000000e+00> : vector<8x16xf32>
    %77 = vector.multi_reduction <add>, %76, %cst_48 [2] : vector<8x16x16xf32> to vector<8x16xf32>
    %78 = vector.shape_cast %77 : vector<8x16xf32> to vector<8x16x1xf32>
    %79 = vector.broadcast %78 : vector<8x16x1xf32> to vector<8x16x16xf32>
    %80 = arith.divf %76, %79 : vector<8x16x16xf32>
    "tpu.trace_start"() <{level = 10 : i32, message = "bnm,bmd->bnd"}> : () -> ()
    %cst_49 = arith.constant dense<0.000000e+00> : vector<8x16x8xf32>
    %81 = tpu.matmul %80, %68, %cst_49 {dimension_numbers = #tpu.dot_dimension_numbers<[2], [1], [1], [2], [0, 0, 0, 1, 1, 2], [0], [0]>} : vector<8x16x16xf32>, vector<8x16x8xf32>, vector<8x16x8xf32> -> vector<8x16x8xf32>
    "tpu.trace_stop"() : () -> ()
    %82 = vector.shape_cast %81 : vector<8x16x8xf32> to vector<128x8xf32>
    %c0_50 = arith.constant 0 : index
    %c0_51 = arith.constant 0 : index
    %c0_52 = arith.constant 0 : index
    %83 = vector.load %arg7[%c0_50, %c0_51, %c0_52] : memref<8x8x32xf32, #tpu.memory_space<vmem>>, vector<1x8x32xf32>
    %84 = vector.shape_cast %83 : vector<1x8x32xf32> to vector<8x32xf32>
    %cst_53 = arith.constant dense<0.000000e+00> : vector<128x32xf32>
    %85 = tpu.matmul %82, %84, %cst_53 {dimension_numbers = #tpu.dot_dimension_numbers<[1], [0], [0], [1], [0, 0, 1, 1], [], []>} : vector<128x8xf32>, vector<8x32xf32>, vector<128x32xf32> -> vector<128x32xf32>
    %86 = arith.addf %44, %85 : vector<128x32xf32>
    %c1_54 = arith.constant 1 : index
    %c0_55 = arith.constant 0 : index
    %c0_56 = arith.constant 0 : index
    %87 = vector.load %arg5[%c1_54, %c0_55, %c0_56] : memref<24x32x8xf32, #tpu.memory_space<vmem>>, vector<1x32x8xf32>
    %88 = vector.shape_cast %87 : vector<1x32x8xf32> to vector<32x8xf32>
    %cst_57 = arith.constant dense<0.000000e+00> : vector<128x8xf32>
    %89 = tpu.matmul %43, %88, %cst_57 {dimension_numbers = #tpu.dot_dimension_numbers<[1], [0], [0], [1], [0, 0, 1, 1], [], []>} : vector<128x32xf32>, vector<32x8xf32>, vector<128x8xf32> -> vector<128x8xf32>
    %c1_58 = arith.constant 1 : index
    %c0_59 = arith.constant 0 : index
    %c0_60 = arith.constant 0 : index
    %90 = vector.load %arg6[%c1_58, %c0_59, %c0_60] : memref<24x1x8xf32, #tpu.memory_space<vmem>>, vector<1x1x8xf32>
    %91 = vector.shape_cast %90 : vector<1x1x8xf32> to vector<1x8xf32>
    %92 = vector.broadcast %91 : vector<1x8xf32> to vector<128x8xf32>
    %93 = arith.addf %89, %92 : vector<128x8xf32>
    %c5_61 = arith.constant 5 : index
    %c0_62 = arith.constant 0 : index
    %c0_63 = arith.constant 0 : index
    %94 = vector.load %arg5[%c5_61, %c0_62, %c0_63] : memref<24x32x8xf32, #tpu.memory_space<vmem>>, vector<1x32x8xf32>
    %95 = vector.shape_cast %94 : vector<1x32x8xf32> to vector<32x8xf32>
    %cst_64 = arith.constant dense<0.000000e+00> : vector<128x8xf32>
    %96 = tpu.matmul %43, %95, %cst_64 {dimension_numbers = #tpu.dot_dimension_numbers<[1], [0], [0], [1], [0, 0, 1, 1], [], []>} : vector<128x32xf32>, vector<32x8xf32>, vector<128x8xf32> -> vector<128x8xf32>
    %c5_65 = arith.constant 5 : index
    %c0_66 = arith.constant 0 : index
    %c0_67 = arith.constant 0 : index
    %97 = vector.load %arg6[%c5_65, %c0_66, %c0_67] : memref<24x1x8xf32, #tpu.memory_space<vmem>>, vector<1x1x8xf32>
    %98 = vector.shape_cast %97 : vector<1x1x8xf32> to vector<1x8xf32>
    %99 = vector.broadcast %98 : vector<1x8xf32> to vector<128x8xf32>
    %100 = arith.addf %96, %99 : vector<128x8xf32>
    %c9 = arith.constant 9 : index
    %c0_68 = arith.constant 0 : index
    %c0_69 = arith.constant 0 : index
    %101 = vector.load %arg5[%c9, %c0_68, %c0_69] : memref<24x32x8xf32, #tpu.memory_space<vmem>>, vector<1x32x8xf32>
    %102 = vector.shape_cast %101 : vector<1x32x8xf32> to vector<32x8xf32>
    %cst_70 = arith.constant dense<0.000000e+00> : vector<128x8xf32>
    %103 = tpu.matmul %43, %102, %cst_70 {dimension_numbers = #tpu.dot_dimension_numbers<[1], [0], [0], [1], [0, 0, 1, 1], [], []>} : vector<128x32xf32>, vector<32x8xf32>, vector<128x8xf32> -> vector<128x8xf32>
    %c9_71 = arith.constant 9 : index
    %c0_72 = arith.constant 0 : index
    %c0_73 = arith.constant 0 : index
    %104 = vector.load %arg6[%c9_71, %c0_72, %c0_73] : memref<24x1x8xf32, #tpu.memory_space<vmem>>, vector<1x1x8xf32>
    %105 = vector.shape_cast %104 : vector<1x1x8xf32> to vector<1x8xf32>
    %106 = vector.broadcast %105 : vector<1x8xf32> to vector<128x8xf32>
    %107 = arith.addf %103, %106 : vector<128x8xf32>
    %108 = vector.shape_cast %93 : vector<128x8xf32> to vector<8x16x8xf32>
    %109 = vector.shape_cast %100 : vector<128x8xf32> to vector<8x16x8xf32>
    %110 = vector.shape_cast %107 : vector<128x8xf32> to vector<8x16x8xf32>
    "tpu.trace_start"() <{level = 10 : i32, message = "bnd,bmd->bnm"}> : () -> ()
    %cst_74 = arith.constant dense<0.000000e+00> : vector<8x16x16xf32>
    %111 = tpu.matmul %108, %109, %cst_74 {dimension_numbers = #tpu.dot_dimension_numbers<[2], [2], [1], [1], [0, 0, 0, 1, 1, 1], [0], [0]>} : vector<8x16x8xf32>, vector<8x16x8xf32>, vector<8x16x16xf32> -> vector<8x16x16xf32>
    "tpu.trace_stop"() : () -> ()
    %cst_75 = arith.constant 0.353553385 : f32
    %112 = vector.broadcast %cst_75 : f32 to vector<8x16x16xf32>
    %113 = arith.mulf %111, %112 : vector<8x16x16xf32>
    %cst_76 = arith.constant dense<0xFF800000> : vector<8x16xf32>
    %114 = vector.multi_reduction <maximumf>, %113, %cst_76 [2] : vector<8x16x16xf32> to vector<8x16xf32>
    %115 = vector.shape_cast %114 : vector<8x16xf32> to vector<8x16x1xf32>
    %116 = vector.broadcast %115 : vector<8x16x1xf32> to vector<8x16x16xf32>
    %117 = arith.subf %113, %116 : vector<8x16x16xf32>
    %118 = math.exp %117 : vector<8x16x16xf32>
    %cst_77 = arith.constant dense<0.000000e+00> : vector<8x16xf32>
    %119 = vector.multi_reduction <add>, %118, %cst_77 [2] : vector<8x16x16xf32> to vector<8x16xf32>
    %120 = vector.shape_cast %119 : vector<8x16xf32> to vector<8x16x1xf32>
    %121 = vector.broadcast %120 : vector<8x16x1xf32> to vector<8x16x16xf32>
    %122 = arith.divf %118, %121 : vector<8x16x16xf32>
    "tpu.trace_start"() <{level = 10 : i32, message = "bnm,bmd->bnd"}> : () -> ()
    %cst_78 = arith.constant dense<0.000000e+00> : vector<8x16x8xf32>
    %123 = tpu.matmul %122, %110, %cst_78 {dimension_numbers = #tpu.dot_dimension_numbers<[2], [1], [1], [2], [0, 0, 0, 1, 1, 2], [0], [0]>} : vector<8x16x16xf32>, vector<8x16x8xf32>, vector<8x16x8xf32> -> vector<8x16x8xf32>
    "tpu.trace_stop"() : () -> ()
    %124 = vector.shape_cast %123 : vector<8x16x8xf32> to vector<128x8xf32>
    %c1_79 = arith.constant 1 : index
    %c0_80 = arith.constant 0 : index
    %c0_81 = arith.constant 0 : index
    %125 = vector.load %arg7[%c1_79, %c0_80, %c0_81] : memref<8x8x32xf32, #tpu.memory_space<vmem>>, vector<1x8x32xf32>
    %126 = vector.shape_cast %125 : vector<1x8x32xf32> to vector<8x32xf32>
    %cst_82 = arith.constant dense<0.000000e+00> : vector<128x32xf32>
    %127 = tpu.matmul %124, %126, %cst_82 {dimension_numbers = #tpu.dot_dimension_numbers<[1], [0], [0], [1], [0, 0, 1, 1], [], []>} : vector<128x8xf32>, vector<8x32xf32>, vector<128x32xf32> -> vector<128x32xf32>
    %128 = arith.addf %86, %127 : vector<128x32xf32>
    %c2_83 = arith.constant 2 : index
    %c0_84 = arith.constant 0 : index
    %c0_85 = arith.constant 0 : index
    %129 = vector.load %arg5[%c2_83, %c0_84, %c0_85] : memref<24x32x8xf32, #tpu.memory_space<vmem>>, vector<1x32x8xf32>
    %130 = vector.shape_cast %129 : vector<1x32x8xf32> to vector<32x8xf32>
    %cst_86 = arith.constant dense<0.000000e+00> : vector<128x8xf32>
    %131 = tpu.matmul %43, %130, %cst_86 {dimension_numbers = #tpu.dot_dimension_numbers<[1], [0], [0], [1], [0, 0, 1, 1], [], []>} : vector<128x32xf32>, vector<32x8xf32>, vector<128x8xf32> -> vector<128x8xf32>
    %c2_87 = arith.constant 2 : index
    %c0_88 = arith.constant 0 : index
    %c0_89 = arith.constant 0 : index
    %132 = vector.load %arg6[%c2_87, %c0_88, %c0_89] : memref<24x1x8xf32, #tpu.memory_space<vmem>>, vector<1x1x8xf32>
    %133 = vector.shape_cast %132 : vector<1x1x8xf32> to vector<1x8xf32>
    %134 = vector.broadcast %133 : vector<1x8xf32> to vector<128x8xf32>
    %135 = arith.addf %131, %134 : vector<128x8xf32>
    %c6 = arith.constant 6 : index
    %c0_90 = arith.constant 0 : index
    %c0_91 = arith.constant 0 : index
    %136 = vector.load %arg5[%c6, %c0_90, %c0_91] : memref<24x32x8xf32, #tpu.memory_space<vmem>>, vector<1x32x8xf32>
    %137 = vector.shape_cast %136 : vector<1x32x8xf32> to vector<32x8xf32>
    %cst_92 = arith.constant dense<0.000000e+00> : vector<128x8xf32>
    %138 = tpu.matmul %43, %137, %cst_92 {dimension_numbers = #tpu.dot_dimension_numbers<[1], [0], [0], [1], [0, 0, 1, 1], [], []>} : vector<128x32xf32>, vector<32x8xf32>, vector<128x8xf32> -> vector<128x8xf32>
    %c6_93 = arith.constant 6 : index
    %c0_94 = arith.constant 0 : index
    %c0_95 = arith.constant 0 : index
    %139 = vector.load %arg6[%c6_93, %c0_94, %c0_95] : memref<24x1x8xf32, #tpu.memory_space<vmem>>, vector<1x1x8xf32>
    %140 = vector.shape_cast %139 : vector<1x1x8xf32> to vector<1x8xf32>
    %141 = vector.broadcast %140 : vector<1x8xf32> to vector<128x8xf32>
    %142 = arith.addf %138, %141 : vector<128x8xf32>
    %c10 = arith.constant 10 : index
    %c0_96 = arith.constant 0 : index
    %c0_97 = arith.constant 0 : index
    %143 = vector.load %arg5[%c10, %c0_96, %c0_97] : memref<24x32x8xf32, #tpu.memory_space<vmem>>, vector<1x32x8xf32>
    %144 = vector.shape_cast %143 : vector<1x32x8xf32> to vector<32x8xf32>
    %cst_98 = arith.constant dense<0.000000e+00> : vector<128x8xf32>
    %145 = tpu.matmul %43, %144, %cst_98 {dimension_numbers = #tpu.dot_dimension_numbers<[1], [0], [0], [1], [0, 0, 1, 1], [], []>} : vector<128x32xf32>, vector<32x8xf32>, vector<128x8xf32> -> vector<128x8xf32>
    %c10_99 = arith.constant 10 : index
    %c0_100 = arith.constant 0 : index
    %c0_101 = arith.constant 0 : index
    %146 = vector.load %arg6[%c10_99, %c0_100, %c0_101] : memref<24x1x8xf32, #tpu.memory_space<vmem>>, vector<1x1x8xf32>
    %147 = vector.shape_cast %146 : vector<1x1x8xf32> to vector<1x8xf32>
    %148 = vector.broadcast %147 : vector<1x8xf32> to vector<128x8xf32>
    %149 = arith.addf %145, %148 : vector<128x8xf32>
    %150 = vector.shape_cast %135 : vector<128x8xf32> to vector<8x16x8xf32>
    %151 = vector.shape_cast %142 : vector<128x8xf32> to vector<8x16x8xf32>
    %152 = vector.shape_cast %149 : vector<128x8xf32> to vector<8x16x8xf32>
    "tpu.trace_start"() <{level = 10 : i32, message = "bnd,bmd->bnm"}> : () -> ()
    %cst_102 = arith.constant dense<0.000000e+00> : vector<8x16x16xf32>
    %153 = tpu.matmul %150, %151, %cst_102 {dimension_numbers = #tpu.dot_dimension_numbers<[2], [2], [1], [1], [0, 0, 0, 1, 1, 1], [0], [0]>} : vector<8x16x8xf32>, vector<8x16x8xf32>, vector<8x16x16xf32> -> vector<8x16x16xf32>
    "tpu.trace_stop"() : () -> ()
    %cst_103 = arith.constant 0.353553385 : f32
    %154 = vector.broadcast %cst_103 : f32 to vector<8x16x16xf32>
    %155 = arith.mulf %153, %154 : vector<8x16x16xf32>
    %cst_104 = arith.constant dense<0xFF800000> : vector<8x16xf32>
    %156 = vector.multi_reduction <maximumf>, %155, %cst_104 [2] : vector<8x16x16xf32> to vector<8x16xf32>
    %157 = vector.shape_cast %156 : vector<8x16xf32> to vector<8x16x1xf32>
    %158 = vector.broadcast %157 : vector<8x16x1xf32> to vector<8x16x16xf32>
    %159 = arith.subf %155, %158 : vector<8x16x16xf32>
    %160 = math.exp %159 : vector<8x16x16xf32>
    %cst_105 = arith.constant dense<0.000000e+00> : vector<8x16xf32>
    %161 = vector.multi_reduction <add>, %160, %cst_105 [2] : vector<8x16x16xf32> to vector<8x16xf32>
    %162 = vector.shape_cast %161 : vector<8x16xf32> to vector<8x16x1xf32>
    %163 = vector.broadcast %162 : vector<8x16x1xf32> to vector<8x16x16xf32>
    %164 = arith.divf %160, %163 : vector<8x16x16xf32>
    "tpu.trace_start"() <{level = 10 : i32, message = "bnm,bmd->bnd"}> : () -> ()
    %cst_106 = arith.constant dense<0.000000e+00> : vector<8x16x8xf32>
    %165 = tpu.matmul %164, %152, %cst_106 {dimension_numbers = #tpu.dot_dimension_numbers<[2], [1], [1], [2], [0, 0, 0, 1, 1, 2], [0], [0]>} : vector<8x16x16xf32>, vector<8x16x8xf32>, vector<8x16x8xf32> -> vector<8x16x8xf32>
    "tpu.trace_stop"() : () -> ()
    %166 = vector.shape_cast %165 : vector<8x16x8xf32> to vector<128x8xf32>
    %c2_107 = arith.constant 2 : index
    %c0_108 = arith.constant 0 : index
    %c0_109 = arith.constant 0 : index
    %167 = vector.load %arg7[%c2_107, %c0_108, %c0_109] : memref<8x8x32xf32, #tpu.memory_space<vmem>>, vector<1x8x32xf32>
    %168 = vector.shape_cast %167 : vector<1x8x32xf32> to vector<8x32xf32>
    %cst_110 = arith.constant dense<0.000000e+00> : vector<128x32xf32>
    %169 = tpu.matmul %166, %168, %cst_110 {dimension_numbers = #tpu.dot_dimension_numbers<[1], [0], [0], [1], [0, 0, 1, 1], [], []>} : vector<128x8xf32>, vector<8x32xf32>, vector<128x32xf32> -> vector<128x32xf32>
    %170 = arith.addf %128, %169 : vector<128x32xf32>
    %c3_111 = arith.constant 3 : index
    %c0_112 = arith.constant 0 : index
    %c0_113 = arith.constant 0 : index
    %171 = vector.load %arg5[%c3_111, %c0_112, %c0_113] : memref<24x32x8xf32, #tpu.memory_space<vmem>>, vector<1x32x8xf32>
    %172 = vector.shape_cast %171 : vector<1x32x8xf32> to vector<32x8xf32>
    %cst_114 = arith.constant dense<0.000000e+00> : vector<128x8xf32>
    %173 = tpu.matmul %43, %172, %cst_114 {dimension_numbers = #tpu.dot_dimension_numbers<[1], [0], [0], [1], [0, 0, 1, 1], [], []>} : vector<128x32xf32>, vector<32x8xf32>, vector<128x8xf32> -> vector<128x8xf32>
    %c3_115 = arith.constant 3 : index
    %c0_116 = arith.constant 0 : index
    %c0_117 = arith.constant 0 : index
    %174 = vector.load %arg6[%c3_115, %c0_116, %c0_117] : memref<24x1x8xf32, #tpu.memory_space<vmem>>, vector<1x1x8xf32>
    %175 = vector.shape_cast %174 : vector<1x1x8xf32> to vector<1x8xf32>
    %176 = vector.broadcast %175 : vector<1x8xf32> to vector<128x8xf32>
    %177 = arith.addf %173, %176 : vector<128x8xf32>
    %c7 = arith.constant 7 : index
    %c0_118 = arith.constant 0 : index
    %c0_119 = arith.constant 0 : index
    %178 = vector.load %arg5[%c7, %c0_118, %c0_119] : memref<24x32x8xf32, #tpu.memory_space<vmem>>, vector<1x32x8xf32>
    %179 = vector.shape_cast %178 : vector<1x32x8xf32> to vector<32x8xf32>
    %cst_120 = arith.constant dense<0.000000e+00> : vector<128x8xf32>
    %180 = tpu.matmul %43, %179, %cst_120 {dimension_numbers = #tpu.dot_dimension_numbers<[1], [0], [0], [1], [0, 0, 1, 1], [], []>} : vector<128x32xf32>, vector<32x8xf32>, vector<128x8xf32> -> vector<128x8xf32>
    %c7_121 = arith.constant 7 : index
    %c0_122 = arith.constant 0 : index
    %c0_123 = arith.constant 0 : index
    %181 = vector.load %arg6[%c7_121, %c0_122, %c0_123] : memref<24x1x8xf32, #tpu.memory_space<vmem>>, vector<1x1x8xf32>
    %182 = vector.shape_cast %181 : vector<1x1x8xf32> to vector<1x8xf32>
    %183 = vector.broadcast %182 : vector<1x8xf32> to vector<128x8xf32>
    %184 = arith.addf %180, %183 : vector<128x8xf32>
    %c11 = arith.constant 11 : index
    %c0_124 = arith.constant 0 : index
    %c0_125 = arith.constant 0 : index
    %185 = vector.load %arg5[%c11, %c0_124, %c0_125] : memref<24x32x8xf32, #tpu.memory_space<vmem>>, vector<1x32x8xf32>
    %186 = vector.shape_cast %185 : vector<1x32x8xf32> to vector<32x8xf32>
    %cst_126 = arith.constant dense<0.000000e+00> : vector<128x8xf32>
    %187 = tpu.matmul %43, %186, %cst_126 {dimension_numbers = #tpu.dot_dimension_numbers<[1], [0], [0], [1], [0, 0, 1, 1], [], []>} : vector<128x32xf32>, vector<32x8xf32>, vector<128x8xf32> -> vector<128x8xf32>
    %c11_127 = arith.constant 11 : index
    %c0_128 = arith.constant 0 : index
    %c0_129 = arith.constant 0 : index
    %188 = vector.load %arg6[%c11_127, %c0_128, %c0_129] : memref<24x1x8xf32, #tpu.memory_space<vmem>>, vector<1x1x8xf32>
    %189 = vector.shape_cast %188 : vector<1x1x8xf32> to vector<1x8xf32>
    %190 = vector.broadcast %189 : vector<1x8xf32> to vector<128x8xf32>
    %191 = arith.addf %187, %190 : vector<128x8xf32>
    %192 = vector.shape_cast %177 : vector<128x8xf32> to vector<8x16x8xf32>
    %193 = vector.shape_cast %184 : vector<128x8xf32> to vector<8x16x8xf32>
    %194 = vector.shape_cast %191 : vector<128x8xf32> to vector<8x16x8xf32>
    "tpu.trace_start"() <{level = 10 : i32, message = "bnd,bmd->bnm"}> : () -> ()
    %cst_130 = arith.constant dense<0.000000e+00> : vector<8x16x16xf32>
    %195 = tpu.matmul %192, %193, %cst_130 {dimension_numbers = #tpu.dot_dimension_numbers<[2], [2], [1], [1], [0, 0, 0, 1, 1, 1], [0], [0]>} : vector<8x16x8xf32>, vector<8x16x8xf32>, vector<8x16x16xf32> -> vector<8x16x16xf32>
    "tpu.trace_stop"() : () -> ()
    %cst_131 = arith.constant 0.353553385 : f32
    %196 = vector.broadcast %cst_131 : f32 to vector<8x16x16xf32>
    %197 = arith.mulf %195, %196 : vector<8x16x16xf32>
    %cst_132 = arith.constant dense<0xFF800000> : vector<8x16xf32>
    %198 = vector.multi_reduction <maximumf>, %197, %cst_132 [2] : vector<8x16x16xf32> to vector<8x16xf32>
    %199 = vector.shape_cast %198 : vector<8x16xf32> to vector<8x16x1xf32>
    %200 = vector.broadcast %199 : vector<8x16x1xf32> to vector<8x16x16xf32>
    %201 = arith.subf %197, %200 : vector<8x16x16xf32>
    %202 = math.exp %201 : vector<8x16x16xf32>
    %cst_133 = arith.constant dense<0.000000e+00> : vector<8x16xf32>
    %203 = vector.multi_reduction <add>, %202, %cst_133 [2] : vector<8x16x16xf32> to vector<8x16xf32>
    %204 = vector.shape_cast %203 : vector<8x16xf32> to vector<8x16x1xf32>
    %205 = vector.broadcast %204 : vector<8x16x1xf32> to vector<8x16x16xf32>
    %206 = arith.divf %202, %205 : vector<8x16x16xf32>
    "tpu.trace_start"() <{level = 10 : i32, message = "bnm,bmd->bnd"}> : () -> ()
    %cst_134 = arith.constant dense<0.000000e+00> : vector<8x16x8xf32>
    %207 = tpu.matmul %206, %194, %cst_134 {dimension_numbers = #tpu.dot_dimension_numbers<[2], [1], [1], [2], [0, 0, 0, 1, 1, 2], [0], [0]>} : vector<8x16x16xf32>, vector<8x16x8xf32>, vector<8x16x8xf32> -> vector<8x16x8xf32>
    "tpu.trace_stop"() : () -> ()
    %208 = vector.shape_cast %207 : vector<8x16x8xf32> to vector<128x8xf32>
    %c3_135 = arith.constant 3 : index
    %c0_136 = arith.constant 0 : index
    %c0_137 = arith.constant 0 : index
    %209 = vector.load %arg7[%c3_135, %c0_136, %c0_137] : memref<8x8x32xf32, #tpu.memory_space<vmem>>, vector<1x8x32xf32>
    %210 = vector.shape_cast %209 : vector<1x8x32xf32> to vector<8x32xf32>
    %cst_138 = arith.constant dense<0.000000e+00> : vector<128x32xf32>
    %211 = tpu.matmul %208, %210, %cst_138 {dimension_numbers = #tpu.dot_dimension_numbers<[1], [0], [0], [1], [0, 0, 1, 1], [], []>} : vector<128x8xf32>, vector<8x32xf32>, vector<128x32xf32> -> vector<128x32xf32>
    %212 = arith.addf %170, %211 : vector<128x32xf32>
    %213 = arith.addf %9, %212 : vector<128x32xf32>
    %214 = vector.broadcast %19 : vector<1x32xf32> to vector<128x32xf32>
    %215 = arith.addf %213, %214 : vector<128x32xf32>
    %cst_139 = arith.constant dense<0.000000e+00> : vector<128xf32>
    %216 = vector.multi_reduction <add>, %215, %cst_139 [1] : vector<128x32xf32> to vector<128xf32>
    %217 = vector.shape_cast %216 : vector<128xf32> to vector<128x1xf32>
    %cst_140 = arith.constant 3.200000e+01 : f32
    %218 = vector.broadcast %cst_140 : f32 to vector<128x1xf32>
    %219 = arith.divf %217, %218 : vector<128x1xf32>
    %220 = vector.broadcast %219 : vector<128x1xf32> to vector<128x32xf32>
    %221 = arith.subf %215, %220 : vector<128x32xf32>
    %222 = arith.mulf %221, %221 : vector<128x32xf32>
    %cst_141 = arith.constant dense<0.000000e+00> : vector<128xf32>
    %223 = vector.multi_reduction <add>, %222, %cst_141 [1] : vector<128x32xf32> to vector<128xf32>
    %224 = vector.shape_cast %223 : vector<128xf32> to vector<128x1xf32>
    %cst_142 = arith.constant 3.200000e+01 : f32
    %225 = vector.broadcast %cst_142 : f32 to vector<128x1xf32>
    %226 = arith.divf %224, %225 : vector<128x1xf32>
    %227 = vector.broadcast %219 : vector<128x1xf32> to vector<128x32xf32>
    %228 = arith.subf %215, %227 : vector<128x32xf32>
    %cst_143 = arith.constant 9.99999974E-6 : f32
    %229 = vector.broadcast %cst_143 : f32 to vector<128x1xf32>
    %230 = arith.addf %226, %229 : vector<128x1xf32>
    %231 = math.rsqrt %230 : vector<128x1xf32>
    %232 = vector.broadcast %231 : vector<128x1xf32> to vector<128x32xf32>
    %233 = arith.mulf %228, %232 : vector<128x32xf32>
    %234 = vector.broadcast %15 : vector<1x32xf32> to vector<128x32xf32>
    %235 = arith.mulf %233, %234 : vector<128x32xf32>
    %236 = vector.broadcast %17 : vector<1x32xf32> to vector<128x32xf32>
    %237 = arith.addf %235, %236 : vector<128x32xf32>
    %c0_144 = arith.constant 0 : index
    %c0_145 = arith.constant 0 : index
    %c0_146 = arith.constant 0 : index
    %238 = vector.load %arg8[%c0_144, %c0_145, %c0_146] : memref<2x32x128xf32, #tpu.memory_space<vmem>>, vector<1x32x128xf32>
    %239 = vector.shape_cast %238 : vector<1x32x128xf32> to vector<32x128xf32>
    %cst_147 = arith.constant dense<0.000000e+00> : vector<128x128xf32>
    %240 = tpu.matmul %237, %239, %cst_147 {dimension_numbers = #tpu.dot_dimension_numbers<[1], [0], [0], [1], [0, 0, 1, 1], [], []>} : vector<128x32xf32>, vector<32x128xf32>, vector<128x128xf32> -> vector<128x128xf32>
    %c0_148 = arith.constant 0 : index
    %c0_149 = arith.constant 0 : index
    %c0_150 = arith.constant 0 : index
    %241 = vector.load %arg9[%c0_148, %c0_149, %c0_150] : memref<2x1x128xf32, #tpu.memory_space<vmem>>, vector<1x1x128xf32>
    %242 = vector.shape_cast %241 : vector<1x1x128xf32> to vector<1x128xf32>
    %243 = vector.broadcast %242 : vector<1x128xf32> to vector<128x128xf32>
    %244 = arith.addf %240, %243 : vector<128x128xf32>
    %cst_151 = arith.constant 5.000000e-01 : f32
    %245 = vector.broadcast %cst_151 : f32 to vector<128x128xf32>
    %246 = arith.mulf %245, %244 : vector<128x128xf32>
    %cst_152 = arith.constant 0.707106769 : f32
    %247 = vector.broadcast %cst_152 : f32 to vector<128x128xf32>
    %248 = arith.mulf %244, %247 : vector<128x128xf32>
    %249 = math.erf %248 : vector<128x128xf32>
    %cst_153 = arith.constant 1.000000e+00 : f32
    %250 = vector.broadcast %cst_153 : f32 to vector<128x128xf32>
    %251 = arith.addf %250, %249 : vector<128x128xf32>
    %252 = arith.mulf %246, %251 : vector<128x128xf32>
    %c0_154 = arith.constant 0 : index
    %c0_155 = arith.constant 0 : index
    %c0_156 = arith.constant 0 : index
    %253 = vector.load %arg10[%c0_154, %c0_155, %c0_156] : memref<2x128x32xf32, #tpu.memory_space<vmem>>, vector<1x128x32xf32>
    %254 = vector.shape_cast %253 : vector<1x128x32xf32> to vector<128x32xf32>
    %cst_157 = arith.constant dense<0.000000e+00> : vector<128x32xf32>
    %255 = tpu.matmul %252, %254, %cst_157 {dimension_numbers = #tpu.dot_dimension_numbers<[1], [0], [0], [1], [0, 0, 1, 1], [], []>} : vector<128x128xf32>, vector<128x32xf32>, vector<128x32xf32> -> vector<128x32xf32>
    %256 = arith.addf %215, %255 : vector<128x32xf32>
    %257 = vector.broadcast %21 : vector<1x32xf32> to vector<128x32xf32>
    %258 = arith.addf %256, %257 : vector<128x32xf32>
    %c6_158 = arith.constant 6 : index
    %c0_159 = arith.constant 0 : index
    %c0_160 = arith.constant 0 : index
    %259 = vector.load %arg4[%c6_158, %c0_159, %c0_160] : memref<12x1x32xf32, #tpu.memory_space<vmem>>, vector<1x1x32xf32>
    %260 = vector.shape_cast %259 : vector<1x1x32xf32> to vector<1x32xf32>
    %c7_161 = arith.constant 7 : index
    %c0_162 = arith.constant 0 : index
    %c0_163 = arith.constant 0 : index
    %261 = vector.load %arg4[%c7_161, %c0_162, %c0_163] : memref<12x1x32xf32, #tpu.memory_space<vmem>>, vector<1x1x32xf32>
    %262 = vector.shape_cast %261 : vector<1x1x32xf32> to vector<1x32xf32>
    %c8_164 = arith.constant 8 : index
    %c0_165 = arith.constant 0 : index
    %c0_166 = arith.constant 0 : index
    %263 = vector.load %arg4[%c8_164, %c0_165, %c0_166] : memref<12x1x32xf32, #tpu.memory_space<vmem>>, vector<1x1x32xf32>
    %264 = vector.shape_cast %263 : vector<1x1x32xf32> to vector<1x32xf32>
    %c9_167 = arith.constant 9 : index
    %c0_168 = arith.constant 0 : index
    %c0_169 = arith.constant 0 : index
    %265 = vector.load %arg4[%c9_167, %c0_168, %c0_169] : memref<12x1x32xf32, #tpu.memory_space<vmem>>, vector<1x1x32xf32>
    %266 = vector.shape_cast %265 : vector<1x1x32xf32> to vector<1x32xf32>
    %c10_170 = arith.constant 10 : index
    %c0_171 = arith.constant 0 : index
    %c0_172 = arith.constant 0 : index
    %267 = vector.load %arg4[%c10_170, %c0_171, %c0_172] : memref<12x1x32xf32, #tpu.memory_space<vmem>>, vector<1x1x32xf32>
    %268 = vector.shape_cast %267 : vector<1x1x32xf32> to vector<1x32xf32>
    %c11_173 = arith.constant 11 : index
    %c0_174 = arith.constant 0 : index
    %c0_175 = arith.constant 0 : index
    %269 = vector.load %arg4[%c11_173, %c0_174, %c0_175] : memref<12x1x32xf32, #tpu.memory_space<vmem>>, vector<1x1x32xf32>
    %270 = vector.shape_cast %269 : vector<1x1x32xf32> to vector<1x32xf32>
    %cst_176 = arith.constant dense<0.000000e+00> : vector<128xf32>
    %271 = vector.multi_reduction <add>, %258, %cst_176 [1] : vector<128x32xf32> to vector<128xf32>
    %272 = vector.shape_cast %271 : vector<128xf32> to vector<128x1xf32>
    %cst_177 = arith.constant 3.200000e+01 : f32
    %273 = vector.broadcast %cst_177 : f32 to vector<128x1xf32>
    %274 = arith.divf %272, %273 : vector<128x1xf32>
    %275 = vector.broadcast %274 : vector<128x1xf32> to vector<128x32xf32>
    %276 = arith.subf %258, %275 : vector<128x32xf32>
    %277 = arith.mulf %276, %276 : vector<128x32xf32>
    %cst_178 = arith.constant dense<0.000000e+00> : vector<128xf32>
    %278 = vector.multi_reduction <add>, %277, %cst_178 [1] : vector<128x32xf32> to vector<128xf32>
    %279 = vector.shape_cast %278 : vector<128xf32> to vector<128x1xf32>
    %cst_179 = arith.constant 3.200000e+01 : f32
    %280 = vector.broadcast %cst_179 : f32 to vector<128x1xf32>
    %281 = arith.divf %279, %280 : vector<128x1xf32>
    %282 = vector.broadcast %274 : vector<128x1xf32> to vector<128x32xf32>
    %283 = arith.subf %258, %282 : vector<128x32xf32>
    %cst_180 = arith.constant 9.99999974E-6 : f32
    %284 = vector.broadcast %cst_180 : f32 to vector<128x1xf32>
    %285 = arith.addf %281, %284 : vector<128x1xf32>
    %286 = math.rsqrt %285 : vector<128x1xf32>
    %287 = vector.broadcast %286 : vector<128x1xf32> to vector<128x32xf32>
    %288 = arith.mulf %283, %287 : vector<128x32xf32>
    %289 = vector.broadcast %260 : vector<1x32xf32> to vector<128x32xf32>
    %290 = arith.mulf %288, %289 : vector<128x32xf32>
    %291 = vector.broadcast %262 : vector<1x32xf32> to vector<128x32xf32>
    %292 = arith.addf %290, %291 : vector<128x32xf32>
    %cst_181 = arith.constant 0.000000e+00 : f32
    %293 = vector.broadcast %cst_181 : f32 to vector<128x32xf32>
    %c12 = arith.constant 12 : index
    %c0_182 = arith.constant 0 : index
    %c0_183 = arith.constant 0 : index
    %294 = vector.load %arg5[%c12, %c0_182, %c0_183] : memref<24x32x8xf32, #tpu.memory_space<vmem>>, vector<1x32x8xf32>
    %295 = vector.shape_cast %294 : vector<1x32x8xf32> to vector<32x8xf32>
    %cst_184 = arith.constant dense<0.000000e+00> : vector<128x8xf32>
    %296 = tpu.matmul %292, %295, %cst_184 {dimension_numbers = #tpu.dot_dimension_numbers<[1], [0], [0], [1], [0, 0, 1, 1], [], []>} : vector<128x32xf32>, vector<32x8xf32>, vector<128x8xf32> -> vector<128x8xf32>
    %c12_185 = arith.constant 12 : index
    %c0_186 = arith.constant 0 : index
    %c0_187 = arith.constant 0 : index
    %297 = vector.load %arg6[%c12_185, %c0_186, %c0_187] : memref<24x1x8xf32, #tpu.memory_space<vmem>>, vector<1x1x8xf32>
    %298 = vector.shape_cast %297 : vector<1x1x8xf32> to vector<1x8xf32>
    %299 = vector.broadcast %298 : vector<1x8xf32> to vector<128x8xf32>
    %300 = arith.addf %296, %299 : vector<128x8xf32>
    %c16 = arith.constant 16 : index
    %c0_188 = arith.constant 0 : index
    %c0_189 = arith.constant 0 : index
    %301 = vector.load %arg5[%c16, %c0_188, %c0_189] : memref<24x32x8xf32, #tpu.memory_space<vmem>>, vector<1x32x8xf32>
    %302 = vector.shape_cast %301 : vector<1x32x8xf32> to vector<32x8xf32>
    %cst_190 = arith.constant dense<0.000000e+00> : vector<128x8xf32>
    %303 = tpu.matmul %292, %302, %cst_190 {dimension_numbers = #tpu.dot_dimension_numbers<[1], [0], [0], [1], [0, 0, 1, 1], [], []>} : vector<128x32xf32>, vector<32x8xf32>, vector<128x8xf32> -> vector<128x8xf32>
    %c16_191 = arith.constant 16 : index
    %c0_192 = arith.constant 0 : index
    %c0_193 = arith.constant 0 : index
    %304 = vector.load %arg6[%c16_191, %c0_192, %c0_193] : memref<24x1x8xf32, #tpu.memory_space<vmem>>, vector<1x1x8xf32>
    %305 = vector.shape_cast %304 : vector<1x1x8xf32> to vector<1x8xf32>
    %306 = vector.broadcast %305 : vector<1x8xf32> to vector<128x8xf32>
    %307 = arith.addf %303, %306 : vector<128x8xf32>
    %c20 = arith.constant 20 : index
    %c0_194 = arith.constant 0 : index
    %c0_195 = arith.constant 0 : index
    %308 = vector.load %arg5[%c20, %c0_194, %c0_195] : memref<24x32x8xf32, #tpu.memory_space<vmem>>, vector<1x32x8xf32>
    %309 = vector.shape_cast %308 : vector<1x32x8xf32> to vector<32x8xf32>
    %cst_196 = arith.constant dense<0.000000e+00> : vector<128x8xf32>
    %310 = tpu.matmul %292, %309, %cst_196 {dimension_numbers = #tpu.dot_dimension_numbers<[1], [0], [0], [1], [0, 0, 1, 1], [], []>} : vector<128x32xf32>, vector<32x8xf32>, vector<128x8xf32> -> vector<128x8xf32>
    %c20_197 = arith.constant 20 : index
    %c0_198 = arith.constant 0 : index
    %c0_199 = arith.constant 0 : index
    %311 = vector.load %arg6[%c20_197, %c0_198, %c0_199] : memref<24x1x8xf32, #tpu.memory_space<vmem>>, vector<1x1x8xf32>
    %312 = vector.shape_cast %311 : vector<1x1x8xf32> to vector<1x8xf32>
    %313 = vector.broadcast %312 : vector<1x8xf32> to vector<128x8xf32>
    %314 = arith.addf %310, %313 : vector<128x8xf32>
    %315 = vector.shape_cast %300 : vector<128x8xf32> to vector<8x16x8xf32>
    %316 = vector.shape_cast %307 : vector<128x8xf32> to vector<8x16x8xf32>
    %317 = vector.shape_cast %314 : vector<128x8xf32> to vector<8x16x8xf32>
    "tpu.trace_start"() <{level = 10 : i32, message = "bnd,bmd->bnm"}> : () -> ()
    %cst_200 = arith.constant dense<0.000000e+00> : vector<8x16x16xf32>
    %318 = tpu.matmul %315, %316, %cst_200 {dimension_numbers = #tpu.dot_dimension_numbers<[2], [2], [1], [1], [0, 0, 0, 1, 1, 1], [0], [0]>} : vector<8x16x8xf32>, vector<8x16x8xf32>, vector<8x16x16xf32> -> vector<8x16x16xf32>
    "tpu.trace_stop"() : () -> ()
    %cst_201 = arith.constant 0.353553385 : f32
    %319 = vector.broadcast %cst_201 : f32 to vector<8x16x16xf32>
    %320 = arith.mulf %318, %319 : vector<8x16x16xf32>
    %cst_202 = arith.constant dense<0xFF800000> : vector<8x16xf32>
    %321 = vector.multi_reduction <maximumf>, %320, %cst_202 [2] : vector<8x16x16xf32> to vector<8x16xf32>
    %322 = vector.shape_cast %321 : vector<8x16xf32> to vector<8x16x1xf32>
    %323 = vector.broadcast %322 : vector<8x16x1xf32> to vector<8x16x16xf32>
    %324 = arith.subf %320, %323 : vector<8x16x16xf32>
    %325 = math.exp %324 : vector<8x16x16xf32>
    %cst_203 = arith.constant dense<0.000000e+00> : vector<8x16xf32>
    %326 = vector.multi_reduction <add>, %325, %cst_203 [2] : vector<8x16x16xf32> to vector<8x16xf32>
    %327 = vector.shape_cast %326 : vector<8x16xf32> to vector<8x16x1xf32>
    %328 = vector.broadcast %327 : vector<8x16x1xf32> to vector<8x16x16xf32>
    %329 = arith.divf %325, %328 : vector<8x16x16xf32>
    "tpu.trace_start"() <{level = 10 : i32, message = "bnm,bmd->bnd"}> : () -> ()
    %cst_204 = arith.constant dense<0.000000e+00> : vector<8x16x8xf32>
    %330 = tpu.matmul %329, %317, %cst_204 {dimension_numbers = #tpu.dot_dimension_numbers<[2], [1], [1], [2], [0, 0, 0, 1, 1, 2], [0], [0]>} : vector<8x16x16xf32>, vector<8x16x8xf32>, vector<8x16x8xf32> -> vector<8x16x8xf32>
    "tpu.trace_stop"() : () -> ()
    %331 = vector.shape_cast %330 : vector<8x16x8xf32> to vector<128x8xf32>
    %c4_205 = arith.constant 4 : index
    %c0_206 = arith.constant 0 : index
    %c0_207 = arith.constant 0 : index
    %332 = vector.load %arg7[%c4_205, %c0_206, %c0_207] : memref<8x8x32xf32, #tpu.memory_space<vmem>>, vector<1x8x32xf32>
    %333 = vector.shape_cast %332 : vector<1x8x32xf32> to vector<8x32xf32>
    %cst_208 = arith.constant dense<0.000000e+00> : vector<128x32xf32>
    %334 = tpu.matmul %331, %333, %cst_208 {dimension_numbers = #tpu.dot_dimension_numbers<[1], [0], [0], [1], [0, 0, 1, 1], [], []>} : vector<128x8xf32>, vector<8x32xf32>, vector<128x32xf32> -> vector<128x32xf32>
    %335 = arith.addf %293, %334 : vector<128x32xf32>
    %c13 = arith.constant 13 : index
    %c0_209 = arith.constant 0 : index
    %c0_210 = arith.constant 0 : index
    %336 = vector.load %arg5[%c13, %c0_209, %c0_210] : memref<24x32x8xf32, #tpu.memory_space<vmem>>, vector<1x32x8xf32>
    %337 = vector.shape_cast %336 : vector<1x32x8xf32> to vector<32x8xf32>
    %cst_211 = arith.constant dense<0.000000e+00> : vector<128x8xf32>
    %338 = tpu.matmul %292, %337, %cst_211 {dimension_numbers = #tpu.dot_dimension_numbers<[1], [0], [0], [1], [0, 0, 1, 1], [], []>} : vector<128x32xf32>, vector<32x8xf32>, vector<128x8xf32> -> vector<128x8xf32>
    %c13_212 = arith.constant 13 : index
    %c0_213 = arith.constant 0 : index
    %c0_214 = arith.constant 0 : index
    %339 = vector.load %arg6[%c13_212, %c0_213, %c0_214] : memref<24x1x8xf32, #tpu.memory_space<vmem>>, vector<1x1x8xf32>
    %340 = vector.shape_cast %339 : vector<1x1x8xf32> to vector<1x8xf32>
    %341 = vector.broadcast %340 : vector<1x8xf32> to vector<128x8xf32>
    %342 = arith.addf %338, %341 : vector<128x8xf32>
    %c17 = arith.constant 17 : index
    %c0_215 = arith.constant 0 : index
    %c0_216 = arith.constant 0 : index
    %343 = vector.load %arg5[%c17, %c0_215, %c0_216] : memref<24x32x8xf32, #tpu.memory_space<vmem>>, vector<1x32x8xf32>
    %344 = vector.shape_cast %343 : vector<1x32x8xf32> to vector<32x8xf32>
    %cst_217 = arith.constant dense<0.000000e+00> : vector<128x8xf32>
    %345 = tpu.matmul %292, %344, %cst_217 {dimension_numbers = #tpu.dot_dimension_numbers<[1], [0], [0], [1], [0, 0, 1, 1], [], []>} : vector<128x32xf32>, vector<32x8xf32>, vector<128x8xf32> -> vector<128x8xf32>
    %c17_218 = arith.constant 17 : index
    %c0_219 = arith.constant 0 : index
    %c0_220 = arith.constant 0 : index
    %346 = vector.load %arg6[%c17_218, %c0_219, %c0_220] : memref<24x1x8xf32, #tpu.memory_space<vmem>>, vector<1x1x8xf32>
    %347 = vector.shape_cast %346 : vector<1x1x8xf32> to vector<1x8xf32>
    %348 = vector.broadcast %347 : vector<1x8xf32> to vector<128x8xf32>
    %349 = arith.addf %345, %348 : vector<128x8xf32>
    %c21 = arith.constant 21 : index
    %c0_221 = arith.constant 0 : index
    %c0_222 = arith.constant 0 : index
    %350 = vector.load %arg5[%c21, %c0_221, %c0_222] : memref<24x32x8xf32, #tpu.memory_space<vmem>>, vector<1x32x8xf32>
    %351 = vector.shape_cast %350 : vector<1x32x8xf32> to vector<32x8xf32>
    %cst_223 = arith.constant dense<0.000000e+00> : vector<128x8xf32>
    %352 = tpu.matmul %292, %351, %cst_223 {dimension_numbers = #tpu.dot_dimension_numbers<[1], [0], [0], [1], [0, 0, 1, 1], [], []>} : vector<128x32xf32>, vector<32x8xf32>, vector<128x8xf32> -> vector<128x8xf32>
    %c21_224 = arith.constant 21 : index
    %c0_225 = arith.constant 0 : index
    %c0_226 = arith.constant 0 : index
    %353 = vector.load %arg6[%c21_224, %c0_225, %c0_226] : memref<24x1x8xf32, #tpu.memory_space<vmem>>, vector<1x1x8xf32>
    %354 = vector.shape_cast %353 : vector<1x1x8xf32> to vector<1x8xf32>
    %355 = vector.broadcast %354 : vector<1x8xf32> to vector<128x8xf32>
    %356 = arith.addf %352, %355 : vector<128x8xf32>
    %357 = vector.shape_cast %342 : vector<128x8xf32> to vector<8x16x8xf32>
    %358 = vector.shape_cast %349 : vector<128x8xf32> to vector<8x16x8xf32>
    %359 = vector.shape_cast %356 : vector<128x8xf32> to vector<8x16x8xf32>
    "tpu.trace_start"() <{level = 10 : i32, message = "bnd,bmd->bnm"}> : () -> ()
    %cst_227 = arith.constant dense<0.000000e+00> : vector<8x16x16xf32>
    %360 = tpu.matmul %357, %358, %cst_227 {dimension_numbers = #tpu.dot_dimension_numbers<[2], [2], [1], [1], [0, 0, 0, 1, 1, 1], [0], [0]>} : vector<8x16x8xf32>, vector<8x16x8xf32>, vector<8x16x16xf32> -> vector<8x16x16xf32>
    "tpu.trace_stop"() : () -> ()
    %cst_228 = arith.constant 0.353553385 : f32
    %361 = vector.broadcast %cst_228 : f32 to vector<8x16x16xf32>
    %362 = arith.mulf %360, %361 : vector<8x16x16xf32>
    %cst_229 = arith.constant dense<0xFF800000> : vector<8x16xf32>
    %363 = vector.multi_reduction <maximumf>, %362, %cst_229 [2] : vector<8x16x16xf32> to vector<8x16xf32>
    %364 = vector.shape_cast %363 : vector<8x16xf32> to vector<8x16x1xf32>
    %365 = vector.broadcast %364 : vector<8x16x1xf32> to vector<8x16x16xf32>
    %366 = arith.subf %362, %365 : vector<8x16x16xf32>
    %367 = math.exp %366 : vector<8x16x16xf32>
    %cst_230 = arith.constant dense<0.000000e+00> : vector<8x16xf32>
    %368 = vector.multi_reduction <add>, %367, %cst_230 [2] : vector<8x16x16xf32> to vector<8x16xf32>
    %369 = vector.shape_cast %368 : vector<8x16xf32> to vector<8x16x1xf32>
    %370 = vector.broadcast %369 : vector<8x16x1xf32> to vector<8x16x16xf32>
    %371 = arith.divf %367, %370 : vector<8x16x16xf32>
    "tpu.trace_start"() <{level = 10 : i32, message = "bnm,bmd->bnd"}> : () -> ()
    %cst_231 = arith.constant dense<0.000000e+00> : vector<8x16x8xf32>
    %372 = tpu.matmul %371, %359, %cst_231 {dimension_numbers = #tpu.dot_dimension_numbers<[2], [1], [1], [2], [0, 0, 0, 1, 1, 2], [0], [0]>} : vector<8x16x16xf32>, vector<8x16x8xf32>, vector<8x16x8xf32> -> vector<8x16x8xf32>
    "tpu.trace_stop"() : () -> ()
    %373 = vector.shape_cast %372 : vector<8x16x8xf32> to vector<128x8xf32>
    %c5_232 = arith.constant 5 : index
    %c0_233 = arith.constant 0 : index
    %c0_234 = arith.constant 0 : index
    %374 = vector.load %arg7[%c5_232, %c0_233, %c0_234] : memref<8x8x32xf32, #tpu.memory_space<vmem>>, vector<1x8x32xf32>
    %375 = vector.shape_cast %374 : vector<1x8x32xf32> to vector<8x32xf32>
    %cst_235 = arith.constant dense<0.000000e+00> : vector<128x32xf32>
    %376 = tpu.matmul %373, %375, %cst_235 {dimension_numbers = #tpu.dot_dimension_numbers<[1], [0], [0], [1], [0, 0, 1, 1], [], []>} : vector<128x8xf32>, vector<8x32xf32>, vector<128x32xf32> -> vector<128x32xf32>
    %377 = arith.addf %335, %376 : vector<128x32xf32>
    %c14 = arith.constant 14 : index
    %c0_236 = arith.constant 0 : index
    %c0_237 = arith.constant 0 : index
    %378 = vector.load %arg5[%c14, %c0_236, %c0_237] : memref<24x32x8xf32, #tpu.memory_space<vmem>>, vector<1x32x8xf32>
    %379 = vector.shape_cast %378 : vector<1x32x8xf32> to vector<32x8xf32>
    %cst_238 = arith.constant dense<0.000000e+00> : vector<128x8xf32>
    %380 = tpu.matmul %292, %379, %cst_238 {dimension_numbers = #tpu.dot_dimension_numbers<[1], [0], [0], [1], [0, 0, 1, 1], [], []>} : vector<128x32xf32>, vector<32x8xf32>, vector<128x8xf32> -> vector<128x8xf32>
    %c14_239 = arith.constant 14 : index
    %c0_240 = arith.constant 0 : index
    %c0_241 = arith.constant 0 : index
    %381 = vector.load %arg6[%c14_239, %c0_240, %c0_241] : memref<24x1x8xf32, #tpu.memory_space<vmem>>, vector<1x1x8xf32>
    %382 = vector.shape_cast %381 : vector<1x1x8xf32> to vector<1x8xf32>
    %383 = vector.broadcast %382 : vector<1x8xf32> to vector<128x8xf32>
    %384 = arith.addf %380, %383 : vector<128x8xf32>
    %c18 = arith.constant 18 : index
    %c0_242 = arith.constant 0 : index
    %c0_243 = arith.constant 0 : index
    %385 = vector.load %arg5[%c18, %c0_242, %c0_243] : memref<24x32x8xf32, #tpu.memory_space<vmem>>, vector<1x32x8xf32>
    %386 = vector.shape_cast %385 : vector<1x32x8xf32> to vector<32x8xf32>
    %cst_244 = arith.constant dense<0.000000e+00> : vector<128x8xf32>
    %387 = tpu.matmul %292, %386, %cst_244 {dimension_numbers = #tpu.dot_dimension_numbers<[1], [0], [0], [1], [0, 0, 1, 1], [], []>} : vector<128x32xf32>, vector<32x8xf32>, vector<128x8xf32> -> vector<128x8xf32>
    %c18_245 = arith.constant 18 : index
    %c0_246 = arith.constant 0 : index
    %c0_247 = arith.constant 0 : index
    %388 = vector.load %arg6[%c18_245, %c0_246, %c0_247] : memref<24x1x8xf32, #tpu.memory_space<vmem>>, vector<1x1x8xf32>
    %389 = vector.shape_cast %388 : vector<1x1x8xf32> to vector<1x8xf32>
    %390 = vector.broadcast %389 : vector<1x8xf32> to vector<128x8xf32>
    %391 = arith.addf %387, %390 : vector<128x8xf32>
    %c22 = arith.constant 22 : index
    %c0_248 = arith.constant 0 : index
    %c0_249 = arith.constant 0 : index
    %392 = vector.load %arg5[%c22, %c0_248, %c0_249] : memref<24x32x8xf32, #tpu.memory_space<vmem>>, vector<1x32x8xf32>
    %393 = vector.shape_cast %392 : vector<1x32x8xf32> to vector<32x8xf32>
    %cst_250 = arith.constant dense<0.000000e+00> : vector<128x8xf32>
    %394 = tpu.matmul %292, %393, %cst_250 {dimension_numbers = #tpu.dot_dimension_numbers<[1], [0], [0], [1], [0, 0, 1, 1], [], []>} : vector<128x32xf32>, vector<32x8xf32>, vector<128x8xf32> -> vector<128x8xf32>
    %c22_251 = arith.constant 22 : index
    %c0_252 = arith.constant 0 : index
    %c0_253 = arith.constant 0 : index
    %395 = vector.load %arg6[%c22_251, %c0_252, %c0_253] : memref<24x1x8xf32, #tpu.memory_space<vmem>>, vector<1x1x8xf32>
    %396 = vector.shape_cast %395 : vector<1x1x8xf32> to vector<1x8xf32>
    %397 = vector.broadcast %396 : vector<1x8xf32> to vector<128x8xf32>
    %398 = arith.addf %394, %397 : vector<128x8xf32>
    %399 = vector.shape_cast %384 : vector<128x8xf32> to vector<8x16x8xf32>
    %400 = vector.shape_cast %391 : vector<128x8xf32> to vector<8x16x8xf32>
    %401 = vector.shape_cast %398 : vector<128x8xf32> to vector<8x16x8xf32>
    "tpu.trace_start"() <{level = 10 : i32, message = "bnd,bmd->bnm"}> : () -> ()
    %cst_254 = arith.constant dense<0.000000e+00> : vector<8x16x16xf32>
    %402 = tpu.matmul %399, %400, %cst_254 {dimension_numbers = #tpu.dot_dimension_numbers<[2], [2], [1], [1], [0, 0, 0, 1, 1, 1], [0], [0]>} : vector<8x16x8xf32>, vector<8x16x8xf32>, vector<8x16x16xf32> -> vector<8x16x16xf32>
    "tpu.trace_stop"() : () -> ()
    %cst_255 = arith.constant 0.353553385 : f32
    %403 = vector.broadcast %cst_255 : f32 to vector<8x16x16xf32>
    %404 = arith.mulf %402, %403 : vector<8x16x16xf32>
    %cst_256 = arith.constant dense<0xFF800000> : vector<8x16xf32>
    %405 = vector.multi_reduction <maximumf>, %404, %cst_256 [2] : vector<8x16x16xf32> to vector<8x16xf32>
    %406 = vector.shape_cast %405 : vector<8x16xf32> to vector<8x16x1xf32>
    %407 = vector.broadcast %406 : vector<8x16x1xf32> to vector<8x16x16xf32>
    %408 = arith.subf %404, %407 : vector<8x16x16xf32>
    %409 = math.exp %408 : vector<8x16x16xf32>
    %cst_257 = arith.constant dense<0.000000e+00> : vector<8x16xf32>
    %410 = vector.multi_reduction <add>, %409, %cst_257 [2] : vector<8x16x16xf32> to vector<8x16xf32>
    %411 = vector.shape_cast %410 : vector<8x16xf32> to vector<8x16x1xf32>
    %412 = vector.broadcast %411 : vector<8x16x1xf32> to vector<8x16x16xf32>
    %413 = arith.divf %409, %412 : vector<8x16x16xf32>
    "tpu.trace_start"() <{level = 10 : i32, message = "bnm,bmd->bnd"}> : () -> ()
    %cst_258 = arith.constant dense<0.000000e+00> : vector<8x16x8xf32>
    %414 = tpu.matmul %413, %401, %cst_258 {dimension_numbers = #tpu.dot_dimension_numbers<[2], [1], [1], [2], [0, 0, 0, 1, 1, 2], [0], [0]>} : vector<8x16x16xf32>, vector<8x16x8xf32>, vector<8x16x8xf32> -> vector<8x16x8xf32>
    "tpu.trace_stop"() : () -> ()
    %415 = vector.shape_cast %414 : vector<8x16x8xf32> to vector<128x8xf32>
    %c6_259 = arith.constant 6 : index
    %c0_260 = arith.constant 0 : index
    %c0_261 = arith.constant 0 : index
    %416 = vector.load %arg7[%c6_259, %c0_260, %c0_261] : memref<8x8x32xf32, #tpu.memory_space<vmem>>, vector<1x8x32xf32>
    %417 = vector.shape_cast %416 : vector<1x8x32xf32> to vector<8x32xf32>
    %cst_262 = arith.constant dense<0.000000e+00> : vector<128x32xf32>
    %418 = tpu.matmul %415, %417, %cst_262 {dimension_numbers = #tpu.dot_dimension_numbers<[1], [0], [0], [1], [0, 0, 1, 1], [], []>} : vector<128x8xf32>, vector<8x32xf32>, vector<128x32xf32> -> vector<128x32xf32>
    %419 = arith.addf %377, %418 : vector<128x32xf32>
    %c15 = arith.constant 15 : index
    %c0_263 = arith.constant 0 : index
    %c0_264 = arith.constant 0 : index
    %420 = vector.load %arg5[%c15, %c0_263, %c0_264] : memref<24x32x8xf32, #tpu.memory_space<vmem>>, vector<1x32x8xf32>
    %421 = vector.shape_cast %420 : vector<1x32x8xf32> to vector<32x8xf32>
    %cst_265 = arith.constant dense<0.000000e+00> : vector<128x8xf32>
    %422 = tpu.matmul %292, %421, %cst_265 {dimension_numbers = #tpu.dot_dimension_numbers<[1], [0], [0], [1], [0, 0, 1, 1], [], []>} : vector<128x32xf32>, vector<32x8xf32>, vector<128x8xf32> -> vector<128x8xf32>
    %c15_266 = arith.constant 15 : index
    %c0_267 = arith.constant 0 : index
    %c0_268 = arith.constant 0 : index
    %423 = vector.load %arg6[%c15_266, %c0_267, %c0_268] : memref<24x1x8xf32, #tpu.memory_space<vmem>>, vector<1x1x8xf32>
    %424 = vector.shape_cast %423 : vector<1x1x8xf32> to vector<1x8xf32>
    %425 = vector.broadcast %424 : vector<1x8xf32> to vector<128x8xf32>
    %426 = arith.addf %422, %425 : vector<128x8xf32>
    %c19 = arith.constant 19 : index
    %c0_269 = arith.constant 0 : index
    %c0_270 = arith.constant 0 : index
    %427 = vector.load %arg5[%c19, %c0_269, %c0_270] : memref<24x32x8xf32, #tpu.memory_space<vmem>>, vector<1x32x8xf32>
    %428 = vector.shape_cast %427 : vector<1x32x8xf32> to vector<32x8xf32>
    %cst_271 = arith.constant dense<0.000000e+00> : vector<128x8xf32>
    %429 = tpu.matmul %292, %428, %cst_271 {dimension_numbers = #tpu.dot_dimension_numbers<[1], [0], [0], [1], [0, 0, 1, 1], [], []>} : vector<128x32xf32>, vector<32x8xf32>, vector<128x8xf32> -> vector<128x8xf32>
    %c19_272 = arith.constant 19 : index
    %c0_273 = arith.constant 0 : index
    %c0_274 = arith.constant 0 : index
    %430 = vector.load %arg6[%c19_272, %c0_273, %c0_274] : memref<24x1x8xf32, #tpu.memory_space<vmem>>, vector<1x1x8xf32>
    %431 = vector.shape_cast %430 : vector<1x1x8xf32> to vector<1x8xf32>
    %432 = vector.broadcast %431 : vector<1x8xf32> to vector<128x8xf32>
    %433 = arith.addf %429, %432 : vector<128x8xf32>
    %c23 = arith.constant 23 : index
    %c0_275 = arith.constant 0 : index
    %c0_276 = arith.constant 0 : index
    %434 = vector.load %arg5[%c23, %c0_275, %c0_276] : memref<24x32x8xf32, #tpu.memory_space<vmem>>, vector<1x32x8xf32>
    %435 = vector.shape_cast %434 : vector<1x32x8xf32> to vector<32x8xf32>
    %cst_277 = arith.constant dense<0.000000e+00> : vector<128x8xf32>
    %436 = tpu.matmul %292, %435, %cst_277 {dimension_numbers = #tpu.dot_dimension_numbers<[1], [0], [0], [1], [0, 0, 1, 1], [], []>} : vector<128x32xf32>, vector<32x8xf32>, vector<128x8xf32> -> vector<128x8xf32>
    %c23_278 = arith.constant 23 : index
    %c0_279 = arith.constant 0 : index
    %c0_280 = arith.constant 0 : index
    %437 = vector.load %arg6[%c23_278, %c0_279, %c0_280] : memref<24x1x8xf32, #tpu.memory_space<vmem>>, vector<1x1x8xf32>
    %438 = vector.shape_cast %437 : vector<1x1x8xf32> to vector<1x8xf32>
    %439 = vector.broadcast %438 : vector<1x8xf32> to vector<128x8xf32>
    %440 = arith.addf %436, %439 : vector<128x8xf32>
    %441 = vector.shape_cast %426 : vector<128x8xf32> to vector<8x16x8xf32>
    %442 = vector.shape_cast %433 : vector<128x8xf32> to vector<8x16x8xf32>
    %443 = vector.shape_cast %440 : vector<128x8xf32> to vector<8x16x8xf32>
    "tpu.trace_start"() <{level = 10 : i32, message = "bnd,bmd->bnm"}> : () -> ()
    %cst_281 = arith.constant dense<0.000000e+00> : vector<8x16x16xf32>
    %444 = tpu.matmul %441, %442, %cst_281 {dimension_numbers = #tpu.dot_dimension_numbers<[2], [2], [1], [1], [0, 0, 0, 1, 1, 1], [0], [0]>} : vector<8x16x8xf32>, vector<8x16x8xf32>, vector<8x16x16xf32> -> vector<8x16x16xf32>
    "tpu.trace_stop"() : () -> ()
    %cst_282 = arith.constant 0.353553385 : f32
    %445 = vector.broadcast %cst_282 : f32 to vector<8x16x16xf32>
    %446 = arith.mulf %444, %445 : vector<8x16x16xf32>
    %cst_283 = arith.constant dense<0xFF800000> : vector<8x16xf32>
    %447 = vector.multi_reduction <maximumf>, %446, %cst_283 [2] : vector<8x16x16xf32> to vector<8x16xf32>
    %448 = vector.shape_cast %447 : vector<8x16xf32> to vector<8x16x1xf32>
    %449 = vector.broadcast %448 : vector<8x16x1xf32> to vector<8x16x16xf32>
    %450 = arith.subf %446, %449 : vector<8x16x16xf32>
    %451 = math.exp %450 : vector<8x16x16xf32>
    %cst_284 = arith.constant dense<0.000000e+00> : vector<8x16xf32>
    %452 = vector.multi_reduction <add>, %451, %cst_284 [2] : vector<8x16x16xf32> to vector<8x16xf32>
    %453 = vector.shape_cast %452 : vector<8x16xf32> to vector<8x16x1xf32>
    %454 = vector.broadcast %453 : vector<8x16x1xf32> to vector<8x16x16xf32>
    %455 = arith.divf %451, %454 : vector<8x16x16xf32>
    "tpu.trace_start"() <{level = 10 : i32, message = "bnm,bmd->bnd"}> : () -> ()
    %cst_285 = arith.constant dense<0.000000e+00> : vector<8x16x8xf32>
    %456 = tpu.matmul %455, %443, %cst_285 {dimension_numbers = #tpu.dot_dimension_numbers<[2], [1], [1], [2], [0, 0, 0, 1, 1, 2], [0], [0]>} : vector<8x16x16xf32>, vector<8x16x8xf32>, vector<8x16x8xf32> -> vector<8x16x8xf32>
    "tpu.trace_stop"() : () -> ()
    %457 = vector.shape_cast %456 : vector<8x16x8xf32> to vector<128x8xf32>
    %c7_286 = arith.constant 7 : index
    %c0_287 = arith.constant 0 : index
    %c0_288 = arith.constant 0 : index
    %458 = vector.load %arg7[%c7_286, %c0_287, %c0_288] : memref<8x8x32xf32, #tpu.memory_space<vmem>>, vector<1x8x32xf32>
    %459 = vector.shape_cast %458 : vector<1x8x32xf32> to vector<8x32xf32>
    %cst_289 = arith.constant dense<0.000000e+00> : vector<128x32xf32>
    %460 = tpu.matmul %457, %459, %cst_289 {dimension_numbers = #tpu.dot_dimension_numbers<[1], [0], [0], [1], [0, 0, 1, 1], [], []>} : vector<128x8xf32>, vector<8x32xf32>, vector<128x32xf32> -> vector<128x32xf32>
    %461 = arith.addf %419, %460 : vector<128x32xf32>
    %462 = arith.addf %258, %461 : vector<128x32xf32>
    %463 = vector.broadcast %268 : vector<1x32xf32> to vector<128x32xf32>
    %464 = arith.addf %462, %463 : vector<128x32xf32>
    %cst_290 = arith.constant dense<0.000000e+00> : vector<128xf32>
    %465 = vector.multi_reduction <add>, %464, %cst_290 [1] : vector<128x32xf32> to vector<128xf32>
    %466 = vector.shape_cast %465 : vector<128xf32> to vector<128x1xf32>
    %cst_291 = arith.constant 3.200000e+01 : f32
    %467 = vector.broadcast %cst_291 : f32 to vector<128x1xf32>
    %468 = arith.divf %466, %467 : vector<128x1xf32>
    %469 = vector.broadcast %468 : vector<128x1xf32> to vector<128x32xf32>
    %470 = arith.subf %464, %469 : vector<128x32xf32>
    %471 = arith.mulf %470, %470 : vector<128x32xf32>
    %cst_292 = arith.constant dense<0.000000e+00> : vector<128xf32>
    %472 = vector.multi_reduction <add>, %471, %cst_292 [1] : vector<128x32xf32> to vector<128xf32>
    %473 = vector.shape_cast %472 : vector<128xf32> to vector<128x1xf32>
    %cst_293 = arith.constant 3.200000e+01 : f32
    %474 = vector.broadcast %cst_293 : f32 to vector<128x1xf32>
    %475 = arith.divf %473, %474 : vector<128x1xf32>
    %476 = vector.broadcast %468 : vector<128x1xf32> to vector<128x32xf32>
    %477 = arith.subf %464, %476 : vector<128x32xf32>
    %cst_294 = arith.constant 9.99999974E-6 : f32
    %478 = vector.broadcast %cst_294 : f32 to vector<128x1xf32>
    %479 = arith.addf %475, %478 : vector<128x1xf32>
    %480 = math.rsqrt %479 : vector<128x1xf32>
    %481 = vector.broadcast %480 : vector<128x1xf32> to vector<128x32xf32>
    %482 = arith.mulf %477, %481 : vector<128x32xf32>
    %483 = vector.broadcast %264 : vector<1x32xf32> to vector<128x32xf32>
    %484 = arith.mulf %482, %483 : vector<128x32xf32>
    %485 = vector.broadcast %266 : vector<1x32xf32> to vector<128x32xf32>
    %486 = arith.addf %484, %485 : vector<128x32xf32>
    %c1_295 = arith.constant 1 : index
    %c0_296 = arith.constant 0 : index
    %c0_297 = arith.constant 0 : index
    %487 = vector.load %arg8[%c1_295, %c0_296, %c0_297] : memref<2x32x128xf32, #tpu.memory_space<vmem>>, vector<1x32x128xf32>
    %488 = vector.shape_cast %487 : vector<1x32x128xf32> to vector<32x128xf32>
    %cst_298 = arith.constant dense<0.000000e+00> : vector<128x128xf32>
    %489 = tpu.matmul %486, %488, %cst_298 {dimension_numbers = #tpu.dot_dimension_numbers<[1], [0], [0], [1], [0, 0, 1, 1], [], []>} : vector<128x32xf32>, vector<32x128xf32>, vector<128x128xf32> -> vector<128x128xf32>
    %c1_299 = arith.constant 1 : index
    %c0_300 = arith.constant 0 : index
    %c0_301 = arith.constant 0 : index
    %490 = vector.load %arg9[%c1_299, %c0_300, %c0_301] : memref<2x1x128xf32, #tpu.memory_space<vmem>>, vector<1x1x128xf32>
    %491 = vector.shape_cast %490 : vector<1x1x128xf32> to vector<1x128xf32>
    %492 = vector.broadcast %491 : vector<1x128xf32> to vector<128x128xf32>
    %493 = arith.addf %489, %492 : vector<128x128xf32>
    %cst_302 = arith.constant 5.000000e-01 : f32
    %494 = vector.broadcast %cst_302 : f32 to vector<128x128xf32>
    %495 = arith.mulf %494, %493 : vector<128x128xf32>
    %cst_303 = arith.constant 0.707106769 : f32
    %496 = vector.broadcast %cst_303 : f32 to vector<128x128xf32>
    %497 = arith.mulf %493, %496 : vector<128x128xf32>
    %498 = math.erf %497 : vector<128x128xf32>
    %cst_304 = arith.constant 1.000000e+00 : f32
    %499 = vector.broadcast %cst_304 : f32 to vector<128x128xf32>
    %500 = arith.addf %499, %498 : vector<128x128xf32>
    %501 = arith.mulf %495, %500 : vector<128x128xf32>
    %c1_305 = arith.constant 1 : index
    %c0_306 = arith.constant 0 : index
    %c0_307 = arith.constant 0 : index
    %502 = vector.load %arg10[%c1_305, %c0_306, %c0_307] : memref<2x128x32xf32, #tpu.memory_space<vmem>>, vector<1x128x32xf32>
    %503 = vector.shape_cast %502 : vector<1x128x32xf32> to vector<128x32xf32>
    %cst_308 = arith.constant dense<0.000000e+00> : vector<128x32xf32>
    %504 = tpu.matmul %501, %503, %cst_308 {dimension_numbers = #tpu.dot_dimension_numbers<[1], [0], [0], [1], [0, 0, 1, 1], [], []>} : vector<128x128xf32>, vector<128x32xf32>, vector<128x32xf32> -> vector<128x32xf32>
    %505 = arith.addf %464, %504 : vector<128x32xf32>
    %506 = vector.broadcast %270 : vector<1x32xf32> to vector<128x32xf32>
    %507 = arith.addf %505, %506 : vector<128x32xf32>
    %508 = vector.shape_cast %507 : vector<128x32xf32> to vector<8x16x32xf32>
    %cst_309 = arith.constant dense<0.000000e+00> : vector<8x32xf32>
    %509 = vector.multi_reduction <add>, %508, %cst_309 [1] : vector<8x16x32xf32> to vector<8x32xf32>
    %cst_310 = arith.constant 1.600000e+01 : f32
    %510 = vector.broadcast %cst_310 : f32 to vector<8x32xf32>
    %511 = arith.divf %509, %510 : vector<8x32xf32>
    %c0_311 = arith.constant 0 : index
    %c0_312 = arith.constant 0 : index
    %512 = vector.load %arg11[%c0_311, %c0_312] : memref<8x32xf32, #tpu.memory_space<vmem>>, vector<8x32xf32>
    tpu.vector_store %arg11[%c0_311, %c0_312], %511 {strides = array<i32>} : memref<8x32xf32, #tpu.memory_space<vmem>>, vector<8x32xf32>,
    return
  }
  func.func @transform_0(%arg0: i32) -> (i32, i32, i32) {
    %c0_i32 = arith.constant 0 : i32
    %c0_i32_0 = arith.constant 0 : i32
    %c0_i32_1 = arith.constant 0 : i32
    return %arg0, %c0_i32, %c0_i32_0 : i32, i32, i32
  }
  func.func @transform_1(%arg0: i32) -> (i32, i32) {
    %c0_i32 = arith.constant 0 : i32
    %c0_i32_0 = arith.constant 0 : i32
    %c0_i32_1 = arith.constant 0 : i32
    return %c0_i32, %c0_i32_0 : i32, i32
  }
  func.func @transform_2(%arg0: i32) -> (i32, i32) {
    %c0_i32 = arith.constant 0 : i32
    %c0_i32_0 = arith.constant 0 : i32
    %c0_i32_1 = arith.constant 0 : i32
    return %c0_i32, %c0_i32_0 : i32, i32
  }
  func.func @transform_3(%arg0: i32) -> (i32, i32, i32) {
    %c0_i32 = arith.constant 0 : i32
    %c0_i32_0 = arith.constant 0 : i32
    %c0_i32_1 = arith.constant 0 : i32
    %c0_i32_2 = arith.constant 0 : i32
    return %c0_i32, %c0_i32_0, %c0_i32_1 : i32, i32, i32
  }
  func.func @transform_4(%arg0: i32) -> (i32, i32, i32) {
    %c0_i32 = arith.constant 0 : i32
    %c0_i32_0 = arith.constant 0 : i32
    %c0_i32_1 = arith.constant 0 : i32
    %c0_i32_2 = arith.constant 0 : i32
    return %c0_i32, %c0_i32_0, %c0_i32_1 : i32, i32, i32
  }
  func.func @transform_5(%arg0: i32) -> (i32, i32, i32) {
    %c0_i32 = arith.constant 0 : i32
    %c0_i32_0 = arith.constant 0 : i32
    %c0_i32_1 = arith.constant 0 : i32
    %c0_i32_2 = arith.constant 0 : i32
    return %c0_i32, %c0_i32_0, %c0_i32_1 : i32, i32, i32
  }
  func.func @transform_6(%arg0: i32) -> (i32, i32, i32) {
    %c0_i32 = arith.constant 0 : i32
    %c0_i32_0 = arith.constant 0 : i32
    %c0_i32_1 = arith.constant 0 : i32
    %c0_i32_2 = arith.constant 0 : i32
    return %c0_i32, %c0_i32_0, %c0_i32_1 : i32, i32, i32
  }
  func.func @transform_7(%arg0: i32) -> (i32, i32, i32) {
    %c0_i32 = arith.constant 0 : i32
    %c0_i32_0 = arith.constant 0 : i32
    %c0_i32_1 = arith.constant 0 : i32
    %c0_i32_2 = arith.constant 0 : i32
    return %c0_i32, %c0_i32_0, %c0_i32_1 : i32, i32, i32
  }
  func.func @transform_8(%arg0: i32) -> (i32, i32, i32) {
    %c0_i32 = arith.constant 0 : i32
    %c0_i32_0 = arith.constant 0 : i32
    %c0_i32_1 = arith.constant 0 : i32
    %c0_i32_2 = arith.constant 0 : i32
    return %c0_i32, %c0_i32_0, %c0_i32_1 : i32, i32, i32
  }
  func.func @transform_9(%arg0: i32) -> (i32, i32, i32) {
    %c0_i32 = arith.constant 0 : i32
    %c0_i32_0 = arith.constant 0 : i32
    %c0_i32_1 = arith.constant 0 : i32
    %c0_i32_2 = arith.constant 0 : i32
    return %c0_i32, %c0_i32_0, %c0_i32_1 : i32, i32, i32
  }
  func.func @transform_10(%arg0: i32) -> (i32, i32) {
    %c0_i32 = arith.constant 0 : i32
    %c0_i32_0 = arith.constant 0 : i32
    return %arg0, %c0_i32 : i32, i32
  }
}

</mosaic_0001>

<bundles_post_ra>
// kernel: mini_swin_forward.1
= control target key start
LH: loop header
LB: loop body
LE: loop exit
PB: predicated region body
PF: predicated region fallthrough
CT: control target
= control target key end

     0   :  { %vm59_vm0 = vcmask 523264   ;;  %vm282_vm1 = vcmask 261120   ;;  %vm1056_vm2 = vcmask 64512   ;;  %vm1769_vm4 = vcmask 130048   ;;  %s31812_s1 = inlined_call_operand.vmem [shape: f32[64,32], index: 1, kind: input, shape index: {}]   ;;  %s31813_s0 = inlined_call_operand.vmem [shape: f32[8,16,64], index: 0, kind: input, shape index: {}]   ;;  %s31814_s2 = inlined_call_operand.vmem [shape: f32[16,32], index: 2, kind: input, shape index: {}]   ;;  %s31815_s4 = inlined_call_operand.vmem [shape: f32[24,32,8], index: 4, kind: input, shape index: {}]   ;;  %s31816_s3 = inlined_call_operand.vmem [shape: f32[12,1,32], index: 3, kind: input, shape index: {}]   ;;  %s31817_s5 = inlined_call_operand.vmem [shape: f32[24,1,8], index: 5, kind: input, shape index: {}]   ;;  %s31818_s6 = inlined_call_operand.vmem [shape: f32[8,8,32], index: 6, kind: input, shape index: {}]   ;;  %s31819_s7 = inlined_call_operand.vmem [shape: f32[2,32,128], index: 7, kind: input, shape index: {}]   ;;  %s31820_s9 = inlined_call_operand.vmem [shape: f32[2,128,32], index: 9, kind: input, shape index: {}]   ;;  %s31821_s8 = inlined_call_operand.vmem [shape: f32[2,1,128], index: 8, kind: input, shape index: {}]   ;;  %s31822_s10 = inlined_call_operand.vmem [shape: f32[8,32], index: 10, kind: output, shape index: {}]  }
   0x1   :  { %v51_v0 = vld [vmem:[%s31812_s1] sm:$0xff]  ;;  %v52_v1 = vld [vmem:[%s31812_s1 + $0x8] sm:$0xff]  ;;  %v53_v2 = vld [vmem:[%s31812_s1 + $0x10] sm:$0xff]  ;;  %vm20237_vm5 = vcmask 1041409   ;;  %vm20239_vm6 = vcmask 1042434   ;;  %vm20241_vm7 = vcmask 1043459  }
   0x2   :  { %v24737_v3 = vpack.c.bf16 %v52_v1, %v51_v0  ;;  %v54_v4 = vld [vmem:[%s31812_s1 + $0x18] sm:$0xff]  ;;  %v55_v6 = vld [vmem:[%s31812_s1 + $0x20] sm:$0xff]  ;;  %v56_v7 = vld [vmem:[%s31812_s1 + $0x28] sm:$0xff]  ;;  %vm20243_vm8 = vcmask 1044484   ;;  %vm20245_vm9 = vcmask 1045509   ;;  %vm20247_vm10 = vcmask 1046534  }
   0x3   :  { %v24741_v5 = vpack.c.bf16 %v54_v4, %v53_v2  ;;  %v35_v8 = vld [vmem:[%s31813_s0] sm:$0xff]  ;;  %v24745_v9 = vpack.c.bf16 %v56_v7, %v55_v6  ;;  %v57_v10 = vld [vmem:[%s31812_s1 + $0x30] sm:$0xff]  ;;  %v58_v11 = vld [vmem:[%s31812_s1 + $0x38] sm:$0xff]  ;;  %vm20249_vm11 = vcmask 1047559  }
   0x4   :  { %24738 = vmatprep.subr.bf16.mxu0 %v24737_v3  ;;  %22665 = vmatprep.mubr.msk.f32.mxu0 %vm59_vm0, %v35_v8  ;;  %v24749_v12 = vpack.c.bf16 %v58_v11, %v57_v10  ;;  %v36_v13 = vld [vmem:[%s31813_s0 + $0x8] sm:$0xff]  ;;  %v37_v14 = vld [vmem:[%s31813_s0 + $0x10] sm:$0xff]  ;;  %v38_v15 = vld [vmem:[%s31813_s0 + $0x18] sm:$0xff] }
   0x5   :  { %24740 = vmatpush3.bf16.msra.mxu0 %v24737_v3  ;;  %v39_v16 = vld [vmem:[%s31813_s0 + $0x20] sm:$0xff]  ;;  %v40_v17 = vld [vmem:[%s31813_s0 + $0x28] sm:$0xff]  ;;  %v41_v18 = vld [vmem:[%s31813_s0 + $0x30] sm:$0xff] }
   0x6   :  { %24742 = vmatprep.subr.bf16.mxu0 %v24741_v5  ;;  %v42_v19 = vld [vmem:[%s31813_s0 + $0x38] sm:$0xff]  ;;  %v43_v20 = vld [vmem:[%s31813_s0 + $0x40] sm:$0xff]  ;;  %v44_v21 = vld [vmem:[%s31813_s0 + $0x48] sm:$0xff] }
   0x7   :  { %v45_v22 = vld [vmem:[%s31813_s0 + $0x50] sm:$0xff]  ;;  %v46_v23 = vld [vmem:[%s31813_s0 + $0x58] sm:$0xff]  ;;  %v47_v24 = vld [vmem:[%s31813_s0 + $0x60] sm:$0xff] }
   0x8   :  { %v48_v25 = vld [vmem:[%s31813_s0 + $0x68] sm:$0xff]  ;;  %v49_v26 = vld [vmem:[%s31813_s0 + $0x70] sm:$0xff]  ;;  %v50_v27 = vld [vmem:[%s31813_s0 + $0x78] sm:$0xff] }
   0x9   :  { %24744 = vmatpush3.bf16.msra.mxu0 %v24741_v5  ;;  %v253_v35 = vld [vmem:[%s31814_s2] sm:$0xff]  ;;  %v254_v38 = vld [vmem:[%s31814_s2 + $0x8] sm:$0xff]  ;;  %vm27043_vm3 = vmpackc.low %vm1056_vm2, %vm1056_vm2 }
   0xa   :  { %24746 = vmatprep.subr.bf16.mxu0 %v24745_v9 }
   0xd   :  { %24748 = vmatpush3.bf16.msra.mxu0 %v24745_v9 }
   0xe   :  { %24750 = vmatprep.subr.bf16.mxu0 %v24749_v12 }
  0x11   :  { %24752 = vmatpush3.bf16.msra.mxu0 %v24749_v12 }
  0x14   :  { %22666 = vmatmul.mubr.msk.f32.vlgmr.msra.gmra.mrb[0].mxu0 %vm59_vm0, %v36_v13 }
  0x15   :  { %22668 = vmatprep.mubr.msk.f32.mxu0 %vm59_vm0, %v37_v14 }
  0x18   :  { %22669 = vmatmul.mubr.msk.f32.gmra.mrb[2].mxu0 %vm59_vm0, %v38_v15 }
  0x19   :  { %22671 = vmatprep.mubr.msk.f32.mxu0 %vm59_vm0, %v39_v16 }
  0x1c   :  { %22672 = vmatmul.mubr.msk.f32.gmra.mrb[4].mxu0 %vm59_vm0, %v40_v17 }
  0x1d   :  { %22674 = vmatprep.mubr.msk.f32.mxu0 %vm59_vm0, %v41_v18 }
  0x20   :  { %22675 = vmatmul.mubr.msk.f32.gmra.mrb[6].mxu0 %vm59_vm0, %v42_v19 }
  0x21   :  { %22677 = vmatprep.mubr.msk.f32.mxu0 %vm59_vm0, %v43_v20 }
  0x24   :  { %22678 = vmatmul.mubr.msk.f32.gmra.mrb[8].mxu0 %vm59_vm0, %v44_v21 }
  0x25   :  { %22680 = vmatprep.mubr.msk.f32.mxu0 %vm59_vm0, %v45_v22 }
  0x28   :  { %22681 = vmatmul.mubr.msk.f32.gmra.mrb[10].mxu0 %vm59_vm0, %v46_v23 }
  0x29   :  { %22683 = vmatprep.mubr.msk.f32.mxu0 %vm59_vm0, %v47_v24 }
  0x2c   :  { %22684 = vmatmul.mubr.msk.f32.gmra.mrb[12].mxu0 %vm59_vm0, %v48_v25 }
  0x2d   :  { %22686 = vmatprep.mubr.msk.f32.mxu0 %vm59_vm0, %v49_v26 }
  0x30   :  { %22687 = vmatmul.mubr.msk.f32.gmra.mrb[14].mxu0 %vm59_vm0, %v50_v27 }
  0xe7   :  { %v22667_v28 = vpop.f32.mrb[0].mxu0 }
  0xe8   :  { %v174_v29 = vpop.f32.mrb[1].mxu0  ;;  %v26658_v2 = vadd.f32 %v22667_v28, %v254_v38 }
  0xe9   :  { %v26650_v62 = vadd.f32 %v253_v35, %v174_v29 }
  0xea   :  { %31869 = vst [vmem:[#allocation13_spill] sm:$0xff] %v26658_v2  ;;  %v286_v8 = vsel %vm282_vm1, %v26658_v2, 0.0 }
  0xeb   :  { %v22670_v30 = vpop.f32.mrb[2].mxu0  ;;  %31867 = vst [vmem:[#allocation11_spill] sm:$0xff] %v26650_v62  ;;  %v283_v5 = vsel %vm282_vm1, %v26650_v62, 0.0 }
  0xec   :  { %v184_v31 = vpop.f32.mrb[3].mxu0  ;;  %v26666_v6 = vadd.f32 %v22670_v30, %v254_v38 }
  0xed   :  { %v26660_v3 = vadd.f32 %v253_v35, %v184_v31 }
  0xee   :  { %31871 = vst [vmem:[#allocation15_spill] sm:$0xff] %v26666_v6  ;;  %v292_v11 = vsel %vm282_vm1, %v26666_v6, 0.0 }
  0xef   :  { %v22673_v32 = vpop.f32.mrb[4].mxu0  ;;  %31870 = vst [vmem:[#allocation14_spill] sm:$0xff] %v26660_v3  ;;  %v289_v9 = vsel %vm282_vm1, %v26660_v3, 0.0 }
  0xf0   :  { %v194_v33 = vpop.f32.mrb[5].mxu0  ;;  %v26674_v10 = vadd.f32 %v22673_v32, %v254_v38 }
  0xf1   :  { %v26668_v7 = vadd.f32 %v253_v35, %v194_v33 }
  0xf2   :  { %31873 = vst [vmem:[#allocation17_spill] sm:$0xff] %v26674_v10  ;;  %v298_v13 = vsel %vm282_vm1, %v26674_v10, 0.0 }
  0xf3   :  { %v22676_v34 = vpop.f32.mrb[6].mxu0  ;;  %31872 = vst [vmem:[#allocation16_spill] sm:$0xff] %v26668_v7  ;;  %v295_v12 = vsel %vm282_vm1, %v26668_v7, 0.0 }
  0xf4   :  { %v204_v36 = vpop.f32.mrb[7].mxu0  ;;  %v26620_v39 = vadd.f32 %v22676_v34, %v254_v38 }
  0xf5   :  { %v26615_v37 = vadd.f32 %v253_v35, %v204_v36 }
  0xf6   :  { %31859 = vst [vmem:[#allocation3_spill] sm:$0xff] %v26620_v39  ;;  %v304_v46 = vsel %vm282_vm1, %v26620_v39, 0.0 }
  0xf7   :  { %31858 = vst [vmem:[#allocation2_spill] sm:$0xff] %v26615_v37  ;;  %v22679_v40 = vpop.f32.mrb[8].mxu0  ;;  %v301_v41 = vsel %vm282_vm1, %v26615_v37, 0.0 }
  0xf8   :  { %302 = vadd.xlane.f32.xlu0 %v301_v41  ;;  %v214_v42 = vpop.f32.mrb[9].mxu0  ;;  %v26626_v44 = vadd.f32 %v22679_v40, %v254_v38 }
  0xf9   :  { %v26624_v43 = vadd.f32 %v253_v35, %v214_v42 }
  0xfa   :  { %31861 = vst [vmem:[#allocation5_spill] sm:$0xff] %v26626_v44  ;;  %v310_v52 = vsel %vm282_vm1, %v26626_v44, 0.0 }
  0xfb   :  { %31860 = vst [vmem:[#allocation4_spill] sm:$0xff] %v26624_v43  ;;  %v22682_v45 = vpop.f32.mrb[10].mxu0  ;;  %v307_v47 = vsel %vm282_vm1, %v26624_v43, 0.0 }
  0xfc   :  { %305 = vadd.xlane.f32.xlu0 %v304_v46  ;;  %308 = vadd.xlane.f32.xlu1 %v307_v47  ;;  %v224_v48 = vpop.f32.mrb[11].mxu0  ;;  %v26634_v50 = vadd.f32 %v22682_v45, %v254_v38 }
  0xfd   :  { %v26632_v49 = vadd.f32 %v253_v35, %v224_v48 }
  0xfe   :  { %31863 = vst [vmem:[#allocation7_spill] sm:$0xff] %v26634_v50  ;;  %v316_v58 = vsel %vm282_vm1, %v26634_v50, 0.0 }
  0xff   :  { %31862 = vst [vmem:[#allocation6_spill] sm:$0xff] %v26632_v49  ;;  %v22685_v51 = vpop.f32.mrb[12].mxu0  ;;  %v313_v53 = vsel %vm282_vm1, %v26632_v49, 0.0 }
 0x100   :  { %311 = vadd.xlane.f32.xlu1 %v310_v52  ;;  %314 = vadd.xlane.f32.xlu0 %v313_v53  ;;  %v234_v54 = vpop.f32.mrb[13].mxu0  ;;  %v26642_v56 = vadd.f32 %v22685_v51, %v254_v38 }
 0x101   :  { %v26640_v55 = vadd.f32 %v253_v35, %v234_v54 }
 0x102   :  { %31865 = vst [vmem:[#allocation9_spill] sm:$0xff] %v26642_v56  ;;  %v322_v0 = vsel %vm282_vm1, %v26642_v56, 0.0 }
 0x103   :  { %31864 = vst [vmem:[#allocation8_spill] sm:$0xff] %v26640_v55  ;;  %v22688_v57 = vpop.f32.mrb[14].mxu0  ;;  %v319_v59 = vsel %vm282_vm1, %v26640_v55, 0.0 }
 0x104   :  { %317 = vadd.xlane.f32.xlu1 %v316_v58  ;;  %320 = vadd.xlane.f32.xlu0 %v319_v59  ;;  %v244_v60 = vpop.f32.mrb[15].mxu0  ;;  %v26652_v63 = vadd.f32 %v22688_v57, %v254_v38 }
 0x105   :  { %v26648_v61 = vadd.f32 %v253_v35, %v244_v60 }
 0x106   :  { %31868 = vst [vmem:[#allocation12_spill] sm:$0xff] %v26652_v63  ;;  %v328_v4 = vsel %vm282_vm1, %v26652_v63, 0.0 }
 0x107   :  { %31866 = vst [vmem:[#allocation10_spill] sm:$0xff] %v26648_v61  ;;  %v325_v1 = vsel %vm282_vm1, %v26648_v61, 0.0 }
 0x108   :  { %323 = vadd.xlane.f32.xlu1 %v322_v0  ;;  %326 = vadd.xlane.f32.xlu0 %v325_v1 }
 0x10c   :  { %329 = vadd.xlane.f32.xlu1 %v328_v4  ;;  %284 = vadd.xlane.f32.xlu0 %v283_v5 }
 0x110   :  { %287 = vadd.xlane.f32.xlu1 %v286_v8  ;;  %290 = vadd.xlane.f32.xlu0 %v289_v9 }
 0x114   :  { %293 = vadd.xlane.f32.xlu1 %v292_v11  ;;  %296 = vadd.xlane.f32.xlu0 %v295_v12 }
 0x118   :  { %299 = vadd.xlane.f32.xlu1 %v298_v13 }
 0x185   :  { %v303_v14 = vpop.xlane.xlu0 %302 }
 0x186   :  { %v338_v15 = vmul.f32 0.03125, %v303_v14 }
 0x188   :  { %v26683_v16 = vsub.f32 %v26615_v37, %v338_v15 }
 0x189   :  { %v306_v17 = vpop.xlane.xlu0 %305  ;;  %v309_v18 = vpop.xlane.xlu1 %308 }
 0x18a   :  { %v339_v19 = vmul.f32 0.03125, %v306_v17  ;;  %v340_v20 = vmul.f32 0.03125, %v309_v18  ;;  %v370_v21 = vmul.f32 %v26683_v16, %v26683_v16 }
 0x18c   :  { %v26688_v22 = vsub.f32 %v26620_v39, %v339_v19  ;;  %v26691_v23 = vsub.f32 %v26624_v43, %v340_v20  ;;  %v398_v24 = vsel %vm282_vm1, %v370_v21, 0.0 }
 0x18d   :  { %v312_v25 = vpop.xlane.xlu1 %311  ;;  %v315_v26 = vpop.xlane.xlu0 %314  ;;  %399 = vadd.xlane.f32.xlu0 %v398_v24 }
 0x18e   :  { %v341_v27 = vmul.f32 0.03125, %v312_v25  ;;  %v342_v28 = vmul.f32 0.03125, %v315_v26  ;;  %v371_v29 = vmul.f32 %v26688_v22, %v26688_v22  ;;  %v372_v30 = vmul.f32 %v26691_v23, %v26691_v23 }
 0x190   :  { %v26699_v31 = vsub.f32 %v26626_v44, %v341_v27  ;;  %v26702_v32 = vsub.f32 %v26632_v49, %v342_v28  ;;  %v401_v33 = vsel %vm282_vm1, %v371_v29, 0.0  ;;  %v404_v34 = vsel %vm282_vm1, %v372_v30, 0.0 }
 0x191   :  { %v318_v35 = vpop.xlane.xlu1 %317  ;;  %v321_v36 = vpop.xlane.xlu0 %320  ;;  %402 = vadd.xlane.f32.xlu1 %v401_v33  ;;  %405 = vadd.xlane.f32.xlu0 %v404_v34 }
 0x192   :  { %v343_v38 = vmul.f32 0.03125, %v318_v35  ;;  %v344_v40 = vmul.f32 0.03125, %v321_v36  ;;  %v373_v41 = vmul.f32 %v26699_v31, %v26699_v31  ;;  %v374_v42 = vmul.f32 %v26702_v32, %v26702_v32 }
 0x194   :  { %v26711_v45 = vsub.f32 %v26634_v50, %v343_v38  ;;  %v26714_v46 = vsub.f32 %v26640_v55, %v344_v40  ;;  %v407_v47 = vsel %vm282_vm1, %v373_v41, 0.0  ;;  %v410_v48 = vsel %vm282_vm1, %v374_v42, 0.0 }
 0x195   :  { %v324_v51 = vpop.xlane.xlu1 %323  ;;  %408 = vadd.xlane.f32.xlu1 %v407_v47  ;;  %411 = vadd.xlane.f32.xlu0 %v410_v48  ;;  %v327_v52 = vpop.xlane.xlu0 %326 }
 0x196   :  { %v345_v53 = vmul.f32 0.03125, %v324_v51  ;;  %v346_v54 = vmul.f32 0.03125, %v327_v52  ;;  %v375_v57 = vmul.f32 %v26711_v45, %v26711_v45  ;;  %v376_v58 = vmul.f32 %v26714_v46, %v26714_v46 }
 0x198   :  { %v26723_v59 = vsub.f32 %v26642_v56, %v345_v53  ;;  %v26726_v60 = vsub.f32 %v26648_v61, %v346_v54  ;;  %v413_v0 = vsel %vm282_vm1, %v375_v57, 0.0  ;;  %v416_v1 = vsel %vm282_vm1, %v376_v58, 0.0 }
 0x199   :  { %414 = vadd.xlane.f32.xlu1 %v413_v0  ;;  %v330_v4 = vpop.xlane.xlu1 %329  ;;  %417 = vadd.xlane.f32.xlu0 %v416_v1  ;;  %v285_v5 = vpop.xlane.xlu0 %284  ;;  %v536_v1 = vld [vmem:[%s31815_s4] sm:$0xff] }
 0x19a   :  { %v347_v8 = vmul.f32 0.03125, %v330_v4  ;;  %v332_v9 = vmul.f32 0.03125, %v285_v5  ;;  %v377_v11 = vmul.f32 %v26723_v59, %v26723_v59  ;;  %v378_v12 = vmul.f32 %v26726_v60, %v26726_v60  ;;  %v537_v4 = vld [vmem:[%s31815_s4 + $0x8] sm:$0xff] }
 0x19b   :  { %v24753_v5 = vpack.c.bf16 %v537_v4, %v536_v1  ;;  %v26811_v4 = vld [vmem:[%s31816_s3] ss:$0 sm:$0xff] }
 0x19c   :  { %v26735_v13 = vsub.f32 %v26652_v63, %v347_v8  ;;  %v26738_v14 = vsub.f32 %v26650_v62, %v332_v9  ;;  %v419_v15 = vsel %vm282_vm1, %v377_v11, 0.0  ;;  %v422_v17 = vsel %vm282_vm1, %v378_v12, 0.0  ;;  %v538_v9 = vld [vmem:[%s31815_s4 + $0x10] sm:$0xff]  ;;  %v539_v11 = vld [vmem:[%s31815_s4 + $0x18] sm:$0xff] }
 0x19d   :  { %420 = vadd.xlane.f32.xlu1 %v419_v15  ;;  %v288_v18 = vpop.xlane.xlu1 %287  ;;  %423 = vadd.xlane.f32.xlu0 %v422_v17  ;;  %v291_v19 = vpop.xlane.xlu0 %290  ;;  %v24757_v12 = vpack.c.bf16 %v539_v11, %v538_v9  ;;  %v20297_v15 = vld [vmem:[%s31815_s4 + $0x80] sm:$0xff]  ;;  %v20298_v17 = vld [vmem:[%s31815_s4 + $0x88] sm:$0xff] }
 0x19e   :  { %v333_v20 = vmul.f32 0.03125, %v288_v18  ;;  %v334_v21 = vmul.f32 0.03125, %v291_v19  ;;  %v379_v24 = vmul.f32 %v26735_v13, %v26735_v13  ;;  %v364_v25 = vmul.f32 %v26738_v14, %v26738_v14  ;;  %25665 = vmatprep.subr.bf16.mxu1 %v24753_v5  ;;  %24754 = vmatprep.subr.bf16.mxu0 %v24753_v5  ;;  %v20319_v19 = vld [vmem:[%s31815_s4 + $0x100] sm:$0xff] }
 0x19f   :  { %25667 = vmatpush3.bf16.msra.mxu1 %v24753_v5  ;;  %24756 = vmatpush3.bf16.msra.mxu0 %v24753_v5  ;;  %v26796_v18 = vpack.c.bf16 %v20298_v17, %v20297_v15  ;;  %v26817_v15 = vld [vmem:[%s31816_s3 + $0x1] ss:$0 sm:$0xff] }
 0x1a0   :  { %v26747_v26 = vsub.f32 %v26658_v2, %v333_v20  ;;  %v26750_v27 = vsub.f32 %v26660_v3, %v334_v21  ;;  %v425_v28 = vsel %vm282_vm1, %v379_v24, 0.0  ;;  %v380_v29 = vsel %vm282_vm1, %v364_v25, 0.0  ;;  %25666 = vmatprep.subr.bf16.mxu1 %v24757_v12  ;;  %24758 = vmatprep.subr.bf16.mxu0 %v24757_v12  ;;  %v20320_v20 = vld [vmem:[%s31815_s4 + $0x108] sm:$0xff] }
 0x1a1   :  { %426 = vadd.xlane.f32.xlu1 %v425_v28  ;;  %v294_v30 = vpop.xlane.xlu1 %293  ;;  %381 = vadd.xlane.f32.xlu0 %v380_v29  ;;  %v297_v33 = vpop.xlane.xlu0 %296  ;;  %v26805_v21 = vpack.c.bf16 %v20320_v20, %v20319_v19 }
 0x1a2   :  { %v335_v34 = vmul.f32 0.03125, %v294_v30  ;;  %v336_v35 = vmul.f32 0.03125, %v297_v33  ;;  %v365_v36 = vmul.f32 %v26747_v26, %v26747_v26  ;;  %v366_v38 = vmul.f32 %v26750_v27, %v26750_v27 }
 0x1a3   :  { %25668 = vmatpush3.bf16.msra.mxu1 %v24757_v12  ;;  %24760 = vmatpush3.bf16.msra.mxu0 %v24757_v12 }
 0x1a4   :  { %v26759_v40 = vsub.f32 %v26666_v6, %v335_v34  ;;  %v26762_v41 = vsub.f32 %v26668_v7, %v336_v35  ;;  %v383_v42 = vsel %vm282_vm1, %v365_v36, 0.0  ;;  %v386_v47 = vsel %vm282_vm1, %v366_v38, 0.0  ;;  %24762 = vmatprep.subr.bf16.mxu1 %v26796_v18  ;;  %24770 = vmatprep.subr.bf16.mxu0 %v26805_v21 }
 0x1a5   :  { %384 = vadd.xlane.f32.xlu1 %v383_v42  ;;  %v300_v48 = vpop.xlane.xlu1 %299  ;;  %387 = vadd.xlane.f32.xlu0 %v386_v47 }
 0x1a6   :  { %v337_v51 = vmul.f32 0.03125, %v300_v48  ;;  %v367_v52 = vmul.f32 %v26759_v40, %v26759_v40  ;;  %v368_v53 = vmul.f32 %v26762_v41, %v26762_v41 }
 0x1a8   :  { %v26771_v54 = vsub.f32 %v26674_v10, %v337_v51  ;;  %v389_v57 = vsel %vm282_vm1, %v367_v52, 0.0  ;;  %v392_v58 = vsel %vm282_vm1, %v368_v53, 0.0 }
 0x1a9   :  { %390 = vadd.xlane.f32.xlu1 %v389_v57  ;;  %393 = vadd.xlane.f32.xlu0 %v392_v58 }
 0x1aa   :  { %v369_v0 = vmul.f32 %v26771_v54, %v26771_v54 }
 0x1ac   :  { %v395_v8 = vsel %vm282_vm1, %v369_v0, 0.0 }
 0x1ad   :  { %396 = vadd.xlane.f32.xlu1 %v395_v8 }
 0x21a   :  { %v400_v24 = vpop.xlane.xlu0 %399 }
 0x21b   :  { %v434_v25 = vmul.f32 0.03125, %v400_v24 }
 0x21d   :  { %v450_v28 = vadd.f32 1e-05, %v434_v25 }
 0x21e   :  { %v403_v29 = vpop.xlane.xlu1 %402  ;;  %v406_v30 = vpop.xlane.xlu0 %405 }
 0x21f   :  { %25765 = vrsqrt.f32 %v450_v28  ;;  %v435_v33 = vmul.f32 0.03125, %v403_v29  ;;  %v436_v34 = vmul.f32 0.03125, %v406_v30 }
 0x221   :  { %v451_v35 = vadd.f32 1e-05, %v435_v33  ;;  %v452_v36 = vadd.f32 1e-05, %v436_v34 }
 0x222   :  { %v409_v38 = vpop.xlane.xlu1 %408  ;;  %v412_v42 = vpop.xlane.xlu0 %411 }
 0x223   :  { %25767 = vrsqrt.f32 %v451_v35  ;;  %v437_v47 = vmul.f32 0.03125, %v409_v38  ;;  %v438_v48 = vmul.f32 0.03125, %v412_v42  ;;  %v20299_v42 = vld [vmem:[%s31815_s4 + $0x90] sm:$0xff] }
 0x224   :  { %25769 = vrsqrt.f32 %v452_v36 }
 0x225   :  { %v453_v51 = vadd.f32 1e-05, %v437_v47  ;;  %v454_v52 = vadd.f32 1e-05, %v438_v48  ;;  %v20300_v47 = vld [vmem:[%s31815_s4 + $0x98] sm:$0xff] }
 0x226   :  { %v415_v53 = vpop.xlane.xlu1 %414  ;;  %v418_v57 = vpop.xlane.xlu0 %417 }
 0x227   :  { %25771 = vrsqrt.f32 %v453_v51  ;;  %v439_v58 = vmul.f32 0.03125, %v415_v53  ;;  %v440_v0 = vmul.f32 0.03125, %v418_v57 }
 0x228   :  { %25773 = vrsqrt.f32 %v454_v52 }
 0x229   :  { %v25766_v1 = vpop.eup %25765  ;;  %v455_v5 = vadd.f32 1e-05, %v439_v58  ;;  %v456_v8 = vadd.f32 1e-05, %v440_v0 }
 0x22a   :  { %v482_v9 = vmul.f32 %v25766_v1, %v26683_v16  ;;  %v421_v11 = vpop.xlane.xlu1 %420  ;;  %v424_v12 = vpop.xlane.xlu0 %423 }
 0x22b   :  { %25775 = vrsqrt.f32 %v455_v5  ;;  %v441_v17 = vmul.f32 0.03125, %v421_v11  ;;  %v442_v19 = vmul.f32 0.03125, %v424_v12  ;;  %v24765_v5 = vpack.c.bf16 %v20300_v47, %v20299_v42 }
 0x22c   :  { %v504_v20 = vmul.f32 %v26811_v4, %v482_v9  ;;  %25777 = vrsqrt.f32 %v456_v8 }
 0x22d   :  { %v25768_v24 = vpop.eup %25767  ;;  %v457_v25 = vadd.f32 1e-05, %v441_v17  ;;  %v458_v28 = vadd.f32 1e-05, %v442_v19 }
 0x22e   :  { %v25770_v29 = vpop.eup %25769  ;;  %v26821_v30 = vadd.f32 %v26817_v15, %v504_v20  ;;  %v483_v16 = vmul.f32 %v25768_v24, %v26688_v22  ;;  %v427_v33 = vpop.xlane.xlu1 %426 }
 0x22f   :  { %v382_v34 = vpop.xlane.xlu0 %381  ;;  %v484_v35 = vmul.f32 %v25770_v29, %v26691_v23  ;;  %25779 = vrsqrt.f32 %v457_v25  ;;  %v443_v36 = vmul.f32 0.03125, %v427_v33 }
 0x230   :  { %v428_v38 = vmul.f32 0.03125, %v382_v34  ;;  %v505_v48 = vmul.f32 %v26811_v4, %v483_v16  ;;  %25781 = vrsqrt.f32 %v458_v28  ;;  %22706 = vmatprep.mubr.msk.f32.mxu1 %vm282_vm1, %v26821_v30 }
 0x231   :  { %v25772_v22 = vpop.eup %25771  ;;  %v506_v23 = vmul.f32 %v26811_v4, %v484_v35  ;;  %v459_v51 = vadd.f32 1e-05, %v443_v36 }
 0x232   :  { %v444_v52 = vadd.f32 1e-05, %v428_v38  ;;  %v25774_v53 = vpop.eup %25773  ;;  %v26836_v57 = vadd.f32 %v26817_v15, %v505_v48  ;;  %v485_v58 = vmul.f32 %v25772_v22, %v26699_v31  ;;  %v385_v0 = vpop.xlane.xlu1 %384 }
 0x233   :  { %v388_v1 = vpop.xlane.xlu0 %387  ;;  %v26840_v8 = vadd.f32 %v26817_v15, %v506_v23  ;;  %v486_v9 = vmul.f32 %v25774_v53, %v26702_v32  ;;  %25783 = vrsqrt.f32 %v459_v51  ;;  %v429_v11 = vmul.f32 0.03125, %v385_v0 }
 0x234   :  { %v507_v12 = vmul.f32 %v26811_v4, %v485_v58  ;;  %25785 = vrsqrt.f32 %v444_v52  ;;  %v430_v17 = vmul.f32 0.03125, %v388_v1  ;;  %22707 = vmatmul.mubr.msk.f32.vlgmr.msra.gmra.mrb[0].mxu1 %vm282_vm1, %v26836_v57 }
 0x235   :  { %v25776_v19 = vpop.eup %25775  ;;  %v508_v31 = vmul.f32 %v26811_v4, %v486_v9  ;;  %v445_v20 = vadd.f32 1e-05, %v429_v11  ;;  %22709 = vmatprep.mubr.msk.f32.mxu1 %vm282_vm1, %v26840_v8  ;;  %24764 = vmatpush3.bf16.msra.mxu1 %v26796_v18 }
 0x236   :  { %v25778_v24 = vpop.eup %25777  ;;  %v26851_v32 = vadd.f32 %v26817_v15, %v507_v12  ;;  %v487_v25 = vmul.f32 %v25776_v19, %v26711_v45  ;;  %v446_v28 = vadd.f32 1e-05, %v430_v17  ;;  %v391_v29 = vpop.xlane.xlu1 %390  ;;  %24766 = vmatprep.subr.bf16.mxu1 %v24765_v5 }
 0x237   :  { %v394_v16 = vpop.xlane.xlu0 %393  ;;  %v26855_v33 = vadd.f32 %v26817_v15, %v508_v31  ;;  %v488_v34 = vmul.f32 %v25778_v24, %v26714_v46  ;;  %25787 = vrsqrt.f32 %v445_v20  ;;  %v431_v35 = vmul.f32 0.03125, %v391_v29  ;;  %v20321_v29 = vld [vmem:[%s31815_s4 + $0x110] sm:$0xff] }
 0x238   :  { %v509_v36 = vmul.f32 %v26811_v4, %v487_v25  ;;  %25789 = vrsqrt.f32 %v446_v28  ;;  %v432_v18 = vmul.f32 0.03125, %v394_v16  ;;  %22710 = vmatmul.mubr.msk.f32.gmra.mrb[2].mxu1 %vm282_vm1, %v26851_v32  ;;  %v20322_v16 = vld [vmem:[%s31815_s4 + $0x118] sm:$0xff] }
 0x239   :  { %v25780_v38 = vpop.eup %25779  ;;  %v510_v45 = vmul.f32 %v26811_v4, %v488_v34  ;;  %v447_v42 = vadd.f32 1e-05, %v431_v35  ;;  %22712 = vmatprep.mubr.msk.f32.mxu1 %vm282_vm1, %v26855_v33  ;;  %24768 = vmatpush3.bf16.msra.mxu1 %v24765_v5 }
 0x23a   :  { %v25782_v47 = vpop.eup %25781  ;;  %v26865_v46 = vadd.f32 %v26817_v15, %v509_v36  ;;  %v489_v48 = vmul.f32 %v25780_v38, %v26723_v59  ;;  %v448_v22 = vadd.f32 1e-05, %v432_v18  ;;  %v397_v23 = vpop.xlane.xlu1 %396 }
 0x23b   :  { %v26869_v51 = vadd.f32 %v26817_v15, %v510_v45  ;;  %v490_v52 = vmul.f32 %v25782_v47, %v26726_v60  ;;  %25791 = vrsqrt.f32 %v447_v42  ;;  %v433_v53 = vmul.f32 0.03125, %v397_v23 }
 0x23c   :  { %v511_v58 = vmul.f32 %v26811_v4, %v489_v48  ;;  %25793 = vrsqrt.f32 %v448_v22  ;;  %22713 = vmatmul.mubr.msk.f32.gmra.mrb[4].mxu1 %vm282_vm1, %v26865_v46  ;;  %v24773_v45 = vpack.c.bf16 %v20322_v16, %v20321_v29  ;;  %v31874_v29 = vmov 0 }
 0x23d   :  { %v25784_v0 = vpop.eup %25783  ;;  %v512_v1 = vmul.f32 %v26811_v4, %v490_v52  ;;  %v449_v5 = vadd.f32 1e-05, %v433_v53  ;;  %22715 = vmatprep.mubr.msk.f32.mxu1 %vm282_vm1, %v26869_v51  ;;  %v31875_v29 = vsel %vm27043_vm3, 4294967295, %v31874_v29 }
 0x23e   :  { %v25786_v59 = vpop.eup %25785  ;;  %v26879_v9 = vadd.f32 %v26817_v15, %v511_v58  ;;  %v491_v60 = vmul.f32 %v25784_v0, %v26735_v13  ;;  %31876 = vst [vmem:[#allocation18_spill] sm:$0xff] %v31875_v29 }
 0x23f   :  { %v26883_v11 = vadd.f32 %v26817_v15, %v512_v1  ;;  %v476_v12 = vmul.f32 %v25786_v59, %v26738_v14  ;;  %25795 = vrsqrt.f32 %v449_v5 }
 0x240   :  { %v513_v17 = vmul.f32 %v26811_v4, %v491_v60  ;;  %22716 = vmatmul.mubr.msk.f32.gmra.mrb[6].mxu1 %vm282_vm1, %v26879_v9  ;;  %v27031_v60 = vld [vmem:[%s31817_s5 + $0x4] ss:$0 sm:$0xff] }
 0x241   :  { %v25788_v19 = vpop.eup %25787  ;;  %v498_v31 = vmul.f32 %v26811_v4, %v476_v12  ;;  %22718 = vmatprep.mubr.msk.f32.mxu1 %vm282_vm1, %v26883_v11 }
 0x242   :  { %v25790_v20 = vpop.eup %25789  ;;  %v26893_v13 = vadd.f32 %v26817_v15, %v513_v17  ;;  %v477_v24 = vmul.f32 %v25788_v19, %v26747_v26  ;;  %v27036_v19 = vld [vmem:[%s31817_s5] ss:$0 sm:$0xff] }
 0x243   :  { %v26897_v14 = vadd.f32 %v26817_v15, %v498_v31  ;;  %v478_v25 = vmul.f32 %v25790_v20, %v26750_v27 }
 0x244   :  { %v499_v28 = vmul.f32 %v26811_v4, %v477_v24  ;;  %22719 = vmatmul.mubr.msk.f32.gmra.mrb[8].mxu1 %vm282_vm1, %v26893_v13 }
 0x245   :  { %v25792_v34 = vpop.eup %25791  ;;  %v500_v26 = vmul.f32 %v26811_v4, %v478_v25  ;;  %22697 = vmatprep.mubr.msk.f32.mxu0 %vm282_vm1, %v26897_v14  ;;  %22729 = vmatprep.mubr.msk.f32.mxu1 %vm282_vm1, %v26897_v14 }
 0x246   :  { %v25794_v27 = vpop.eup %25793  ;;  %v26915_v35 = vadd.f32 %v26817_v15, %v499_v28  ;;  %v479_v36 = vmul.f32 %v25792_v34, %v26759_v40 }
 0x247   :  { %v26919_v18 = vadd.f32 %v26817_v15, %v500_v26  ;;  %v480_v38 = vmul.f32 %v25794_v27, %v26762_v41 }
 0x248   :  { %v501_v42 = vmul.f32 %v26811_v4, %v479_v36  ;;  %22698 = vmatmul.mubr.msk.f32.vlgmr.msra.gmra.mrb[16].mxu0 %vm282_vm1, %v26915_v35  ;;  %22730 = vmatmul.mubr.msk.f32.vlgmr.msra.gmra.mrb[10].mxu1 %vm282_vm1, %v26915_v35 }
 0x249   :  { %v25796_v47 = vpop.eup %25795  ;;  %v502_v48 = vmul.f32 %v26811_v4, %v480_v38  ;;  %22700 = vmatprep.mubr.msk.f32.mxu0 %vm282_vm1, %v26919_v18  ;;  %22732 = vmatprep.mubr.msk.f32.mxu1 %vm282_vm1, %v26919_v18 }
 0x24a   :  { %v26933_v40 = vadd.f32 %v26817_v15, %v501_v42  ;;  %v481_v41 = vmul.f32 %v25796_v47, %v26771_v54  ;;  %24772 = vmatpush3.bf16.msra.mxu0 %v26805_v21 }
 0x24b   :  { %v26938_v22 = vadd.f32 %v26817_v15, %v502_v48  ;;  %24774 = vmatprep.subr.bf16.mxu0 %v24773_v45 }
 0x24c   :  { %v503_v23 = vmul.f32 %v26811_v4, %v481_v41  ;;  %22701 = vmatmul.mubr.msk.f32.gmra.mrb[18].mxu0 %vm282_vm1, %v26933_v40  ;;  %22733 = vmatmul.mubr.msk.f32.gmra.mrb[12].mxu1 %vm282_vm1, %v26933_v40 }
 0x24d   :  { %22703 = vmatprep.mubr.msk.f32.mxu0 %vm282_vm1, %v26938_v22  ;;  %22735 = vmatprep.mubr.msk.f32.mxu1 %vm282_vm1, %v26938_v22 }
 0x24e   :  { %v26950_v54 = vadd.f32 %v26817_v15, %v503_v23  ;;  %24776 = vmatpush3.bf16.msra.mxu0 %v24773_v45 }
 0x250   :  { %22704 = vmatmul.mubr.msk.f32.gmra.mrb[20].mxu0 %vm282_vm1, %v26950_v54  ;;  %22736 = vmatmul.mubr.msk.f32.gmra.mrb[14].mxu1 %vm282_vm1, %v26950_v54 }
 0x251   :  { %22738 = vmatprep.mubr.msk.f32.mxu1 %vm282_vm1, %v26821_v30  ;;  %22761 = vmatprep.mubr.msk.f32.mxu0 %vm282_vm1, %v26897_v14 }
 0x254   :  { %22739 = vmatmul.mubr.msk.f32.gmra.mrb[16].mxu1 %vm282_vm1, %v26836_v57  ;;  %22762 = vmatmul.mubr.msk.f32.vlgmr.msra.gmra.mrb[22].mxu0 %vm282_vm1, %v26915_v35 }
 0x255   :  { %22741 = vmatprep.mubr.msk.f32.mxu1 %vm282_vm1, %v26840_v8  ;;  %22764 = vmatprep.mubr.msk.f32.mxu0 %vm282_vm1, %v26919_v18 }
 0x258   :  { %22742 = vmatmul.mubr.msk.f32.gmra.mrb[18].mxu1 %vm282_vm1, %v26851_v32  ;;  %22765 = vmatmul.mubr.msk.f32.gmra.mrb[24].mxu0 %vm282_vm1, %v26933_v40 }
 0x259   :  { %22744 = vmatprep.mubr.msk.f32.mxu1 %vm282_vm1, %v26855_v33  ;;  %22767 = vmatprep.mubr.msk.f32.mxu0 %vm282_vm1, %v26938_v22 }
 0x25c   :  { %22745 = vmatmul.mubr.msk.f32.gmra.mrb[20].mxu1 %vm282_vm1, %v26865_v46  ;;  %22768 = vmatmul.mubr.msk.f32.gmra.mrb[26].mxu0 %vm282_vm1, %v26950_v54 }
 0x25d   :  { %22747 = vmatprep.mubr.msk.f32.mxu1 %vm282_vm1, %v26869_v51  ;;  %22770 = vmatprep.mubr.msk.f32.mxu0 %vm282_vm1, %v26821_v30 }
 0x260   :  { %22748 = vmatmul.mubr.msk.f32.gmra.mrb[22].mxu1 %vm282_vm1, %v26879_v9  ;;  %22771 = vmatmul.mubr.msk.f32.gmra.mrb[28].mxu0 %vm282_vm1, %v26836_v57 }
 0x261   :  { %22750 = vmatprep.mubr.msk.f32.mxu1 %vm282_vm1, %v26883_v11  ;;  %22773 = vmatprep.mubr.msk.f32.mxu0 %vm282_vm1, %v26840_v8 }
 0x264   :  { %22751 = vmatmul.mubr.msk.f32.gmra.mrb[24].mxu1 %vm282_vm1, %v26893_v13  ;;  %22774 = vmatmul.mubr.msk.f32.gmra.mrb[30].mxu0 %vm282_vm1, %v26851_v32 }
 0x265   :  { %22776 = vmatprep.mubr.msk.f32.mxu0 %vm282_vm1, %v26855_v33 }
 0x268   :  { %22777 = vmatmul.mubr.msk.f32.gmra.mrb[32].mxu0 %vm282_vm1, %v26865_v46 }
 0x269   :  { %22779 = vmatprep.mubr.msk.f32.mxu0 %vm282_vm1, %v26869_v51 }
 0x26c   :  { %22780 = vmatmul.mubr.msk.f32.gmra.mrb[34].mxu0 %vm282_vm1, %v26879_v9 }
 0x26d   :  { %22782 = vmatprep.mubr.msk.f32.mxu0 %vm282_vm1, %v26883_v11 }
 0x270   :  { %22783 = vmatmul.mubr.msk.f32.gmra.mrb[36].mxu0 %vm282_vm1, %v26893_v13 }
 0x307   :  { %v27008_v21 = vpop.f32.mrb[0].mxu1 }
 0x308   :  { %v27010_v4 = vpop.f32.mrb[1].mxu1 }
 0x30b   :  { %v27012_v15 = vpop.f32.mrb[2].mxu1 }
 0x30c   :  { %v27014_v52 = vpop.f32.mrb[3].mxu1 }
 0x30f   :  { %v27016_v53 = vpop.f32.mrb[4].mxu1 }
 0x310   :  { %v27018_v58 = vpop.f32.mrb[5].mxu1 }
 0x313   :  { %v27020_v0 = vpop.f32.mrb[6].mxu1 }
 0x314   :  { %v27022_v1 = vpop.f32.mrb[7].mxu1 }
 0x317   :  { %v27024_v5 = vpop.f32.mrb[8].mxu1 }
 0x318   :  { %v27026_v59 = vpop.f32.mrb[9].mxu1 }
 0x31b   :  { %v22699_v12 = vpop.f32.mrb[16].mxu0  ;;  %v22731_v17 = vpop.f32.mrb[10].mxu1 }
 0x31c   :  { %v825_v31 = vadd.f32 %v22731_v17, %v27031_v60  ;;  %v661_v20 = vpop.f32.mrb[17].mxu0  ;;  %v819_v24 = vpop.f32.mrb[11].mxu1 }
 0x31d   :  { %v662_v25 = vadd.f32 %v27036_v19, %v661_v20  ;;  %v820_v28 = vadd.f32 %v27031_v60, %v819_v24  ;;  %v27063_v24 = vld [vmem:[%s31817_s5 + $0x8] ss:$0 sm:$0xff] }
 0x31f   :  { %v24777_v16 = vpack.c.bf16 %v825_v31, %v820_v28  ;;  %v22702_v34 = vpop.f32.mrb[18].mxu0  ;;  %v22734_v26 = vpop.f32.mrb[12].mxu1  ;;  %22789 = vmatprep.mubr.msk.f32.mxu1 %vm1056_vm2, %v662_v25  ;;  %v667_v25 = vadd.f32 %v22699_v12, %v27036_v19 }
 0x320   :  { %v835_v27 = vadd.f32 %v22734_v26, %v27031_v60  ;;  %v671_v36 = vpop.f32.mrb[19].mxu0  ;;  %v829_v38 = vpop.f32.mrb[13].mxu1  ;;  %v677_v12 = vadd.f32 %v22702_v34, %v27036_v19 }
 0x321   :  { %v672_v45 = vadd.f32 %v27036_v19, %v671_v36  ;;  %v830_v42 = vadd.f32 %v27031_v60, %v829_v38  ;;  %24779 = vmatprep.subr.msk.bf16.mxu1 %vm27043_vm3, %v24777_v16 }
 0x322   :  { %24782 = vmatpush3.bf16.xpose.msk.msra.mxu1 %vm27043_vm3, %v24777_v16 }
 0x323   :  { %v24783_v47 = vpack.c.bf16 %v835_v27, %v830_v42  ;;  %v22705_v48 = vpop.f32.mrb[20].mxu0  ;;  %v22737_v41 = vpop.f32.mrb[14].mxu1  ;;  %22796 = vmatprep.mubr.msk.f32.mxu0 %vm1056_vm2, %v672_v45 }
 0x324   :  { %v845_v23 = vadd.f32 %v22737_v41, %v27031_v60  ;;  %v681_v17 = vpop.f32.mrb[21].mxu0  ;;  %v839_v31 = vpop.f32.mrb[15].mxu1 }
 0x325   :  { %v840_v20 = vadd.f32 %v27031_v60, %v839_v31  ;;  %24785 = vmatprep.subr.msk.bf16.mxu0 %vm27043_vm3, %v24783_v47  ;;  %v682_v27 = vadd.f32 %v27036_v19, %v681_v17 }
 0x326   :  { %24788 = vmatpush3.bf16.xpose.msk.msra.mxu0 %vm27043_vm3, %v24783_v47 }
 0x327   :  { %v24789_v28 = vpack.c.bf16 %v845_v23, %v840_v20  ;;  %v22740_v16 = vpop.f32.mrb[16].mxu1  ;;  %v22763_v26 = vpop.f32.mrb[22].mxu0 }
 0x328   :  { %v855_v36 = vadd.f32 %v22740_v16, %v27031_v60  ;;  %v983_v38 = vadd.f32 %v22763_v26, %v27063_v24  ;;  %v849_v45 = vpop.f32.mrb[17].mxu1  ;;  %v977_v42 = vpop.f32.mrb[23].mxu0  ;;  %v692_v16 = vadd.f32 %v27036_v19, %v27010_v4  ;;  %v687_v4 = vadd.f32 %v22705_v48, %v27036_v19 }
 0x329   :  { %v850_v41 = vadd.f32 %v27031_v60, %v849_v45  ;;  %v978_v31 = vadd.f32 %v27063_v24, %v977_v42  ;;  %22790 = vmatmul.mubr.msk.f32.vlgmr.msra.gmra.mrb[26].mxu1 %vm1056_vm2, %v667_v25  ;;  %24791 = vmatprep.subr.msk.bf16.mxu1 %vm27043_vm3, %v24789_v28 }
 0x32a   :  { %24794 = vmatpush3.bf16.xpose.msk.msra.mxu1 %vm27043_vm3, %v24789_v28  ;;  %22803 = vmatprep.mubr.msk.f32.mxu1 %vm1056_vm2, %v682_v27 }
 0x32b   :  { %v24795_v47 = vpack.c.bf16 %v855_v36, %v850_v41  ;;  %v22743_v23 = vpop.f32.mrb[18].mxu1  ;;  %v22766_v17 = vpop.f32.mrb[24].mxu0  ;;  %v27080_v20 = vpack.c.bf16 %v983_v38, %v978_v31  ;;  %v702_v31 = vadd.f32 %v27036_v19, %v27014_v52  ;;  %v697_v52 = vadd.f32 %v27008_v21, %v27036_v19 }
 0x32c   :  { %v865_v25 = vadd.f32 %v22743_v23, %v27031_v60  ;;  %v993_v26 = vadd.f32 %v22766_v17, %v27063_v24  ;;  %v859_v45 = vpop.f32.mrb[19].mxu1  ;;  %v987_v42 = vpop.f32.mrb[25].mxu0  ;;  %v707_v21 = vadd.f32 %v27012_v15, %v27036_v19  ;;  %v717_v15 = vadd.f32 %v27016_v53, %v27036_v19 }
 0x32d   :  { %v860_v28 = vadd.f32 %v27031_v60, %v859_v45  ;;  %v988_v27 = vadd.f32 %v27063_v24, %v987_v42  ;;  %22797 = vmatmul.mubr.msk.f32.vlgmr.msra.gmra.mrb[38].mxu0 %vm1056_vm2, %v677_v12  ;;  %24797 = vmatprep.subr.msk.bf16.mxu0 %vm27043_vm3, %v24795_v47  ;;  %v727_v53 = vadd.f32 %v27020_v0, %v27036_v19 }
 0x32e   :  { %24800 = vmatpush3.bf16.xpose.msk.msra.mxu0 %vm27043_vm3, %v24795_v47  ;;  %22810 = vmatprep.mubr.msk.f32.mxu0 %vm1056_vm2, %v692_v16 }
 0x32f   :  { %v24801_v34 = vpack.c.bf16 %v865_v25, %v860_v28  ;;  %v22746_v36 = vpop.f32.mrb[20].mxu1  ;;  %v22769_v38 = vpop.f32.mrb[26].mxu0  ;;  %v27095_v41 = vpack.c.bf16 %v993_v26, %v988_v27  ;;  %v712_v28 = vadd.f32 %v27036_v19, %v27018_v58 }
 0x330   :  { %v875_v12 = vadd.f32 %v22746_v36, %v27031_v60  ;;  %v1003_v23 = vadd.f32 %v22769_v38, %v27063_v24  ;;  %v869_v17 = vpop.f32.mrb[21].mxu1  ;;  %v997_v45 = vpop.f32.mrb[27].mxu0 }
 0x331   :  { %v870_v47 = vadd.f32 %v27031_v60, %v869_v17  ;;  %v998_v16 = vadd.f32 %v27063_v24, %v997_v45  ;;  %22804 = vmatmul.mubr.msk.f32.vlgmr.msra.gmra.mrb[28].mxu1 %vm1056_vm2, %v687_v4  ;;  %24803 = vmatprep.subr.msk.bf16.mxu1 %vm27043_vm3, %v24801_v34  ;;  %v722_v45 = vadd.f32 %v27036_v19, %v27022_v1 }
 0x332   :  { %24806 = vmatpush3.bf16.xpose.msk.msra.mxu1 %vm27043_vm3, %v24801_v34  ;;  %22817 = vmatprep.mubr.msk.f32.mxu1 %vm1056_vm2, %v702_v31 }
 0x333   :  { %v24807_v48 = vpack.c.bf16 %v875_v12, %v870_v47  ;;  %v22749_v25 = vpop.f32.mrb[22].mxu1  ;;  %v22772_v26 = vpop.f32.mrb[28].mxu0  ;;  %v24833_v42 = vpack.c.bf16 %v1003_v23, %v998_v16 }
 0x334   :  { %v885_v27 = vadd.f32 %v22749_v25, %v27031_v60  ;;  %v1013_v4 = vadd.f32 %v22772_v26, %v27063_v24  ;;  %v879_v36 = vpop.f32.mrb[23].mxu1  ;;  %v1007_v38 = vpop.f32.mrb[29].mxu0 }
 0x335   :  { %v880_v34 = vadd.f32 %v27031_v60, %v879_v36  ;;  %v1008_v31 = vadd.f32 %v27063_v24, %v1007_v38  ;;  %22811 = vmatmul.mubr.msk.f32.vlgmr.msra.gmra.mrb[40].mxu0 %vm1056_vm2, %v697_v52  ;;  %24809 = vmatprep.subr.msk.bf16.mxu0 %vm27043_vm3, %v24807_v48 }
 0x336   :  { %24812 = vmatpush3.bf16.xpose.msk.msra.mxu0 %vm27043_vm3, %v24807_v48  ;;  %22824 = vmatprep.mubr.msk.f32.mxu0 %vm1056_vm2, %v712_v28 }
 0x337   :  { %v24813_v58 = vpack.c.bf16 %v885_v27, %v880_v34  ;;  %v22752_v12 = vpop.f32.mrb[24].mxu1  ;;  %v22775_v23 = vpop.f32.mrb[30].mxu0  ;;  %v27125_v17 = vpack.c.bf16 %v1013_v4, %v1008_v31  ;;  %v732_v27 = vadd.f32 %v27036_v19, %v27026_v59 }
 0x338   :  { %v895_v47 = vadd.f32 %v22752_v12, %v27031_v60  ;;  %v1023_v16 = vadd.f32 %v22775_v23, %v27063_v24  ;;  %v889_v52 = vpop.f32.mrb[25].mxu1  ;;  %v1017_v25 = vpop.f32.mrb[31].mxu0  ;;  %v737_v12 = vadd.f32 %v27024_v5, %v27036_v19 }
 0x339   :  { %v890_v48 = vadd.f32 %v27031_v60, %v889_v52  ;;  %v1018_v26 = vadd.f32 %v27063_v24, %v1017_v25  ;;  %22818 = vmatmul.mubr.msk.f32.vlgmr.msra.gmra.mrb[30].mxu1 %vm1056_vm2, %v707_v21  ;;  %24815 = vmatprep.subr.msk.bf16.mxu1 %vm27043_vm3, %v24813_v58 }
 0x33a   :  { %24818 = vmatpush3.bf16.xpose.msk.msra.mxu1 %vm27043_vm3, %v24813_v58  ;;  %22831 = vmatprep.mubr.msk.f32.mxu1 %vm1056_vm2, %v722_v45 }
 0x33b   :  { %v24819_v1 = vpack.c.bf16 %v895_v47, %v890_v48  ;;  %v22778_v28 = vpop.f32.mrb[32].mxu0  ;;  %24826 = vmatprep.subr.bf16.mxu1 %v27080_v20  ;;  %v27142_v60 = vpack.c.bf16 %v1023_v16, %v1018_v26 }
 0x33c   :  { %v1033_v4 = vadd.f32 %v22778_v28, %v27063_v24  ;;  %v1027_v36 = vpop.f32.mrb[33].mxu0 }
 0x33d   :  { %v1028_v38 = vadd.f32 %v27063_v24, %v1027_v36  ;;  %22825 = vmatmul.mubr.msk.f32.vlgmr.msra.gmra.mrb[42].mxu0 %vm1056_vm2, %v717_v15  ;;  %24821 = vmatprep.subr.msk.bf16.mxu0 %vm27043_vm3, %v24819_v1 }
 0x33e   :  { %24824 = vmatpush3.bf16.xpose.msk.msra.mxu0 %vm27043_vm3, %v24819_v1  ;;  %22838 = vmatprep.mubr.msk.f32.mxu0 %vm1056_vm2, %v732_v27 }
 0x33f   :  { %v22781_v34 = vpop.f32.mrb[34].mxu0  ;;  %24834 = vmatprep.subr.bf16.mxu0 %v24833_v42  ;;  %v27156_v59 = vpack.c.bf16 %v1033_v4, %v1028_v38 }
 0x340   :  { %v1043_v31 = vadd.f32 %v22781_v34, %v27063_v24  ;;  %v1037_v21 = vpop.f32.mrb[35].mxu0 }
 0x341   :  { %v1038_v58 = vadd.f32 %v27063_v24, %v1037_v21  ;;  %22832 = vmatmul.mubr.msk.f32.vlgmr.msra.gmra.mrb[32].mxu1 %vm1056_vm2, %v727_v53 }
 0x342   :  { %24828 = vmatpush3.bf16.msra.mxu1 %v27080_v20 }
 0x343   :  { %v22784_v23 = vpop.f32.mrb[36].mxu0  ;;  %24830 = vmatprep.subr.bf16.mxu1 %v27095_v41  ;;  %v27165_v0 = vpack.c.bf16 %v1043_v31, %v1038_v58 }
 0x344   :  { %v1053_v45 = vadd.f32 %v22784_v23, %v27063_v24  ;;  %v1047_v47 = vpop.f32.mrb[37].mxu0 }
 0x345   :  { %v1048_v16 = vadd.f32 %v27063_v24, %v1047_v47  ;;  %22839 = vmatmul.mubr.msk.f32.vlgmr.msra.gmra.mrb[44].mxu0 %vm1056_vm2, %v737_v12 }
 0x346   :  { %24836 = vmatpush3.bf16.msra.mxu0 %v24833_v42 }
 0x347   :  { %24842 = vmatprep.subr.bf16.mxu0 %v27142_v60  ;;  %v27171_v52 = vpack.c.bf16 %v1053_v45, %v1048_v16 }
 0x3fc   :  { %v22791_v20 = vpop.f32.mrb[26].mxu1 }
 0x3fd   :  { %v1135_v5 = vpop.f32.mrb[27].mxu1  ;;  %v27173_v19 = vmul.f32 0.35355338, %v22791_v20 }
 0x3fe   :  { %v27175_v25 = vmul.f32 0.35355338, %v1135_v5 }
 0x3ff   :  { %v1773_v48 = vsel %vm1769_vm4, %v27173_v19, -inf }
 0x400   :  { %1774 = vmax.xlane.f32.xlu1 %v1773_v48  ;;  %v22798_v26 = vpop.f32.mrb[38].mxu0  ;;  %v1770_v24 = vsel %vm1769_vm4, %v27175_v25, -inf }
 0x401   :  { %1771 = vmax.xlane.f32.xlu0 %v1770_v24  ;;  %v1222_v42 = vpop.f32.mrb[39].mxu0  ;;  %v27181_v15 = vmul.f32 0.35355338, %v22798_v26 }
 0x402   :  { %v27183_v1 = vmul.f32 0.35355338, %v1222_v42 }
 0x403   :  { %v1779_v28 = vsel %vm1769_vm4, %v27181_v15, -inf }
 0x404   :  { %1780 = vmax.xlane.f32.xlu1 %v1779_v28  ;;  %v22805_v27 = vpop.f32.mrb[28].mxu1  ;;  %v1776_v4 = vsel %vm1769_vm4, %v27183_v1, -inf }
 0x405   :  { %1777 = vmax.xlane.f32.xlu0 %v1776_v4  ;;  %v1309_v36 = vpop.f32.mrb[29].mxu1 }
 0x408   :  { %v22812_v38 = vpop.f32.mrb[40].mxu0 }
 0x409   :  { %v1396_v53 = vpop.f32.mrb[41].mxu0  ;;  %v27189_v34 = vmul.f32 0.35355338, %v22812_v38 }
 0x40a   :  { %v27191_v31 = vmul.f32 0.35355338, %v1396_v53 }
 0x40b   :  { %v1791_v21 = vsel %vm1769_vm4, %v27189_v34, -inf }
 0x40c   :  { %1792 = vmax.xlane.f32.xlu1 %v1791_v21  ;;  %v22819_v58 = vpop.f32.mrb[30].mxu1  ;;  %v1788_v12 = vsel %vm1769_vm4, %v27191_v31, -inf  ;;  %v27211_v21 = vmul.f32 0.35355338, %v22805_v27 }
 0x40d   :  { %1789 = vmax.xlane.f32.xlu0 %v1788_v12  ;;  %v1483_v23 = vpop.f32.mrb[31].mxu1 }
 0x410   :  { %v22826_v45 = vpop.f32.mrb[42].mxu0 }
 0x411   :  { %v1570_v47 = vpop.f32.mrb[43].mxu0  ;;  %v27197_v16 = vmul.f32 0.35355338, %v22826_v45  ;;  %v27215_v45 = vmul.f32 0.35355338, %v1309_v36 }
 0x412   :  { %v27199_v20 = vmul.f32 0.35355338, %v1570_v47  ;;  %v1785_v47 = vsel %vm1769_vm4, %v27211_v21, -inf }
 0x413   :  { %v1803_v5 = vsel %vm1769_vm4, %v27197_v16, -inf }
 0x414   :  { %1804 = vmax.xlane.f32.xlu1 %v1803_v5  ;;  %v22833_v48 = vpop.f32.mrb[32].mxu1  ;;  %v1800_v26 = vsel %vm1769_vm4, %v27199_v20, -inf  ;;  %v27219_v5 = vmul.f32 0.35355338, %v22819_v58 }
 0x415   :  { %1801 = vmax.xlane.f32.xlu0 %v1800_v26  ;;  %v1657_v24 = vpop.f32.mrb[33].mxu1  ;;  %v1782_v26 = vsel %vm1769_vm4, %v27215_v45, -inf }
 0x416   :  { %v1797_v27 = vsel %vm1769_vm4, %v27219_v5, -inf }
 0x418   :  { %v22840_v42 = vpop.f32.mrb[44].mxu0 }
 0x419   :  { %v1744_v28 = vpop.f32.mrb[45].mxu0  ;;  %v27205_v4 = vmul.f32 0.35355338, %v22840_v42  ;;  %v27223_v42 = vmul.f32 0.35355338, %v1483_v23 }
 0x41a   :  { %v27207_v38 = vmul.f32 0.35355338, %v1744_v28  ;;  %v27227_v28 = vmul.f32 0.35355338, %v22833_v48 }
 0x41b   :  { %v1815_v53 = vsel %vm1769_vm4, %v27205_v4, -inf  ;;  %v1794_v36 = vsel %vm1769_vm4, %v27223_v42, -inf }
 0x41c   :  { %1816 = vmax.xlane.f32.xlu1 %v1815_v53  ;;  %v1812_v12 = vsel %vm1769_vm4, %v27207_v38, -inf  ;;  %v27231_v53 = vmul.f32 0.35355338, %v1657_v24  ;;  %v1809_v58 = vsel %vm1769_vm4, %v27227_v28, -inf }
 0x41d   :  { %1813 = vmax.xlane.f32.xlu0 %v1812_v12 }
 0x41e   :  { %v1806_v23 = vsel %vm1769_vm4, %v27231_v53, -inf }
 0x420   :  { %1786 = vmax.xlane.f32.xlu1 %v1785_v47 }
 0x421   :  { %1783 = vmax.xlane.f32.xlu0 %v1782_v26 }
 0x424   :  { %1798 = vmax.xlane.f32.xlu1 %v1797_v27 }
 0x425   :  { %1795 = vmax.xlane.f32.xlu0 %v1794_v36 }
 0x428   :  { %1810 = vmax.xlane.f32.xlu1 %v1809_v58 }
 0x429   :  { %1807 = vmax.xlane.f32.xlu0 %v1806_v23 }
 0x48d   :  { %v1775_v12 = vpop.xlane.xlu1 %1774 }
 0x48e   :  { %v1819_v47 = vsub.f32 %v27173_v19, %v1775_v12  ;;  %v1772_v48 = vpop.xlane.xlu0 %1771 }
 0x48f   :  { %v1818_v26 = vsub.f32 %v27175_v25, %v1772_v48 }
 0x490   :  { %v1836_v27 = vmul.f32 1.442695, %v1819_v47 }
 0x491   :  { %v1834_v61 = vmul.f32 1.442695, %v1818_v26  ;;  %v1781_v63 = vpop.xlane.xlu1 %1780 }
 0x492   :  { %25797 = vpow2.f32 %v1836_v27  ;;  %v1821_v24 = vsub.f32 %v27181_v15, %v1781_v63  ;;  %v1778_v36 = vpop.xlane.xlu0 %1777 }
 0x493   :  { %25799 = vpow2.f32 %v1834_v61  ;;  %v1820_v58 = vsub.f32 %v27183_v1, %v1778_v36 }
 0x494   :  { %v1840_v55 = vmul.f32 1.442695, %v1821_v24 }
 0x495   :  { %v1838_v56 = vmul.f32 1.442695, %v1820_v58 }
 0x496   :  { %25801 = vpow2.f32 %v1840_v55 }
 0x497   :  { %25803 = vpow2.f32 %v1838_v56 }
 0x499   :  { %v1793_v23 = vpop.xlane.xlu1 %1792 }
 0x49a   :  { %v1825_v19 = vsub.f32 %v27189_v34, %v1793_v23  ;;  %v1790_v12 = vpop.xlane.xlu0 %1789 }
 0x49b   :  { %v1824_v25 = vsub.f32 %v27191_v31, %v1790_v12 }
 0x49c   :  { %v27243_v47 = vpop.eup %25797  ;;  %v1848_v48 = vmul.f32 1.442695, %v1825_v19 }
 0x49d   :  { %v27245_v26 = vpop.eup %25799  ;;  %v1846_v63 = vmul.f32 1.442695, %v1824_v25  ;;  %v1869_v61 = vsel %vm1769_vm4, %v27243_v47, 0.0 }
 0x49e   :  { %25805 = vpow2.f32 %v1848_v48  ;;  %1870 = vadd.xlane.f32.xlu1 %v1869_v61  ;;  %v1866_v55 = vsel %vm1769_vm4, %v27245_v26, 0.0 }
 0x49f   :  { %25807 = vpow2.f32 %v1846_v63  ;;  %1867 = vadd.xlane.f32.xlu0 %v1866_v55 }
 0x4a0   :  { %v27251_v56 = vpop.eup %25801 }
 0x4a1   :  { %v27253_v15 = vpop.eup %25803  ;;  %v1805_v1 = vpop.xlane.xlu1 %1804  ;;  %v1875_v34 = vsel %vm1769_vm4, %v27251_v56, 0.0 }
 0x4a2   :  { %v1829_v31 = vsub.f32 %v27197_v16, %v1805_v1  ;;  %v1802_v27 = vpop.xlane.xlu0 %1801  ;;  %1876 = vadd.xlane.f32.xlu1 %v1875_v34  ;;  %v1872_v24 = vsel %vm1769_vm4, %v27253_v15, 0.0 }
 0x4a3   :  { %v1828_v36 = vsub.f32 %v27199_v20, %v1802_v27  ;;  %1873 = vadd.xlane.f32.xlu0 %v1872_v24 }
 0x4a4   :  { %v1856_v58 = vmul.f32 1.442695, %v1829_v31 }
 0x4a5   :  { %v1854_v23 = vmul.f32 1.442695, %v1828_v36 }
 0x4a6   :  { %25809 = vpow2.f32 %v1856_v58 }
 0x4a7   :  { %25811 = vpow2.f32 %v1854_v23 }
 0x4a8   :  { %v27261_v19 = vpop.eup %25805 }
 0x4a9   :  { %v27263_v12 = vpop.eup %25807  ;;  %v1817_v25 = vpop.xlane.xlu1 %1816  ;;  %v1887_v16 = vsel %vm1769_vm4, %v27261_v19, 0.0 }
 0x4aa   :  { %v1833_v48 = vsub.f32 %v27205_v4, %v1817_v25  ;;  %v1814_v63 = vpop.xlane.xlu0 %1813  ;;  %1888 = vadd.xlane.f32.xlu1 %v1887_v16  ;;  %v1884_v20 = vsel %vm1769_vm4, %v27263_v12, 0.0 }
 0x4ab   :  { %v1832_v61 = vsub.f32 %v27207_v38, %v1814_v63  ;;  %1885 = vadd.xlane.f32.xlu0 %v1884_v20 }
 0x4ac   :  { %v1864_v55 = vmul.f32 1.442695, %v1833_v48 }
 0x4ad   :  { %v1862_v1 = vmul.f32 1.442695, %v1832_v61  ;;  %v1787_v34 = vpop.xlane.xlu1 %1786 }
 0x4ae   :  { %25813 = vpow2.f32 %v1864_v55  ;;  %v1823_v31 = vsub.f32 %v27211_v21, %v1787_v34  ;;  %v1784_v27 = vpop.xlane.xlu0 %1783 }
 0x4af   :  { %25815 = vpow2.f32 %v1862_v1  ;;  %v1822_v24 = vsub.f32 %v27215_v45, %v1784_v27 }
 0x4b0   :  { %v27273_v36 = vpop.eup %25809  ;;  %v1844_v4 = vmul.f32 1.442695, %v1823_v31 }
 0x4b1   :  { %v27275_v58 = vpop.eup %25811  ;;  %v1842_v23 = vmul.f32 1.442695, %v1822_v24  ;;  %v1799_v25 = vpop.xlane.xlu1 %1798  ;;  %v1899_v38 = vsel %vm1769_vm4, %v27273_v36, 0.0 }
 0x4b2   :  { %25817 = vpow2.f32 %v1844_v4  ;;  %v1827_v16 = vsub.f32 %v27219_v5, %v1799_v25  ;;  %v1796_v48 = vpop.xlane.xlu0 %1795  ;;  %1900 = vadd.xlane.f32.xlu1 %v1899_v38  ;;  %v1896_v21 = vsel %vm1769_vm4, %v27275_v58, 0.0 }
 0x4b3   :  { %25819 = vpow2.f32 %v1842_v23  ;;  %v1826_v45 = vsub.f32 %v27223_v42, %v1796_v48  ;;  %1897 = vadd.xlane.f32.xlu0 %v1896_v21 }
 0x4b4   :  { %v1852_v63 = vmul.f32 1.442695, %v1827_v16 }
 0x4b5   :  { %v1850_v20 = vmul.f32 1.442695, %v1826_v45  ;;  %v1811_v61 = vpop.xlane.xlu1 %1810 }
 0x4b6   :  { %25821 = vpow2.f32 %v1852_v63  ;;  %v1831_v55 = vsub.f32 %v27227_v28, %v1811_v61  ;;  %v1808_v1 = vpop.xlane.xlu0 %1807 }
 0x4b7   :  { %25823 = vpow2.f32 %v1850_v20  ;;  %v1830_v34 = vsub.f32 %v27231_v53, %v1808_v1 }
 0x4b8   :  { %v27285_v5 = vpop.eup %25813  ;;  %v1860_v31 = vmul.f32 1.442695, %v1831_v55 }
 0x4b9   :  { %v27287_v27 = vpop.eup %25815  ;;  %v1858_v24 = vmul.f32 1.442695, %v1830_v34  ;;  %v1911_v42 = vsel %vm1769_vm4, %v27285_v5, 0.0 }
 0x4ba   :  { %25825 = vpow2.f32 %v1860_v31  ;;  %1912 = vadd.xlane.f32.xlu1 %v1911_v42  ;;  %v1908_v4 = vsel %vm1769_vm4, %v27287_v27, 0.0 }
 0x4bb   :  { %25827 = vpow2.f32 %v1858_v24  ;;  %1909 = vadd.xlane.f32.xlu0 %v1908_v4 }
 0x4bc   :  { %v27293_v28 = vpop.eup %25817 }
 0x4bd   :  { %v27295_v23 = vpop.eup %25819  ;;  %v1881_v53 = vsel %vm1769_vm4, %v27293_v28, 0.0 }
 0x4be   :  { %1882 = vadd.xlane.f32.xlu1 %v1881_v53  ;;  %v1878_v25 = vsel %vm1769_vm4, %v27295_v23, 0.0 }
 0x4bf   :  { %1879 = vadd.xlane.f32.xlu0 %v1878_v25 }
 0x4c0   :  { %v27301_v38 = vpop.eup %25821 }
 0x4c1   :  { %v27303_v16 = vpop.eup %25823  ;;  %v1893_v48 = vsel %vm1769_vm4, %v27301_v38, 0.0 }
 0x4c2   :  { %1894 = vadd.xlane.f32.xlu1 %v1893_v48  ;;  %v1890_v21 = vsel %vm1769_vm4, %v27303_v16, 0.0 }
 0x4c3   :  { %1891 = vadd.xlane.f32.xlu0 %v1890_v21 }
 0x4c4   :  { %v27309_v45 = vpop.eup %25825 }
 0x4c5   :  { %v27311_v63 = vpop.eup %25827  ;;  %v1905_v20 = vsel %vm1769_vm4, %v27309_v45, 0.0 }
 0x4c6   :  { %1906 = vadd.xlane.f32.xlu1 %v1905_v20  ;;  %v1902_v61 = vsel %vm1769_vm4, %v27311_v63, 0.0 }
 0x4c7   :  { %1903 = vadd.xlane.f32.xlu0 %v1902_v61 }
 0x52b   :  { %v1871_v55 = vpop.xlane.xlu1 %1870 }
 0x52c   :  { %25829 = vrcp.f32 %v1871_v55  ;;  %v1868_v1 = vpop.xlane.xlu0 %1867 }
 0x52d   :  { %25831 = vrcp.f32 %v1868_v1 }
 0x52f   :  { %v1877_v34 = vpop.xlane.xlu1 %1876 }
 0x530   :  { %25833 = vrcp.f32 %v1877_v34  ;;  %v1874_v31 = vpop.xlane.xlu0 %1873 }
 0x531   :  { %25835 = vrcp.f32 %v1874_v31 }
 0x536   :  { %v25830_v24 = vpop.eup %25829 }
 0x537   :  { %v25832_v42 = vpop.eup %25831  ;;  %v1889_v4 = vpop.xlane.xlu1 %1888  ;;  %v1917_v48 = vmul.f32 %v25830_v24, %v27243_v47  ;;  %v20411_v24 = vld [vmem:[%s31815_s4 + $0xa0] sm:$0xff] }
 0x538   :  { %25837 = vrcp.f32 %v1889_v4  ;;  %v1886_v53 = vpop.xlane.xlu0 %1885  ;;  %v1915_v25 = vmul.f32 %v25832_v42, %v27245_v26 }
 0x539   :  { %25839 = vrcp.f32 %v1886_v53 }
 0x53a   :  { %v25834_v21 = vpop.eup %25833  ;;  %22845 = vmatprep.mubr.msk.f32.mxu1 %vm1769_vm4, %v1915_v25 }
 0x53b   :  { %v25836_v20 = vpop.eup %25835  ;;  %22846 = vmatmul.mubr.msk.f32.vlgmr.msra.gmra.mrb[34].mxu1 %vm1769_vm4, %v1917_v48  ;;  %v1921_v55 = vmul.f32 %v25834_v21, %v27251_v56 }
 0x53c   :  { %24832 = vmatpush3.bf16.msra.mxu1 %v27095_v41  ;;  %v1919_v61 = vmul.f32 %v25836_v20, %v27253_v15 }
 0x53d   :  { %24838 = vmatprep.subr.bf16.mxu1 %v27125_v17 }
 0x53e   :  { %22852 = vmatprep.mubr.msk.f32.mxu1 %vm1769_vm4, %v1919_v61 }
 0x53f   :  { %v1901_v26 = vpop.xlane.xlu1 %1900  ;;  %22853 = vmatmul.mubr.msk.f32.vlgmr.msra.gmra.mrb[36].mxu1 %vm1769_vm4, %v1921_v55 }
 0x540   :  { %25841 = vrcp.f32 %v1901_v26  ;;  %24840 = vmatpush3.bf16.msra.mxu1 %v27125_v17  ;;  %v1898_v47 = vpop.xlane.xlu0 %1897 }
 0x541   :  { %24846 = vmatprep.subr.bf16.mxu1 %v27156_v59  ;;  %25843 = vrcp.f32 %v1898_v47 }
 0x542   :  { %v25838_v1 = vpop.eup %25837 }
 0x543   :  { %v25840_v41 = vpop.eup %25839  ;;  %v1929_v34 = vmul.f32 %v25838_v1, %v27261_v19  ;;  %v20412_v19 = vld [vmem:[%s31815_s4 + $0xa8] sm:$0xff] }
 0x544   :  { %v1927_v15 = vmul.f32 %v25840_v41, %v27263_v12  ;;  %v24865_v25 = vpack.c.bf16 %v20412_v19, %v20411_v24 }
 0x546   :  { %22866 = vmatprep.mubr.msk.f32.mxu1 %vm1769_vm4, %v1927_v15 }
 0x547   :  { %v1913_v56 = vpop.xlane.xlu1 %1912  ;;  %22867 = vmatmul.mubr.msk.f32.vlgmr.msra.gmra.mrb[38].mxu1 %vm1769_vm4, %v1929_v34 }
 0x548   :  { %25845 = vrcp.f32 %v1913_v56  ;;  %24848 = vmatpush3.bf16.msra.mxu1 %v27156_v59  ;;  %v1910_v31 = vpop.xlane.xlu0 %1909 }
 0x549   :  { %24854 = vmatprep.subr.bf16.mxu1 %v27171_v52  ;;  %25847 = vrcp.f32 %v1910_v31  ;;  %v20390_v31 = vld [vmem:[%s31815_s4 + $0x28] sm:$0xff] }
 0x54a   :  { %v25842_v17 = vpop.eup %25841 }
 0x54b   :  { %v25844_v12 = vpop.eup %25843  ;;  %v1883_v42 = vpop.xlane.xlu1 %1882  ;;  %v1937_v59 = vmul.f32 %v25842_v17, %v27273_v36  ;;  %v20414_v36 = vld [vmem:[%s31815_s4 + $0xb8] sm:$0xff] }
 0x54c   :  { %25849 = vrcp.f32 %v1883_v42  ;;  %v1880_v4 = vpop.xlane.xlu0 %1879  ;;  %v1935_v53 = vmul.f32 %v25844_v12, %v27275_v58  ;;  %v20413_v58 = vld [vmem:[%s31815_s4 + $0xb0] sm:$0xff]  ;;  %v20392_v42 = vld [vmem:[%s31815_s4 + $0x38] sm:$0xff] }
 0x54d   :  { %25851 = vrcp.f32 %v1880_v4  ;;  %v24869_v1 = vpack.c.bf16 %v20414_v36, %v20413_v58  ;;  %v20391_v12 = vld [vmem:[%s31815_s4 + $0x30] sm:$0xff] }
 0x54e   :  { %22880 = vmatprep.mubr.msk.f32.mxu1 %vm1769_vm4, %v1935_v53  ;;  %v24861_v4 = vpack.c.bf16 %v20392_v42, %v20391_v12  ;;  %v20433_v53 = vld [vmem:[%s31815_s4 + $0x120] sm:$0xff] }
 0x54f   :  { %v1895_v48 = vpop.xlane.xlu1 %1894  ;;  %22881 = vmatmul.mubr.msk.f32.vlgmr.msra.gmra.mrb[40].mxu1 %vm1769_vm4, %v1937_v59  ;;  %v20434_v59 = vld [vmem:[%s31815_s4 + $0x128] sm:$0xff] }
 0x550   :  { %25853 = vrcp.f32 %v1895_v48  ;;  %24856 = vmatpush3.bf16.msra.mxu1 %v27171_v52  ;;  %v1892_v21 = vpop.xlane.xlu0 %1891 }
 0x551   :  { %25855 = vrcp.f32 %v1892_v21  ;;  %24866 = vmatprep.subr.bf16.mxu1 %v24865_v25 }
 0x552   :  { %v25846_v20 = vpop.eup %25845 }
 0x553   :  { %v25848_v61 = vpop.eup %25847  ;;  %v1907_v55 = vpop.xlane.xlu1 %1906  ;;  %v1945_v52 = vmul.f32 %v25846_v20, %v27285_v5  ;;  %v20389_v5 = vld [vmem:[%s31815_s4 + $0x20] sm:$0xff] }
 0x554   :  { %25857 = vrcp.f32 %v1907_v55  ;;  %v1904_v26 = vpop.xlane.xlu0 %1903  ;;  %v1943_v47 = vmul.f32 %v25848_v61, %v27287_v27  ;;  %v24857_v24 = vpack.c.bf16 %v20390_v31, %v20389_v5 }
 0x555   :  { %25859 = vrcp.f32 %v1904_v26 }
 0x556   :  { %v25850_v41 = vpop.eup %25849  ;;  %22894 = vmatprep.mubr.msk.f32.mxu1 %vm1769_vm4, %v1943_v47 }
 0x557   :  { %v25852_v15 = vpop.eup %25851  ;;  %22895 = vmatmul.mubr.msk.f32.vlgmr.msra.gmra.mrb[42].mxu1 %vm1769_vm4, %v1945_v52  ;;  %v1925_v56 = vmul.f32 %v25850_v41, %v27293_v28 }
 0x558   :  { %24868 = vmatpush3.bf16.msra.mxu1 %v24865_v25  ;;  %22937 = vmatprep.mubr.msk.f32.mxu1 %vm282_vm1, %v26897_v14  ;;  %v1923_v34 = vmul.f32 %v25852_v15, %v27295_v23  ;;  %v27518_v15 = vld [vmem:[%s31817_s5 + $0x5] ss:$0 sm:$0xff] }
 0x559   :  { %24870 = vmatprep.subr.bf16.mxu1 %v24869_v1 }
 0x55a   :  { %v25854_v27 = vpop.eup %25853  ;;  %22859 = vmatprep.mubr.msk.f32.mxu0 %vm1769_vm4, %v1923_v34 }
 0x55b   :  { %v25856_v17 = vpop.eup %25855  ;;  %22860 = vmatmul.mubr.msk.f32.vlgmr.msra.gmra.mrb[46].mxu0 %vm1769_vm4, %v1925_v56  ;;  %v1933_v28 = vmul.f32 %v25854_v27, %v27301_v38 }
 0x55c   :  { %24844 = vmatpush3.bf16.msra.mxu0 %v27142_v60  ;;  %24872 = vmatpush3.bf16.msra.mxu1 %v24869_v1  ;;  %v1931_v23 = vmul.f32 %v25856_v17, %v27303_v16 }
 0x55d   :  { %24850 = vmatprep.subr.bf16.mxu0 %v27165_v0 }
 0x55e   :  { %v25858_v19 = vpop.eup %25857  ;;  %22873 = vmatprep.mubr.msk.f32.mxu0 %vm1769_vm4, %v1931_v23 }
 0x55f   :  { %v25860_v60 = vpop.eup %25859  ;;  %22938 = vmatmul.mubr.msk.f32.vlgmr.msra.gmra.mrb[44].mxu1 %vm282_vm1, %v26915_v35  ;;  %22874 = vmatmul.mubr.msk.f32.vlgmr.msra.gmra.mrb[48].mxu0 %vm1769_vm4, %v1933_v28  ;;  %v1941_v16 = vmul.f32 %v25858_v19, %v27309_v45  ;;  %v20435_v45 = vld [vmem:[%s31815_s4 + $0x130] sm:$0xff] }
 0x560   :  { %24852 = vmatpush3.bf16.msra.mxu0 %v27165_v0  ;;  %22940 = vmatprep.mubr.msk.f32.mxu1 %vm282_vm1, %v26919_v18  ;;  %v1939_v38 = vmul.f32 %v25860_v60, %v27311_v63  ;;  %v24873_v0 = vpack.c.bf16 %v20434_v59, %v20433_v53  ;;  %v20436_v63 = vld [vmem:[%s31815_s4 + $0x138] sm:$0xff] }
 0x561   :  { %24858 = vmatprep.subr.bf16.mxu0 %v24857_v24  ;;  %v24877_v25 = vpack.c.bf16 %v20436_v63, %v20435_v45 }
 0x562   :  { %22887 = vmatprep.mubr.msk.f32.mxu0 %vm1769_vm4, %v1939_v38 }
 0x563   :  { %22941 = vmatmul.mubr.msk.f32.gmra.mrb[46].mxu1 %vm282_vm1, %v26933_v40  ;;  %22888 = vmatmul.mubr.msk.f32.vlgmr.msra.gmra.mrb[50].mxu0 %vm1769_vm4, %v1941_v16 }
 0x564   :  { %24860 = vmatpush3.bf16.msra.mxu0 %v24857_v24  ;;  %22943 = vmatprep.mubr.msk.f32.mxu1 %vm282_vm1, %v26938_v22 }
 0x565   :  { %22905 = vmatprep.mubr.msk.f32.mxu0 %vm282_vm1, %v26897_v14  ;;  %24862 = vmatprep.subr.bf16.mxu0 %v24861_v4 }
 0x567   :  { %22944 = vmatmul.mubr.msk.f32.gmra.mrb[48].mxu1 %vm282_vm1, %v26950_v54 }
 0x568   :  { %24864 = vmatpush3.bf16.msra.mxu0 %v24861_v4  ;;  %22946 = vmatprep.mubr.msk.f32.mxu1 %vm282_vm1, %v26821_v30 }
 0x569   :  { %24874 = vmatprep.subr.bf16.mxu0 %v24873_v0 }
 0x56b   :  { %22906 = vmatmul.mubr.msk.f32.vlgmr.msra.gmra.mrb[52].mxu0 %vm282_vm1, %v26915_v35  ;;  %22947 = vmatmul.mubr.msk.f32.gmra.mrb[50].mxu1 %vm282_vm1, %v26836_v57 }
 0x56c   :  { %22908 = vmatprep.mubr.msk.f32.mxu0 %vm282_vm1, %v26919_v18  ;;  %22949 = vmatprep.mubr.msk.f32.mxu1 %vm282_vm1, %v26840_v8 }
 0x56d   :  { %24876 = vmatpush3.bf16.msra.mxu0 %v24873_v0  ;;  %v27543_v0 = vld [vmem:[%s31817_s5 + $0x1] ss:$0 sm:$0xff] }
 0x56e   :  { %24878 = vmatprep.subr.bf16.mxu0 %v24877_v25 }
 0x56f   :  { %22909 = vmatmul.mubr.msk.f32.gmra.mrb[54].mxu0 %vm282_vm1, %v26933_v40  ;;  %22950 = vmatmul.mubr.msk.f32.gmra.mrb[52].mxu1 %vm282_vm1, %v26851_v32 }
 0x570   :  { %22911 = vmatprep.mubr.msk.f32.mxu0 %vm282_vm1, %v26938_v22  ;;  %22952 = vmatprep.mubr.msk.f32.mxu1 %vm282_vm1, %v26855_v33 }
 0x571   :  { %24880 = vmatpush3.bf16.msra.mxu0 %v24877_v25 }
 0x573   :  { %22912 = vmatmul.mubr.msk.f32.gmra.mrb[56].mxu0 %vm282_vm1, %v26950_v54  ;;  %22953 = vmatmul.mubr.msk.f32.gmra.mrb[54].mxu1 %vm282_vm1, %v26865_v46 }
 0x574   :  { %22914 = vmatprep.mubr.msk.f32.mxu0 %vm282_vm1, %v26821_v30  ;;  %22955 = vmatprep.mubr.msk.f32.mxu1 %vm282_vm1, %v26869_v51 }
 0x577   :  { %22915 = vmatmul.mubr.msk.f32.gmra.mrb[58].mxu0 %vm282_vm1, %v26836_v57  ;;  %22956 = vmatmul.mubr.msk.f32.gmra.mrb[56].mxu1 %vm282_vm1, %v26879_v9 }
 0x578   :  { %22917 = vmatprep.mubr.msk.f32.mxu0 %vm282_vm1, %v26840_v8  ;;  %22958 = vmatprep.mubr.msk.f32.mxu1 %vm282_vm1, %v26883_v11 }
 0x57b   :  { %22918 = vmatmul.mubr.msk.f32.gmra.mrb[60].mxu0 %vm282_vm1, %v26851_v32  ;;  %22959 = vmatmul.mubr.msk.f32.gmra.mrb[58].mxu1 %vm282_vm1, %v26893_v13 }
 0x57c   :  { %22920 = vmatprep.mubr.msk.f32.mxu0 %vm282_vm1, %v26855_v33 }
 0x57f   :  { %22921 = vmatmul.mubr.msk.f32.gmra.mrb[62].mxu0 %vm282_vm1, %v26865_v46 }
 0x580   :  { %22923 = vmatprep.mubr.msk.f32.mxu0 %vm282_vm1, %v26869_v51 }
 0x583   :  { %22924 = vmatmul.mubr.msk.f32.gmra.mrb[64].mxu0 %vm282_vm1, %v26879_v9 }
 0x584   :  { %22926 = vmatprep.mubr.msk.f32.mxu0 %vm282_vm1, %v26883_v11 }
 0x587   :  { %22927 = vmatmul.mubr.msk.f32.gmra.mrb[66].mxu0 %vm282_vm1, %v26893_v13 }
 0x588   :  { %22969 = vmatprep.mubr.msk.f32.mxu0 %vm282_vm1, %v26897_v14 }
 0x58b   :  { %22970 = vmatmul.mubr.msk.f32.vlgmr.msra.gmra.mrb[68].mxu0 %vm282_vm1, %v26915_v35 }
 0x58c   :  { %22972 = vmatprep.mubr.msk.f32.mxu0 %vm282_vm1, %v26919_v18 }
 0x58f   :  { %22973 = vmatmul.mubr.msk.f32.gmra.mrb[70].mxu0 %vm282_vm1, %v26933_v40 }
 0x590   :  { %22975 = vmatprep.mubr.msk.f32.mxu0 %vm282_vm1, %v26938_v22 }
 0x593   :  { %22976 = vmatmul.mubr.msk.f32.gmra.mrb[72].mxu0 %vm282_vm1, %v26950_v54 }
 0x594   :  { %22978 = vmatprep.mubr.msk.f32.mxu0 %vm282_vm1, %v26821_v30 }
 0x597   :  { %22979 = vmatmul.mubr.msk.f32.gmra.mrb[74].mxu0 %vm282_vm1, %v26836_v57 }
 0x598   :  { %22981 = vmatprep.mubr.msk.f32.mxu0 %vm282_vm1, %v26840_v8 }
 0x59b   :  { %22982 = vmatmul.mubr.msk.f32.gmra.mrb[76].mxu0 %vm282_vm1, %v26851_v32 }
 0x59c   :  { %22984 = vmatprep.mubr.msk.f32.mxu0 %vm282_vm1, %v26855_v33 }
 0x59f   :  { %22985 = vmatmul.mubr.msk.f32.gmra.mrb[78].mxu0 %vm282_vm1, %v26865_v46 }
 0x5a0   :  { %22987 = vmatprep.mubr.msk.f32.mxu0 %vm282_vm1, %v26869_v51 }
 0x5a3   :  { %22988 = vmatmul.mubr.msk.f32.gmra.mrb[80].mxu0 %vm282_vm1, %v26879_v9 }
 0x5a4   :  { %22990 = vmatprep.mubr.msk.f32.mxu0 %vm282_vm1, %v26883_v11 }
 0x5a7   :  { %22991 = vmatmul.mubr.msk.f32.gmra.mrb[82].mxu0 %vm282_vm1, %v26893_v13 }
 0x60e   :  { %v27491_v48 = vpop.f32.mrb[34].mxu1 }
 0x60f   :  { %v27493_v21 = vpop.f32.mrb[35].mxu1 }
 0x612   :  { %v27495_v20 = vpop.f32.mrb[36].mxu1 }
 0x613   :  { %v27497_v58 = vpop.f32.mrb[37].mxu1 }
 0x61a   :  { %v27499_v36 = vpop.f32.mrb[38].mxu1 }
 0x61b   :  { %v27501_v61 = vpop.f32.mrb[39].mxu1 }
 0x622   :  { %v27503_v55 = vpop.f32.mrb[40].mxu1 }
 0x623   :  { %v27505_v26 = vpop.f32.mrb[41].mxu1 }
 0x62a   :  { %v27507_v47 = vpop.f32.mrb[42].mxu1 }
 0x62b   :  { %31877 = vst [vmem:[#allocation19_spill] sm:$0xff] %v27507_v47  ;;  %v27509_v52 = vpop.f32.mrb[43].mxu1 }
 0x62c   :  { %31878 = vst [vmem:[#allocation20_spill] sm:$0xff] %v27509_v52 }
 0x62e   :  { %v27511_v1 = vpop.f32.mrb[46].mxu0 }
 0x62f   :  { %v27513_v41 = vpop.f32.mrb[47].mxu0 }
 0x632   :  { %v22939_v34 = vpop.f32.mrb[44].mxu1  ;;  %v27520_v56 = vpop.f32.mrb[48].mxu0 }
 0x633   :  { %v2838_v27 = vadd.f32 %v22939_v34, %v27518_v15  ;;  %v2832_v5 = vpop.f32.mrb[45].mxu1  ;;  %v27523_v31 = vpop.f32.mrb[49].mxu0 }
 0x634   :  { %v2833_v17 = vadd.f32 %v27518_v15, %v2832_v5 }
 0x636   :  { %v24881_v23 = vpack.c.bf16 %v2838_v27, %v2833_v17  ;;  %v22942_v28 = vpop.f32.mrb[46].mxu1  ;;  %v27526_v24 = vpop.f32.mrb[50].mxu0 }
 0x637   :  { %31879 = vst [vmem:[#allocation21_spill] sm:$0xff] %v27526_v24  ;;  %v2848_v19 = vadd.f32 %v22942_v28, %v27518_v15  ;;  %v2842_v12 = vpop.f32.mrb[47].mxu1  ;;  %v27529_v42 = vpop.f32.mrb[51].mxu0 }
 0x638   :  { %v2843_v60 = vadd.f32 %v27518_v15, %v2842_v12  ;;  %24883 = vmatprep.subr.msk.bf16.mxu1 %vm27043_vm3, %v24881_v23 }
 0x639   :  { %24886 = vmatpush3.bf16.xpose.msk.msra.mxu1 %vm27043_vm3, %v24881_v23 }
 0x63a   :  { %v24887_v38 = vpack.c.bf16 %v2848_v19, %v2843_v60  ;;  %v22945_v16 = vpop.f32.mrb[48].mxu1 }
 0x63b   :  { %v2858_v4 = vadd.f32 %v22945_v16, %v27518_v15  ;;  %v2852_v53 = vpop.f32.mrb[49].mxu1 }
 0x63c   :  { %v2853_v59 = vadd.f32 %v27518_v15, %v2852_v53  ;;  %24889 = vmatprep.subr.msk.bf16.mxu1 %vm27043_vm3, %v24887_v38 }
 0x63e   :  { %v24893_v45 = vpack.c.bf16 %v2858_v4, %v2853_v59  ;;  %v22907_v63 = vpop.f32.mrb[52].mxu0  ;;  %v22948_v25 = vpop.f32.mrb[50].mxu1 }
 0x63f   :  { %v2868_v34 = vadd.f32 %v22948_v25, %v27518_v15  ;;  %v2674_v27 = vpop.f32.mrb[53].mxu0  ;;  %v2862_v5 = vpop.f32.mrb[51].mxu1  ;;  %v2680_v28 = vadd.f32 %v22907_v63, %v27543_v0 }
 0x640   :  { %v2675_v17 = vadd.f32 %v27543_v0, %v2674_v27  ;;  %v2863_v23 = vadd.f32 %v27518_v15, %v2862_v5 }
 0x642   :  { %v24899_v19 = vpack.c.bf16 %v2868_v34, %v2863_v23  ;;  %v22910_v12 = vpop.f32.mrb[54].mxu0  ;;  %v22951_v60 = vpop.f32.mrb[52].mxu1  ;;  %22997 = vmatprep.mubr.msk.f32.mxu1 %vm1056_vm2, %v2675_v17 }
 0x643   :  { %v2878_v16 = vadd.f32 %v22951_v60, %v27518_v15  ;;  %v2684_v4 = vpop.f32.mrb[55].mxu0  ;;  %v2872_v53 = vpop.f32.mrb[53].mxu1  ;;  %22998 = vmatmul.mubr.msk.f32.vlgmr.msra.gmra.mrb[60].mxu1 %vm1056_vm2, %v2680_v28 }
 0x644   :  { %v2685_v59 = vadd.f32 %v27543_v0, %v2684_v4  ;;  %v2873_v25 = vadd.f32 %v27518_v15, %v2872_v53  ;;  %24892 = vmatpush3.bf16.xpose.msk.msra.mxu1 %vm27043_vm3, %v24887_v38  ;;  %v2690_v38 = vadd.f32 %v22910_v12, %v27543_v0 }
 0x645   :  { %24895 = vmatprep.subr.msk.bf16.mxu1 %vm27043_vm3, %v24893_v45 }
 0x646   :  { %v24905_v63 = vpack.c.bf16 %v2878_v16, %v2873_v25  ;;  %v22913_v34 = vpop.f32.mrb[56].mxu0  ;;  %v22954_v27 = vpop.f32.mrb[54].mxu1  ;;  %23004 = vmatprep.mubr.msk.f32.mxu1 %vm1056_vm2, %v2685_v59 }
 0x647   :  { %v2888_v5 = vadd.f32 %v22954_v27, %v27518_v15  ;;  %v2694_v17 = vpop.f32.mrb[57].mxu0  ;;  %v2882_v23 = vpop.f32.mrb[55].mxu1 }
 0x648   :  { %v2695_v28 = vadd.f32 %v27543_v0, %v2694_v17  ;;  %v2883_v60 = vadd.f32 %v27518_v15, %v2882_v23  ;;  %24907 = vmatprep.subr.msk.bf16.mxu0 %vm27043_vm3, %v24905_v63 }
 0x649   :  { %24910 = vmatpush3.bf16.xpose.msk.msra.mxu0 %vm27043_vm3, %v24905_v63 }
 0x64a   :  { %v24911_v16 = vpack.c.bf16 %v2888_v5, %v2883_v60  ;;  %v22916_v4 = vpop.f32.mrb[58].mxu0  ;;  %v22957_v53 = vpop.f32.mrb[56].mxu1 }
 0x64b   :  { %v2898_v59 = vadd.f32 %v22957_v53, %v27518_v15  ;;  %23005 = vmatmul.mubr.msk.f32.vlgmr.msra.gmra.mrb[62].mxu1 %vm1056_vm2, %v2690_v38  ;;  %v2704_v25 = vpop.f32.mrb[59].mxu0  ;;  %v2892_v27 = vpop.f32.mrb[57].mxu1 }
 0x64c   :  { %v2893_v17 = vadd.f32 %v27518_v15, %v2892_v27  ;;  %24898 = vmatpush3.bf16.xpose.msk.msra.mxu1 %vm27043_vm3, %v24893_v45  ;;  %23011 = vmatprep.mubr.msk.f32.mxu1 %vm1056_vm2, %v2695_v28  ;;  %v2700_v45 = vadd.f32 %v22913_v34, %v27543_v0  ;;  %v2705_v27 = vadd.f32 %v27543_v0, %v2704_v25 }
 0x64d   :  { %24901 = vmatprep.subr.msk.bf16.mxu1 %vm27043_vm3, %v24899_v19  ;;  %v2710_v25 = vadd.f32 %v22916_v4, %v27543_v0 }
 0x64e   :  { %v24917_v12 = vpack.c.bf16 %v2898_v59, %v2893_v17  ;;  %v22919_v63 = vpop.f32.mrb[60].mxu0  ;;  %v22960_v5 = vpop.f32.mrb[58].mxu1 }
 0x64f   :  { %v2908_v23 = vadd.f32 %v22960_v5, %v27518_v15  ;;  %v2714_v60 = vpop.f32.mrb[61].mxu0  ;;  %v2902_v53 = vpop.f32.mrb[59].mxu1  ;;  %v2720_v28 = vadd.f32 %v22919_v63, %v27543_v0 }
 0x650   :  { %v2715_v38 = vadd.f32 %v27543_v0, %v2714_v60  ;;  %v2903_v49 = vadd.f32 %v27518_v15, %v2902_v53  ;;  %24919 = vmatprep.subr.msk.bf16.mxu0 %vm27043_vm3, %v24917_v12 }
 0x652   :  { %v24923_v59 = vpack.c.bf16 %v2908_v23, %v2903_v49  ;;  %v22922_v17 = vpop.f32.mrb[62].mxu0  ;;  %23025 = vmatprep.mubr.msk.f32.mxu0 %vm1056_vm2, %v2715_v38 }
 0x653   :  { %23012 = vmatmul.mubr.msk.f32.vlgmr.msra.gmra.mrb[64].mxu1 %vm1056_vm2, %v2700_v45  ;;  %v2724_v5 = vpop.f32.mrb[63].mxu0  ;;  %23026 = vmatmul.mubr.msk.f32.vlgmr.msra.gmra.mrb[84].mxu0 %vm1056_vm2, %v2720_v28  ;;  %v2730_v28 = vadd.f32 %v22922_v17, %v27543_v0 }
 0x654   :  { %24904 = vmatpush3.bf16.xpose.msk.msra.mxu1 %vm27043_vm3, %v24899_v19  ;;  %23018 = vmatprep.mubr.msk.f32.mxu1 %vm1056_vm2, %v2705_v27  ;;  %v2725_v63 = vadd.f32 %v27543_v0, %v2724_v5 }
 0x655   :  { %24922 = vmatpush3.bf16.xpose.msk.msra.mxu0 %vm27043_vm3, %v24917_v12  ;;  %24913 = vmatprep.subr.msk.bf16.mxu1 %vm27043_vm3, %v24911_v16  ;;  %v20438_v12 = vld [vmem:[%s31817_s5 + $0x9] ss:$0 sm:$0xff] }
 0x656   :  { %v22925_v49 = vpop.f32.mrb[64].mxu0 }
 0x657   :  { %v2734_v15 = vpop.f32.mrb[65].mxu0  ;;  %v2740_v19 = vadd.f32 %v22925_v49, %v27543_v0 }
 0x658   :  { %v2735_v34 = vadd.f32 %v27543_v0, %v2734_v15 }
 0x65a   :  { %v22928_v23 = vpop.f32.mrb[66].mxu0  ;;  %23039 = vmatprep.mubr.msk.f32.mxu0 %vm1056_vm2, %v2735_v34 }
 0x65b   :  { %23019 = vmatmul.mubr.msk.f32.vlgmr.msra.gmra.mrb[66].mxu1 %vm1056_vm2, %v2710_v25  ;;  %v2744_v60 = vpop.f32.mrb[67].mxu0 }
 0x65c   :  { %24916 = vmatpush3.bf16.xpose.msk.msra.mxu1 %vm27043_vm3, %v24911_v16  ;;  %23032 = vmatprep.mubr.msk.f32.mxu1 %vm1056_vm2, %v2725_v63  ;;  %v2745_v27 = vadd.f32 %v27543_v0, %v2744_v60  ;;  %v2750_v60 = vadd.f32 %v22928_v23, %v27543_v0 }
 0x65d   :  { %23040 = vmatmul.mubr.msk.f32.vlgmr.msra.gmra.mrb[86].mxu0 %vm1056_vm2, %v2740_v19  ;;  %24925 = vmatprep.subr.msk.bf16.mxu1 %vm27043_vm3, %v24923_v59 }
 0x65e   :  { %v22971_v4 = vpop.f32.mrb[68].mxu0 }
 0x65f   :  { %v2996_v53 = vadd.f32 %v22971_v4, %v20438_v12  ;;  %v2990_v38 = vpop.f32.mrb[69].mxu0 }
 0x660   :  { %v2991_v45 = vadd.f32 %v20438_v12, %v2990_v38 }
 0x662   :  { %v22974_v16 = vpop.f32.mrb[70].mxu0  ;;  %v24929_v5 = vpack.c.bf16 %v2996_v53, %v2991_v45 }
 0x663   :  { %v3006_v49 = vadd.f32 %v22974_v16, %v20438_v12  ;;  %23033 = vmatmul.mubr.msk.f32.vlgmr.msra.gmra.mrb[68].mxu1 %vm1056_vm2, %v2730_v28  ;;  %v3000_v15 = vpop.f32.mrb[71].mxu0 }
 0x664   :  { %v3001_v34 = vadd.f32 %v20438_v12, %v3000_v15  ;;  %24928 = vmatpush3.bf16.xpose.msk.msra.mxu1 %vm27043_vm3, %v24923_v59  ;;  %23046 = vmatprep.mubr.msk.f32.mxu1 %vm1056_vm2, %v2745_v27 }
 0x665   :  { %24930 = vmatprep.subr.bf16.mxu0 %v24929_v5 }
 0x666   :  { %24932 = vmatpush3.bf16.msra.mxu0 %v24929_v5  ;;  %v22977_v25 = vpop.f32.mrb[72].mxu0  ;;  %v24933_v63 = vpack.c.bf16 %v3006_v49, %v3001_v34 }
 0x667   :  { %v3016_v19 = vadd.f32 %v22977_v25, %v20438_v12  ;;  %v3010_v17 = vpop.f32.mrb[73].mxu0 }
 0x668   :  { %v3011_v4 = vadd.f32 %v20438_v12, %v3010_v17  ;;  %24934 = vmatprep.subr.bf16.mxu1 %v24933_v63 }
 0x66a   :  { %v22980_v53 = vpop.f32.mrb[74].mxu0  ;;  %v27615_v38 = vpack.c.bf16 %v3016_v19, %v3011_v4 }
 0x66b   :  { %v3026_v45 = vadd.f32 %v22980_v53, %v20438_v12  ;;  %23047 = vmatmul.mubr.msk.f32.vlgmr.msra.gmra.mrb[70].mxu1 %vm1056_vm2, %v2750_v60  ;;  %v3020_v28 = vpop.f32.mrb[75].mxu0 }
 0x66c   :  { %v3021_v59 = vadd.f32 %v20438_v12, %v3020_v28  ;;  %24936 = vmatpush3.bf16.msra.mxu1 %v24933_v63  ;;  %24938 = vmatprep.subr.bf16.mxu0 %v27615_v38 }
 0x66e   :  { %v22983_v27 = vpop.f32.mrb[76].mxu0  ;;  %v27619_v16 = vpack.c.bf16 %v3026_v45, %v3021_v59 }
 0x66f   :  { %v3036_v5 = vadd.f32 %v22983_v27, %v20438_v12  ;;  %v3030_v49 = vpop.f32.mrb[77].mxu0 }
 0x670   :  { %v3031_v15 = vadd.f32 %v20438_v12, %v3030_v49  ;;  %24942 = vmatprep.subr.bf16.mxu1 %v27619_v16 }
 0x672   :  { %v22986_v0 = vpop.f32.mrb[78].mxu0  ;;  %v27622_v23 = vpack.c.bf16 %v3036_v5, %v3031_v15 }
 0x673   :  { %v3046_v34 = vadd.f32 %v22986_v0, %v20438_v12  ;;  %v3040_v25 = vpop.f32.mrb[79].mxu0 }
 0x674   :  { %v3041_v19 = vadd.f32 %v20438_v12, %v3040_v25 }
 0x676   :  { %v22989_v17 = vpop.f32.mrb[80].mxu0  ;;  %v27624_v4 = vpack.c.bf16 %v3046_v34, %v3041_v19 }
 0x677   :  { %v3056_v63 = vadd.f32 %v22989_v17, %v20438_v12  ;;  %v3050_v60 = vpop.f32.mrb[81].mxu0 }
 0x678   :  { %v3051_v53 = vadd.f32 %v20438_v12, %v3050_v60 }
 0x67a   :  { %v22992_v28 = vpop.f32.mrb[82].mxu0  ;;  %v27626_v45 = vpack.c.bf16 %v3056_v63, %v3051_v53 }
 0x67b   :  { %v3066_v59 = vadd.f32 %v22992_v28, %v20438_v12  ;;  %v3060_v27 = vpop.f32.mrb[83].mxu0 }
 0x67c   :  { %v3061_v49 = vadd.f32 %v20438_v12, %v3060_v27 }
 0x67e   :  { %v27628_v50 = vpack.c.bf16 %v3066_v59, %v3061_v49 }
 0x716   :  { %v22999_v43 = vpop.f32.mrb[60].mxu1 }
 0x717   :  { %v3147_v5 = vpop.f32.mrb[61].mxu1  ;;  %v27630_v15 = vmul.f32 0.35355338, %v22999_v43 }
 0x718   :  { %v27632_v0 = vmul.f32 0.35355338, %v3147_v5 }
 0x719   :  { %v3784_v34 = vsel %vm1769_vm4, %v27630_v15, -inf }
 0x71a   :  { %3785 = vmax.xlane.f32.xlu1 %v3784_v34  ;;  %v3781_v25 = vsel %vm1769_vm4, %v27632_v0, -inf }
 0x71b   :  { %3782 = vmax.xlane.f32.xlu0 %v3781_v25 }
 0x71e   :  { %v23006_v19 = vpop.f32.mrb[62].mxu1 }
 0x71f   :  { %v3234_v17 = vpop.f32.mrb[63].mxu1  ;;  %v27638_v63 = vmul.f32 0.35355338, %v23006_v19 }
 0x720   :  { %v27640_v12 = vmul.f32 0.35355338, %v3234_v17 }
 0x721   :  { %v3790_v43 = vsel %vm1769_vm4, %v27638_v63, -inf }
 0x722   :  { %3791 = vmax.xlane.f32.xlu1 %v3790_v43  ;;  %v3787_v60 = vsel %vm1769_vm4, %v27640_v12, -inf }
 0x723   :  { %3788 = vmax.xlane.f32.xlu0 %v3787_v60 }
 0x726   :  { %v23013_v53 = vpop.f32.mrb[64].mxu1  ;;  %v23027_v28 = vpop.f32.mrb[84].mxu0 }
 0x727   :  { %v3321_v59 = vpop.f32.mrb[65].mxu1  ;;  %v3495_v27 = vpop.f32.mrb[85].mxu0  ;;  %v27646_v49 = vmul.f32 0.35355338, %v23013_v53  ;;  %v27652_v25 = vmul.f32 0.35355338, %v23027_v28 }
 0x728   :  { %v27648_v5 = vmul.f32 0.35355338, %v3321_v59  ;;  %v27656_v17 = vmul.f32 0.35355338, %v3495_v27 }
 0x729   :  { %v3796_v34 = vsel %vm1769_vm4, %v27646_v49, -inf  ;;  %v3808_v43 = vsel %vm1769_vm4, %v27652_v25, -inf }
 0x72a   :  { %3797 = vmax.xlane.f32.xlu1 %v3796_v34  ;;  %v3793_v19 = vsel %vm1769_vm4, %v27648_v5, -inf  ;;  %v3805_v53 = vsel %vm1769_vm4, %v27656_v17, -inf }
 0x72b   :  { %3794 = vmax.xlane.f32.xlu0 %v3793_v19 }
 0x72e   :  { %3809 = vmax.xlane.f32.xlu1 %v3808_v43  ;;  %v23020_v60 = vpop.f32.mrb[66].mxu1 }
 0x72f   :  { %3806 = vmax.xlane.f32.xlu0 %v3805_v53  ;;  %v3408_v59 = vpop.f32.mrb[67].mxu1  ;;  %v27662_v44 = vmul.f32 0.35355338, %v23020_v60 }
 0x730   :  { %v23041_v28 = vpop.f32.mrb[86].mxu0  ;;  %v27664_v34 = vmul.f32 0.35355338, %v3408_v59 }
 0x731   :  { %v3669_v37 = vpop.f32.mrb[87].mxu0  ;;  %v3802_v27 = vsel %vm1769_vm4, %v27662_v44, -inf }
 0x732   :  { %3803 = vmax.xlane.f32.xlu1 %v3802_v27  ;;  %v3799_v19 = vsel %vm1769_vm4, %v27664_v34, -inf }
 0x733   :  { %3800 = vmax.xlane.f32.xlu0 %v3799_v19 }
 0x736   :  { %v23034_v43 = vpop.f32.mrb[68].mxu1 }
 0x737   :  { %v3582_v39 = vpop.f32.mrb[69].mxu1  ;;  %v27670_v7 = vmul.f32 0.35355338, %v23034_v43  ;;  %v27684_v43 = vmul.f32 0.35355338, %v23041_v28 }
 0x738   :  { %v27672_v53 = vmul.f32 0.35355338, %v3582_v39 }
 0x739   :  { %v3814_v60 = vsel %vm1769_vm4, %v27670_v7, -inf }
 0x73a   :  { %3815 = vmax.xlane.f32.xlu1 %v3814_v60  ;;  %v3811_v59 = vsel %vm1769_vm4, %v27672_v53, -inf  ;;  %v27688_v60 = vmul.f32 0.35355338, %v3669_v37 }
 0x73b   :  { %3812 = vmax.xlane.f32.xlu0 %v3811_v59  ;;  %v3820_v59 = vsel %vm1769_vm4, %v27684_v43, -inf }
 0x73e   :  { %v23048_v10 = vpop.f32.mrb[70].mxu1 }
 0x73f   :  { %v3756_v27 = vpop.f32.mrb[71].mxu1  ;;  %v27678_v3 = vmul.f32 0.35355338, %v23048_v10  ;;  %v3817_v10 = vsel %vm1769_vm4, %v27688_v60, -inf }
 0x740   :  { %v27680_v6 = vmul.f32 0.35355338, %v3756_v27 }
 0x741   :  { %v3826_v19 = vsel %vm1769_vm4, %v27678_v3, -inf }
 0x742   :  { %3827 = vmax.xlane.f32.xlu1 %v3826_v19  ;;  %v3823_v39 = vsel %vm1769_vm4, %v27680_v6, -inf }
 0x743   :  { %3824 = vmax.xlane.f32.xlu0 %v3823_v39 }
 0x746   :  { %3821 = vmax.xlane.f32.xlu1 %v3820_v59 }
 0x747   :  { %3818 = vmax.xlane.f32.xlu0 %v3817_v10 }
 0x7a7   :  { %v3786_v27 = vpop.xlane.xlu1 %3785 }
 0x7a8   :  { %v3830_v62 = vsub.f32 %v27630_v15, %v3786_v27  ;;  %v3783_v28 = vpop.xlane.xlu0 %3782 }
 0x7a9   :  { %v3829_v19 = vsub.f32 %v27632_v0, %v3783_v28 }
 0x7aa   :  { %v3847_v2 = vmul.f32 1.442695, %v3830_v62 }
 0x7ab   :  { %v3845_v29 = vmul.f32 1.442695, %v3829_v19 }
 0x7ac   :  { %25861 = vpow2.f32 %v3847_v2 }
 0x7ad   :  { %25863 = vpow2.f32 %v3845_v29 }
 0x7af   :  { %v3792_v37 = vpop.xlane.xlu1 %3791 }
 0x7b0   :  { %v3832_v39 = vsub.f32 %v27638_v63, %v3792_v37  ;;  %v3789_v47 = vpop.xlane.xlu0 %3788 }
 0x7b1   :  { %v3831_v59 = vsub.f32 %v27640_v12, %v3789_v47 }
 0x7b2   :  { %v3851_v52 = vmul.f32 1.442695, %v3832_v39 }
 0x7b3   :  { %v3849_v24 = vmul.f32 1.442695, %v3831_v59 }
 0x7b4   :  { %25865 = vpow2.f32 %v3851_v52 }
 0x7b5   :  { %25867 = vpow2.f32 %v3849_v24 }
 0x7b6   :  { %v27698_v10 = vpop.eup %25861 }
 0x7b7   :  { %v27700_v15 = vpop.eup %25863  ;;  %v3798_v27 = vpop.xlane.xlu1 %3797  ;;  %v3880_v62 = vsel %vm1769_vm4, %v27698_v10, 0.0 }
 0x7b8   :  { %v3834_v2 = vsub.f32 %v27646_v49, %v3798_v27  ;;  %v3795_v29 = vpop.xlane.xlu0 %3794  ;;  %3881 = vadd.xlane.f32.xlu1 %v3880_v62  ;;  %v3877_v0 = vsel %vm1769_vm4, %v27700_v15, 0.0 }
 0x7b9   :  { %v3833_v47 = vsub.f32 %v27648_v5, %v3795_v29  ;;  %3878 = vadd.xlane.f32.xlu0 %v3877_v0 }
 0x7ba   :  { %v3855_v52 = vmul.f32 1.442695, %v3834_v2 }
 0x7bb   :  { %v3853_v24 = vmul.f32 1.442695, %v3833_v47  ;;  %v3810_v63 = vpop.xlane.xlu1 %3809 }
 0x7bc   :  { %25869 = vpow2.f32 %v3855_v52  ;;  %v3838_v12 = vsub.f32 %v27652_v25, %v3810_v63  ;;  %v3807_v28 = vpop.xlane.xlu0 %3806 }
 0x7bd   :  { %25871 = vpow2.f32 %v3853_v24  ;;  %v3837_v19 = vsub.f32 %v27656_v17, %v3807_v28 }
 0x7be   :  { %v27710_v37 = vpop.eup %25865  ;;  %v3863_v49 = vmul.f32 1.442695, %v3838_v12 }
 0x7bf   :  { %v27712_v39 = vpop.eup %25867  ;;  %v3861_v59 = vmul.f32 1.442695, %v3837_v19  ;;  %v3804_v27 = vpop.xlane.xlu1 %3803  ;;  %v3886_v5 = vsel %vm1769_vm4, %v27710_v37, 0.0 }
 0x7c0   :  { %25873 = vpow2.f32 %v3863_v49  ;;  %v3836_v62 = vsub.f32 %v27662_v44, %v3804_v27  ;;  %v3801_v2 = vpop.xlane.xlu0 %3800  ;;  %3887 = vadd.xlane.f32.xlu1 %v3886_v5  ;;  %v3883_v25 = vsel %vm1769_vm4, %v27712_v39, 0.0 }
 0x7c1   :  { %25875 = vpow2.f32 %v3861_v59  ;;  %v3835_v17 = vsub.f32 %v27664_v34, %v3801_v2  ;;  %3884 = vadd.xlane.f32.xlu0 %v3883_v25 }
 0x7c2   :  { %v3859_v29 = vmul.f32 1.442695, %v3836_v62 }
 0x7c3   :  { %v3857_v0 = vmul.f32 1.442695, %v3835_v17 }
 0x7c4   :  { %25877 = vpow2.f32 %v3859_v29 }
 0x7c5   :  { %25879 = vpow2.f32 %v3857_v0 }
 0x7c6   :  { %v27720_v47 = vpop.eup %25869 }
 0x7c7   :  { %v27722_v52 = vpop.eup %25871  ;;  %v3816_v24 = vpop.xlane.xlu1 %3815  ;;  %v3892_v44 = vsel %vm1769_vm4, %v27720_v47, 0.0 }
 0x7c8   :  { %v3840_v63 = vsub.f32 %v27670_v7, %v3816_v24  ;;  %v3813_v12 = vpop.xlane.xlu0 %3812  ;;  %3893 = vadd.xlane.f32.xlu1 %v3892_v44  ;;  %v3889_v34 = vsel %vm1769_vm4, %v27722_v52, 0.0 }
 0x7c9   :  { %v3839_v28 = vsub.f32 %v27672_v53, %v3813_v12  ;;  %3890 = vadd.xlane.f32.xlu0 %v3889_v34 }
 0x7ca   :  { %v27730_v19 = vpop.eup %25873  ;;  %v3867_v49 = vmul.f32 1.442695, %v3840_v63 }
 0x7cb   :  { %v27732_v59 = vpop.eup %25875  ;;  %v3865_v27 = vmul.f32 1.442695, %v3839_v28  ;;  %v3904_v5 = vsel %vm1769_vm4, %v27730_v19, 0.0 }
 0x7cc   :  { %25881 = vpow2.f32 %v3867_v49  ;;  %3905 = vadd.xlane.f32.xlu1 %v3904_v5  ;;  %v3901_v7 = vsel %vm1769_vm4, %v27732_v59, 0.0 }
 0x7cd   :  { %25883 = vpow2.f32 %v3865_v27  ;;  %3902 = vadd.xlane.f32.xlu0 %v3901_v7 }
 0x7ce   :  { %v27738_v62 = vpop.eup %25877 }
 0x7cf   :  { %v27740_v53 = vpop.eup %25879  ;;  %v3828_v2 = vpop.xlane.xlu1 %3827  ;;  %v3898_v25 = vsel %vm1769_vm4, %v27738_v62, 0.0 }
 0x7d0   :  { %v3844_v17 = vsub.f32 %v27678_v3, %v3828_v2  ;;  %3899 = vadd.xlane.f32.xlu1 %v3898_v25  ;;  %v3825_v29 = vpop.xlane.xlu0 %3824  ;;  %v3895_v0 = vsel %vm1769_vm4, %v27740_v53, 0.0 }
 0x7d1   :  { %v3843_v24 = vsub.f32 %v27680_v6, %v3825_v29  ;;  %3896 = vadd.xlane.f32.xlu0 %v3895_v0 }
 0x7d2   :  { %v3875_v44 = vmul.f32 1.442695, %v3844_v17 }
 0x7d3   :  { %v3873_v63 = vmul.f32 1.442695, %v3843_v24  ;;  %v3822_v12 = vpop.xlane.xlu1 %3821 }
 0x7d4   :  { %25885 = vpow2.f32 %v3875_v44  ;;  %v3842_v34 = vsub.f32 %v27684_v43, %v3822_v12  ;;  %v3819_v28 = vpop.xlane.xlu0 %3818 }
 0x7d5   :  { %25887 = vpow2.f32 %v3873_v63  ;;  %v3841_v49 = vsub.f32 %v27688_v60, %v3819_v28 }
 0x7d6   :  { %v27750_v27 = vpop.eup %25881  ;;  %v3871_v3 = vmul.f32 1.442695, %v3842_v34 }
 0x7d7   :  { %v27752_v5 = vpop.eup %25883  ;;  %v3869_v7 = vmul.f32 1.442695, %v3841_v49  ;;  %v3910_v6 = vsel %vm1769_vm4, %v27750_v27, 0.0 }
 0x7d8   :  { %25889 = vpow2.f32 %v3871_v3  ;;  %3911 = vadd.xlane.f32.xlu1 %v3910_v6  ;;  %v3907_v2 = vsel %vm1769_vm4, %v27752_v5, 0.0 }
 0x7d9   :  { %25891 = vpow2.f32 %v3869_v7  ;;  %3908 = vadd.xlane.f32.xlu0 %v3907_v2 }
 0x7de   :  { %v27758_v43 = vpop.eup %25885 }
 0x7df   :  { %v27760_v25 = vpop.eup %25887  ;;  %v3922_v60 = vsel %vm1769_vm4, %v27758_v43, 0.0 }
 0x7e0   :  { %3923 = vadd.xlane.f32.xlu1 %v3922_v60  ;;  %v3919_v17 = vsel %vm1769_vm4, %v27760_v25, 0.0 }
 0x7e1   :  { %3920 = vadd.xlane.f32.xlu0 %v3919_v17 }
 0x7e2   :  { %v27766_v29 = vpop.eup %25889 }
 0x7e3   :  { %v27768_v0 = vpop.eup %25891  ;;  %v3916_v24 = vsel %vm1769_vm4, %v27766_v29, 0.0 }
 0x7e4   :  { %3917 = vadd.xlane.f32.xlu1 %v3916_v24  ;;  %v3913_v44 = vsel %vm1769_vm4, %v27768_v0, 0.0 }
 0x7e5   :  { %3914 = vadd.xlane.f32.xlu0 %v3913_v44 }
 0x845   :  { %v3882_v63 = vpop.xlane.xlu1 %3881 }
 0x846   :  { %25893 = vrcp.f32 %v3882_v63  ;;  %v3879_v12 = vpop.xlane.xlu0 %3878 }
 0x847   :  { %25895 = vrcp.f32 %v3879_v12 }
 0x84d   :  { %v3888_v34 = vpop.xlane.xlu1 %3887 }
 0x84e   :  { %25897 = vrcp.f32 %v3888_v34  ;;  %v3885_v28 = vpop.xlane.xlu0 %3884 }
 0x84f   :  { %25899 = vrcp.f32 %v3885_v28 }
 0x850   :  { %v25894_v49 = vpop.eup %25893 }
 0x851   :  { %v25896_v3 = vpop.eup %25895  ;;  %v3928_v6 = vmul.f32 %v25894_v49, %v27698_v10 }
 0x852   :  { %v3926_v7 = vmul.f32 %v25896_v3, %v27700_v15 }
 0x854   :  { %23053 = vmatprep.mubr.msk.f32.mxu0 %vm1769_vm4, %v3926_v7 }
 0x855   :  { %v3894_v2 = vpop.xlane.xlu1 %3893  ;;  %23054 = vmatmul.mubr.msk.f32.vlgmr.msra.gmra.mrb[88].mxu0 %vm1769_vm4, %v3928_v6 }
 0x856   :  { %25901 = vrcp.f32 %v3894_v2  ;;  %24940 = vmatpush3.bf16.msra.mxu0 %v27615_v38  ;;  %v3891_v60 = vpop.xlane.xlu0 %3890 }
 0x857   :  { %25903 = vrcp.f32 %v3891_v60  ;;  %24946 = vmatprep.subr.bf16.mxu0 %v27622_v23 }
 0x858   :  { %v25898_v17 = vpop.eup %25897 }
 0x859   :  { %v25900_v24 = vpop.eup %25899  ;;  %v3906_v44 = vpop.xlane.xlu1 %3905  ;;  %v3932_v10 = vmul.f32 %v25898_v17, %v27710_v37 }
 0x85a   :  { %25905 = vrcp.f32 %v3906_v44  ;;  %v3903_v63 = vpop.xlane.xlu0 %3902  ;;  %v3930_v15 = vmul.f32 %v25900_v24, %v27712_v39 }
 0x85b   :  { %25907 = vrcp.f32 %v3903_v63 }
 0x85c   :  { %23060 = vmatprep.mubr.msk.f32.mxu1 %vm1769_vm4, %v3930_v15 }
 0x85d   :  { %v3900_v12 = vpop.xlane.xlu1 %3899  ;;  %23061 = vmatmul.mubr.msk.f32.vlgmr.msra.gmra.mrb[72].mxu1 %vm1769_vm4, %v3932_v10 }
 0x85e   :  { %25909 = vrcp.f32 %v3900_v12  ;;  %24944 = vmatpush3.bf16.msra.mxu1 %v27619_v16  ;;  %v3897_v38 = vpop.xlane.xlu0 %3896  ;;  %v20538_v12 = vld [vmem:[%s31815_s4 + $0x50] sm:$0xff] }
 0x85f   :  { %24950 = vmatprep.subr.bf16.mxu1 %v27624_v4  ;;  %25911 = vrcp.f32 %v3897_v38 }
 0x860   :  { %v25902_v34 = vpop.eup %25901 }
 0x861   :  { %v25904_v28 = vpop.eup %25903  ;;  %v3936_v39 = vmul.f32 %v25902_v34, %v27720_v47 }
 0x862   :  { %v3934_v49 = vmul.f32 %v25904_v28, %v27722_v52 }
 0x864   :  { %v25906_v3 = vpop.eup %25905  ;;  %23067 = vmatprep.mubr.msk.f32.mxu0 %vm1769_vm4, %v3934_v49 }
 0x865   :  { %v25908_v37 = vpop.eup %25907  ;;  %v3912_v7 = vpop.xlane.xlu1 %3911  ;;  %23068 = vmatmul.mubr.msk.f32.vlgmr.msra.gmra.mrb[90].mxu0 %vm1769_vm4, %v3936_v39  ;;  %v3944_v52 = vmul.f32 %v25906_v3, %v27730_v19  ;;  %v20559_v39 = vld [vmem:[%s31815_s4 + $0xc8] sm:$0xff] }
 0x866   :  { %25913 = vrcp.f32 %v3912_v7  ;;  %24948 = vmatpush3.bf16.msra.mxu0 %v27622_v23  ;;  %v3909_v16 = vpop.xlane.xlu0 %3908  ;;  %v3942_v6 = vmul.f32 %v25908_v37, %v27732_v59  ;;  %v20560_v7 = vld [vmem:[%s31815_s4 + $0xd0] sm:$0xff] }
 0x867   :  { %24954 = vmatprep.subr.bf16.mxu0 %v27626_v45  ;;  %25915 = vrcp.f32 %v3909_v16  ;;  %v20561_v16 = vld [vmem:[%s31815_s4 + $0xd8] sm:$0xff] }
 0x868   :  { %v25910_v2 = vpop.eup %25909  ;;  %23081 = vmatprep.mubr.msk.f32.mxu0 %vm1769_vm4, %v3942_v6  ;;  %v24973_v6 = vpack.c.bf16 %v20561_v16, %v20560_v7 }
 0x869   :  { %v25912_v47 = vpop.eup %25911  ;;  %23082 = vmatmul.mubr.msk.f32.vlgmr.msra.gmra.mrb[92].mxu0 %vm1769_vm4, %v3944_v52  ;;  %v3940_v23 = vmul.f32 %v25910_v2, %v27738_v62  ;;  %v20537_v62 = vld [vmem:[%s31815_s4 + $0x48] sm:$0xff]  ;;  %v20580_v52 = vld [vmem:[%s31815_s4 + $0x140] sm:$0xff] }
 0x86a   :  { %24956 = vmatpush3.bf16.msra.mxu0 %v27626_v45  ;;  %v3938_v60 = vmul.f32 %v25912_v47, %v27740_v53  ;;  %v20536_v45 = vld [vmem:[%s31815_s4 + $0x40] sm:$0xff]  ;;  %v20581_v2 = vld [vmem:[%s31815_s4 + $0x148] sm:$0xff] }
 0x86b   :  { %v24961_v15 = vpack.c.bf16 %v20537_v62, %v20536_v45 }
 0x86c   :  { %23074 = vmatprep.mubr.msk.f32.mxu1 %vm1769_vm4, %v3938_v60 }
 0x86d   :  { %v3924_v59 = vpop.xlane.xlu1 %3923  ;;  %23075 = vmatmul.mubr.msk.f32.vlgmr.msra.gmra.mrb[74].mxu1 %vm1769_vm4, %v3940_v23  ;;  %v24977_v23 = vpack.c.bf16 %v20581_v2, %v20580_v52 }
 0x86e   :  { %25917 = vrcp.f32 %v3924_v59  ;;  %24952 = vmatpush3.bf16.msra.mxu1 %v27624_v4  ;;  %v3921_v19 = vpop.xlane.xlu0 %3920 }
 0x86f   :  { %24958 = vmatprep.subr.bf16.mxu1 %v27628_v50  ;;  %25919 = vrcp.f32 %v3921_v19 }
 0x870   :  { %v25914_v17 = vpop.eup %25913 }
 0x871   :  { %v25916_v53 = vpop.eup %25915  ;;  %v3918_v24 = vpop.xlane.xlu1 %3917  ;;  %v3948_v4 = vmul.f32 %v25914_v17, %v27750_v27 }
 0x872   :  { %25921 = vrcp.f32 %v3918_v24  ;;  %v3915_v44 = vpop.xlane.xlu0 %3914  ;;  %v3946_v63 = vmul.f32 %v25916_v53, %v27752_v5  ;;  %v20539_v5 = vld [vmem:[%s31815_s4 + $0x58] sm:$0xff] }
 0x873   :  { %25923 = vrcp.f32 %v3915_v44  ;;  %v24965_v28 = vpack.c.bf16 %v20539_v5, %v20538_v12 }
 0x874   :  { %23088 = vmatprep.mubr.msk.f32.mxu1 %vm1769_vm4, %v3946_v63 }
 0x875   :  { %23089 = vmatmul.mubr.msk.f32.vlgmr.msra.gmra.mrb[76].mxu1 %vm1769_vm4, %v3948_v4 }
 0x876   :  { %24960 = vmatpush3.bf16.msra.mxu1 %v27628_v50  ;;  %v20558_v50 = vld [vmem:[%s31815_s4 + $0xc0] sm:$0xff] }
 0x877   :  { %24962 = vmatprep.subr.bf16.mxu1 %v24961_v15  ;;  %v24969_v37 = vpack.c.bf16 %v20559_v39, %v20558_v50  ;;  %v20583_v50 = vld [vmem:[%s31815_s4 + $0x158] sm:$0xff] }
 0x878   :  { %v25918_v10 = vpop.eup %25917 }
 0x879   :  { %v25920_v38 = vpop.eup %25919  ;;  %v3956_v34 = vmul.f32 %v25918_v10, %v27758_v43 }
 0x87a   :  { %v3954_v27 = vmul.f32 %v25920_v38, %v27760_v25  ;;  %v27933_v38 = vld [vmem:[%s31817_s5 + $0x2] ss:$0 sm:$0xff] }
 0x87c   :  { %v25922_v49 = vpop.eup %25921  ;;  %23102 = vmatprep.mubr.msk.f32.mxu1 %vm1769_vm4, %v3954_v27 }
 0x87d   :  { %v25924_v3 = vpop.eup %25923  ;;  %23103 = vmatmul.mubr.msk.f32.vlgmr.msra.gmra.mrb[78].mxu1 %vm1769_vm4, %v3956_v34  ;;  %v3952_v25 = vmul.f32 %v25922_v49, %v27766_v29  ;;  %v20503_v29 = vld [vmem:[%s31818_s6 + $0x8] sm:$0xff]  ;;  %v20582_v49 = vld [vmem:[%s31815_s4 + $0x150] sm:$0xff] }
 0x87e   :  { %24964 = vmatpush3.bf16.msra.mxu1 %v24961_v15  ;;  %23165 = vmatprep.mubr.msk.f32.mxu1 %vm282_vm1, %v26897_v14  ;;  %v3950_v43 = vmul.f32 %v25924_v3, %v27768_v0  ;;  %v2594_v0 = vld [vmem:[%s31818_s6] sm:$0xff] }
 0x87f   :  { %24966 = vmatprep.subr.bf16.mxu1 %v24965_v28  ;;  %23105 = vmatprep.subr.mxu0 %v20503_v29 }
 0x880   :  { %23095 = vmatprep.mubr.msk.f32.mxu0 %vm1769_vm4, %v3950_v43  ;;  %v24981_v43 = vpack.c.bf16 %v20583_v50, %v20582_v49 }
 0x881   :  { %23096 = vmatmul.mubr.msk.f32.vlgmr.msra.gmra.mrb[94].mxu0 %vm1769_vm4, %v3952_v25 }
 0x882   :  { %24968 = vmatpush3.bf16.msra.mxu1 %v24965_v28  ;;  %23106 = vmatpush3.msra.mxu0 %v20503_v29 }
 0x883   :  { %24970 = vmatprep.subr.bf16.mxu1 %v24969_v37  ;;  %23131 = vmatprep.subr.mxu0 %v2594_v0 }
 0x885   :  { %23166 = vmatmul.mubr.msk.f32.vlgmr.msra.gmra.mrb[80].mxu1 %vm282_vm1, %v26915_v35 }
 0x886   :  { %23168 = vmatprep.mubr.msk.f32.mxu1 %vm282_vm1, %v26919_v18  ;;  %24972 = vmatpush3.bf16.msra.mxu1 %v24969_v37 }
 0x887   :  { %24974 = vmatprep.subr.bf16.mxu1 %v24973_v6 }
 0x889   :  { %23169 = vmatmul.mubr.msk.f32.gmra.mrb[82].mxu1 %vm282_vm1, %v26933_v40 }
 0x88a   :  { %23171 = vmatprep.mubr.msk.f32.mxu1 %vm282_vm1, %v26938_v22  ;;  %24976 = vmatpush3.bf16.msra.mxu1 %v24973_v6 }
 0x88d   :  { %23172 = vmatmul.mubr.msk.f32.gmra.mrb[84].mxu1 %vm282_vm1, %v26950_v54 }
 0x88e   :  { %23174 = vmatprep.mubr.msk.f32.mxu1 %vm282_vm1, %v26821_v30 }
 0x891   :  { %23175 = vmatmul.mubr.msk.f32.gmra.mrb[86].mxu1 %vm282_vm1, %v26836_v57 }
 0x892   :  { %23177 = vmatprep.mubr.msk.f32.mxu1 %vm282_vm1, %v26840_v8 }
 0x895   :  { %23178 = vmatmul.mubr.msk.f32.gmra.mrb[88].mxu1 %vm282_vm1, %v26851_v32 }
 0x896   :  { %23180 = vmatprep.mubr.msk.f32.mxu1 %vm282_vm1, %v26855_v33 }
 0x899   :  { %23181 = vmatmul.mubr.msk.f32.gmra.mrb[90].mxu1 %vm282_vm1, %v26865_v46 }
 0x89a   :  { %23183 = vmatprep.mubr.msk.f32.mxu1 %vm282_vm1, %v26869_v51 }
 0x89d   :  { %23184 = vmatmul.mubr.msk.f32.gmra.mrb[92].mxu1 %vm282_vm1, %v26879_v9 }
 0x89e   :  { %23186 = vmatprep.mubr.msk.f32.mxu1 %vm282_vm1, %v26883_v11 }
 0x8a1   :  { %23187 = vmatmul.mubr.msk.f32.gmra.mrb[94].mxu1 %vm282_vm1, %v26893_v13 }
 0x8a2   :  { %23197 = vmatprep.mubr.msk.f32.mxu1 %vm282_vm1, %v26897_v14 }
 0x8a5   :  { %23198 = vmatmul.mubr.msk.f32.vlgmr.msra.gmra.mrb[96].mxu1 %vm282_vm1, %v26915_v35 }
 0x8a6   :  { %23200 = vmatprep.mubr.msk.f32.mxu1 %vm282_vm1, %v26919_v18 }
 0x8a9   :  { %23201 = vmatmul.mubr.msk.f32.gmra.mrb[98].mxu1 %vm282_vm1, %v26933_v40 }
 0x8aa   :  { %23203 = vmatprep.mubr.msk.f32.mxu1 %vm282_vm1, %v26938_v22 }
 0x8ad   :  { %23204 = vmatmul.mubr.msk.f32.gmra.mrb[100].mxu1 %vm282_vm1, %v26950_v54 }
 0x8ae   :  { %23206 = vmatprep.mubr.msk.f32.mxu1 %vm282_vm1, %v26821_v30 }
 0x8b1   :  { %23207 = vmatmul.mubr.msk.f32.gmra.mrb[102].mxu1 %vm282_vm1, %v26836_v57 }
 0x8b2   :  { %23209 = vmatprep.mubr.msk.f32.mxu1 %vm282_vm1, %v26840_v8 }
 0x8b5   :  { %23210 = vmatmul.mubr.msk.f32.gmra.mrb[104].mxu1 %vm282_vm1, %v26851_v32 }
 0x8b6   :  { %23212 = vmatprep.mubr.msk.f32.mxu1 %vm282_vm1, %v26855_v33 }
 0x8b9   :  { %23213 = vmatmul.mubr.msk.f32.gmra.mrb[106].mxu1 %vm282_vm1, %v26865_v46 }
 0x8ba   :  { %23215 = vmatprep.mubr.msk.f32.mxu1 %vm282_vm1, %v26869_v51 }
 0x8bd   :  { %23216 = vmatmul.mubr.msk.f32.gmra.mrb[108].mxu1 %vm282_vm1, %v26879_v9 }
 0x8be   :  { %23218 = vmatprep.mubr.msk.f32.mxu1 %vm282_vm1, %v26883_v11 }
 0x8c1   :  { %23219 = vmatmul.mubr.msk.f32.gmra.mrb[110].mxu1 %vm282_vm1, %v26893_v13 }
 0x928   :  { %v23055_v47 = vpop.f32.mrb[88].mxu0 }
 0x929   :  { %v4029_v60 = vpop.f32.mrb[89].mxu0 }
 0x92a   :  { %23107 = vmatprep.mubr.msk.f32.mxu0 %vm1056_vm2, %v4029_v60  ;;  %v28013_v60 = vld [vmem:[%s31817_s5 + $0x6] ss:$0 sm:$0xff] }
 0x92b   :  { %23108 = vmatmul.mubr.msk.f32.vlgmr.msra.gmra.mrb[96].mxu0 %vm1056_vm2, %v23055_v47 }
 0x92c   :  { %23132 = vmatpush3.msra.mxu0 %v2594_v0 }
 0x92d   :  { %24978 = vmatprep.subr.bf16.mxu0 %v24977_v23 }
 0x930   :  { %v23062_v59 = vpop.f32.mrb[72].mxu1 }
 0x931   :  { %v4110_v19 = vpop.f32.mrb[73].mxu1 }
 0x932   :  { %23110 = vmatprep.mubr.msk.f32.mxu0 %vm1056_vm2, %v4110_v19 }
 0x933   :  { %23111 = vmatmul.mubr.msk.f32.gmra.mrb[98].mxu0 %vm1056_vm2, %v23062_v59  ;;  %v31881_v59 = vld [vmem:[#allocation20_spill] sm:$0xff] }
 0x938   :  { %v23069_v17 = vpop.f32.mrb[90].mxu0 }
 0x939   :  { %v4191_v45 = vpop.f32.mrb[91].mxu0 }
 0x93a   :  { %23113 = vmatprep.mubr.msk.f32.mxu0 %vm1056_vm2, %v4191_v45  ;;  %v31882_v45 = vld [vmem:[#allocation19_spill] sm:$0xff] }
 0x93b   :  { %23114 = vmatmul.mubr.msk.f32.gmra.mrb[100].mxu0 %vm1056_vm2, %v23069_v17 }
 0x93c   :  { %v23083_v62 = vpop.f32.mrb[92].mxu0 }
 0x93d   :  { %v4353_v53 = vpop.f32.mrb[93].mxu0 }
 0x940   :  { %v23076_v24 = vpop.f32.mrb[74].mxu1 }
 0x941   :  { %v4272_v44 = vpop.f32.mrb[75].mxu1 }
 0x942   :  { %23116 = vmatprep.mubr.msk.f32.mxu0 %vm1056_vm2, %v4272_v44 }
 0x943   :  { %23117 = vmatmul.mubr.msk.f32.gmra.mrb[102].mxu0 %vm1056_vm2, %v23076_v24 }
 0x944   :  { %23119 = vmatprep.mubr.msk.f32.mxu0 %vm1056_vm2, %v4353_v53 }
 0x947   :  { %23120 = vmatmul.mubr.msk.f32.gmra.mrb[104].mxu0 %vm1056_vm2, %v23083_v62 }
 0x948   :  { %v23090_v63 = vpop.f32.mrb[76].mxu1 }
 0x949   :  { %v4434_v4 = vpop.f32.mrb[77].mxu1 }
 0x94a   :  { %23122 = vmatprep.mubr.msk.f32.mxu0 %vm1056_vm2, %v4434_v4 }
 0x94b   :  { %23123 = vmatmul.mubr.msk.f32.gmra.mrb[106].mxu0 %vm1056_vm2, %v23090_v63 }
 0x950   :  { %v23104_v15 = vpop.f32.mrb[78].mxu1 }
 0x951   :  { %v4596_v10 = vpop.f32.mrb[79].mxu1 }
 0x954   :  { %v23097_v12 = vpop.f32.mrb[94].mxu0 }
 0x955   :  { %v4515_v5 = vpop.f32.mrb[95].mxu0 }
 0x956   :  { %23125 = vmatprep.mubr.msk.f32.mxu0 %vm1056_vm2, %v4515_v5 }
 0x957   :  { %23126 = vmatmul.mubr.msk.f32.gmra.mrb[108].mxu0 %vm1056_vm2, %v23097_v12 }
 0x958   :  { %v27935_v27 = vpop.f32.mrb[80].mxu1  ;;  %23128 = vmatprep.mubr.msk.f32.mxu0 %vm1056_vm2, %v4596_v10 }
 0x959   :  { %v5072_v34 = vpop.f32.mrb[81].mxu1 }
 0x95a   :  { %v5073_v28 = vadd.f32 %v27933_v38, %v5072_v34 }
 0x95b   :  { %23129 = vmatmul.mubr.msk.f32.gmra.mrb[110].mxu0 %vm1056_vm2, %v23104_v15 }
 0x95c   :  { %v27946_v39 = vpop.f32.mrb[82].mxu1  ;;  %23257 = vmatprep.mubr.msk.f32.mxu1 %vm1056_vm2, %v5073_v28  ;;  %23133 = vmatprep.mubr.msk.f32.mxu0 %vm1056_vm2, %v27493_v21  ;;  %v5078_v28 = vadd.f32 %v27935_v27, %v27933_v38 }
 0x95d   :  { %v27951_v3 = vpop.f32.mrb[83].mxu1 }
 0x95f   :  { %23134 = vmatmul.mubr.msk.f32.vlgmr.msra.gmra.mrb[96].mxu0 %vm1056_vm2, %v27491_v48 }
 0x960   :  { %v27955_v25 = vpop.f32.mrb[84].mxu1  ;;  %23136 = vmatprep.mubr.msk.f32.mxu0 %vm1056_vm2, %v27497_v58  ;;  %24980 = vmatpush3.bf16.msra.mxu0 %v24977_v23  ;;  %v31880_v23 = vld [vmem:[#allocation21_spill] sm:$0xff] }
 0x961   :  { %v27959_v37 = vpop.f32.mrb[85].mxu1  ;;  %24982 = vmatprep.subr.bf16.mxu0 %v24981_v43 }
 0x963   :  { %23137 = vmatmul.mubr.msk.f32.gmra.mrb[98].mxu0 %vm1056_vm2, %v27495_v20 }
 0x964   :  { %v23176_v7 = vpop.f32.mrb[86].mxu1  ;;  %23139 = vmatprep.mubr.msk.f32.mxu0 %vm1056_vm2, %v27513_v41  ;;  %24984 = vmatpush3.bf16.msra.mxu0 %v24981_v43  ;;  %v5083_v43 = vadd.f32 %v27933_v38, %v27951_v3 }
 0x965   :  { %v27966_v21 = vadd.f32 %v23176_v7, %v27933_v38  ;;  %v27968_v48 = vpop.f32.mrb[87].mxu1 }
 0x967   :  { %23140 = vmatmul.mubr.msk.f32.gmra.mrb[100].mxu0 %vm1056_vm2, %v27511_v1 }
 0x968   :  { %v23179_v58 = vpop.f32.mrb[88].mxu1  ;;  %23142 = vmatprep.mubr.msk.f32.mxu0 %vm1056_vm2, %v27501_v61 }
 0x969   :  { %v27975_v16 = vadd.f32 %v23179_v58, %v27933_v38  ;;  %v5112_v20 = vpop.f32.mrb[89].mxu1 }
 0x96a   :  { %v27978_v6 = vadd.f32 %v27933_v38, %v5112_v20 }
 0x96b   :  { %23143 = vmatmul.mubr.msk.f32.gmra.mrb[102].mxu0 %vm1056_vm2, %v27499_v36 }
 0x96c   :  { %v23182_v41 = vpop.f32.mrb[90].mxu1  ;;  %23145 = vmatprep.mubr.msk.f32.mxu0 %vm1056_vm2, %v27523_v31 }
 0x96d   :  { %v27985_v1 = vadd.f32 %v23182_v41, %v27933_v38  ;;  %v5122_v29 = vpop.f32.mrb[91].mxu1 }
 0x96e   :  { %v27988_v61 = vadd.f32 %v27933_v38, %v5122_v29 }
 0x96f   :  { %23146 = vmatmul.mubr.msk.f32.gmra.mrb[104].mxu0 %vm1056_vm2, %v27520_v56 }
 0x970   :  { %v23185_v0 = vpop.f32.mrb[92].mxu1  ;;  %23148 = vmatprep.mubr.msk.f32.mxu0 %vm1056_vm2, %v27505_v26 }
 0x971   :  { %v27995_v36 = vadd.f32 %v23185_v0, %v27933_v38  ;;  %v5132_v52 = vpop.f32.mrb[93].mxu1 }
 0x972   :  { %v27998_v31 = vadd.f32 %v27933_v38, %v5132_v52  ;;  %v5088_v52 = vadd.f32 %v27946_v39, %v27933_v38 }
 0x973   :  { %23149 = vmatmul.mubr.msk.f32.gmra.mrb[106].mxu0 %vm1056_vm2, %v27503_v55 }
 0x974   :  { %v23188_v2 = vpop.f32.mrb[94].mxu1  ;;  %23151 = vmatprep.mubr.msk.f32.mxu0 %vm1056_vm2, %v27529_v42 }
 0x975   :  { %v28005_v56 = vadd.f32 %v23188_v2, %v27933_v38  ;;  %v5142_v47 = vpop.f32.mrb[95].mxu1 }
 0x976   :  { %v28008_v26 = vadd.f32 %v27933_v38, %v5142_v47 }
 0x977   :  { %23152 = vmatmul.mubr.msk.f32.gmra.mrb[108].mxu0 %vm1056_vm2, %v31880_v23  ;;  %v5093_v23 = vadd.f32 %v27933_v38, %v27959_v37 }
 0x978   :  { %v23199_v55 = vpop.f32.mrb[96].mxu1  ;;  %23154 = vmatprep.mubr.msk.f32.mxu0 %vm1056_vm2, %v31881_v59 }
 0x979   :  { %v5236_v42 = vadd.f32 %v23199_v55, %v28013_v60  ;;  %v5230_v19 = vpop.f32.mrb[97].mxu1 }
 0x97a   :  { %v5231_v17 = vadd.f32 %v28013_v60, %v5230_v19 }
 0x97b   :  { %23155 = vmatmul.mubr.msk.f32.gmra.mrb[110].mxu0 %vm1056_vm2, %v31882_v45 }
 0x97c   :  { %v24985_v62 = vpack.c.bf16 %v5236_v42, %v5231_v17  ;;  %v23202_v53 = vpop.f32.mrb[98].mxu1  ;;  %23229 = vmatprep.mubr.msk.f32.mxu0 %vm282_vm1, %v26897_v14 }
 0x97d   :  { %v5246_v24 = vadd.f32 %v23202_v53, %v28013_v60  ;;  %v5240_v44 = vpop.f32.mrb[99].mxu1 }
 0x97e   :  { %v5241_v63 = vadd.f32 %v28013_v60, %v5240_v44  ;;  %24987 = vmatprep.subr.msk.bf16.mxu1 %vm27043_vm3, %v24985_v62 }
 0x97f   :  { %24990 = vmatpush3.bf16.xpose.msk.msra.mxu1 %vm27043_vm3, %v24985_v62  ;;  %23230 = vmatmul.mubr.msk.f32.vlgmr.msra.gmra.mrb[112].mxu0 %vm282_vm1, %v26915_v35  ;;  %v5098_v62 = vadd.f32 %v27955_v25, %v27933_v38 }
 0x980   :  { %v24991_v15 = vpack.c.bf16 %v5246_v24, %v5241_v63  ;;  %v23205_v10 = vpop.f32.mrb[100].mxu1  ;;  %23232 = vmatprep.mubr.msk.f32.mxu0 %vm282_vm1, %v26919_v18 }
 0x981   :  { %v5256_v12 = vadd.f32 %v23205_v10, %v28013_v60  ;;  %v5250_v5 = vpop.f32.mrb[101].mxu1 }
 0x982   :  { %v5251_v34 = vadd.f32 %v28013_v60, %v5250_v5  ;;  %24993 = vmatprep.subr.msk.bf16.mxu1 %vm27043_vm3, %v24991_v15 }
 0x983   :  { %23233 = vmatmul.mubr.msk.f32.gmra.mrb[114].mxu0 %vm282_vm1, %v26933_v40 }
 0x984   :  { %v24997_v49 = vpack.c.bf16 %v5256_v12, %v5251_v34  ;;  %v23208_v50 = vpop.f32.mrb[102].mxu1  ;;  %23235 = vmatprep.mubr.msk.f32.mxu0 %vm282_vm1, %v26938_v22 }
 0x985   :  { %v5266_v7 = vadd.f32 %v23208_v50, %v28013_v60  ;;  %v5260_v58 = vpop.f32.mrb[103].mxu1 }
 0x986   :  { %v5261_v20 = vadd.f32 %v28013_v60, %v5260_v58  ;;  %23258 = vmatmul.mubr.msk.f32.vlgmr.msra.gmra.mrb[112].mxu1 %vm1056_vm2, %v5078_v28 }
 0x987   :  { %24996 = vmatpush3.bf16.xpose.msk.msra.mxu1 %vm27043_vm3, %v24991_v15  ;;  %23264 = vmatprep.mubr.msk.f32.mxu1 %vm1056_vm2, %v5083_v43  ;;  %v5103_v15 = vadd.f32 %v27933_v38, %v27968_v48  ;;  %v28140_v38 = vld [vmem:[%s31817_s5 + $0xa] ss:$0 sm:$0xff] }
 0x988   :  { %v25003_v27 = vpack.c.bf16 %v5266_v7, %v5261_v20  ;;  %v23211_v41 = vpop.f32.mrb[104].mxu1  ;;  %23236 = vmatmul.mubr.msk.f32.gmra.mrb[116].mxu0 %vm282_vm1, %v26950_v54  ;;  %24999 = vmatprep.subr.msk.bf16.mxu1 %vm27043_vm3, %v24997_v49 }
 0x989   :  { %v5276_v3 = vadd.f32 %v23211_v41, %v28013_v60  ;;  %v5270_v29 = vpop.f32.mrb[105].mxu1  ;;  %23238 = vmatprep.mubr.msk.f32.mxu0 %vm282_vm1, %v26821_v30 }
 0x98a   :  { %v5271_v0 = vadd.f32 %v28013_v60, %v5270_v29 }
 0x98c   :  { %v25009_v2 = vpack.c.bf16 %v5276_v3, %v5271_v0  ;;  %v23214_v47 = vpop.f32.mrb[106].mxu1  ;;  %23239 = vmatmul.mubr.msk.f32.gmra.mrb[118].mxu0 %vm282_vm1, %v26836_v57 }
 0x98d   :  { %v5286_v55 = vadd.f32 %v23214_v47, %v28013_v60  ;;  %v5280_v59 = vpop.f32.mrb[107].mxu1  ;;  %23241 = vmatprep.mubr.msk.f32.mxu0 %vm282_vm1, %v26840_v8 }
 0x98e   :  { %v5281_v42 = vadd.f32 %v28013_v60, %v5280_v59  ;;  %23265 = vmatmul.mubr.msk.f32.vlgmr.msra.gmra.mrb[114].mxu1 %vm1056_vm2, %v5088_v52  ;;  %25011 = vmatprep.subr.msk.bf16.mxu0 %vm27043_vm3, %v25009_v2 }
 0x98f   :  { %25002 = vmatpush3.bf16.xpose.msk.msra.mxu1 %vm27043_vm3, %v24997_v49  ;;  %23271 = vmatprep.mubr.msk.f32.mxu1 %vm1056_vm2, %v5093_v23 }
 0x990   :  { %v25015_v39 = vpack.c.bf16 %v5286_v55, %v5281_v42  ;;  %25014 = vmatpush3.bf16.xpose.msk.msra.mxu0 %vm27043_vm3, %v25009_v2  ;;  %v23217_v37 = vpop.f32.mrb[108].mxu1  ;;  %25005 = vmatprep.subr.msk.bf16.mxu1 %vm27043_vm3, %v25003_v27 }
 0x991   :  { %v5296_v19 = vadd.f32 %v23217_v37, %v28013_v60  ;;  %23242 = vmatmul.mubr.msk.f32.gmra.mrb[120].mxu0 %vm282_vm1, %v26851_v32  ;;  %v5290_v17 = vpop.f32.mrb[109].mxu1 }
 0x992   :  { %v5291_v45 = vadd.f32 %v28013_v60, %v5290_v17  ;;  %23244 = vmatprep.mubr.msk.f32.mxu0 %vm282_vm1, %v26855_v33 }
 0x994   :  { %v25021_v53 = vpack.c.bf16 %v5296_v19, %v5291_v45  ;;  %v23220_v24 = vpop.f32.mrb[110].mxu1 }
 0x995   :  { %v5306_v44 = vadd.f32 %v23220_v24, %v28013_v60  ;;  %23245 = vmatmul.mubr.msk.f32.gmra.mrb[122].mxu0 %vm282_vm1, %v26865_v46  ;;  %v5300_v63 = vpop.f32.mrb[111].mxu1 }
 0x996   :  { %v5301_v10 = vadd.f32 %v28013_v60, %v5300_v63  ;;  %23247 = vmatprep.mubr.msk.f32.mxu0 %vm282_vm1, %v26869_v51  ;;  %23272 = vmatmul.mubr.msk.f32.vlgmr.msra.gmra.mrb[116].mxu1 %vm1056_vm2, %v5098_v62 }
 0x997   :  { %25023 = vmatprep.subr.msk.bf16.mxu0 %vm27043_vm3, %v25021_v53  ;;  %25008 = vmatpush3.bf16.xpose.msk.msra.mxu1 %vm27043_vm3, %v25003_v27 }
 0x998   :  { %v25027_v25 = vpack.c.bf16 %v5306_v44, %v5301_v10  ;;  %23278 = vmatprep.mubr.msk.f32.mxu1 %vm1056_vm2, %v5103_v15  ;;  %25017 = vmatprep.subr.msk.bf16.mxu1 %vm27043_vm3, %v25015_v39 }
 0x999   :  { %23248 = vmatmul.mubr.msk.f32.gmra.mrb[124].mxu0 %vm282_vm1, %v26879_v9 }
 0x99a   :  { %23250 = vmatprep.mubr.msk.f32.mxu0 %vm282_vm1, %v26883_v11 }
 0x99d   :  { %23251 = vmatmul.mubr.msk.f32.gmra.mrb[126].mxu0 %vm282_vm1, %v26893_v13 }
 0x99e   :  { %23285 = vmatprep.mubr.msk.f32.mxu0 %vm1056_vm2, %v27978_v6  ;;  %23279 = vmatmul.mubr.msk.f32.vlgmr.msra.gmra.mrb[118].mxu1 %vm1056_vm2, %v27966_v21 }
 0x99f   :  { %25020 = vmatpush3.bf16.xpose.msk.msra.mxu1 %vm27043_vm3, %v25015_v39  ;;  %23292 = vmatprep.mubr.msk.f32.mxu1 %vm1056_vm2, %v27988_v61 }
 0x9a0   :  { %25029 = vmatprep.subr.msk.bf16.mxu1 %vm27043_vm3, %v25027_v25 }
 0x9a1   :  { %23286 = vmatmul.mubr.msk.f32.vlgmr.msra.gmra.mrb[128].mxu0 %vm1056_vm2, %v27975_v16 }
 0x9a2   :  { %25026 = vmatpush3.bf16.xpose.msk.msra.mxu0 %vm27043_vm3, %v25021_v53  ;;  %23299 = vmatprep.mubr.msk.f32.mxu0 %vm1056_vm2, %v27998_v31 }
 0x9a6   :  { %23293 = vmatmul.mubr.msk.f32.vlgmr.msra.gmra.mrb[120].mxu1 %vm1056_vm2, %v27985_v1 }
 0x9a7   :  { %25032 = vmatpush3.bf16.xpose.msk.msra.mxu1 %vm27043_vm3, %v25027_v25  ;;  %23306 = vmatprep.mubr.msk.f32.mxu1 %vm1056_vm2, %v28008_v26 }
 0x9a9   :  { %23300 = vmatmul.mubr.msk.f32.vlgmr.msra.gmra.mrb[130].mxu0 %vm1056_vm2, %v27995_v36 }
 0x9ae   :  { %23307 = vmatmul.mubr.msk.f32.vlgmr.msra.gmra.mrb[122].mxu1 %vm1056_vm2, %v28005_v56 }
 0xa52   :  { %v23231_v21 = vpop.f32.mrb[112].mxu0 }
 0xa53   :  { %v5394_v48 = vadd.f32 %v23231_v21, %v28140_v38  ;;  %v5388_v16 = vpop.f32.mrb[113].mxu0 }
 0xa54   :  { %v5389_v6 = vadd.f32 %v28140_v38, %v5388_v16 }
 0xa56   :  { %v23234_v1 = vpop.f32.mrb[114].mxu0  ;;  %v25033_v61 = vpack.c.bf16 %v5394_v48, %v5389_v6 }
 0xa57   :  { %v5404_v31 = vadd.f32 %v23234_v1, %v28140_v38  ;;  %v5398_v26 = vpop.f32.mrb[115].mxu0 }
 0xa58   :  { %v5399_v36 = vadd.f32 %v28140_v38, %v5398_v26  ;;  %25034 = vmatprep.subr.bf16.mxu0 %v25033_v61 }
 0xa59   :  { %v23259_v56 = vpop.f32.mrb[112].mxu1  ;;  %25036 = vmatpush3.bf16.msra.mxu0 %v25033_v61 }
 0xa5a   :  { %v5545_v60 = vpop.f32.mrb[113].mxu1  ;;  %v28146_v12 = vmul.f32 0.35355338, %v23259_v56  ;;  %v28148_v5 = vpack.c.bf16 %v5404_v31, %v5399_v36 }
 0xa5b   :  { %v23237_v34 = vpop.f32.mrb[116].mxu0  ;;  %v28150_v28 = vmul.f32 0.35355338, %v5545_v60 }
 0xa5c   :  { %v5414_v49 = vadd.f32 %v23237_v34, %v28140_v38  ;;  %v5408_v50 = vpop.f32.mrb[117].mxu0  ;;  %v6182_v43 = vsel %vm1769_vm4, %v28146_v12, -inf  ;;  %25038 = vmatprep.subr.bf16.mxu0 %v28148_v5 }
 0xa5d   :  { %v5409_v7 = vadd.f32 %v28140_v38, %v5408_v50  ;;  %6183 = vmax.xlane.f32.xlu1 %v6182_v43  ;;  %v6179_v58 = vsel %vm1769_vm4, %v28150_v28, -inf }
 0xa5e   :  { %6180 = vmax.xlane.f32.xlu0 %v6179_v58 }
 0xa5f   :  { %v23240_v20 = vpop.f32.mrb[118].mxu0  ;;  %v25041_v27 = vpack.c.bf16 %v5414_v49, %v5409_v7 }
 0xa60   :  { %v5424_v41 = vadd.f32 %v23240_v20, %v28140_v38  ;;  %v5418_v3 = vpop.f32.mrb[119].mxu0 }
 0xa61   :  { %v5419_v29 = vadd.f32 %v28140_v38, %v5418_v3  ;;  %v23266_v0 = vpop.f32.mrb[114].mxu1  ;;  %25042 = vmatprep.subr.bf16.mxu1 %v25041_v27 }
 0xa62   :  { %v28161_v52 = vmul.f32 0.35355338, %v23266_v0  ;;  %v5632_v2 = vpop.f32.mrb[115].mxu1  ;;  %25044 = vmatpush3.bf16.msra.mxu1 %v25041_v27 }
 0xa63   :  { %v28163_v47 = vmul.f32 0.35355338, %v5632_v2  ;;  %v28165_v23 = vpack.c.bf16 %v5424_v41, %v5419_v29 }
 0xa64   :  { %v23243_v55 = vpop.f32.mrb[120].mxu0  ;;  %v6188_v59 = vsel %vm1769_vm4, %v28161_v52, -inf }
 0xa65   :  { %v5434_v42 = vadd.f32 %v23243_v55, %v28140_v38  ;;  %v5428_v39 = vpop.f32.mrb[121].mxu0  ;;  %6189 = vmax.xlane.f32.xlu1 %v6188_v59  ;;  %v6185_v37 = vsel %vm1769_vm4, %v28163_v47, -inf }
 0xa66   :  { %v5429_v19 = vadd.f32 %v28140_v38, %v5428_v39  ;;  %6186 = vmax.xlane.f32.xlu0 %v6185_v37 }
 0xa68   :  { %v23246_v17 = vpop.f32.mrb[122].mxu0  ;;  %v28173_v45 = vpack.c.bf16 %v5434_v42, %v5429_v19 }
 0xa69   :  { %v5444_v62 = vadd.f32 %v23246_v17, %v28140_v38  ;;  %v5438_v53 = vpop.f32.mrb[123].mxu0  ;;  %v23273_v24 = vpop.f32.mrb[116].mxu1 }
 0xa6a   :  { %v5439_v44 = vadd.f32 %v28140_v38, %v5438_v53  ;;  %v28177_v63 = vmul.f32 0.35355338, %v23273_v24  ;;  %25050 = vmatprep.subr.bf16.mxu1 %v28173_v45  ;;  %v5719_v15 = vpop.f32.mrb[117].mxu1 }
 0xa6b   :  { %v28180_v10 = vmul.f32 0.35355338, %v5719_v15 }
 0xa6c   :  { %v23249_v25 = vpop.f32.mrb[124].mxu0  ;;  %v6194_v21 = vsel %vm1769_vm4, %v28177_v63, -inf  ;;  %v28184_v48 = vpack.c.bf16 %v5444_v62, %v5439_v44 }
 0xa6d   :  { %v5454_v16 = vadd.f32 %v23249_v25, %v28140_v38  ;;  %v5448_v6 = vpop.f32.mrb[125].mxu0  ;;  %6195 = vmax.xlane.f32.xlu1 %v6194_v21  ;;  %v6191_v1 = vsel %vm1769_vm4, %v28180_v10, -inf }
 0xa6e   :  { %v5449_v61 = vadd.f32 %v28140_v38, %v5448_v6  ;;  %6192 = vmax.xlane.f32.xlu0 %v6191_v1 }
 0xa70   :  { %v23252_v31 = vpop.f32.mrb[126].mxu0  ;;  %v28190_v26 = vpack.c.bf16 %v5454_v16, %v5449_v61 }
 0xa71   :  { %v5464_v36 = vadd.f32 %v23252_v31, %v28140_v38  ;;  %v5458_v56 = vpop.f32.mrb[127].mxu0  ;;  %v23280_v60 = vpop.f32.mrb[118].mxu1 }
 0xa72   :  { %v5459_v34 = vadd.f32 %v28140_v38, %v5458_v56  ;;  %v28194_v49 = vmul.f32 0.35355338, %v23280_v60  ;;  %v5806_v50 = vpop.f32.mrb[119].mxu1 }
 0xa73   :  { %v28196_v43 = vmul.f32 0.35355338, %v5806_v50 }
 0xa74   :  { %v23287_v7 = vpop.f32.mrb[128].mxu0  ;;  %v6200_v58 = vsel %vm1769_vm4, %v28194_v49, -inf  ;;  %v28200_v20 = vpack.c.bf16 %v5464_v36, %v5459_v34 }
 0xa75   :  { %v28202_v27 = vmul.f32 0.35355338, %v23287_v7  ;;  %v5893_v41 = vpop.f32.mrb[129].mxu0  ;;  %6201 = vmax.xlane.f32.xlu1 %v6200_v58  ;;  %v6197_v3 = vsel %vm1769_vm4, %v28196_v43, -inf }
 0xa76   :  { %v28206_v29 = vmul.f32 0.35355338, %v5893_v41  ;;  %6198 = vmax.xlane.f32.xlu0 %v6197_v3 }
 0xa77   :  { %v6206_v38 = vsel %vm1769_vm4, %v28202_v27, -inf }
 0xa78   :  { %v6203_v2 = vsel %vm1769_vm4, %v28206_v29, -inf }
 0xa79   :  { %v23294_v0 = vpop.f32.mrb[120].mxu1  ;;  %6207 = vmax.xlane.f32.xlu1 %v6206_v38 }
 0xa7a   :  { %v28212_v55 = vmul.f32 0.35355338, %v23294_v0  ;;  %v5980_v59 = vpop.f32.mrb[121].mxu1  ;;  %6204 = vmax.xlane.f32.xlu0 %v6203_v2 }
 0xa7b   :  { %v28214_v42 = vmul.f32 0.35355338, %v5980_v59 }
 0xa7c   :  { %v23301_v39 = vpop.f32.mrb[130].mxu0  ;;  %v6212_v37 = vsel %vm1769_vm4, %v28212_v55, -inf }
 0xa7d   :  { %v28218_v19 = vmul.f32 0.35355338, %v23301_v39  ;;  %v6067_v17 = vpop.f32.mrb[131].mxu0  ;;  %6213 = vmax.xlane.f32.xlu1 %v6212_v37  ;;  %v6209_v62 = vsel %vm1769_vm4, %v28214_v42, -inf }
 0xa7e   :  { %v28222_v53 = vmul.f32 0.35355338, %v6067_v17  ;;  %6210 = vmax.xlane.f32.xlu0 %v6209_v62 }
 0xa7f   :  { %v6218_v24 = vsel %vm1769_vm4, %v28218_v19, -inf }
 0xa80   :  { %v6215_v15 = vsel %vm1769_vm4, %v28222_v53, -inf }
 0xa81   :  { %v23308_v44 = vpop.f32.mrb[122].mxu1  ;;  %6219 = vmax.xlane.f32.xlu1 %v6218_v24 }
 0xa82   :  { %v28228_v25 = vmul.f32 0.35355338, %v23308_v44  ;;  %v6154_v21 = vpop.f32.mrb[123].mxu1  ;;  %6216 = vmax.xlane.f32.xlu0 %v6215_v15 }
 0xa83   :  { %v28230_v16 = vmul.f32 0.35355338, %v6154_v21 }
 0xa84   :  { %v6224_v6 = vsel %vm1769_vm4, %v28228_v25, -inf }
 0xa85   :  { %6225 = vmax.xlane.f32.xlu1 %v6224_v6  ;;  %v6221_v1 = vsel %vm1769_vm4, %v28230_v16, -inf }
 0xa86   :  { %6222 = vmax.xlane.f32.xlu0 %v6221_v1 }
 0xaea   :  { %v6184_v61 = vpop.xlane.xlu1 %6183 }
 0xaeb   :  { %v6228_v31 = vsub.f32 %v28146_v12, %v6184_v61  ;;  %v6181_v36 = vpop.xlane.xlu0 %6180 }
 0xaec   :  { %v6227_v56 = vsub.f32 %v28150_v28, %v6181_v36 }
 0xaed   :  { %v6245_v60 = vmul.f32 1.442695, %v6228_v31 }
 0xaee   :  { %v6243_v34 = vmul.f32 1.442695, %v6227_v56 }
 0xaef   :  { %25925 = vpow2.f32 %v6245_v60 }
 0xaf0   :  { %25927 = vpow2.f32 %v6243_v34 }
 0xaf2   :  { %v6190_v50 = vpop.xlane.xlu1 %6189 }
 0xaf3   :  { %v6230_v7 = vsub.f32 %v28161_v52, %v6190_v50  ;;  %v6187_v58 = vpop.xlane.xlu0 %6186 }
 0xaf4   :  { %v6229_v41 = vsub.f32 %v28163_v47, %v6187_v58 }
 0xaf5   :  { %v6249_v3 = vmul.f32 1.442695, %v6230_v7 }
 0xaf6   :  { %v6247_v38 = vmul.f32 1.442695, %v6229_v41 }
 0xaf7   :  { %25929 = vpow2.f32 %v6249_v3 }
 0xaf8   :  { %25931 = vpow2.f32 %v6247_v38 }
 0xaf9   :  { %v28240_v0 = vpop.eup %25925 }
 0xafa   :  { %v28242_v12 = vpop.eup %25927  ;;  %v6196_v2 = vpop.xlane.xlu1 %6195  ;;  %v6278_v28 = vsel %vm1769_vm4, %v28240_v0, 0.0 }
 0xafb   :  { %v6232_v59 = vsub.f32 %v28177_v63, %v6196_v2  ;;  %6279 = vadd.xlane.f32.xlu1 %v6278_v28  ;;  %v6193_v39 = vpop.xlane.xlu0 %6192  ;;  %v6275_v52 = vsel %vm1769_vm4, %v28242_v12, 0.0 }
 0xafc   :  { %v6231_v47 = vsub.f32 %v28180_v10, %v6193_v39  ;;  %6276 = vadd.xlane.f32.xlu0 %v6275_v52 }
 0xafd   :  { %v6253_v37 = vmul.f32 1.442695, %v6232_v59 }
 0xafe   :  { %v6251_v17 = vmul.f32 1.442695, %v6231_v47 }
 0xaff   :  { %25933 = vpow2.f32 %v6253_v37 }
 0xb00   :  { %25935 = vpow2.f32 %v6251_v17 }
 0xb01   :  { %v28250_v62 = vpop.eup %25929 }
 0xb02   :  { %v28252_v24 = vpop.eup %25931  ;;  %v6202_v44 = vpop.xlane.xlu1 %6201  ;;  %v6284_v63 = vsel %vm1769_vm4, %v28250_v62, 0.0 }
 0xb03   :  { %v6234_v15 = vsub.f32 %v28194_v49, %v6202_v44  ;;  %6285 = vadd.xlane.f32.xlu1 %v6284_v63  ;;  %v6199_v21 = vpop.xlane.xlu0 %6198  ;;  %v6281_v10 = vsel %vm1769_vm4, %v28252_v24, 0.0 }
 0xb04   :  { %v6233_v6 = vsub.f32 %v28196_v43, %v6199_v21  ;;  %6282 = vadd.xlane.f32.xlu0 %v6281_v10 }
 0xb05   :  { %v6257_v1 = vmul.f32 1.442695, %v6234_v15 }
 0xb06   :  { %v6255_v61 = vmul.f32 1.442695, %v6233_v6  ;;  %v6208_v31 = vpop.xlane.xlu1 %6207 }
 0xb07   :  { %25937 = vpow2.f32 %v6257_v1  ;;  %v6236_v36 = vsub.f32 %v28202_v27, %v6208_v31  ;;  %v6205_v56 = vpop.xlane.xlu0 %6204 }
 0xb08   :  { %25939 = vpow2.f32 %v6255_v61  ;;  %v6235_v60 = vsub.f32 %v28206_v29, %v6205_v56 }
 0xb09   :  { %v28262_v34 = vpop.eup %25933  ;;  %v6261_v49 = vmul.f32 1.442695, %v6236_v36 }
 0xb0a   :  { %v28264_v50 = vpop.eup %25935  ;;  %v6259_v7 = vmul.f32 1.442695, %v6235_v60  ;;  %v6214_v58 = vpop.xlane.xlu1 %6213  ;;  %v6290_v43 = vsel %vm1769_vm4, %v28262_v34, 0.0 }
 0xb0b   :  { %25941 = vpow2.f32 %v6261_v49  ;;  %v6238_v41 = vsub.f32 %v28212_v55, %v6214_v58  ;;  %6291 = vadd.xlane.f32.xlu1 %v6290_v43  ;;  %v6211_v3 = vpop.xlane.xlu0 %6210  ;;  %v6287_v27 = vsel %vm1769_vm4, %v28264_v50, 0.0 }
 0xb0c   :  { %25943 = vpow2.f32 %v6259_v7  ;;  %v6237_v29 = vsub.f32 %v28214_v42, %v6211_v3  ;;  %6288 = vadd.xlane.f32.xlu0 %v6287_v27 }
 0xb0d   :  { %v6265_v38 = vmul.f32 1.442695, %v6238_v41 }
 0xb0e   :  { %v6263_v2 = vmul.f32 1.442695, %v6237_v29  ;;  %v6220_v28 = vpop.xlane.xlu1 %6219 }
 0xb0f   :  { %25945 = vpow2.f32 %v6265_v38  ;;  %v6240_v59 = vsub.f32 %v28218_v19, %v6220_v28  ;;  %v6217_v39 = vpop.xlane.xlu0 %6216 }
 0xb10   :  { %25947 = vpow2.f32 %v6263_v2  ;;  %v6239_v52 = vsub.f32 %v28222_v53, %v6217_v39 }
 0xb11   :  { %v28274_v55 = vpop.eup %25937  ;;  %v6269_v47 = vmul.f32 1.442695, %v6240_v59 }
 0xb12   :  { %v28276_v37 = vpop.eup %25939  ;;  %v6267_v17 = vmul.f32 1.442695, %v6239_v52  ;;  %v6226_v44 = vpop.xlane.xlu1 %6225  ;;  %v6296_v42 = vsel %vm1769_vm4, %v28274_v55, 0.0 }
 0xb13   :  { %25949 = vpow2.f32 %v6269_v47  ;;  %v6242_v63 = vsub.f32 %v28228_v25, %v6226_v44  ;;  %6297 = vadd.xlane.f32.xlu1 %v6296_v42  ;;  %v6223_v15 = vpop.xlane.xlu0 %6222  ;;  %v6293_v19 = vsel %vm1769_vm4, %v28276_v37, 0.0 }
 0xb14   :  { %25951 = vpow2.f32 %v6267_v17  ;;  %v6241_v53 = vsub.f32 %v28230_v16, %v6223_v15  ;;  %6294 = vadd.xlane.f32.xlu0 %v6293_v19 }
 0xb15   :  { %v28284_v21 = vpop.eup %25941  ;;  %v6273_v10 = vmul.f32 1.442695, %v6242_v63 }
 0xb16   :  { %v28286_v6 = vpop.eup %25943  ;;  %v6271_v1 = vmul.f32 1.442695, %v6241_v53  ;;  %v6302_v61 = vsel %vm1769_vm4, %v28284_v21, 0.0 }
 0xb17   :  { %25953 = vpow2.f32 %v6273_v10  ;;  %6303 = vadd.xlane.f32.xlu1 %v6302_v61  ;;  %v6299_v25 = vsel %vm1769_vm4, %v28286_v6, 0.0 }
 0xb18   :  { %25955 = vpow2.f32 %v6271_v1  ;;  %6300 = vadd.xlane.f32.xlu0 %v6299_v25 }
 0xb19   :  { %v28292_v31 = vpop.eup %25945 }
 0xb1a   :  { %v28294_v16 = vpop.eup %25947  ;;  %v6308_v36 = vsel %vm1769_vm4, %v28292_v31, 0.0 }
 0xb1b   :  { %6309 = vadd.xlane.f32.xlu1 %v6308_v36  ;;  %v6305_v56 = vsel %vm1769_vm4, %v28294_v16, 0.0 }
 0xb1c   :  { %6306 = vadd.xlane.f32.xlu0 %v6305_v56 }
 0xb1d   :  { %v28300_v60 = vpop.eup %25949 }
 0xb1e   :  { %v28302_v49 = vpop.eup %25951  ;;  %v6314_v7 = vsel %vm1769_vm4, %v28300_v60, 0.0 }
 0xb1f   :  { %6315 = vadd.xlane.f32.xlu1 %v6314_v7  ;;  %v6311_v58 = vsel %vm1769_vm4, %v28302_v49, 0.0 }
 0xb20   :  { %6312 = vadd.xlane.f32.xlu0 %v6311_v58 }
 0xb21   :  { %v28308_v43 = vpop.eup %25953 }
 0xb22   :  { %v28310_v41 = vpop.eup %25955  ;;  %v6320_v3 = vsel %vm1769_vm4, %v28308_v43, 0.0 }
 0xb23   :  { %6321 = vadd.xlane.f32.xlu1 %v6320_v3  ;;  %v6317_v27 = vsel %vm1769_vm4, %v28310_v41, 0.0  ;;  %v20668_v3 = vld [vmem:[%s31815_s4 + $0x68] sm:$0xff] }
 0xb24   :  { %6318 = vadd.xlane.f32.xlu0 %v6317_v27 }
 0xb88   :  { %v6280_v29 = vpop.xlane.xlu1 %6279 }
 0xb89   :  { %25957 = vrcp.f32 %v6280_v29  ;;  %v6277_v38 = vpop.xlane.xlu0 %6276 }
 0xb8a   :  { %25959 = vrcp.f32 %v6277_v38 }
 0xb90   :  { %v6286_v2 = vpop.xlane.xlu1 %6285 }
 0xb91   :  { %25961 = vrcp.f32 %v6286_v2  ;;  %v6283_v28 = vpop.xlane.xlu0 %6282 }
 0xb92   :  { %25963 = vrcp.f32 %v6283_v28 }
 0xb93   :  { %v25958_v59 = vpop.eup %25957 }
 0xb94   :  { %v25960_v39 = vpop.eup %25959  ;;  %v6326_v47 = vmul.f32 %v25958_v59, %v28240_v0 }
 0xb95   :  { %v6324_v52 = vmul.f32 %v25960_v39, %v28242_v12 }
 0xb97   :  { %23313 = vmatprep.mubr.msk.f32.mxu0 %vm1769_vm4, %v6324_v52  ;;  %v20670_v52 = vld [vmem:[%s31815_s4 + $0x78] sm:$0xff] }
 0xb98   :  { %v6292_v17 = vpop.xlane.xlu1 %6291  ;;  %23314 = vmatmul.mubr.msk.f32.vlgmr.msra.gmra.mrb[132].mxu0 %vm1769_vm4, %v6326_v47 }
 0xb99   :  { %25965 = vrcp.f32 %v6292_v17  ;;  %25040 = vmatpush3.bf16.msra.mxu0 %v28148_v5  ;;  %v6289_v44 = vpop.xlane.xlu0 %6288 }
 0xb9a   :  { %25046 = vmatprep.subr.bf16.mxu0 %v28165_v23  ;;  %25967 = vrcp.f32 %v6289_v44  ;;  %v20711_v44 = vld [vmem:[%s31815_s4 + $0x160] sm:$0xff] }
 0xb9b   :  { %v25962_v42 = vpop.eup %25961 }
 0xb9c   :  { %v25964_v63 = vpop.eup %25963  ;;  %v6330_v12 = vmul.f32 %v25962_v42, %v28250_v62  ;;  %v20712_v42 = vld [vmem:[%s31815_s4 + $0x168] sm:$0xff] }
 0xb9d   :  { %v6328_v15 = vmul.f32 %v25964_v63, %v28252_v24 }
 0xb9f   :  { %23320 = vmatprep.mubr.msk.f32.mxu0 %vm1769_vm4, %v6328_v15  ;;  %v20713_v15 = vld [vmem:[%s31815_s4 + $0x170] sm:$0xff] }
 0xba0   :  { %v6298_v0 = vpop.xlane.xlu1 %6297  ;;  %23321 = vmatmul.mubr.msk.f32.vlgmr.msra.gmra.mrb[134].mxu0 %vm1769_vm4, %v6330_v12  ;;  %v20714_v12 = vld [vmem:[%s31815_s4 + $0x178] sm:$0xff] }
 0xba1   :  { %25969 = vrcp.f32 %v6298_v0  ;;  %25048 = vmatpush3.bf16.msra.mxu0 %v28165_v23  ;;  %v6295_v19 = vpop.xlane.xlu0 %6294  ;;  %v25085_v0 = vpack.c.bf16 %v20714_v12, %v20713_v15 }
 0xba2   :  { %25054 = vmatprep.subr.bf16.mxu0 %v28184_v48  ;;  %25971 = vrcp.f32 %v6295_v19  ;;  %v20690_v19 = vld [vmem:[%s31815_s4 + $0xe8] sm:$0xff] }
 0xba3   :  { %v25966_v5 = vpop.eup %25965 }
 0xba4   :  { %v25968_v53 = vpop.eup %25967  ;;  %v6304_v10 = vpop.xlane.xlu1 %6303  ;;  %v6334_v62 = vmul.f32 %v25966_v5, %v28262_v34 }
 0xba5   :  { %25973 = vrcp.f32 %v6304_v10  ;;  %v6301_v1 = vpop.xlane.xlu0 %6300  ;;  %v6332_v24 = vmul.f32 %v25968_v53, %v28264_v50  ;;  %v20691_v53 = vld [vmem:[%s31815_s4 + $0xf0] sm:$0xff]  ;;  %v20692_v10 = vld [vmem:[%s31815_s4 + $0xf8] sm:$0xff] }
 0xba6   :  { %25975 = vrcp.f32 %v6301_v1 }
 0xba7   :  { %23327 = vmatprep.mubr.msk.f32.mxu1 %vm1769_vm4, %v6332_v24 }
 0xba8   :  { %v6310_v61 = vpop.xlane.xlu1 %6309  ;;  %23328 = vmatmul.mubr.msk.f32.vlgmr.msra.gmra.mrb[124].mxu1 %vm1769_vm4, %v6334_v62  ;;  %v25077_v62 = vpack.c.bf16 %v20692_v10, %v20691_v53 }
 0xba9   :  { %25977 = vrcp.f32 %v6310_v61  ;;  %25052 = vmatpush3.bf16.msra.mxu1 %v28173_v45  ;;  %v6307_v23 = vpop.xlane.xlu0 %6306  ;;  %v20667_v45 = vld [vmem:[%s31815_s4 + $0x60] sm:$0xff] }
 0xbaa   :  { %25058 = vmatprep.subr.bf16.mxu1 %v28190_v26  ;;  %25979 = vrcp.f32 %v6307_v23  ;;  %v25065_v2 = vpack.c.bf16 %v20668_v3, %v20667_v45 }
 0xbab   :  { %v25970_v25 = vpop.eup %25969 }
 0xbac   :  { %v25972_v36 = vpop.eup %25971  ;;  %v6316_v56 = vpop.xlane.xlu1 %6315  ;;  %v6338_v34 = vmul.f32 %v25970_v25, %v28274_v55 }
 0xbad   :  { %25981 = vrcp.f32 %v6316_v56  ;;  %v6313_v50 = vpop.xlane.xlu0 %6312  ;;  %v6336_v7 = vmul.f32 %v25972_v36, %v28276_v37 }
 0xbae   :  { %25983 = vrcp.f32 %v6313_v50 }
 0xbaf   :  { %v25974_v58 = vpop.eup %25973  ;;  %23334 = vmatprep.mubr.msk.f32.mxu0 %vm1769_vm4, %v6336_v7 }
 0xbb0   :  { %v25976_v27 = vpop.eup %25975  ;;  %v6322_v29 = vpop.xlane.xlu1 %6321  ;;  %23335 = vmatmul.mubr.msk.f32.vlgmr.msra.gmra.mrb[136].mxu0 %vm1769_vm4, %v6338_v34  ;;  %v6342_v38 = vmul.f32 %v25974_v58, %v28284_v21  ;;  %v20669_v21 = vld [vmem:[%s31815_s4 + $0x70] sm:$0xff] }
 0xbb1   :  { %25985 = vrcp.f32 %v6322_v29  ;;  %25056 = vmatpush3.bf16.msra.mxu0 %v28184_v48  ;;  %v6319_v37 = vpop.xlane.xlu0 %6318  ;;  %v6340_v55 = vmul.f32 %v25976_v27, %v28286_v6 }
 0xbb2   :  { %25062 = vmatprep.subr.bf16.mxu0 %v28200_v20  ;;  %25987 = vrcp.f32 %v6319_v37 }
 0xbb3   :  { %v25978_v28 = vpop.eup %25977  ;;  %23341 = vmatprep.mubr.msk.f32.mxu1 %vm1769_vm4, %v6340_v55  ;;  %v20672_v55 = vld [vmem:[%s31817_s5 + $0x3] ss:$0 sm:$0xff] }
 0xbb4   :  { %v25980_v59 = vpop.eup %25979  ;;  %23342 = vmatmul.mubr.msk.f32.vlgmr.msra.gmra.mrb[126].mxu1 %vm1769_vm4, %v6342_v38  ;;  %v6346_v48 = vmul.f32 %v25978_v28, %v28292_v31 }
 0xbb5   :  { %25060 = vmatpush3.bf16.msra.mxu1 %v28190_v26  ;;  %v6344_v39 = vmul.f32 %v25980_v59, %v28294_v16  ;;  %v25069_v16 = vpack.c.bf16 %v20670_v52, %v20669_v21 }
 0xbb6   :  { %25066 = vmatprep.subr.bf16.mxu1 %v25065_v2 }
 0xbb7   :  { %v25982_v6 = vpop.eup %25981  ;;  %23348 = vmatprep.mubr.msk.f32.mxu0 %vm1769_vm4, %v6344_v39 }
 0xbb8   :  { %v25984_v47 = vpop.eup %25983  ;;  %23349 = vmatmul.mubr.msk.f32.vlgmr.msra.gmra.mrb[138].mxu0 %vm1769_vm4, %v6346_v48  ;;  %v6350_v31 = vmul.f32 %v25982_v6, %v28300_v60 }
 0xbb9   :  { %25064 = vmatpush3.bf16.msra.mxu0 %v28200_v20  ;;  %v6348_v26 = vmul.f32 %v25984_v47, %v28302_v49  ;;  %v25081_v49 = vpack.c.bf16 %v20712_v42, %v20711_v44 }
 0xbbb   :  { %v25986_v17 = vpop.eup %25985  ;;  %23355 = vmatprep.mubr.msk.f32.mxu1 %vm1769_vm4, %v6348_v26 }
 0xbbc   :  { %v25988_v63 = vpop.eup %25987  ;;  %23356 = vmatmul.mubr.msk.f32.vlgmr.msra.gmra.mrb[128].mxu1 %vm1769_vm4, %v6350_v31  ;;  %v6354_v60 = vmul.f32 %v25986_v17, %v28308_v43  ;;  %v20650_v43 = vld [vmem:[%s31818_s6 + $0x10] sm:$0xff] }
 0xbbd   :  { %25068 = vmatpush3.bf16.msra.mxu1 %v25065_v2  ;;  %23399 = vmatprep.mubr.msk.f32.mxu1 %vm282_vm1, %v26897_v14  ;;  %v6352_v20 = vmul.f32 %v25988_v63, %v28310_v41  ;;  %v20689_v41 = vld [vmem:[%s31815_s4 + $0xe0] sm:$0xff] }
 0xbbe   :  { %25070 = vmatprep.subr.bf16.mxu1 %v25069_v16  ;;  %23365 = vmatprep.subr.mxu0 %v20650_v43  ;;  %v25073_v5 = vpack.c.bf16 %v20690_v19, %v20689_v41 }
 0xbbf   :  { %23362 = vmatprep.mubr.msk.f32.mxu0 %vm1769_vm4, %v6352_v20 }
 0xbc0   :  { %23363 = vmatmul.mubr.msk.f32.vlgmr.msra.gmra.mrb[140].mxu0 %vm1769_vm4, %v6354_v60 }
 0xbc1   :  { %25072 = vmatpush3.bf16.msra.mxu1 %v25069_v16  ;;  %23366 = vmatpush3.msra.mxu0 %v20650_v43 }
 0xbc2   :  { %25082 = vmatprep.subr.bf16.mxu1 %v25081_v49  ;;  %25074 = vmatprep.subr.bf16.mxu0 %v25073_v5 }
 0xbc4   :  { %23400 = vmatmul.mubr.msk.f32.vlgmr.msra.gmra.mrb[130].mxu1 %vm282_vm1, %v26915_v35 }
 0xbc5   :  { %23402 = vmatprep.mubr.msk.f32.mxu1 %vm282_vm1, %v26919_v18  ;;  %25084 = vmatpush3.bf16.msra.mxu1 %v25081_v49 }
 0xbc6   :  { %25086 = vmatprep.subr.bf16.mxu1 %v25085_v0 }
 0xbc8   :  { %23403 = vmatmul.mubr.msk.f32.gmra.mrb[132].mxu1 %vm282_vm1, %v26933_v40 }
 0xbc9   :  { %23405 = vmatprep.mubr.msk.f32.mxu1 %vm282_vm1, %v26938_v22  ;;  %25088 = vmatpush3.bf16.msra.mxu1 %v25085_v0 }
 0xbcc   :  { %23406 = vmatmul.mubr.msk.f32.gmra.mrb[134].mxu1 %vm282_vm1, %v26950_v54 }
 0xbcd   :  { %23408 = vmatprep.mubr.msk.f32.mxu1 %vm282_vm1, %v26821_v30 }
 0xbd0   :  { %23409 = vmatmul.mubr.msk.f32.gmra.mrb[136].mxu1 %vm282_vm1, %v26836_v57 }
 0xbd1   :  { %23411 = vmatprep.mubr.msk.f32.mxu1 %vm282_vm1, %v26840_v8 }
 0xbd4   :  { %23412 = vmatmul.mubr.msk.f32.gmra.mrb[138].mxu1 %vm282_vm1, %v26851_v32 }
 0xbd5   :  { %23414 = vmatprep.mubr.msk.f32.mxu1 %vm282_vm1, %v26855_v33 }
 0xbd8   :  { %23415 = vmatmul.mubr.msk.f32.gmra.mrb[140].mxu1 %vm282_vm1, %v26865_v46 }
 0xbd9   :  { %23417 = vmatprep.mubr.msk.f32.mxu1 %vm282_vm1, %v26869_v51 }
 0xbdc   :  { %23418 = vmatmul.mubr.msk.f32.gmra.mrb[142].mxu1 %vm282_vm1, %v26879_v9 }
 0xbdd   :  { %23420 = vmatprep.mubr.msk.f32.mxu1 %vm282_vm1, %v26883_v11 }
 0xbe0   :  { %23421 = vmatmul.mubr.msk.f32.gmra.mrb[144].mxu1 %vm282_vm1, %v26893_v13 }
 0xbe1   :  { %23463 = vmatprep.mubr.msk.f32.mxu1 %vm282_vm1, %v26897_v14 }
 0xbe4   :  { %23464 = vmatmul.mubr.msk.f32.vlgmr.msra.gmra.mrb[146].mxu1 %vm282_vm1, %v26915_v35 }
 0xbe5   :  { %23466 = vmatprep.mubr.msk.f32.mxu1 %vm282_vm1, %v26919_v18 }
 0xbe8   :  { %23467 = vmatmul.mubr.msk.f32.gmra.mrb[148].mxu1 %vm282_vm1, %v26933_v40 }
 0xbe9   :  { %23469 = vmatprep.mubr.msk.f32.mxu1 %vm282_vm1, %v26938_v22 }
 0xbec   :  { %23470 = vmatmul.mubr.msk.f32.gmra.mrb[150].mxu1 %vm282_vm1, %v26950_v54 }
 0xbed   :  { %23472 = vmatprep.mubr.msk.f32.mxu1 %vm282_vm1, %v26821_v30 }
 0xbf0   :  { %23473 = vmatmul.mubr.msk.f32.gmra.mrb[152].mxu1 %vm282_vm1, %v26836_v57 }
 0xbf1   :  { %23475 = vmatprep.mubr.msk.f32.mxu1 %vm282_vm1, %v26840_v8 }
 0xbf4   :  { %23476 = vmatmul.mubr.msk.f32.gmra.mrb[154].mxu1 %vm282_vm1, %v26851_v32 }
 0xbf5   :  { %23478 = vmatprep.mubr.msk.f32.mxu1 %vm282_vm1, %v26855_v33 }
 0xbf8   :  { %23479 = vmatmul.mubr.msk.f32.gmra.mrb[156].mxu1 %vm282_vm1, %v26865_v46 }
 0xbf9   :  { %23481 = vmatprep.mubr.msk.f32.mxu1 %vm282_vm1, %v26869_v51 }
 0xbfc   :  { %23482 = vmatmul.mubr.msk.f32.gmra.mrb[158].mxu1 %vm282_vm1, %v26879_v9 }
 0xbfd   :  { %23484 = vmatprep.mubr.msk.f32.mxu1 %vm282_vm1, %v26883_v11 }
 0xc00   :  { %23485 = vmatmul.mubr.msk.f32.gmra.mrb[160].mxu1 %vm282_vm1, %v26893_v13 }
 0xc6b   :  { %v23315_v1 = vpop.f32.mrb[132].mxu0 }
 0xc6c   :  { %v6427_v24 = vpop.f32.mrb[133].mxu0 }
 0xc6d   :  { %23367 = vmatprep.mubr.msk.f32.mxu0 %vm1056_vm2, %v6427_v24 }
 0xc6e   :  { %23368 = vmatmul.mubr.msk.f32.vlgmr.msra.gmra.mrb[96].mxu0 %vm1056_vm2, %v23315_v1 }
 0xc6f   :  { %25076 = vmatpush3.bf16.msra.mxu0 %v25073_v5 }
 0xc70   :  { %25078 = vmatprep.subr.bf16.mxu0 %v25077_v62 }
 0xc73   :  { %v23322_v61 = vpop.f32.mrb[134].mxu0  ;;  %25080 = vmatpush3.bf16.msra.mxu0 %v25077_v62 }
 0xc74   :  { %v6508_v23 = vpop.f32.mrb[135].mxu0 }
 0xc75   :  { %23370 = vmatprep.mubr.msk.f32.mxu0 %vm1056_vm2, %v6508_v23 }
 0xc76   :  { %23371 = vmatmul.mubr.msk.f32.gmra.mrb[98].mxu0 %vm1056_vm2, %v23322_v61 }
 0xc7b   :  { %v23329_v25 = vpop.f32.mrb[124].mxu1 }
 0xc7c   :  { %v6589_v36 = vpop.f32.mrb[125].mxu1 }
 0xc7d   :  { %23373 = vmatprep.mubr.msk.f32.mxu0 %vm1056_vm2, %v6589_v36 }
 0xc7e   :  { %23374 = vmatmul.mubr.msk.f32.gmra.mrb[100].mxu0 %vm1056_vm2, %v23329_v25 }
 0xc83   :  { %v23336_v56 = vpop.f32.mrb[136].mxu0 }
 0xc84   :  { %v6670_v50 = vpop.f32.mrb[137].mxu0 }
 0xc85   :  { %23376 = vmatprep.mubr.msk.f32.mxu0 %vm1056_vm2, %v6670_v50 }
 0xc86   :  { %23377 = vmatmul.mubr.msk.f32.gmra.mrb[102].mxu0 %vm1056_vm2, %v23336_v56 }
 0xc87   :  { %v23343_v7 = vpop.f32.mrb[126].mxu1 }
 0xc88   :  { %v6751_v34 = vpop.f32.mrb[127].mxu1 }
 0xc89   :  { %23379 = vmatprep.mubr.msk.f32.mxu0 %vm1056_vm2, %v6751_v34 }
 0xc8a   :  { %23380 = vmatmul.mubr.msk.f32.gmra.mrb[104].mxu0 %vm1056_vm2, %v23343_v7 }
 0xc8b   :  { %v23350_v58 = vpop.f32.mrb[138].mxu0 }
 0xc8c   :  { %v6832_v45 = vpop.f32.mrb[139].mxu0 }
 0xc8d   :  { %23382 = vmatprep.mubr.msk.f32.mxu0 %vm1056_vm2, %v6832_v45 }
 0xc8e   :  { %23383 = vmatmul.mubr.msk.f32.gmra.mrb[106].mxu0 %vm1056_vm2, %v23350_v58 }
 0xc8f   :  { %v23357_v3 = vpop.f32.mrb[128].mxu1 }
 0xc90   :  { %v6913_v27 = vpop.f32.mrb[129].mxu1 }
 0xc91   :  { %23385 = vmatprep.mubr.msk.f32.mxu0 %vm1056_vm2, %v6913_v27 }
 0xc92   :  { %23386 = vmatmul.mubr.msk.f32.gmra.mrb[108].mxu0 %vm1056_vm2, %v23357_v3 }
 0xc93   :  { %v23364_v29 = vpop.f32.mrb[140].mxu0 }
 0xc94   :  { %v6994_v37 = vpop.f32.mrb[141].mxu0 }
 0xc95   :  { %23388 = vmatprep.mubr.msk.f32.mxu0 %vm1056_vm2, %v6994_v37 }
 0xc96   :  { %23389 = vmatmul.mubr.msk.f32.gmra.mrb[110].mxu0 %vm1056_vm2, %v23364_v29 }
 0xc97   :  { %v23401_v38 = vpop.f32.mrb[130].mxu1  ;;  %23431 = vmatprep.mubr.msk.f32.mxu0 %vm282_vm1, %v26897_v14 }
 0xc98   :  { %v28482_v2 = vadd.f32 %v23401_v38, %v20672_v55  ;;  %v7293_v28 = vpop.f32.mrb[131].mxu1 }
 0xc9a   :  { %23432 = vmatmul.mubr.msk.f32.vlgmr.msra.gmra.mrb[142].mxu0 %vm282_vm1, %v26915_v35 }
 0xc9b   :  { %v23404_v59 = vpop.f32.mrb[132].mxu1  ;;  %23434 = vmatprep.mubr.msk.f32.mxu0 %vm282_vm1, %v26919_v18 }
 0xc9c   :  { %v28488_v39 = vadd.f32 %v23404_v59, %v20672_v55  ;;  %v7303_v48 = vpop.f32.mrb[133].mxu1 }
 0xc9d   :  { %v7304_v6 = vadd.f32 %v20672_v55, %v7303_v48 }
 0xc9e   :  { %23435 = vmatmul.mubr.msk.f32.gmra.mrb[144].mxu0 %vm282_vm1, %v26933_v40 }
 0xc9f   :  { %v23407_v21 = vpop.f32.mrb[134].mxu1  ;;  %23498 = vmatprep.mubr.msk.f32.mxu1 %vm1056_vm2, %v7304_v6  ;;  %23437 = vmatprep.mubr.msk.f32.mxu0 %vm282_vm1, %v26938_v22 }
 0xca0   :  { %v28495_v14 = vadd.f32 %v23407_v21, %v20672_v55  ;;  %v7313_v35 = vpop.f32.mrb[135].mxu1 }
 0xca1   :  { %v28497_v52 = vadd.f32 %v20672_v55, %v7313_v35 }
 0xca2   :  { %23438 = vmatmul.mubr.msk.f32.gmra.mrb[146].mxu0 %vm282_vm1, %v26950_v54 }
 0xca3   :  { %v23410_v18 = vpop.f32.mrb[136].mxu1  ;;  %23440 = vmatprep.mubr.msk.f32.mxu0 %vm282_vm1, %v26821_v30 }
 0xca4   :  { %v28503_v47 = vadd.f32 %v23410_v18, %v20672_v55  ;;  %v7323_v40 = vpop.f32.mrb[137].mxu1 }
 0xca5   :  { %v28505_v26 = vadd.f32 %v20672_v55, %v7323_v40 }
 0xca6   :  { %23441 = vmatmul.mubr.msk.f32.gmra.mrb[148].mxu0 %vm282_vm1, %v26836_v57 }
 0xca7   :  { %v23413_v22 = vpop.f32.mrb[138].mxu1  ;;  %23443 = vmatprep.mubr.msk.f32.mxu0 %vm282_vm1, %v26840_v8 }
 0xca8   :  { %v28511_v31 = vadd.f32 %v23413_v22, %v20672_v55  ;;  %v7333_v16 = vpop.f32.mrb[139].mxu1 }
 0xca9   :  { %v28513_v54 = vadd.f32 %v20672_v55, %v7333_v16  ;;  %v20694_v16 = vld [vmem:[%s31817_s5 + $0x7] ss:$0 sm:$0xff] }
 0xcaa   :  { %23444 = vmatmul.mubr.msk.f32.gmra.mrb[150].mxu0 %vm282_vm1, %v26851_v32 }
 0xcab   :  { %v23416_v30 = vpop.f32.mrb[140].mxu1  ;;  %23446 = vmatprep.mubr.msk.f32.mxu0 %vm282_vm1, %v26855_v33 }
 0xcac   :  { %v28519_v17 = vadd.f32 %v23416_v30, %v20672_v55  ;;  %v7343_v44 = vpop.f32.mrb[141].mxu1 }
 0xcad   :  { %v28521_v57 = vadd.f32 %v20672_v55, %v7343_v44 }
 0xcae   :  { %23447 = vmatmul.mubr.msk.f32.gmra.mrb[152].mxu0 %vm282_vm1, %v26865_v46  ;;  %v7294_v46 = vadd.f32 %v20672_v55, %v7293_v28 }
 0xcaf   :  { %v23419_v8 = vpop.f32.mrb[142].mxu1  ;;  %23449 = vmatprep.mubr.msk.f32.mxu0 %vm282_vm1, %v26869_v51  ;;  %v20716_v51 = vld [vmem:[%s31817_s5 + $0xb] ss:$0 sm:$0xff] }
 0xcb0   :  { %v28527_v42 = vadd.f32 %v23419_v8, %v20672_v55  ;;  %v7353_v63 = vpop.f32.mrb[143].mxu1 }
 0xcb1   :  { %v28529_v32 = vadd.f32 %v20672_v55, %v7353_v63 }
 0xcb2   :  { %23450 = vmatmul.mubr.msk.f32.gmra.mrb[154].mxu0 %vm282_vm1, %v26879_v9 }
 0xcb3   :  { %v23422_v33 = vpop.f32.mrb[144].mxu1  ;;  %23452 = vmatprep.mubr.msk.f32.mxu0 %vm282_vm1, %v26883_v11 }
 0xcb4   :  { %v28535_v20 = vadd.f32 %v23422_v33, %v20672_v55  ;;  %v7363_v60 = vpop.f32.mrb[145].mxu1 }
 0xcb5   :  { %v28537_v49 = vadd.f32 %v20672_v55, %v7363_v60 }
 0xcb6   :  { %23453 = vmatmul.mubr.msk.f32.gmra.mrb[156].mxu0 %vm282_vm1, %v26893_v13 }
 0xcb7   :  { %v23465_v15 = vpop.f32.mrb[146].mxu1  ;;  %23491 = vmatprep.mubr.msk.f32.mxu0 %vm1056_vm2, %v7294_v46 }
 0xcb8   :  { %v7615_v9 = vadd.f32 %v23465_v15, %v20716_v51  ;;  %v7609_v12 = vpop.f32.mrb[147].mxu1 }
 0xcb9   :  { %v7610_v0 = vadd.f32 %v20716_v51, %v7609_v12 }
 0xcbb   :  { %v28545_v11 = vpack.c.bf16 %v7615_v9, %v7610_v0  ;;  %v23468_v43 = vpop.f32.mrb[148].mxu1 }
 0xcbc   :  { %v7625_v41 = vadd.f32 %v23468_v43, %v20716_v51  ;;  %v7619_v19 = vpop.f32.mrb[149].mxu1 }
 0xcbd   :  { %v7620_v5 = vadd.f32 %v20716_v51, %v7619_v19 }
 0xcbf   :  { %v28547_v53 = vpack.c.bf16 %v7625_v41, %v7620_v5  ;;  %v23471_v10 = vpop.f32.mrb[150].mxu1 }
 0xcc0   :  { %v7635_v1 = vadd.f32 %v23471_v10, %v20716_v51  ;;  %v7629_v24 = vpop.f32.mrb[151].mxu1 }
 0xcc1   :  { %v7630_v62 = vadd.f32 %v20716_v51, %v7629_v24 }
 0xcc3   :  { %v28549_v61 = vpack.c.bf16 %v7635_v1, %v7630_v62  ;;  %v23474_v13 = vpop.f32.mrb[152].mxu1 }
 0xcc4   :  { %v7645_v23 = vadd.f32 %v23474_v13, %v20716_v51  ;;  %v7639_v25 = vpop.f32.mrb[153].mxu1 }
 0xcc5   :  { %v7640_v36 = vadd.f32 %v20716_v51, %v7639_v25 }
 0xcc7   :  { %v28551_v56 = vpack.c.bf16 %v7645_v23, %v7640_v36  ;;  %v23477_v50 = vpop.f32.mrb[154].mxu1 }
 0xcc8   :  { %v7655_v7 = vadd.f32 %v23477_v50, %v20716_v51  ;;  %v7649_v34 = vpop.f32.mrb[155].mxu1 }
 0xcc9   :  { %v7650_v58 = vadd.f32 %v20716_v51, %v7649_v34 }
 0xccb   :  { %v28553_v45 = vpack.c.bf16 %v7655_v7, %v7650_v58  ;;  %v23480_v3 = vpop.f32.mrb[156].mxu1 }
 0xccc   :  { %v7665_v27 = vadd.f32 %v23480_v3, %v20716_v51  ;;  %v7659_v29 = vpop.f32.mrb[157].mxu1 }
 0xccd   :  { %v7660_v37 = vadd.f32 %v20716_v51, %v7659_v29 }
 0xccf   :  { %v28555_v55 = vpack.c.bf16 %v7665_v27, %v7660_v37  ;;  %v23483_v38 = vpop.f32.mrb[158].mxu1 }
 0xcd0   :  { %v7675_v28 = vadd.f32 %v23483_v38, %v20716_v51  ;;  %v7669_v59 = vpop.f32.mrb[159].mxu1 }
 0xcd1   :  { %v7670_v48 = vadd.f32 %v20716_v51, %v7669_v59 }
 0xcd3   :  { %v28557_v6 = vpack.c.bf16 %v7675_v28, %v7670_v48  ;;  %v23486_v21 = vpop.f32.mrb[160].mxu1 }
 0xcd4   :  { %v7685_v35 = vadd.f32 %v23486_v21, %v20716_v51  ;;  %v7679_v18 = vpop.f32.mrb[161].mxu1 }
 0xcd5   :  { %v7680_v40 = vadd.f32 %v20716_v51, %v7679_v18 }
 0xcd7   :  { %v28559_v22 = vpack.c.bf16 %v7685_v35, %v7680_v40 }
 0xd6d   :  { %v23433_v30 = vpop.f32.mrb[142].mxu0 }
 0xd6e   :  { %v7457_v44 = vadd.f32 %v23433_v30, %v20694_v16  ;;  %v7451_v8 = vpop.f32.mrb[143].mxu0 }
 0xd6f   :  { %v7452_v63 = vadd.f32 %v20694_v16, %v7451_v8 }
 0xd71   :  { %v25089_v33 = vpack.c.bf16 %v7457_v44, %v7452_v63  ;;  %v23436_v60 = vpop.f32.mrb[144].mxu0 }
 0xd72   :  { %v7467_v46 = vadd.f32 %v23436_v60, %v20694_v16  ;;  %v7461_v15 = vpop.f32.mrb[145].mxu0 }
 0xd73   :  { %v7462_v9 = vadd.f32 %v20694_v16, %v7461_v15  ;;  %25091 = vmatprep.subr.msk.bf16.mxu0 %vm27043_vm3, %v25089_v33 }
 0xd74   :  { %25094 = vmatpush3.bf16.xpose.msk.msra.mxu0 %vm27043_vm3, %v25089_v33 }
 0xd75   :  { %v25095_v51 = vpack.c.bf16 %v7467_v46, %v7462_v9  ;;  %v23439_v12 = vpop.f32.mrb[146].mxu0 }
 0xd76   :  { %v7477_v0 = vadd.f32 %v23439_v12, %v20694_v16  ;;  %v7471_v43 = vpop.f32.mrb[147].mxu0 }
 0xd77   :  { %v7472_v41 = vadd.f32 %v20694_v16, %v7471_v43  ;;  %25097 = vmatprep.subr.msk.bf16.mxu1 %vm27043_vm3, %v25095_v51 }
 0xd78   :  { %25100 = vmatpush3.bf16.xpose.msk.msra.mxu1 %vm27043_vm3, %v25095_v51 }
 0xd79   :  { %v25101_v19 = vpack.c.bf16 %v7477_v0, %v7472_v41  ;;  %v23442_v5 = vpop.f32.mrb[148].mxu0 }
 0xd7a   :  { %v7487_v10 = vadd.f32 %v23442_v5, %v20694_v16  ;;  %v7481_v1 = vpop.f32.mrb[149].mxu0 }
 0xd7b   :  { %v7482_v24 = vadd.f32 %v20694_v16, %v7481_v1  ;;  %23492 = vmatmul.mubr.msk.f32.vlgmr.msra.gmra.mrb[158].mxu0 %vm1056_vm2, %v28482_v2  ;;  %25103 = vmatprep.subr.msk.bf16.mxu0 %vm27043_vm3, %v25101_v19 }
 0xd7c   :  { %25106 = vmatpush3.bf16.xpose.msk.msra.mxu0 %vm27043_vm3, %v25101_v19  ;;  %23505 = vmatprep.mubr.msk.f32.mxu0 %vm1056_vm2, %v28497_v52 }
 0xd7d   :  { %v25107_v62 = vpack.c.bf16 %v7487_v10, %v7482_v24  ;;  %v23445_v13 = vpop.f32.mrb[150].mxu0 }
 0xd7e   :  { %v7497_v23 = vadd.f32 %v23445_v13, %v20694_v16  ;;  %v7491_v25 = vpop.f32.mrb[151].mxu0 }
 0xd7f   :  { %v7492_v36 = vadd.f32 %v20694_v16, %v7491_v25  ;;  %23499 = vmatmul.mubr.msk.f32.vlgmr.msra.gmra.mrb[162].mxu1 %vm1056_vm2, %v28488_v39  ;;  %25109 = vmatprep.subr.msk.bf16.mxu1 %vm27043_vm3, %v25107_v62 }
 0xd80   :  { %25112 = vmatpush3.bf16.xpose.msk.msra.mxu1 %vm27043_vm3, %v25107_v62  ;;  %23512 = vmatprep.mubr.msk.f32.mxu1 %vm1056_vm2, %v28505_v26 }
 0xd81   :  { %v25113_v2 = vpack.c.bf16 %v7497_v23, %v7492_v36  ;;  %v23448_v50 = vpop.f32.mrb[152].mxu0 }
 0xd82   :  { %v7507_v52 = vadd.f32 %v23448_v50, %v20694_v16  ;;  %v7501_v7 = vpop.f32.mrb[153].mxu0 }
 0xd83   :  { %v7502_v34 = vadd.f32 %v20694_v16, %v7501_v7  ;;  %23506 = vmatmul.mubr.msk.f32.vlgmr.msra.gmra.mrb[160].mxu0 %vm1056_vm2, %v28495_v14  ;;  %25115 = vmatprep.subr.msk.bf16.mxu0 %vm27043_vm3, %v25113_v2 }
 0xd84   :  { %25118 = vmatpush3.bf16.xpose.msk.msra.mxu0 %vm27043_vm3, %v25113_v2  ;;  %23519 = vmatprep.mubr.msk.f32.mxu0 %vm1056_vm2, %v28513_v54 }
 0xd85   :  { %v25119_v39 = vpack.c.bf16 %v7507_v52, %v7502_v34  ;;  %v23451_v58 = vpop.f32.mrb[154].mxu0 }
 0xd86   :  { %v7517_v26 = vadd.f32 %v23451_v58, %v20694_v16  ;;  %v7511_v3 = vpop.f32.mrb[155].mxu0 }
 0xd87   :  { %v7512_v27 = vadd.f32 %v20694_v16, %v7511_v3  ;;  %23513 = vmatmul.mubr.msk.f32.vlgmr.msra.gmra.mrb[164].mxu1 %vm1056_vm2, %v28503_v47  ;;  %25121 = vmatprep.subr.msk.bf16.mxu1 %vm27043_vm3, %v25119_v39 }
 0xd88   :  { %25124 = vmatpush3.bf16.xpose.msk.msra.mxu1 %vm27043_vm3, %v25119_v39  ;;  %23526 = vmatprep.mubr.msk.f32.mxu1 %vm1056_vm2, %v28521_v57 }
 0xd89   :  { %v25125_v14 = vpack.c.bf16 %v7517_v26, %v7512_v27  ;;  %v23454_v29 = vpop.f32.mrb[156].mxu0 }
 0xd8a   :  { %v7527_v54 = vadd.f32 %v23454_v29, %v20694_v16  ;;  %v7521_v37 = vpop.f32.mrb[157].mxu0 }
 0xd8b   :  { %v7522_v38 = vadd.f32 %v20694_v16, %v7521_v37  ;;  %23520 = vmatmul.mubr.msk.f32.vlgmr.msra.gmra.mrb[162].mxu0 %vm1056_vm2, %v28511_v31  ;;  %25127 = vmatprep.subr.msk.bf16.mxu0 %vm27043_vm3, %v25125_v14 }
 0xd8c   :  { %25130 = vmatpush3.bf16.xpose.msk.msra.mxu0 %vm27043_vm3, %v25125_v14  ;;  %23533 = vmatprep.mubr.msk.f32.mxu0 %vm1056_vm2, %v28529_v32 }
 0xd8d   :  { %v25131_v47 = vpack.c.bf16 %v7527_v54, %v7522_v38  ;;  %25138 = vmatprep.subr.bf16.mxu0 %v28545_v11 }
 0xd8f   :  { %23527 = vmatmul.mubr.msk.f32.vlgmr.msra.gmra.mrb[166].mxu1 %vm1056_vm2, %v28519_v17  ;;  %25133 = vmatprep.subr.msk.bf16.mxu1 %vm27043_vm3, %v25131_v47 }
 0xd90   :  { %25136 = vmatpush3.bf16.xpose.msk.msra.mxu1 %vm27043_vm3, %v25131_v47  ;;  %23540 = vmatprep.mubr.msk.f32.mxu1 %vm1056_vm2, %v28537_v49 }
 0xd91   :  { %25142 = vmatprep.subr.bf16.mxu1 %v28547_v53 }
 0xd93   :  { %23534 = vmatmul.mubr.msk.f32.vlgmr.msra.gmra.mrb[164].mxu0 %vm1056_vm2, %v28527_v42 }
 0xd94   :  { %25140 = vmatpush3.bf16.msra.mxu0 %v28545_v11 }
 0xd95   :  { %25146 = vmatprep.subr.bf16.mxu0 %v28549_v61 }
 0xd97   :  { %23541 = vmatmul.mubr.msk.f32.vlgmr.msra.gmra.mrb[168].mxu1 %vm1056_vm2, %v28535_v20 }
 0xd98   :  { %25144 = vmatpush3.bf16.msra.mxu1 %v28547_v53 }
 0xd99   :  { %25150 = vmatprep.subr.bf16.mxu1 %v28551_v56 }
 0xe4e   :  { %v23493_v31 = vpop.f32.mrb[158].mxu0 }
 0xe4f   :  { %v28630_v17 = vmul.f32 0.35355338, %v23493_v31  ;;  %v7766_v57 = vpop.f32.mrb[159].mxu0 }
 0xe50   :  { %v28632_v32 = vmul.f32 0.35355338, %v7766_v57 }
 0xe51   :  { %v8403_v42 = vsel %vm1769_vm4, %v28630_v17, -inf }
 0xe52   :  { %v23500_v49 = vpop.f32.mrb[162].mxu1  ;;  %8404 = vmax.xlane.f32.xlu1 %v8403_v42  ;;  %v8400_v11 = vsel %vm1769_vm4, %v28632_v32, -inf }
 0xe53   :  { %v28638_v28 = vmul.f32 0.35355338, %v23500_v49  ;;  %v7853_v20 = vpop.f32.mrb[163].mxu1  ;;  %8401 = vmax.xlane.f32.xlu0 %v8400_v11 }
 0xe54   :  { %v28640_v53 = vmul.f32 0.35355338, %v7853_v20 }
 0xe55   :  { %v8409_v59 = vsel %vm1769_vm4, %v28638_v28, -inf }
 0xe56   :  { %8410 = vmax.xlane.f32.xlu1 %v8409_v59  ;;  %v23507_v48 = vpop.f32.mrb[160].mxu0  ;;  %v8406_v21 = vsel %vm1769_vm4, %v28640_v53, -inf }
 0xe57   :  { %v28646_v35 = vmul.f32 0.35355338, %v23507_v48  ;;  %8407 = vmax.xlane.f32.xlu0 %v8406_v21  ;;  %v7940_v18 = vpop.f32.mrb[161].mxu0 }
 0xe58   :  { %v28648_v40 = vmul.f32 0.35355338, %v7940_v18 }
 0xe59   :  { %v8415_v16 = vsel %vm1769_vm4, %v28646_v35, -inf }
 0xe5a   :  { %v23514_v30 = vpop.f32.mrb[164].mxu1  ;;  %8416 = vmax.xlane.f32.xlu1 %v8415_v16  ;;  %v8412_v44 = vsel %vm1769_vm4, %v28648_v40, -inf }
 0xe5b   :  { %v28654_v8 = vmul.f32 0.35355338, %v23514_v30  ;;  %v8027_v63 = vpop.f32.mrb[165].mxu1  ;;  %8413 = vmax.xlane.f32.xlu0 %v8412_v44 }
 0xe5c   :  { %v28656_v33 = vmul.f32 0.35355338, %v8027_v63 }
 0xe5d   :  { %v8421_v60 = vsel %vm1769_vm4, %v28654_v8, -inf }
 0xe5e   :  { %8422 = vmax.xlane.f32.xlu1 %v8421_v60  ;;  %v23521_v46 = vpop.f32.mrb[162].mxu0  ;;  %v8418_v15 = vsel %vm1769_vm4, %v28656_v33, -inf }
 0xe5f   :  { %v28662_v9 = vmul.f32 0.35355338, %v23521_v46  ;;  %8419 = vmax.xlane.f32.xlu0 %v8418_v15  ;;  %v8114_v51 = vpop.f32.mrb[163].mxu0 }
 0xe60   :  { %v28664_v12 = vmul.f32 0.35355338, %v8114_v51 }
 0xe61   :  { %v8427_v0 = vsel %vm1769_vm4, %v28662_v9, -inf }
 0xe62   :  { %v23528_v43 = vpop.f32.mrb[166].mxu1  ;;  %8428 = vmax.xlane.f32.xlu1 %v8427_v0  ;;  %v8424_v41 = vsel %vm1769_vm4, %v28664_v12, -inf }
 0xe63   :  { %v28670_v19 = vmul.f32 0.35355338, %v23528_v43  ;;  %v8201_v5 = vpop.f32.mrb[167].mxu1  ;;  %8425 = vmax.xlane.f32.xlu0 %v8424_v41 }
 0xe64   :  { %v28672_v10 = vmul.f32 0.35355338, %v8201_v5 }
 0xe65   :  { %v8433_v1 = vsel %vm1769_vm4, %v28670_v19, -inf }
 0xe66   :  { %8434 = vmax.xlane.f32.xlu1 %v8433_v1  ;;  %v23535_v24 = vpop.f32.mrb[164].mxu0  ;;  %v8430_v62 = vsel %vm1769_vm4, %v28672_v10, -inf }
 0xe67   :  { %v28678_v13 = vmul.f32 0.35355338, %v23535_v24  ;;  %8431 = vmax.xlane.f32.xlu0 %v8430_v62  ;;  %v8288_v23 = vpop.f32.mrb[165].mxu0 }
 0xe68   :  { %v28680_v25 = vmul.f32 0.35355338, %v8288_v23 }
 0xe69   :  { %v8439_v36 = vsel %vm1769_vm4, %v28678_v13, -inf }
 0xe6a   :  { %v23542_v2 = vpop.f32.mrb[168].mxu1  ;;  %8440 = vmax.xlane.f32.xlu1 %v8439_v36  ;;  %v8436_v50 = vsel %vm1769_vm4, %v28680_v25, -inf }
 0xe6b   :  { %v28686_v52 = vmul.f32 0.35355338, %v23542_v2  ;;  %v8375_v7 = vpop.f32.mrb[169].mxu1  ;;  %8437 = vmax.xlane.f32.xlu0 %v8436_v50 }
 0xe6c   :  { %v28688_v34 = vmul.f32 0.35355338, %v8375_v7 }
 0xe6d   :  { %v8445_v39 = vsel %vm1769_vm4, %v28686_v52, -inf }
 0xe6e   :  { %8446 = vmax.xlane.f32.xlu1 %v8445_v39  ;;  %v8442_v58 = vsel %vm1769_vm4, %v28688_v34, -inf }
 0xe6f   :  { %8443 = vmax.xlane.f32.xlu0 %v8442_v58 }
 0xedf   :  { %v8405_v26 = vpop.xlane.xlu1 %8404 }
 0xee0   :  { %v8449_v3 = vsub.f32 %v28630_v17, %v8405_v26  ;;  %v8402_v27 = vpop.xlane.xlu0 %8401 }
 0xee1   :  { %v8448_v14 = vsub.f32 %v28632_v32, %v8402_v27 }
 0xee2   :  { %v8466_v29 = vmul.f32 1.442695, %v8449_v3 }
 0xee3   :  { %v8464_v54 = vmul.f32 1.442695, %v8448_v14  ;;  %v8411_v37 = vpop.xlane.xlu1 %8410 }
 0xee4   :  { %25989 = vpow2.f32 %v8466_v29  ;;  %v8451_v38 = vsub.f32 %v28638_v28, %v8411_v37  ;;  %v8408_v47 = vpop.xlane.xlu0 %8407 }
 0xee5   :  { %25991 = vpow2.f32 %v8464_v54  ;;  %v8450_v31 = vsub.f32 %v28640_v53, %v8408_v47 }
 0xee6   :  { %v8470_v57 = vmul.f32 1.442695, %v8451_v38 }
 0xee7   :  { %v8468_v42 = vmul.f32 1.442695, %v8450_v31  ;;  %v8417_v49 = vpop.xlane.xlu1 %8416 }
 0xee8   :  { %25993 = vpow2.f32 %v8470_v57  ;;  %v8453_v11 = vsub.f32 %v28646_v35, %v8417_v49  ;;  %v8414_v17 = vpop.xlane.xlu0 %8413 }
 0xee9   :  { %25995 = vpow2.f32 %v8468_v42  ;;  %v8452_v32 = vsub.f32 %v28648_v40, %v8414_v17 }
 0xeea   :  { %v8474_v20 = vmul.f32 1.442695, %v8453_v11 }
 0xeeb   :  { %v8472_v59 = vmul.f32 1.442695, %v8452_v32  ;;  %v8423_v48 = vpop.xlane.xlu1 %8422 }
 0xeec   :  { %25997 = vpow2.f32 %v8474_v20  ;;  %v8455_v28 = vsub.f32 %v28654_v8, %v8423_v48  ;;  %v8420_v21 = vpop.xlane.xlu0 %8419 }
 0xeed   :  { %25999 = vpow2.f32 %v8472_v59  ;;  %v8454_v53 = vsub.f32 %v28656_v33, %v8420_v21 }
 0xeee   :  { %v28702_v18 = vpop.eup %25989  ;;  %v8478_v16 = vmul.f32 1.442695, %v8455_v28 }
 0xeef   :  { %v28704_v30 = vpop.eup %25991  ;;  %v8476_v35 = vmul.f32 1.442695, %v8454_v53  ;;  %v8429_v44 = vpop.xlane.xlu1 %8428  ;;  %v8499_v40 = vsel %vm1769_vm4, %v28702_v18, 0.0 }
 0xef0   :  { %26001 = vpow2.f32 %v8478_v16  ;;  %v8457_v63 = vsub.f32 %v28662_v9, %v8429_v44  ;;  %v8426_v60 = vpop.xlane.xlu0 %8425  ;;  %8500 = vadd.xlane.f32.xlu1 %v8499_v40  ;;  %v8496_v8 = vsel %vm1769_vm4, %v28704_v30, 0.0 }
 0xef1   :  { %26003 = vpow2.f32 %v8476_v35  ;;  %v8456_v33 = vsub.f32 %v28664_v12, %v8426_v60  ;;  %8497 = vadd.xlane.f32.xlu0 %v8496_v8 }
 0xef2   :  { %v28712_v46 = vpop.eup %25993  ;;  %v8482_v15 = vmul.f32 1.442695, %v8457_v63 }
 0xef3   :  { %v28714_v51 = vpop.eup %25995  ;;  %v8480_v0 = vmul.f32 1.442695, %v8456_v33  ;;  %v8435_v43 = vpop.xlane.xlu1 %8434  ;;  %v8505_v41 = vsel %vm1769_vm4, %v28712_v46, 0.0 }
 0xef4   :  { %26005 = vpow2.f32 %v8482_v15  ;;  %v8459_v9 = vsub.f32 %v28670_v19, %v8435_v43  ;;  %v8432_v5 = vpop.xlane.xlu0 %8431  ;;  %8506 = vadd.xlane.f32.xlu1 %v8505_v41  ;;  %v8502_v1 = vsel %vm1769_vm4, %v28714_v51, 0.0 }
 0xef5   :  { %26007 = vpow2.f32 %v8480_v0  ;;  %v8458_v12 = vsub.f32 %v28672_v10, %v8432_v5  ;;  %8503 = vadd.xlane.f32.xlu0 %v8502_v1 }
 0xef6   :  { %v28722_v24 = vpop.eup %25997  ;;  %v8486_v62 = vmul.f32 1.442695, %v8459_v9 }
 0xef7   :  { %v28724_v23 = vpop.eup %25999  ;;  %v8484_v36 = vmul.f32 1.442695, %v8458_v12  ;;  %v8441_v2 = vpop.xlane.xlu1 %8440  ;;  %v8511_v50 = vsel %vm1769_vm4, %v28722_v24, 0.0 }
 0xef8   :  { %26009 = vpow2.f32 %v8486_v62  ;;  %v8461_v19 = vsub.f32 %v28678_v13, %v8441_v2  ;;  %8512 = vadd.xlane.f32.xlu1 %v8511_v50  ;;  %v8438_v7 = vpop.xlane.xlu0 %8437  ;;  %v8508_v39 = vsel %vm1769_vm4, %v28724_v23, 0.0 }
 0xef9   :  { %26011 = vpow2.f32 %v8484_v36  ;;  %v8460_v10 = vsub.f32 %v28680_v25, %v8438_v7  ;;  %8509 = vadd.xlane.f32.xlu0 %v8508_v39 }
 0xefa   :  { %v28732_v58 = vpop.eup %26001  ;;  %v8490_v26 = vmul.f32 1.442695, %v8461_v19 }
 0xefb   :  { %v28734_v3 = vpop.eup %26003  ;;  %v8488_v27 = vmul.f32 1.442695, %v8460_v10  ;;  %v8447_v14 = vpop.xlane.xlu1 %8446  ;;  %v8517_v29 = vsel %vm1769_vm4, %v28732_v58, 0.0 }
 0xefc   :  { %26013 = vpow2.f32 %v8490_v26  ;;  %v8463_v13 = vsub.f32 %v28686_v52, %v8447_v14  ;;  %8518 = vadd.xlane.f32.xlu1 %v8517_v29  ;;  %v8444_v54 = vpop.xlane.xlu0 %8443  ;;  %v8514_v37 = vsel %vm1769_vm4, %v28734_v3, 0.0 }
 0xefd   :  { %26015 = vpow2.f32 %v8488_v27  ;;  %v8462_v25 = vsub.f32 %v28688_v34, %v8444_v54  ;;  %8515 = vadd.xlane.f32.xlu0 %v8514_v37 }
 0xefe   :  { %v28742_v38 = vpop.eup %26005  ;;  %v8494_v47 = vmul.f32 1.442695, %v8463_v13 }
 0xeff   :  { %v28744_v31 = vpop.eup %26007  ;;  %v8492_v57 = vmul.f32 1.442695, %v8462_v25  ;;  %v8523_v42 = vsel %vm1769_vm4, %v28742_v38, 0.0 }
 0xf00   :  { %26017 = vpow2.f32 %v8494_v47  ;;  %8524 = vadd.xlane.f32.xlu1 %v8523_v42  ;;  %v8520_v52 = vsel %vm1769_vm4, %v28744_v31, 0.0 }
 0xf01   :  { %26019 = vpow2.f32 %v8492_v57  ;;  %8521 = vadd.xlane.f32.xlu0 %v8520_v52 }
 0xf02   :  { %v28750_v49 = vpop.eup %26009 }
 0xf03   :  { %v28752_v34 = vpop.eup %26011  ;;  %v8529_v11 = vsel %vm1769_vm4, %v28750_v49, 0.0 }
 0xf04   :  { %8530 = vadd.xlane.f32.xlu1 %v8529_v11  ;;  %v8526_v17 = vsel %vm1769_vm4, %v28752_v34, 0.0 }
 0xf05   :  { %8527 = vadd.xlane.f32.xlu0 %v8526_v17 }
 0xf06   :  { %v28758_v32 = vpop.eup %26013 }
 0xf07   :  { %v28760_v20 = vpop.eup %26015  ;;  %v8535_v59 = vsel %vm1769_vm4, %v28758_v32, 0.0 }
 0xf08   :  { %8536 = vadd.xlane.f32.xlu1 %v8535_v59  ;;  %v8532_v48 = vsel %vm1769_vm4, %v28760_v20, 0.0 }
 0xf09   :  { %8533 = vadd.xlane.f32.xlu0 %v8532_v48 }
 0xf0a   :  { %v28766_v28 = vpop.eup %26017 }
 0xf0b   :  { %v28768_v21 = vpop.eup %26019  ;;  %v8541_v53 = vsel %vm1769_vm4, %v28766_v28, 0.0 }
 0xf0c   :  { %8542 = vadd.xlane.f32.xlu1 %v8541_v53  ;;  %v8538_v16 = vsel %vm1769_vm4, %v28768_v21, 0.0 }
 0xf0d   :  { %8539 = vadd.xlane.f32.xlu0 %v8538_v16 }
 0xf7d   :  { %v8501_v35 = vpop.xlane.xlu1 %8500 }
 0xf7e   :  { %26021 = vrcp.f32 %v8501_v35  ;;  %v8498_v44 = vpop.xlane.xlu0 %8497 }
 0xf7f   :  { %26023 = vrcp.f32 %v8498_v44 }
 0xf81   :  { %v8507_v40 = vpop.xlane.xlu1 %8506 }
 0xf82   :  { %26025 = vrcp.f32 %v8507_v40  ;;  %v8504_v63 = vpop.xlane.xlu0 %8503  ;;  %v28838_v40 = vld [vmem:[%s31816_s3 + $0x4] ss:$0 sm:$0xff] }
 0xf83   :  { %26027 = vrcp.f32 %v8504_v63 }
 0xf85   :  { %v8513_v60 = vpop.xlane.xlu1 %8512 }
 0xf86   :  { %26029 = vrcp.f32 %v8513_v60  ;;  %v8510_v8 = vpop.xlane.xlu0 %8509  ;;  %v31884_v60 = vld [vmem:[#allocation13_spill] sm:$0xff] }
 0xf87   :  { %26031 = vrcp.f32 %v8510_v8 }
 0xf88   :  { %v26022_v33 = vpop.eup %26021 }
 0xf89   :  { %v26024_v15 = vpop.eup %26023  ;;  %v8519_v0 = vpop.xlane.xlu1 %8518  ;;  %v8547_v9 = vmul.f32 %v26022_v33, %v28702_v18 }
 0xf8a   :  { %26033 = vrcp.f32 %v8519_v0  ;;  %v8516_v43 = vpop.xlane.xlu0 %8515  ;;  %v8545_v41 = vmul.f32 %v26024_v15, %v28704_v30  ;;  %v31885_v15 = vld [vmem:[#allocation11_spill] sm:$0xff] }
 0xf8b   :  { %26035 = vrcp.f32 %v8516_v43 }
 0xf8c   :  { %v26026_v5 = vpop.eup %26025  ;;  %23547 = vmatprep.mubr.msk.f32.mxu0 %vm1769_vm4, %v8545_v41 }
 0xf8d   :  { %v26028_v1 = vpop.eup %26027  ;;  %v8525_v12 = vpop.xlane.xlu1 %8524  ;;  %23548 = vmatmul.mubr.msk.f32.vlgmr.msra.gmra.mrb[166].mxu0 %vm1769_vm4, %v8547_v9  ;;  %v8551_v30 = vmul.f32 %v26026_v5, %v28712_v46  ;;  %v31886_v5 = vld [vmem:[#allocation15_spill] sm:$0xff] }
 0xf8e   :  { %26037 = vrcp.f32 %v8525_v12  ;;  %25148 = vmatpush3.bf16.msra.mxu0 %v28549_v61  ;;  %v8522_v62 = vpop.xlane.xlu0 %8521  ;;  %v8549_v36 = vmul.f32 %v26028_v1, %v28714_v51 }
 0xf8f   :  { %25154 = vmatprep.subr.bf16.mxu0 %v28553_v45  ;;  %26039 = vrcp.f32 %v8522_v62 }
 0xf90   :  { %v26030_v2 = vpop.eup %26029  ;;  %23554 = vmatprep.mubr.msk.f32.mxu1 %vm1769_vm4, %v8549_v36  ;;  %v31887_v36 = vld [vmem:[#allocation14_spill] sm:$0xff] }
 0xf91   :  { %v26032_v18 = vpop.eup %26031  ;;  %v8531_v50 = vpop.xlane.xlu1 %8530  ;;  %23555 = vmatmul.mubr.msk.f32.vlgmr.msra.gmra.mrb[170].mxu1 %vm1769_vm4, %v8551_v30  ;;  %v8555_v51 = vmul.f32 %v26030_v2, %v28722_v24 }
 0xf92   :  { %26041 = vrcp.f32 %v8531_v50  ;;  %25152 = vmatpush3.bf16.msra.mxu1 %v28551_v56  ;;  %v8528_v19 = vpop.xlane.xlu0 %8527  ;;  %v8553_v61 = vmul.f32 %v26032_v18, %v28724_v23 }
 0xf93   :  { %25158 = vmatprep.subr.bf16.mxu1 %v28555_v55  ;;  %26043 = vrcp.f32 %v8528_v19 }
 0xf94   :  { %v26034_v7 = vpop.eup %26033  ;;  %23561 = vmatprep.mubr.msk.f32.mxu0 %vm1769_vm4, %v8553_v61  ;;  %v31888_v61 = vld [vmem:[#allocation17_spill] sm:$0xff] }
 0xf95   :  { %v26036_v46 = vpop.eup %26035  ;;  %v8537_v39 = vpop.xlane.xlu1 %8536  ;;  %23562 = vmatmul.mubr.msk.f32.vlgmr.msra.gmra.mrb[168].mxu0 %vm1769_vm4, %v8555_v51  ;;  %v8559_v23 = vmul.f32 %v26034_v7, %v28732_v58 }
 0xf96   :  { %26045 = vrcp.f32 %v8537_v39  ;;  %25156 = vmatpush3.bf16.msra.mxu0 %v28553_v45  ;;  %v8534_v10 = vpop.xlane.xlu0 %8533  ;;  %v8557_v56 = vmul.f32 %v26036_v46, %v28734_v3  ;;  %v31889_v39 = vld [vmem:[#allocation16_spill] sm:$0xff] }
 0xf97   :  { %25162 = vmatprep.subr.bf16.mxu0 %v28557_v6  ;;  %26047 = vrcp.f32 %v8534_v10 }
 0xf98   :  { %v26038_v26 = vpop.eup %26037  ;;  %23568 = vmatprep.mubr.msk.f32.mxu1 %vm1769_vm4, %v8557_v56 }
 0xf99   :  { %v26040_v24 = vpop.eup %26039  ;;  %v8543_v27 = vpop.xlane.xlu1 %8542  ;;  %23569 = vmatmul.mubr.msk.f32.vlgmr.msra.gmra.mrb[172].mxu1 %vm1769_vm4, %v8559_v23  ;;  %v8563_v3 = vmul.f32 %v26038_v26, %v28742_v38 }
 0xf9a   :  { %26049 = vrcp.f32 %v8543_v27  ;;  %25160 = vmatpush3.bf16.msra.mxu1 %v28555_v55  ;;  %v8540_v14 = vpop.xlane.xlu0 %8539  ;;  %v8561_v45 = vmul.f32 %v26040_v24, %v28744_v31  ;;  %v31890_v27 = vld [vmem:[#allocation3_spill] sm:$0xff] }
 0xf9b   :  { %25166 = vmatprep.subr.bf16.mxu1 %v28559_v22  ;;  %26051 = vrcp.f32 %v8540_v14 }
 0xf9c   :  { %v26042_v29 = vpop.eup %26041  ;;  %23575 = vmatprep.mubr.msk.f32.mxu0 %vm1769_vm4, %v8561_v45 }
 0xf9d   :  { %v26044_v58 = vpop.eup %26043  ;;  %23576 = vmatmul.mubr.msk.f32.vlgmr.msra.gmra.mrb[170].mxu0 %vm1769_vm4, %v8563_v3  ;;  %v8567_v55 = vmul.f32 %v26042_v29, %v28750_v49  ;;  %v31891_v29 = vld [vmem:[#allocation2_spill] sm:$0xff] }
 0xf9e   :  { %25164 = vmatpush3.bf16.msra.mxu0 %v28557_v6  ;;  %v8565_v13 = vmul.f32 %v26044_v58, %v28752_v34 }
 0xfa0   :  { %v26046_v54 = vpop.eup %26045  ;;  %23582 = vmatprep.mubr.msk.f32.mxu1 %vm1769_vm4, %v8565_v13 }
 0xfa1   :  { %v26048_v37 = vpop.eup %26047  ;;  %23583 = vmatmul.mubr.msk.f32.vlgmr.msra.gmra.mrb[174].mxu1 %vm1769_vm4, %v8567_v55  ;;  %v8571_v38 = vmul.f32 %v26046_v54, %v28758_v32 }
 0xfa2   :  { %25168 = vmatpush3.bf16.msra.mxu1 %v28559_v22  ;;  %v8569_v25 = vmul.f32 %v26048_v37, %v28760_v20  ;;  %v20781_v22 = vld [vmem:[%s31818_s6 + $0x18] sm:$0xff] }
 0xfa3   :  { %23599 = vmatprep.subr.mxu0 %v20781_v22 }
 0xfa4   :  { %v26050_v47 = vpop.eup %26049  ;;  %23589 = vmatprep.mubr.msk.f32.mxu0 %vm1769_vm4, %v8569_v25  ;;  %v31892_v25 = vld [vmem:[#allocation5_spill] sm:$0xff] }
 0xfa5   :  { %v26052_v6 = vpop.eup %26051  ;;  %23590 = vmatmul.mubr.msk.f32.vlgmr.msra.gmra.mrb[172].mxu0 %vm1769_vm4, %v8571_v38  ;;  %v8575_v57 = vmul.f32 %v26050_v47, %v28766_v28 }
 0xfa6   :  { %v8573_v31 = vmul.f32 %v26052_v6, %v28768_v21  ;;  %23600 = vmatpush3.msra.mxu0 %v20781_v22 }
 0xfa8   :  { %23596 = vmatprep.mubr.msk.f32.mxu1 %vm1769_vm4, %v8573_v31  ;;  %v31893_v31 = vld [vmem:[#allocation4_spill] sm:$0xff] }
 0xfa9   :  { %23597 = vmatmul.mubr.msk.f32.vlgmr.msra.gmra.mrb[176].mxu1 %vm1769_vm4, %v8575_v57 }
0x1060   :  { %v23549_v42 = vpop.f32.mrb[166].mxu0 }
0x1061   :  { %v8648_v52 = vpop.f32.mrb[167].mxu0 }
0x1062   :  { %23601 = vmatprep.mubr.msk.f32.mxu0 %vm1056_vm2, %v8648_v52 }
0x1063   :  { %23602 = vmatmul.mubr.msk.f32.vlgmr.msra.gmra.mrb[96].mxu0 %vm1056_vm2, %v23549_v42 }
0x1064   :  { %v23556_v49 = vpop.f32.mrb[170].mxu1 }
0x1065   :  { %v8729_v34 = vpop.f32.mrb[171].mxu1 }
0x1066   :  { %23604 = vmatprep.mubr.msk.f32.mxu0 %vm1056_vm2, %v8729_v34  ;;  %v31894_v34 = vld [vmem:[#allocation7_spill] sm:$0xff] }
0x1067   :  { %23605 = vmatmul.mubr.msk.f32.gmra.mrb[98].mxu0 %vm1056_vm2, %v23556_v49 }
0x1068   :  { %v23563_v11 = vpop.f32.mrb[168].mxu0 }
0x1069   :  { %v8810_v17 = vpop.f32.mrb[169].mxu0 }
0x106a   :  { %23607 = vmatprep.mubr.msk.f32.mxu0 %vm1056_vm2, %v8810_v17 }
0x106b   :  { %23608 = vmatmul.mubr.msk.f32.gmra.mrb[100].mxu0 %vm1056_vm2, %v23563_v11 }
0x106c   :  { %v23570_v32 = vpop.f32.mrb[172].mxu1 }
0x106d   :  { %v8891_v20 = vpop.f32.mrb[173].mxu1 }
0x106e   :  { %23610 = vmatprep.mubr.msk.f32.mxu0 %vm1056_vm2, %v8891_v20  ;;  %v31895_v20 = vld [vmem:[#allocation6_spill] sm:$0xff] }
0x106f   :  { %23611 = vmatmul.mubr.msk.f32.gmra.mrb[102].mxu0 %vm1056_vm2, %v23570_v32 }
0x1070   :  { %v23577_v59 = vpop.f32.mrb[170].mxu0 }
0x1071   :  { %v8972_v48 = vpop.f32.mrb[171].mxu0 }
0x1072   :  { %23613 = vmatprep.mubr.msk.f32.mxu0 %vm1056_vm2, %v8972_v48 }
0x1073   :  { %23614 = vmatmul.mubr.msk.f32.gmra.mrb[104].mxu0 %vm1056_vm2, %v23577_v59 }
0x1074   :  { %v23584_v28 = vpop.f32.mrb[174].mxu1 }
0x1075   :  { %v9053_v21 = vpop.f32.mrb[175].mxu1 }
0x1076   :  { %23616 = vmatprep.mubr.msk.f32.mxu0 %vm1056_vm2, %v9053_v21 }
0x1077   :  { %23617 = vmatmul.mubr.msk.f32.gmra.mrb[106].mxu0 %vm1056_vm2, %v23584_v28 }
0x1078   :  { %v23591_v53 = vpop.f32.mrb[172].mxu0 }
0x1079   :  { %v9134_v16 = vpop.f32.mrb[173].mxu0 }
0x107a   :  { %23619 = vmatprep.mubr.msk.f32.mxu0 %vm1056_vm2, %v9134_v16  ;;  %v31896_v16 = vld [vmem:[#allocation9_spill] sm:$0xff] }
0x107b   :  { %23620 = vmatmul.mubr.msk.f32.gmra.mrb[108].mxu0 %vm1056_vm2, %v23591_v53 }
0x107c   :  { %v23598_v35 = vpop.f32.mrb[176].mxu1 }
0x107d   :  { %v9215_v44 = vpop.f32.mrb[177].mxu1 }
0x107e   :  { %23622 = vmatprep.mubr.msk.f32.mxu0 %vm1056_vm2, %v9215_v44 }
0x107f   :  { %23623 = vmatmul.mubr.msk.f32.gmra.mrb[110].mxu0 %vm1056_vm2, %v23598_v35 }
0x1136   :  { %v23603_v63 = vpop.f32.mrb[96].mxu0 }
0x1137   :  { %v9436_v8 = vadd.f32 %v23603_v63, %v31884_v60  ;;  %v9340_v33 = vpop.f32.mrb[97].mxu0  ;;  %v31897_v60 = vld [vmem:[#allocation8_spill] sm:$0xff] }
0x1138   :  { %v9435_v0 = vadd.f32 %v9340_v33, %v31885_v15 }
0x1139   :  { %v28843_v43 = vadd.f32 %v28838_v40, %v9436_v8 }
0x113a   :  { %v28846_v41 = vadd.f32 %v28838_v40, %v9435_v0  ;;  %v23606_v9 = vpop.f32.mrb[98].mxu0 }
0x113b   :  { %v9438_v1 = vadd.f32 %v23606_v9, %v31886_v5  ;;  %v9350_v12 = vpop.f32.mrb[99].mxu0  ;;  %v9476_v62 = vsel %vm282_vm1, %v28843_v43, 0.0  ;;  %v31898_v5 = vld [vmem:[#allocation12_spill] sm:$0xff] }
0x113c   :  { %v9437_v30 = vadd.f32 %v9350_v12, %v31887_v36  ;;  %9477 = vadd.xlane.f32.xlu1 %v9476_v62  ;;  %v9473_v2 = vsel %vm282_vm1, %v28846_v41, 0.0  ;;  %v31899_v36 = vld [vmem:[#allocation10_spill] sm:$0xff] }
0x113d   :  { %v28855_v18 = vadd.f32 %v28838_v40, %v9438_v1  ;;  %9474 = vadd.xlane.f32.xlu0 %v9473_v2 }
0x113e   :  { %v28858_v50 = vadd.f32 %v28838_v40, %v9437_v30  ;;  %v23609_v19 = vpop.f32.mrb[100].mxu0 }
0x113f   :  { %v9440_v51 = vadd.f32 %v23609_v19, %v31888_v61  ;;  %v9360_v7 = vpop.f32.mrb[101].mxu0  ;;  %v9482_v46 = vsel %vm282_vm1, %v28855_v18, 0.0 }
0x1140   :  { %v9439_v10 = vadd.f32 %v9360_v7, %v31889_v39  ;;  %9483 = vadd.xlane.f32.xlu1 %v9482_v46  ;;  %v9479_v56 = vsel %vm282_vm1, %v28858_v50, 0.0 }
0x1141   :  { %v28867_v23 = vadd.f32 %v28838_v40, %v9440_v51  ;;  %9480 = vadd.xlane.f32.xlu0 %v9479_v56 }
0x1142   :  { %v28870_v26 = vadd.f32 %v28838_v40, %v9439_v10  ;;  %v23612_v24 = vpop.f32.mrb[102].mxu0 }
0x1143   :  { %v9442_v14 = vadd.f32 %v23612_v24, %v31890_v27  ;;  %v9370_v45 = vpop.f32.mrb[103].mxu0  ;;  %v9488_v3 = vsel %vm282_vm1, %v28867_v23, 0.0 }
0x1144   :  { %v9441_v58 = vadd.f32 %v9370_v45, %v31891_v29  ;;  %9489 = vadd.xlane.f32.xlu1 %v9488_v3  ;;  %v9485_v13 = vsel %vm282_vm1, %v28870_v26, 0.0 }
0x1145   :  { %v28879_v55 = vadd.f32 %v28838_v40, %v9442_v14  ;;  %9486 = vadd.xlane.f32.xlu0 %v9485_v13 }
0x1146   :  { %v28882_v54 = vadd.f32 %v28838_v40, %v9441_v58  ;;  %v23615_v37 = vpop.f32.mrb[104].mxu0 }
0x1147   :  { %v9444_v38 = vadd.f32 %v23615_v37, %v31892_v25  ;;  %v9380_v47 = vpop.f32.mrb[105].mxu0  ;;  %v9494_v6 = vsel %vm282_vm1, %v28879_v55, 0.0 }
0x1148   :  { %v9443_v57 = vadd.f32 %v9380_v47, %v31893_v31  ;;  %9495 = vadd.xlane.f32.xlu1 %v9494_v6  ;;  %v9491_v22 = vsel %vm282_vm1, %v28882_v54, 0.0 }
0x1149   :  { %v28891_v42 = vadd.f32 %v28838_v40, %v9444_v38  ;;  %9492 = vadd.xlane.f32.xlu0 %v9491_v22 }
0x114a   :  { %v28894_v52 = vadd.f32 %v28838_v40, %v9443_v57  ;;  %v23618_v49 = vpop.f32.mrb[106].mxu0 }
0x114b   :  { %v9446_v11 = vadd.f32 %v23618_v49, %v31894_v34  ;;  %v9390_v17 = vpop.f32.mrb[107].mxu0  ;;  %v9500_v32 = vsel %vm282_vm1, %v28891_v42, 0.0 }
0x114c   :  { %v9445_v59 = vadd.f32 %v9390_v17, %v31895_v20  ;;  %9501 = vadd.xlane.f32.xlu1 %v9500_v32  ;;  %v9497_v48 = vsel %vm282_vm1, %v28894_v52, 0.0 }
0x114d   :  { %v28903_v28 = vadd.f32 %v28838_v40, %v9446_v11  ;;  %9498 = vadd.xlane.f32.xlu0 %v9497_v48 }
0x114e   :  { %v28906_v21 = vadd.f32 %v28838_v40, %v9445_v59  ;;  %v23621_v53 = vpop.f32.mrb[108].mxu0 }
0x114f   :  { %v9448_v35 = vadd.f32 %v23621_v53, %v31896_v16  ;;  %v9400_v44 = vpop.f32.mrb[109].mxu0  ;;  %v9506_v63 = vsel %vm282_vm1, %v28903_v28, 0.0 }
0x1150   :  { %v9447_v8 = vadd.f32 %v9400_v44, %v31897_v60  ;;  %9507 = vadd.xlane.f32.xlu1 %v9506_v63  ;;  %v9503_v33 = vsel %vm282_vm1, %v28906_v21, 0.0 }
0x1151   :  { %v28915_v15 = vadd.f32 %v28838_v40, %v9448_v35  ;;  %9504 = vadd.xlane.f32.xlu0 %v9503_v33 }
0x1152   :  { %v28918_v0 = vadd.f32 %v28838_v40, %v9447_v8  ;;  %v23624_v9 = vpop.f32.mrb[110].mxu0 }
0x1153   :  { %v9450_v1 = vadd.f32 %v23624_v9, %v31898_v5  ;;  %v9410_v12 = vpop.f32.mrb[111].mxu0  ;;  %v9512_v62 = vsel %vm282_vm1, %v28915_v15, 0.0 }
0x1154   :  { %v9449_v30 = vadd.f32 %v9410_v12, %v31899_v36  ;;  %9513 = vadd.xlane.f32.xlu1 %v9512_v62  ;;  %v9509_v2 = vsel %vm282_vm1, %v28918_v0, 0.0 }
0x1155   :  { %v28927_v19 = vadd.f32 %v28838_v40, %v9450_v1  ;;  %9510 = vadd.xlane.f32.xlu0 %v9509_v2 }
0x1156   :  { %v28930_v61 = vadd.f32 %v28838_v40, %v9449_v30 }
0x1157   :  { %v9518_v51 = vsel %vm282_vm1, %v28927_v19, 0.0 }
0x1158   :  { %9519 = vadd.xlane.f32.xlu1 %v9518_v51  ;;  %v9515_v7 = vsel %vm282_vm1, %v28930_v61, 0.0 }
0x1159   :  { %9516 = vadd.xlane.f32.xlu0 %v9515_v7 }
0x11c9   :  { %v9478_v46 = vpop.xlane.xlu1 %9477 }
0x11ca   :  { %v9522_v39 = vmul.f32 0.03125, %v9478_v46  ;;  %v9475_v10 = vpop.xlane.xlu0 %9474 }
0x11cb   :  { %v9521_v56 = vmul.f32 0.03125, %v9475_v10 }
0x11cc   :  { %v28937_v24 = vsub.f32 %v28843_v43, %v9522_v39 }
0x11cd   :  { %v28940_v27 = vsub.f32 %v28846_v41, %v9521_v56  ;;  %v9484_v40 = vpop.xlane.xlu1 %9483 }
0x11ce   :  { %v9524_v14 = vmul.f32 0.03125, %v9484_v40  ;;  %v9481_v45 = vpop.xlane.xlu0 %9480  ;;  %v9554_v3 = vmul.f32 %v28937_v24, %v28937_v24 }
0x11cf   :  { %v9523_v29 = vmul.f32 0.03125, %v9481_v45  ;;  %v9553_v58 = vmul.f32 %v28940_v27, %v28940_v27 }
0x11d0   :  { %v28947_v13 = vsub.f32 %v28855_v18, %v9524_v14  ;;  %v9572_v37 = vsel %vm282_vm1, %v9554_v3, 0.0 }
0x11d1   :  { %v28951_v25 = vsub.f32 %v28858_v50, %v9523_v29  ;;  %v9490_v38 = vpop.xlane.xlu1 %9489  ;;  %9573 = vadd.xlane.f32.xlu1 %v9572_v37  ;;  %v9569_v47 = vsel %vm282_vm1, %v9553_v58, 0.0 }
0x11d2   :  { %v9526_v6 = vmul.f32 0.03125, %v9490_v38  ;;  %9570 = vadd.xlane.f32.xlu0 %v9569_v47  ;;  %v9487_v31 = vpop.xlane.xlu0 %9486  ;;  %v9556_v57 = vmul.f32 %v28947_v13, %v28947_v13 }
0x11d3   :  { %v9525_v22 = vmul.f32 0.03125, %v9487_v31  ;;  %v9555_v49 = vmul.f32 %v28951_v25, %v28951_v25 }
0x11d4   :  { %v28959_v34 = vsub.f32 %v28867_v23, %v9526_v6  ;;  %v9578_v11 = vsel %vm282_vm1, %v9556_v57, 0.0 }
0x11d5   :  { %v28963_v17 = vsub.f32 %v28870_v26, %v9525_v22  ;;  %v9496_v32 = vpop.xlane.xlu1 %9495  ;;  %9579 = vadd.xlane.f32.xlu1 %v9578_v11  ;;  %v9575_v20 = vsel %vm282_vm1, %v9555_v49, 0.0 }
0x11d6   :  { %v9528_v59 = vmul.f32 0.03125, %v9496_v32  ;;  %9576 = vadd.xlane.f32.xlu0 %v9575_v20  ;;  %v9493_v48 = vpop.xlane.xlu0 %9492  ;;  %v9558_v53 = vmul.f32 %v28959_v34, %v28959_v34 }
0x11d7   :  { %v9527_v16 = vmul.f32 0.03125, %v9493_v48  ;;  %v9557_v35 = vmul.f32 %v28963_v17, %v28963_v17 }
0x11d8   :  { %v28971_v44 = vsub.f32 %v28879_v55, %v9528_v59  ;;  %v9584_v63 = vsel %vm282_vm1, %v9558_v53, 0.0 }
0x11d9   :  { %v28975_v60 = vsub.f32 %v28882_v54, %v9527_v16  ;;  %v9502_v8 = vpop.xlane.xlu1 %9501  ;;  %9585 = vadd.xlane.f32.xlu1 %v9584_v63  ;;  %v9581_v33 = vsel %vm282_vm1, %v9557_v35, 0.0 }
0x11da   :  { %v9530_v9 = vmul.f32 0.03125, %v9502_v8  ;;  %9582 = vadd.xlane.f32.xlu0 %v9581_v33  ;;  %v9499_v5 = vpop.xlane.xlu0 %9498  ;;  %v9560_v1 = vmul.f32 %v28971_v44, %v28971_v44 }
0x11db   :  { %v9529_v12 = vmul.f32 0.03125, %v9499_v5  ;;  %v9559_v62 = vmul.f32 %v28975_v60, %v28975_v60 }
0x11dc   :  { %v28983_v36 = vsub.f32 %v28891_v42, %v9530_v9  ;;  %v9590_v30 = vsel %vm282_vm1, %v9560_v1, 0.0 }
0x11dd   :  { %v28987_v2 = vsub.f32 %v28894_v52, %v9529_v12  ;;  %v9508_v51 = vpop.xlane.xlu1 %9507  ;;  %9591 = vadd.xlane.f32.xlu1 %v9590_v30  ;;  %v9587_v7 = vsel %vm282_vm1, %v9559_v62, 0.0  ;;  %v9725_v62 = vld [vmem:[%s31819_s7] sm:$0xff]  ;;  %v9726_v30 = vld [vmem:[%s31819_s7 + $0x8] sm:$0xff] }
0x11de   :  { %v9532_v46 = vmul.f32 0.03125, %v9508_v51  ;;  %9588 = vadd.xlane.f32.xlu0 %v9587_v7  ;;  %v9505_v39 = vpop.xlane.xlu0 %9504  ;;  %v9562_v10 = vmul.f32 %v28983_v36, %v28983_v36  ;;  %v25169_v51 = vpack.c.bf16 %v9726_v30, %v9725_v62  ;;  %v9727_v7 = vld [vmem:[%s31819_s7 + $0x10] sm:$0xff] }
0x11df   :  { %v9531_v56 = vmul.f32 0.03125, %v9505_v39  ;;  %v9561_v40 = vmul.f32 %v28987_v2, %v28987_v2 }
0x11e0   :  { %v28995_v14 = vsub.f32 %v28903_v28, %v9532_v46  ;;  %v9596_v45 = vsel %vm282_vm1, %v9562_v10, 0.0  ;;  %25170 = vmatprep.subr.bf16.mxu1 %v25169_v51  ;;  %v9728_v46 = vld [vmem:[%s31819_s7 + $0x18] sm:$0xff]  ;;  %v10009_v10 = vld [vmem:[%s31820_s9] sm:$0xff] }
0x11e1   :  { %v28999_v3 = vsub.f32 %v28906_v21, %v9531_v56  ;;  %v9514_v29 = vpop.xlane.xlu1 %9513  ;;  %9597 = vadd.xlane.f32.xlu1 %v9596_v45  ;;  %v9593_v58 = vsel %vm282_vm1, %v9561_v40, 0.0  ;;  %25172 = vmatpush3.bf16.msra.mxu1 %v25169_v51  ;;  %v25173_v39 = vpack.c.bf16 %v9728_v46, %v9727_v7  ;;  %v10010_v56 = vld [vmem:[%s31820_s9 + $0x8] sm:$0xff]  ;;  %v10011_v40 = vld [vmem:[%s31820_s9 + $0x10] sm:$0xff] }
0x11e2   :  { %v9534_v37 = vmul.f32 0.03125, %v9514_v29  ;;  %9594 = vadd.xlane.f32.xlu0 %v9593_v58  ;;  %v9511_v38 = vpop.xlane.xlu0 %9510  ;;  %v9564_v47 = vmul.f32 %v28995_v14, %v28995_v14  ;;  %v25177_v45 = vpack.c.bf16 %v10010_v56, %v10009_v10  ;;  %v10012_v29 = vld [vmem:[%s31820_s9 + $0x18] sm:$0xff] }
0x11e3   :  { %v9533_v6 = vmul.f32 0.03125, %v9511_v38  ;;  %v9563_v31 = vmul.f32 %v28999_v3, %v28999_v3  ;;  %25174 = vmatprep.subr.bf16.mxu1 %v25173_v39  ;;  %v25181_v58 = vpack.c.bf16 %v10012_v29, %v10011_v40  ;;  %v10014_v38 = vld [vmem:[%s31820_s9 + $0x28] sm:$0xff]  ;;  %v29065_v40 = vld [vmem:[%s31816_s3 + $0x2] ss:$0 sm:$0xff] }
0x11e4   :  { %v29007_v57 = vsub.f32 %v28915_v15, %v9534_v37  ;;  %v9602_v22 = vsel %vm282_vm1, %v9564_v47, 0.0  ;;  %v10013_v37 = vld [vmem:[%s31820_s9 + $0x20] sm:$0xff]  ;;  %25178 = vmatprep.subr.bf16.mxu0 %v25177_v45 }
0x11e5   :  { %v29011_v49 = vsub.f32 %v28918_v0, %v9533_v6  ;;  %9603 = vadd.xlane.f32.xlu1 %v9602_v22  ;;  %v9520_v11 = vpop.xlane.xlu1 %9519  ;;  %v9599_v32 = vsel %vm282_vm1, %v9563_v31, 0.0  ;;  %25176 = vmatpush3.bf16.msra.mxu1 %v25173_v39  ;;  %v25185_v47 = vpack.c.bf16 %v10014_v38, %v10013_v37 }
0x11e6   :  { %v9536_v20 = vmul.f32 0.03125, %v9520_v11  ;;  %9600 = vadd.xlane.f32.xlu0 %v9599_v32  ;;  %v9517_v59 = vpop.xlane.xlu0 %9516  ;;  %v9566_v48 = vmul.f32 %v29007_v57, %v29007_v57  ;;  %25180 = vmatpush3.bf16.msra.mxu0 %v25177_v45 }
0x11e7   :  { %v9535_v53 = vmul.f32 0.03125, %v9517_v59  ;;  %v9565_v16 = vmul.f32 %v29011_v49, %v29011_v49  ;;  %25182 = vmatprep.subr.bf16.mxu0 %v25181_v58 }
0x11e8   :  { %v29019_v35 = vsub.f32 %v28927_v19, %v9536_v20  ;;  %v9608_v63 = vsel %vm282_vm1, %v9566_v48, 0.0 }
0x11e9   :  { %v29023_v8 = vsub.f32 %v28930_v61, %v9535_v53  ;;  %9609 = vadd.xlane.f32.xlu1 %v9608_v63  ;;  %v9605_v33 = vsel %vm282_vm1, %v9565_v16, 0.0 }
0x11ea   :  { %9606 = vadd.xlane.f32.xlu0 %v9605_v33  ;;  %v9568_v9 = vmul.f32 %v29019_v35, %v29019_v35  ;;  %25184 = vmatpush3.bf16.msra.mxu0 %v25181_v58 }
0x11eb   :  { %v9567_v5 = vmul.f32 %v29023_v8, %v29023_v8  ;;  %25186 = vmatprep.subr.bf16.mxu0 %v25185_v47 }
0x11ec   :  { %v9614_v1 = vsel %vm282_vm1, %v9568_v9, 0.0 }
0x11ed   :  { %9615 = vadd.xlane.f32.xlu1 %v9614_v1  ;;  %v9611_v12 = vsel %vm282_vm1, %v9567_v5, 0.0 }
0x11ee   :  { %9612 = vadd.xlane.f32.xlu0 %v9611_v12  ;;  %25188 = vmatpush3.bf16.msra.mxu0 %v25185_v47 }
0x125e   :  { %v9574_v6 = vpop.xlane.xlu1 %9573 }
0x125f   :  { %v9618_v31 = vmul.f32 0.03125, %v9574_v6  ;;  %v9571_v22 = vpop.xlane.xlu0 %9570 }
0x1260   :  { %v9617_v11 = vmul.f32 0.03125, %v9571_v22  ;;  %v29072_v22 = vld [vmem:[%s31816_s3 + $0x3] ss:$0 sm:$0xff] }
0x1261   :  { %v9634_v32 = vadd.f32 1e-05, %v9618_v31 }
0x1262   :  { %v9633_v20 = vadd.f32 1e-05, %v9617_v11  ;;  %v9580_v59 = vpop.xlane.xlu1 %9579 }
0x1263   :  { %26053 = vrsqrt.f32 %v9634_v32  ;;  %v9620_v48 = vmul.f32 0.03125, %v9580_v59  ;;  %v9577_v53 = vpop.xlane.xlu0 %9576 }
0x1264   :  { %26055 = vrsqrt.f32 %v9633_v20  ;;  %v9619_v16 = vmul.f32 0.03125, %v9577_v53 }
0x1265   :  { %v9636_v63 = vadd.f32 1e-05, %v9620_v48 }
0x1266   :  { %v9635_v33 = vadd.f32 1e-05, %v9619_v16  ;;  %v9586_v9 = vpop.xlane.xlu1 %9585 }
0x1267   :  { %26057 = vrsqrt.f32 %v9636_v63  ;;  %v9622_v5 = vmul.f32 0.03125, %v9586_v9  ;;  %v9583_v1 = vpop.xlane.xlu0 %9582 }
0x1268   :  { %26059 = vrsqrt.f32 %v9635_v33  ;;  %v9621_v12 = vmul.f32 0.03125, %v9583_v1 }
0x1269   :  { %v9638_v62 = vadd.f32 1e-05, %v9622_v5 }
0x126a   :  { %v9637_v30 = vadd.f32 1e-05, %v9621_v12  ;;  %v9592_v51 = vpop.xlane.xlu1 %9591 }
0x126b   :  { %26061 = vrsqrt.f32 %v9638_v62  ;;  %v9624_v7 = vmul.f32 0.03125, %v9592_v51  ;;  %v9589_v46 = vpop.xlane.xlu0 %9588 }
0x126c   :  { %26063 = vrsqrt.f32 %v9637_v30  ;;  %v9623_v39 = vmul.f32 0.03125, %v9589_v46 }
0x126d   :  { %v26054_v10 = vpop.eup %26053  ;;  %v9640_v56 = vadd.f32 1e-05, %v9624_v7 }
0x126e   :  { %v26056_v45 = vpop.eup %26055  ;;  %v9666_v29 = vmul.f32 %v26054_v10, %v28937_v24  ;;  %v9639_v58 = vadd.f32 1e-05, %v9623_v39  ;;  %v9598_v37 = vpop.xlane.xlu1 %9597 }
0x126f   :  { %26065 = vrsqrt.f32 %v9640_v56  ;;  %v9626_v38 = vmul.f32 0.03125, %v9598_v37  ;;  %v9595_v47 = vpop.xlane.xlu0 %9594  ;;  %v9665_v6 = vmul.f32 %v26056_v45, %v28940_v27 }
0x1270   :  { %26067 = vrsqrt.f32 %v9639_v58  ;;  %v9625_v31 = vmul.f32 0.03125, %v9595_v47  ;;  %v9688_v11 = vmul.f32 %v29065_v40, %v9666_v29 }
0x1271   :  { %v26058_v32 = vpop.eup %26057  ;;  %v9642_v20 = vadd.f32 1e-05, %v9626_v38  ;;  %v9687_v24 = vmul.f32 %v29065_v40, %v9665_v6 }
0x1272   :  { %v26060_v59 = vpop.eup %26059  ;;  %v9641_v48 = vadd.f32 1e-05, %v9625_v31  ;;  %v9604_v53 = vpop.xlane.xlu1 %9603  ;;  %v9668_v16 = vmul.f32 %v26058_v32, %v28947_v13  ;;  %v9710_v1 = vadd.f32 %v29072_v22, %v9688_v11 }
0x1273   :  { %26069 = vrsqrt.f32 %v9642_v20  ;;  %v9628_v27 = vmul.f32 0.03125, %v9604_v53  ;;  %v9601_v63 = vpop.xlane.xlu0 %9600  ;;  %v9709_v33 = vadd.f32 %v29072_v22, %v9687_v24  ;;  %v9667_v9 = vmul.f32 %v26060_v59, %v28951_v25 }
0x1274   :  { %26071 = vrsqrt.f32 %v9641_v48  ;;  %v9627_v5 = vmul.f32 0.03125, %v9601_v63  ;;  %v9690_v12 = vmul.f32 %v29065_v40, %v9668_v16 }
0x1275   :  { %v26062_v62 = vpop.eup %26061  ;;  %v9644_v30 = vadd.f32 1e-05, %v9628_v27  ;;  %23633 = vmatprep.mubr.msk.f32.mxu1 %vm282_vm1, %v9709_v33  ;;  %v9689_v51 = vmul.f32 %v29065_v40, %v9667_v9 }
0x1276   :  { %v26064_v13 = vpop.eup %26063  ;;  %v9643_v7 = vadd.f32 1e-05, %v9627_v5  ;;  %v9610_v46 = vpop.xlane.xlu1 %9609  ;;  %23634 = vmatmul.mubr.msk.f32.vlgmr.msra.gmra.mrb[178].mxu1 %vm282_vm1, %v9710_v1  ;;  %v9670_v39 = vmul.f32 %v26062_v62, %v28959_v34  ;;  %v9712_v58 = vadd.f32 %v29072_v22, %v9690_v12 }
0x1277   :  { %26073 = vrsqrt.f32 %v9644_v30  ;;  %v9630_v25 = vmul.f32 0.03125, %v9610_v46  ;;  %v9607_v10 = vpop.xlane.xlu0 %9606  ;;  %v9711_v56 = vadd.f32 %v29072_v22, %v9689_v51  ;;  %v9669_v45 = vmul.f32 %v26064_v13, %v28963_v17 }
0x1278   :  { %26075 = vrsqrt.f32 %v9643_v7  ;;  %v9629_v29 = vmul.f32 0.03125, %v9607_v10  ;;  %v9692_v37 = vmul.f32 %v29065_v40, %v9670_v39 }
0x1279   :  { %v26066_v38 = vpop.eup %26065  ;;  %v9646_v47 = vadd.f32 1e-05, %v9630_v25  ;;  %23636 = vmatprep.mubr.msk.f32.mxu1 %vm282_vm1, %v9711_v56  ;;  %v9691_v6 = vmul.f32 %v29065_v40, %v9669_v45 }
0x127a   :  { %v26068_v34 = vpop.eup %26067  ;;  %v9645_v31 = vadd.f32 1e-05, %v9629_v29  ;;  %v9616_v11 = vpop.xlane.xlu1 %9615  ;;  %23637 = vmatmul.mubr.msk.f32.gmra.mrb[180].mxu1 %vm282_vm1, %v9712_v58  ;;  %v9672_v32 = vmul.f32 %v26066_v38, %v28971_v44  ;;  %v9714_v53 = vadd.f32 %v29072_v22, %v9692_v37 }
0x127b   :  { %26077 = vrsqrt.f32 %v9646_v47  ;;  %v9632_v17 = vmul.f32 0.03125, %v9616_v11  ;;  %v9613_v20 = vpop.xlane.xlu0 %9612  ;;  %v9713_v24 = vadd.f32 %v29072_v22, %v9691_v6  ;;  %v9671_v59 = vmul.f32 %v26068_v34, %v28975_v60 }
0x127c   :  { %26079 = vrsqrt.f32 %v9645_v31  ;;  %v9631_v48 = vmul.f32 0.03125, %v9613_v20  ;;  %v9694_v16 = vmul.f32 %v29065_v40, %v9672_v32 }
0x127d   :  { %v26070_v27 = vpop.eup %26069  ;;  %v9648_v63 = vadd.f32 1e-05, %v9632_v17  ;;  %23639 = vmatprep.mubr.msk.f32.mxu1 %vm282_vm1, %v9713_v24  ;;  %v9693_v33 = vmul.f32 %v29065_v40, %v9671_v59  ;;  %v10019_v59 = vld [vmem:[%s31820_s9 + $0x50] sm:$0xff] }
0x127e   :  { %v26072_v44 = vpop.eup %26071  ;;  %v9647_v9 = vadd.f32 1e-05, %v9631_v48  ;;  %23640 = vmatmul.mubr.msk.f32.gmra.mrb[182].mxu1 %vm282_vm1, %v9714_v53  ;;  %v9674_v5 = vmul.f32 %v26070_v27, %v28983_v36  ;;  %v9716_v12 = vadd.f32 %v29072_v22, %v9694_v16  ;;  %v10020_v48 = vld [vmem:[%s31820_s9 + $0x58] sm:$0xff]  ;;  %v10021_v16 = vld [vmem:[%s31820_s9 + $0x60] sm:$0xff]  ;;  %v10022_v27 = vld [vmem:[%s31820_s9 + $0x68] sm:$0xff] }
0x127f   :  { %26081 = vrsqrt.f32 %v9648_v63  ;;  %v9715_v60 = vadd.f32 %v29072_v22, %v9693_v33  ;;  %v9673_v1 = vmul.f32 %v26072_v44, %v28987_v2  ;;  %v25197_v53 = vpack.c.bf16 %v10020_v48, %v10019_v59  ;;  %v10023_v33 = vld [vmem:[%s31820_s9 + $0x70] sm:$0xff]  ;;  %v10024_v44 = vld [vmem:[%s31820_s9 + $0x78] sm:$0xff] }
0x1280   :  { %26083 = vrsqrt.f32 %v9647_v9  ;;  %v9696_v62 = vmul.f32 %v29065_v40, %v9674_v5  ;;  %v25201_v63 = vpack.c.bf16 %v10022_v27, %v10021_v16  ;;  %v25205_v9 = vpack.c.bf16 %v10024_v44, %v10023_v33  ;;  %v29169_v5 = vld [vmem:[%s31821_s8] ss:$0 sm:$0xff] }
0x1281   :  { %v26074_v30 = vpop.eup %26073  ;;  %23642 = vmatprep.mubr.msk.f32.mxu1 %vm282_vm1, %v9715_v60  ;;  %v9695_v51 = vmul.f32 %v29065_v40, %v9673_v1 }
0x1282   :  { %v26076_v13 = vpop.eup %26075  ;;  %23643 = vmatmul.mubr.msk.f32.gmra.mrb[184].mxu1 %vm282_vm1, %v9716_v12  ;;  %v9676_v36 = vmul.f32 %v26074_v30, %v28995_v14  ;;  %v9718_v2 = vadd.f32 %v29072_v22, %v9696_v62 }
0x1283   :  { %v9717_v7 = vadd.f32 %v29072_v22, %v9695_v51  ;;  %v9675_v46 = vmul.f32 %v26076_v13, %v28999_v3 }
0x1284   :  { %v9698_v39 = vmul.f32 %v29065_v40, %v9676_v36 }
0x1285   :  { %v26078_v25 = vpop.eup %26077  ;;  %23645 = vmatprep.mubr.msk.f32.mxu1 %vm282_vm1, %v9717_v7  ;;  %v9697_v10 = vmul.f32 %v29065_v40, %v9675_v46 }
0x1286   :  { %v26080_v56 = vpop.eup %26079  ;;  %23646 = vmatmul.mubr.msk.f32.gmra.mrb[186].mxu1 %vm282_vm1, %v9718_v2  ;;  %v9678_v45 = vmul.f32 %v26078_v25, %v29007_v57  ;;  %v9720_v3 = vadd.f32 %v29072_v22, %v9698_v39 }
0x1287   :  { %v9719_v14 = vadd.f32 %v29072_v22, %v9697_v10  ;;  %v9677_v29 = vmul.f32 %v26080_v56, %v29011_v49 }
0x1288   :  { %v9700_v58 = vmul.f32 %v29065_v40, %v9678_v45 }
0x1289   :  { %v26082_v37 = vpop.eup %26081  ;;  %23648 = vmatprep.mubr.msk.f32.mxu1 %vm282_vm1, %v9719_v14  ;;  %v9699_v38 = vmul.f32 %v29065_v40, %v9677_v29 }
0x128a   :  { %v26084_v47 = vpop.eup %26083  ;;  %23649 = vmatmul.mubr.msk.f32.gmra.mrb[188].mxu1 %vm282_vm1, %v9720_v3  ;;  %v9680_v6 = vmul.f32 %v26082_v37, %v29019_v35  ;;  %v9722_v49 = vadd.f32 %v29072_v22, %v9700_v58  ;;  %v10015_v35 = vld [vmem:[%s31820_s9 + $0x30] sm:$0xff] }
0x128b   :  { %v9721_v57 = vadd.f32 %v29072_v22, %v9699_v38  ;;  %v9679_v34 = vmul.f32 %v26084_v47, %v29023_v8  ;;  %v10016_v8 = vld [vmem:[%s31820_s9 + $0x38] sm:$0xff] }
0x128c   :  { %v9702_v31 = vmul.f32 %v29065_v40, %v9680_v6  ;;  %v25189_v20 = vpack.c.bf16 %v10016_v8, %v10015_v35 }
0x128d   :  { %23651 = vmatprep.mubr.msk.f32.mxu1 %vm282_vm1, %v9721_v57  ;;  %v9701_v11 = vmul.f32 %v29065_v40, %v9679_v34  ;;  %v10017_v40 = vld [vmem:[%s31820_s9 + $0x40] sm:$0xff] }
0x128e   :  { %23652 = vmatmul.mubr.msk.f32.gmra.mrb[190].mxu1 %vm282_vm1, %v9722_v49  ;;  %v9724_v17 = vadd.f32 %v29072_v22, %v9702_v31  ;;  %25190 = vmatprep.subr.bf16.mxu0 %v25189_v20 }
0x128f   :  { %v9723_v32 = vadd.f32 %v29072_v22, %v9701_v11  ;;  %25192 = vmatpush3.bf16.msra.mxu0 %v25189_v20  ;;  %v10018_v22 = vld [vmem:[%s31820_s9 + $0x48] sm:$0xff] }
0x1290   :  { %v25193_v24 = vpack.c.bf16 %v10018_v22, %v10017_v40 }
0x1291   :  { %23654 = vmatprep.mubr.msk.f32.mxu1 %vm282_vm1, %v9723_v32 }
0x1292   :  { %23655 = vmatmul.mubr.msk.f32.gmra.mrb[192].mxu1 %vm282_vm1, %v9724_v17  ;;  %25194 = vmatprep.subr.bf16.mxu0 %v25193_v24 }
0x1293   :  { %25196 = vmatpush3.bf16.msra.mxu0 %v25193_v24 }
0x1294   :  { %25198 = vmatprep.subr.bf16.mxu0 %v25197_v53 }
0x1297   :  { %25200 = vmatpush3.bf16.msra.mxu0 %v25197_v53 }
0x1298   :  { %25202 = vmatprep.subr.bf16.mxu0 %v25201_v63 }
0x129b   :  { %25204 = vmatpush3.bf16.msra.mxu0 %v25201_v63 }
0x129c   :  { %25206 = vmatprep.subr.bf16.mxu0 %v25205_v9 }
0x129f   :  { %25208 = vmatpush3.bf16.msra.mxu0 %v25205_v9 }
0x1349   :  { %v23635_v60 = vpop.f32.mrb[178].mxu1 }
0x134a   :  { %v9856_v1 = vadd.f32 %v23635_v60, %v29169_v5  ;;  %v9850_v12 = vpop.f32.mrb[179].mxu1 }
0x134b   :  { %v9851_v62 = vadd.f32 %v29169_v5, %v9850_v12 }
0x134c   :  { %v9946_v30 = vmul.f32 0.70710677, %v9856_v1  ;;  %v9930_v8 = vmul.f32 0.5, %v9856_v1 }
0x134d   :  { %v9945_v51 = vmul.f32 0.70710677, %v9851_v62  ;;  %v23638_v13 = vpop.f32.mrb[180].mxu1  ;;  %v9929_v11 = vmul.f32 0.5, %v9851_v62 }
0x134e   :  { %26085 = verf.f32 %v9946_v30  ;;  %v9866_v36 = vadd.f32 %v23638_v13, %v29169_v5  ;;  %v9860_v7 = vpop.f32.mrb[181].mxu1 }
0x134f   :  { %26087 = verf.f32 %v9945_v51  ;;  %v9861_v46 = vadd.f32 %v29169_v5, %v9860_v7 }
0x1350   :  { %v9948_v2 = vmul.f32 0.70710677, %v9866_v36  ;;  %v9932_v60 = vmul.f32 0.5, %v9866_v36 }
0x1351   :  { %v9947_v39 = vmul.f32 0.70710677, %v9861_v46  ;;  %v23641_v25 = vpop.f32.mrb[182].mxu1  ;;  %v9931_v63 = vmul.f32 0.5, %v9861_v46 }
0x1352   :  { %26089 = verf.f32 %v9948_v2  ;;  %v9876_v10 = vadd.f32 %v23641_v25, %v29169_v5  ;;  %v9870_v56 = vpop.f32.mrb[183].mxu1 }
0x1353   :  { %26091 = verf.f32 %v9947_v39  ;;  %v9871_v45 = vadd.f32 %v29169_v5, %v9870_v56 }
0x1354   :  { %v9950_v14 = vmul.f32 0.70710677, %v9876_v10  ;;  %v9934_v36 = vmul.f32 0.5, %v9876_v10 }
0x1355   :  { %v9949_v29 = vmul.f32 0.70710677, %v9871_v45  ;;  %v23644_v3 = vpop.f32.mrb[184].mxu1  ;;  %v9933_v39 = vmul.f32 0.5, %v9871_v45 }
0x1356   :  { %26093 = verf.f32 %v9950_v14  ;;  %v29178_v58 = vadd.f32 %v23644_v3, %v29169_v5  ;;  %v9880_v37 = vpop.f32.mrb[185].mxu1 }
0x1357   :  { %26095 = verf.f32 %v9949_v29  ;;  %v9881_v38 = vadd.f32 %v29169_v5, %v9880_v37 }
0x1358   :  { %v26086_v47 = vpop.eup %26085  ;;  %v9952_v6 = vmul.f32 0.70710677, %v29178_v58  ;;  %v9936_v10 = vmul.f32 0.5, %v29178_v58 }
0x1359   :  { %v26088_v57 = vpop.eup %26087  ;;  %v9978_v34 = vadd.f32 1.0, %v26086_v47  ;;  %v9951_v49 = vmul.f32 0.70710677, %v9881_v38  ;;  %v23647_v31 = vpop.f32.mrb[186].mxu1  ;;  %v9935_v45 = vmul.f32 0.5, %v9881_v38 }
0x135a   :  { %v9977_v32 = vadd.f32 1.0, %v26088_v57  ;;  %26097 = verf.f32 %v9952_v6  ;;  %v29183_v17 = vadd.f32 %v23647_v31, %v29169_v5  ;;  %v9890_v35 = vpop.f32.mrb[187].mxu1 }
0x135b   :  { %26099 = verf.f32 %v9951_v49  ;;  %v9891_v20 = vadd.f32 %v29169_v5, %v9890_v35  ;;  %v9994_v48 = vmul.f32 %v9978_v34, %v9930_v8 }
0x135c   :  { %v26090_v40 = vpop.eup %26089  ;;  %v9954_v22 = vmul.f32 0.70710677, %v29183_v17  ;;  %v9993_v24 = vmul.f32 %v9977_v32, %v9929_v11 }
0x135d   :  { %v26092_v59 = vpop.eup %26091  ;;  %v9980_v53 = vadd.f32 1.0, %v26090_v40  ;;  %v9953_v16 = vmul.f32 0.70710677, %v9891_v20  ;;  %v23650_v27 = vpop.f32.mrb[188].mxu1  ;;  %v9937_v38 = vmul.f32 0.5, %v9891_v20 }
0x135e   :  { %v9979_v33 = vadd.f32 1.0, %v26092_v59  ;;  %26101 = verf.f32 %v9954_v22  ;;  %v29188_v44 = vadd.f32 %v23650_v27, %v29169_v5  ;;  %v9900_v9 = vpop.f32.mrb[189].mxu1  ;;  %23689 = vmatprep.mubr.f32.mxu0 %v9993_v24 }
0x135f   :  { %26103 = verf.f32 %v9953_v16  ;;  %v9901_v1 = vadd.f32 %v29169_v5, %v9900_v9  ;;  %23690 = vmatmul.mubr.f32.vlgmr.msra.gmra.mrb[174].mxu0 %v9994_v48  ;;  %v9996_v2 = vmul.f32 %v9980_v53, %v9932_v60 }
0x1360   :  { %v26094_v12 = vpop.eup %26093  ;;  %v9956_v62 = vmul.f32 0.70710677, %v29188_v44  ;;  %v9995_v30 = vmul.f32 %v9979_v33, %v9931_v63  ;;  %v9938_v63 = vmul.f32 0.5, %v29183_v17 }
0x1361   :  { %v26096_v51 = vpop.eup %26095  ;;  %v9982_v13 = vadd.f32 1.0, %v26094_v12  ;;  %v9955_v7 = vmul.f32 0.70710677, %v9901_v1  ;;  %v23653_v46 = vpop.f32.mrb[190].mxu1  ;;  %v9939_v12 = vmul.f32 0.5, %v9901_v1 }
0x1362   :  { %v9981_v25 = vadd.f32 1.0, %v26096_v51  ;;  %26105 = verf.f32 %v9956_v62  ;;  %v9916_v56 = vadd.f32 %v23653_v46, %v29169_v5  ;;  %v9910_v14 = vpop.f32.mrb[191].mxu1  ;;  %23692 = vmatprep.mubr.f32.mxu0 %v9995_v30  ;;  %v9940_v30 = vmul.f32 0.5, %v29188_v44 }
0x1363   :  { %26107 = verf.f32 %v9955_v7  ;;  %v9911_v29 = vadd.f32 %v29169_v5, %v9910_v14  ;;  %23693 = vmatmul.mubr.f32.gmra.mrb[176].mxu0 %v9996_v2  ;;  %v9998_v31 = vmul.f32 %v9982_v13, %v9934_v36 }
0x1364   :  { %v26098_v3 = vpop.eup %26097  ;;  %v9958_v37 = vmul.f32 0.70710677, %v9916_v56  ;;  %v9997_v47 = vmul.f32 %v9981_v25, %v9933_v39  ;;  %v9942_v39 = vmul.f32 0.5, %v9916_v56 }
0x1365   :  { %v26100_v6 = vpop.eup %26099  ;;  %v9984_v57 = vadd.f32 1.0, %v26098_v3  ;;  %v9957_v34 = vmul.f32 0.70710677, %v9911_v29  ;;  %v23656_v49 = vpop.f32.mrb[192].mxu1  ;;  %v9941_v2 = vmul.f32 0.5, %v9911_v29 }
0x1366   :  { %v9983_v11 = vadd.f32 1.0, %v26100_v6  ;;  %26109 = verf.f32 %v9958_v37  ;;  %v9926_v32 = vadd.f32 %v23656_v49, %v29169_v5  ;;  %v9920_v35 = vpop.f32.mrb[193].mxu1  ;;  %23695 = vmatprep.mubr.f32.mxu0 %v9997_v47  ;;  %v29202_v29 = vld [vmem:[%s31816_s3 + $0x5] ss:$0 sm:$0xff] }
0x1367   :  { %26111 = verf.f32 %v9957_v34  ;;  %v9921_v8 = vadd.f32 %v29169_v5, %v9920_v35  ;;  %23696 = vmatmul.mubr.f32.gmra.mrb[178].mxu0 %v9998_v31  ;;  %v10000_v16 = vmul.f32 %v9984_v57, %v9936_v10 }
0x1368   :  { %v26102_v40 = vpop.eup %26101  ;;  %v9960_v22 = vmul.f32 0.70710677, %v9926_v32  ;;  %v9999_v24 = vmul.f32 %v9983_v11, %v9935_v45  ;;  %v9944_v44 = vmul.f32 0.5, %v9926_v32 }
0x1369   :  { %v26104_v59 = vpop.eup %26103  ;;  %v9986_v48 = vadd.f32 1.0, %v26102_v40  ;;  %v9959_v53 = vmul.f32 0.70710677, %v9921_v8  ;;  %v9943_v37 = vmul.f32 0.5, %v9921_v8 }
0x136a   :  { %v9985_v27 = vadd.f32 1.0, %v26104_v59  ;;  %26113 = verf.f32 %v9960_v22  ;;  %23698 = vmatprep.mubr.f32.mxu0 %v9999_v24 }
0x136b   :  { %26115 = verf.f32 %v9959_v53  ;;  %23699 = vmatmul.mubr.f32.gmra.mrb[180].mxu0 %v10000_v16  ;;  %v10002_v60 = vmul.f32 %v9986_v48, %v9938_v63 }
0x136c   :  { %v26106_v58 = vpop.eup %26105  ;;  %v10001_v33 = vmul.f32 %v9985_v27, %v9937_v38 }
0x136d   :  { %v26108_v9 = vpop.eup %26107  ;;  %v9988_v5 = vadd.f32 1.0, %v26106_v58 }
0x136e   :  { %v9987_v62 = vadd.f32 1.0, %v26108_v9  ;;  %23701 = vmatprep.mubr.f32.mxu0 %v10001_v33 }
0x136f   :  { %23702 = vmatmul.mubr.f32.gmra.mrb[182].mxu0 %v10002_v60  ;;  %v10004_v46 = vmul.f32 %v9988_v5, %v9940_v30 }
0x1370   :  { %v26110_v51 = vpop.eup %26109  ;;  %v10003_v20 = vmul.f32 %v9987_v62, %v9939_v12 }
0x1371   :  { %v26112_v13 = vpop.eup %26111  ;;  %v9990_v7 = vadd.f32 1.0, %v26110_v51 }
0x1372   :  { %v9989_v17 = vadd.f32 1.0, %v26112_v13  ;;  %23704 = vmatprep.mubr.f32.mxu0 %v10003_v20 }
0x1373   :  { %23705 = vmatmul.mubr.f32.gmra.mrb[184].mxu0 %v10004_v46  ;;  %v10006_v1 = vmul.f32 %v9990_v7, %v9942_v39 }
0x1374   :  { %v26114_v25 = vpop.eup %26113  ;;  %v10005_v14 = vmul.f32 %v9989_v17, %v9941_v2 }
0x1375   :  { %v26116_v36 = vpop.eup %26115  ;;  %v9992_v3 = vadd.f32 1.0, %v26114_v25 }
0x1376   :  { %v9991_v47 = vadd.f32 1.0, %v26116_v36  ;;  %23707 = vmatprep.mubr.f32.mxu0 %v10005_v14 }
0x1377   :  { %23708 = vmatmul.mubr.f32.gmra.mrb[186].mxu0 %v10006_v1  ;;  %v10008_v57 = vmul.f32 %v9992_v3, %v9944_v44 }
0x1378   :  { %v10007_v6 = vmul.f32 %v9991_v47, %v9943_v37 }
0x137a   :  { %23710 = vmatprep.mubr.f32.mxu0 %v10007_v6 }
0x137b   :  { %23711 = vmatmul.mubr.f32.gmra.mrb[188].mxu0 %v10008_v57 }
0x1432   :  { %v23691_v56 = vpop.f32.mrb[174].mxu0 }
0x1433   :  { %v10171_v34 = vadd.f32 %v23691_v56, %v28843_v43  ;;  %v10091_v49 = vpop.f32.mrb[175].mxu0 }
0x1434   :  { %v10170_v31 = vadd.f32 %v10091_v49, %v28846_v41 }
0x1435   :  { %v29207_v45 = vadd.f32 %v29202_v29, %v10171_v34 }
0x1436   :  { %v29210_v11 = vadd.f32 %v29202_v29, %v10170_v31  ;;  %v23694_v32 = vpop.f32.mrb[176].mxu0 }
0x1437   :  { %31900 = vst [vmem:[#allocation21_spill] sm:$0xff] %v29207_v45  ;;  %v10173_v35 = vadd.f32 %v23694_v32, %v28855_v18  ;;  %v10101_v10 = vpop.f32.mrb[177].mxu0  ;;  %v10223_v8 = vsel %vm282_vm1, %v29207_v45, 0.0 }
0x1438   :  { %31901 = vst [vmem:[#allocation20_spill] sm:$0xff] %v29210_v11  ;;  %v10172_v40 = vadd.f32 %v10101_v10, %v28858_v50  ;;  %10224 = vadd.xlane.f32.xlu1 %v10223_v8  ;;  %v10220_v43 = vsel %vm282_vm1, %v29210_v11, 0.0 }
0x1439   :  { %v29219_v41 = vadd.f32 %v29202_v29, %v10173_v35  ;;  %10221 = vadd.xlane.f32.xlu0 %v10220_v43 }
0x143a   :  { %v29222_v22 = vadd.f32 %v29202_v29, %v10172_v40  ;;  %v23697_v24 = vpop.f32.mrb[178].mxu0 }
0x143b   :  { %31902 = vst [vmem:[#allocation19_spill] sm:$0xff] %v29219_v41  ;;  %v10175_v18 = vadd.f32 %v23697_v24, %v28867_v23  ;;  %v10111_v59 = vpop.f32.mrb[179].mxu0  ;;  %v10229_v48 = vsel %vm282_vm1, %v29219_v41, 0.0 }
0x143c   :  { %31903 = vst [vmem:[#allocation13_spill] sm:$0xff] %v29222_v22  ;;  %v10174_v50 = vadd.f32 %v10111_v59, %v28870_v26  ;;  %10230 = vadd.xlane.f32.xlu1 %v10229_v48  ;;  %v10226_v53 = vsel %vm282_vm1, %v29222_v22, 0.0 }
0x143d   :  { %v29231_v16 = vadd.f32 %v29202_v29, %v10175_v18  ;;  %10227 = vadd.xlane.f32.xlu0 %v10226_v53 }
0x143e   :  { %v29234_v38 = vadd.f32 %v29202_v29, %v10174_v50  ;;  %v23700_v27 = vpop.f32.mrb[180].mxu0 }
0x143f   :  { %31904 = vst [vmem:[#allocation11_spill] sm:$0xff] %v29231_v16  ;;  %v10177_v23 = vadd.f32 %v23700_v27, %v28879_v55  ;;  %v10121_v63 = vpop.f32.mrb[181].mxu0  ;;  %v10235_v58 = vsel %vm282_vm1, %v29231_v16, 0.0 }
0x1440   :  { %31905 = vst [vmem:[#allocation15_spill] sm:$0xff] %v29234_v38  ;;  %v10176_v26 = vadd.f32 %v10121_v63, %v28882_v54  ;;  %10236 = vadd.xlane.f32.xlu1 %v10235_v58  ;;  %v10232_v33 = vsel %vm282_vm1, %v29234_v38, 0.0 }
0x1441   :  { %v29243_v9 = vadd.f32 %v29202_v29, %v10177_v23  ;;  %10233 = vadd.xlane.f32.xlu0 %v10232_v33 }
0x1442   :  { %v29246_v5 = vadd.f32 %v29202_v29, %v10176_v26  ;;  %v23703_v60 = vpop.f32.mrb[182].mxu0 }
0x1443   :  { %31906 = vst [vmem:[#allocation14_spill] sm:$0xff] %v29243_v9  ;;  %v10179_v55 = vadd.f32 %v23703_v60, %v28891_v42  ;;  %v10131_v12 = vpop.f32.mrb[183].mxu0  ;;  %v10241_v62 = vsel %vm282_vm1, %v29243_v9, 0.0 }
0x1444   :  { %31907 = vst [vmem:[#allocation17_spill] sm:$0xff] %v29246_v5  ;;  %v10178_v54 = vadd.f32 %v10131_v12, %v28894_v52  ;;  %10242 = vadd.xlane.f32.xlu1 %v10241_v62  ;;  %v10238_v30 = vsel %vm282_vm1, %v29246_v5, 0.0 }
0x1445   :  { %v29255_v51 = vadd.f32 %v29202_v29, %v10179_v55  ;;  %10239 = vadd.xlane.f32.xlu0 %v10238_v30 }
0x1446   :  { %v29258_v20 = vadd.f32 %v29202_v29, %v10178_v54  ;;  %v23706_v13 = vpop.f32.mrb[184].mxu0 }
0x1447   :  { %31908 = vst [vmem:[#allocation16_spill] sm:$0xff] %v29255_v51  ;;  %v10181_v42 = vadd.f32 %v23706_v13, %v28903_v28  ;;  %v10141_v7 = vpop.f32.mrb[185].mxu0  ;;  %v10247_v46 = vsel %vm282_vm1, %v29255_v51, 0.0 }
0x1448   :  { %31909 = vst [vmem:[#allocation3_spill] sm:$0xff] %v29258_v20  ;;  %v10180_v52 = vadd.f32 %v10141_v7, %v28906_v21  ;;  %10248 = vadd.xlane.f32.xlu1 %v10247_v46  ;;  %v10244_v2 = vsel %vm282_vm1, %v29258_v20, 0.0 }
0x1449   :  { %v29267_v17 = vadd.f32 %v29202_v29, %v10181_v42  ;;  %10245 = vadd.xlane.f32.xlu0 %v10244_v2 }
0x144a   :  { %v29270_v39 = vadd.f32 %v29202_v29, %v10180_v52  ;;  %v23709_v25 = vpop.f32.mrb[186].mxu0 }
0x144b   :  { %31910 = vst [vmem:[#allocation2_spill] sm:$0xff] %v29267_v17  ;;  %v10183_v28 = vadd.f32 %v23709_v25, %v28915_v15  ;;  %v10151_v14 = vpop.f32.mrb[187].mxu0  ;;  %v10253_v36 = vsel %vm282_vm1, %v29267_v17, 0.0 }
0x144c   :  { %31911 = vst [vmem:[#allocation5_spill] sm:$0xff] %v29270_v39  ;;  %v10182_v21 = vadd.f32 %v10151_v14, %v28918_v0  ;;  %10254 = vadd.xlane.f32.xlu1 %v10253_v36  ;;  %v10250_v3 = vsel %vm282_vm1, %v29270_v39, 0.0 }
0x144d   :  { %v29279_v1 = vadd.f32 %v29202_v29, %v10183_v28  ;;  %10251 = vadd.xlane.f32.xlu0 %v10250_v3 }
0x144e   :  { %v29282_v37 = vadd.f32 %v29202_v29, %v10182_v21  ;;  %v23712_v47 = vpop.f32.mrb[188].mxu0 }
0x144f   :  { %31912 = vst [vmem:[#allocation4_spill] sm:$0xff] %v29279_v1  ;;  %v10185_v15 = vadd.f32 %v23712_v47, %v28927_v19  ;;  %v10161_v44 = vpop.f32.mrb[189].mxu0  ;;  %v10259_v6 = vsel %vm282_vm1, %v29279_v1, 0.0 }
0x1450   :  { %31913 = vst [vmem:[#allocation7_spill] sm:$0xff] %v29282_v37  ;;  %v10184_v0 = vadd.f32 %v10161_v44, %v28930_v61  ;;  %10260 = vadd.xlane.f32.xlu1 %v10259_v6  ;;  %v10256_v57 = vsel %vm282_vm1, %v29282_v37, 0.0 }
0x1451   :  { %v29291_v56 = vadd.f32 %v29202_v29, %v10185_v15  ;;  %10257 = vadd.xlane.f32.xlu0 %v10256_v57 }
0x1452   :  { %v29294_v34 = vadd.f32 %v29202_v29, %v10184_v0 }
0x1453   :  { %31914 = vst [vmem:[#allocation6_spill] sm:$0xff] %v29291_v56  ;;  %v10265_v19 = vsel %vm282_vm1, %v29291_v56, 0.0 }
0x1454   :  { %31915 = vst [vmem:[#allocation9_spill] sm:$0xff] %v29294_v34  ;;  %10266 = vadd.xlane.f32.xlu1 %v10265_v19  ;;  %v10262_v49 = vsel %vm282_vm1, %v29294_v34, 0.0 }
0x1455   :  { %10263 = vadd.xlane.f32.xlu0 %v10262_v49 }
0x14c5   :  { %v10225_v61 = vpop.xlane.xlu1 %10224 }
0x14c6   :  { %v10269_v31 = vmul.f32 0.03125, %v10225_v61  ;;  %v10222_v32 = vpop.xlane.xlu0 %10221 }
0x14c7   :  { %v10268_v35 = vmul.f32 0.03125, %v10222_v32 }
0x14c8   :  { %v29301_v10 = vsub.f32 %v29207_v45, %v10269_v31 }
0x14c9   :  { %v29304_v8 = vsub.f32 %v29210_v11, %v10268_v35  ;;  %v10231_v29 = vpop.xlane.xlu1 %10230 }
0x14ca   :  { %v10271_v40 = vmul.f32 0.03125, %v10231_v29  ;;  %v10228_v43 = vpop.xlane.xlu0 %10227  ;;  %v10301_v24 = vmul.f32 %v29301_v10, %v29301_v10 }
0x14cb   :  { %v10270_v18 = vmul.f32 0.03125, %v10228_v43  ;;  %v10300_v59 = vmul.f32 %v29304_v8, %v29304_v8 }
0x14cc   :  { %v29311_v48 = vsub.f32 %v29219_v41, %v10271_v40  ;;  %v10319_v50 = vsel %vm282_vm1, %v10301_v24, 0.0 }
0x14cd   :  { %v29315_v53 = vsub.f32 %v29222_v22, %v10270_v18  ;;  %v10237_v27 = vpop.xlane.xlu1 %10236  ;;  %10320 = vadd.xlane.f32.xlu1 %v10319_v50  ;;  %v10316_v23 = vsel %vm282_vm1, %v10300_v59, 0.0 }
0x14ce   :  { %v10273_v63 = vmul.f32 0.03125, %v10237_v27  ;;  %10317 = vadd.xlane.f32.xlu0 %v10316_v23  ;;  %v10234_v58 = vpop.xlane.xlu0 %10233  ;;  %v10303_v26 = vmul.f32 %v29311_v48, %v29311_v48 }
0x14cf   :  { %v10272_v33 = vmul.f32 0.03125, %v10234_v58  ;;  %v10302_v60 = vmul.f32 %v29315_v53, %v29315_v53 }
0x14d0   :  { %v29323_v55 = vsub.f32 %v29231_v16, %v10273_v63  ;;  %v10325_v12 = vsel %vm282_vm1, %v10303_v26, 0.0 }
0x14d1   :  { %v29327_v62 = vsub.f32 %v29234_v38, %v10272_v33  ;;  %v10243_v54 = vpop.xlane.xlu1 %10242  ;;  %10326 = vadd.xlane.f32.xlu1 %v10325_v12  ;;  %v10322_v30 = vsel %vm282_vm1, %v10302_v60, 0.0 }
0x14d2   :  { %v10275_v13 = vmul.f32 0.03125, %v10243_v54  ;;  %10323 = vadd.xlane.f32.xlu0 %v10322_v30  ;;  %v10240_v42 = vpop.xlane.xlu0 %10239  ;;  %v10305_v7 = vmul.f32 %v29323_v55, %v29323_v55 }
0x14d3   :  { %v10274_v46 = vmul.f32 0.03125, %v10240_v42  ;;  %v10304_v52 = vmul.f32 %v29327_v62, %v29327_v62 }
0x14d4   :  { %v29335_v2 = vsub.f32 %v29243_v9, %v10275_v13  ;;  %v10331_v25 = vsel %vm282_vm1, %v10305_v7, 0.0 }
0x14d5   :  { %v29339_v28 = vsub.f32 %v29246_v5, %v10274_v46  ;;  %v10249_v14 = vpop.xlane.xlu1 %10248  ;;  %10332 = vadd.xlane.f32.xlu1 %v10331_v25  ;;  %v10328_v36 = vsel %vm282_vm1, %v10304_v52, 0.0 }
0x14d6   :  { %v10277_v21 = vmul.f32 0.03125, %v10249_v14  ;;  %10329 = vadd.xlane.f32.xlu0 %v10328_v36  ;;  %v10246_v3 = vpop.xlane.xlu0 %10245  ;;  %v10307_v47 = vmul.f32 %v29335_v2, %v29335_v2 }
0x14d7   :  { %v10276_v15 = vmul.f32 0.03125, %v10246_v3  ;;  %v10306_v44 = vmul.f32 %v29339_v28, %v29339_v28 }
0x14d8   :  { %v29347_v6 = vsub.f32 %v29255_v51, %v10277_v21  ;;  %v10337_v0 = vsel %vm282_vm1, %v10307_v47, 0.0 }
0x14d9   :  { %v29351_v57 = vsub.f32 %v29258_v20, %v10276_v15  ;;  %v10255_v19 = vpop.xlane.xlu1 %10254  ;;  %10338 = vadd.xlane.f32.xlu1 %v10337_v0  ;;  %v10334_v49 = vsel %vm282_vm1, %v10306_v44, 0.0  ;;  %v20827_v44 = vld [vmem:[%s31815_s4 + $0x180] sm:$0xff]  ;;  %v20828_v0 = vld [vmem:[%s31815_s4 + $0x188] sm:$0xff] }
0x14da   :  { %v10279_v61 = vmul.f32 0.03125, %v10255_v19  ;;  %10335 = vadd.xlane.f32.xlu0 %v10334_v49  ;;  %v10252_v31 = vpop.xlane.xlu0 %10251  ;;  %v10309_v32 = vmul.f32 %v29347_v6, %v29347_v6  ;;  %v20849_v19 = vld [vmem:[%s31815_s4 + $0x200] sm:$0xff]  ;;  %v25209_v49 = vpack.c.bf16 %v20828_v0, %v20827_v44 }
0x14db   :  { %v10278_v35 = vmul.f32 0.03125, %v10252_v31  ;;  %v10308_v29 = vmul.f32 %v29351_v57, %v29351_v57 }
0x14dc   :  { %v29359_v40 = vsub.f32 %v29267_v17, %v10279_v61  ;;  %v10343_v43 = vsel %vm282_vm1, %v10309_v32, 0.0  ;;  %v20850_v61 = vld [vmem:[%s31815_s4 + $0x208] sm:$0xff]  ;;  %25210 = vmatprep.subr.bf16.mxu1 %v25209_v49  ;;  %v20829_v32 = vld [vmem:[%s31815_s4 + $0x190] sm:$0xff] }
0x14dd   :  { %v29363_v24 = vsub.f32 %v29270_v39, %v10278_v35  ;;  %v10261_v18 = vpop.xlane.xlu1 %10260  ;;  %10344 = vadd.xlane.f32.xlu1 %v10343_v43  ;;  %v10340_v59 = vsel %vm282_vm1, %v10308_v29, 0.0  ;;  %v25217_v31 = vpack.c.bf16 %v20850_v61, %v20849_v19  ;;  %25212 = vmatpush3.bf16.msra.mxu1 %v25209_v49  ;;  %v20830_v35 = vld [vmem:[%s31815_s4 + $0x198] sm:$0xff]  ;;  %v20851_v29 = vld [vmem:[%s31815_s4 + $0x210] sm:$0xff] }
0x14de   :  { %v10281_v50 = vmul.f32 0.03125, %v10261_v18  ;;  %10341 = vadd.xlane.f32.xlu0 %v10340_v59  ;;  %v10258_v27 = vpop.xlane.xlu0 %10257  ;;  %v10311_v23 = vmul.f32 %v29359_v40, %v29359_v40  ;;  %v25213_v43 = vpack.c.bf16 %v20830_v35, %v20829_v32  ;;  %v20852_v18 = vld [vmem:[%s31815_s4 + $0x218] sm:$0xff]  ;;  %v29432_v35 = vld [vmem:[%s31816_s3 + $0x6] ss:$0 sm:$0xff] }
0x14df   :  { %v10280_v63 = vmul.f32 0.03125, %v10258_v27  ;;  %v10310_v58 = vmul.f32 %v29363_v24, %v29363_v24  ;;  %25218 = vmatprep.subr.bf16.mxu0 %v25217_v31  ;;  %v25221_v59 = vpack.c.bf16 %v20852_v18, %v20851_v29  ;;  %v20872_v27 = vld [vmem:[%s31815_s4 + $0x288] sm:$0xff] }
0x14e0   :  { %v29371_v26 = vsub.f32 %v29279_v1, %v10281_v50  ;;  %v10349_v33 = vsel %vm282_vm1, %v10311_v23, 0.0  ;;  %25220 = vmatpush3.bf16.msra.mxu0 %v25217_v31  ;;  %25214 = vmatprep.subr.bf16.mxu1 %v25213_v43  ;;  %v20871_v50 = vld [vmem:[%s31815_s4 + $0x280] sm:$0xff] }
0x14e1   :  { %v29375_v60 = vsub.f32 %v29282_v37, %v10280_v63  ;;  %10350 = vadd.xlane.f32.xlu1 %v10349_v33  ;;  %v10267_v12 = vpop.xlane.xlu1 %10266  ;;  %v10346_v54 = vsel %vm282_vm1, %v10310_v58, 0.0  ;;  %25222 = vmatprep.subr.bf16.mxu0 %v25221_v59  ;;  %v29426_v23 = vpack.c.bf16 %v20872_v27, %v20871_v50 }
0x14e2   :  { %v10283_v30 = vmul.f32 0.03125, %v10267_v12  ;;  %10347 = vadd.xlane.f32.xlu0 %v10346_v54  ;;  %v10264_v13 = vpop.xlane.xlu0 %10263  ;;  %v10313_v42 = vmul.f32 %v29371_v26, %v29371_v26  ;;  %25216 = vmatpush3.bf16.msra.mxu1 %v25213_v43 }
0x14e3   :  { %v10282_v7 = vmul.f32 0.03125, %v10264_v13  ;;  %v10312_v46 = vmul.f32 %v29375_v60, %v29375_v60  ;;  %25226 = vmatprep.subr.bf16.mxu1 %v29426_v23 }
0x14e4   :  { %v29383_v52 = vsub.f32 %v29291_v56, %v10283_v30  ;;  %v10355_v25 = vsel %vm282_vm1, %v10313_v42, 0.0  ;;  %25224 = vmatpush3.bf16.msra.mxu0 %v25221_v59 }
0x14e5   :  { %v29387_v14 = vsub.f32 %v29294_v34, %v10282_v7  ;;  %10356 = vadd.xlane.f32.xlu1 %v10355_v25  ;;  %v10352_v36 = vsel %vm282_vm1, %v10312_v46, 0.0 }
0x14e6   :  { %10353 = vadd.xlane.f32.xlu0 %v10352_v36  ;;  %v10315_v21 = vmul.f32 %v29383_v52, %v29383_v52 }
0x14e7   :  { %v10314_v3 = vmul.f32 %v29387_v14, %v29387_v14 }
0x14e8   :  { %v10361_v47 = vsel %vm282_vm1, %v10315_v21, 0.0 }
0x14e9   :  { %10362 = vadd.xlane.f32.xlu1 %v10361_v47  ;;  %v10358_v15 = vsel %vm282_vm1, %v10314_v3, 0.0 }
0x14ea   :  { %10359 = vadd.xlane.f32.xlu0 %v10358_v15 }
0x155a   :  { %v10321_v63 = vpop.xlane.xlu1 %10320 }
0x155b   :  { %v10365_v58 = vmul.f32 0.03125, %v10321_v63  ;;  %v10318_v33 = vpop.xlane.xlu0 %10317 }
0x155c   :  { %v10364_v12 = vmul.f32 0.03125, %v10318_v33  ;;  %v20873_v33 = vld [vmem:[%s31815_s4 + $0x290] sm:$0xff] }
0x155d   :  { %v10381_v54 = vadd.f32 1e-05, %v10365_v58 }
0x155e   :  { %v10380_v30 = vadd.f32 1e-05, %v10364_v12  ;;  %v10327_v13 = vpop.xlane.xlu1 %10326  ;;  %v20874_v12 = vld [vmem:[%s31815_s4 + $0x298] sm:$0xff] }
0x155f   :  { %26117 = vrsqrt.f32 %v10381_v54  ;;  %v10367_v42 = vmul.f32 0.03125, %v10327_v13  ;;  %v10324_v7 = vpop.xlane.xlu0 %10323  ;;  %v29445_v54 = vld [vmem:[%s31816_s3 + $0x7] ss:$0 sm:$0xff] }
0x1560   :  { %26119 = vrsqrt.f32 %v10380_v30  ;;  %v10366_v46 = vmul.f32 0.03125, %v10324_v7 }
0x1561   :  { %v10383_v25 = vadd.f32 1e-05, %v10367_v42 }
0x1562   :  { %v10382_v36 = vadd.f32 1e-05, %v10366_v46  ;;  %v10333_v21 = vpop.xlane.xlu1 %10332 }
0x1563   :  { %26121 = vrsqrt.f32 %v10383_v25  ;;  %v10369_v3 = vmul.f32 0.03125, %v10333_v21  ;;  %v10330_v47 = vpop.xlane.xlu0 %10329  ;;  %v25229_v21 = vpack.c.bf16 %v20874_v12, %v20873_v33 }
0x1564   :  { %26123 = vrsqrt.f32 %v10382_v36  ;;  %v10368_v15 = vmul.f32 0.03125, %v10330_v47 }
0x1565   :  { %v10385_v44 = vadd.f32 1e-05, %v10369_v3 }
0x1566   :  { %v10384_v0 = vadd.f32 1e-05, %v10368_v15  ;;  %v10339_v19 = vpop.xlane.xlu1 %10338 }
0x1567   :  { %26125 = vrsqrt.f32 %v10385_v44  ;;  %v10371_v49 = vmul.f32 0.03125, %v10339_v19  ;;  %v10336_v61 = vpop.xlane.xlu0 %10335 }
0x1568   :  { %26127 = vrsqrt.f32 %v10384_v0  ;;  %v10370_v31 = vmul.f32 0.03125, %v10336_v61 }
0x1569   :  { %v26118_v32 = vpop.eup %26117  ;;  %v10387_v29 = vadd.f32 1e-05, %v10371_v49 }
0x156a   :  { %v26120_v43 = vpop.eup %26119  ;;  %v10413_v18 = vmul.f32 %v26118_v32, %v29301_v10  ;;  %v10386_v59 = vadd.f32 1e-05, %v10370_v31  ;;  %v10345_v50 = vpop.xlane.xlu1 %10344 }
0x156b   :  { %v10412_v27 = vmul.f32 %v26120_v43, %v29304_v8  ;;  %26129 = vrsqrt.f32 %v10387_v29  ;;  %v10373_v63 = vmul.f32 0.03125, %v10345_v50  ;;  %v10342_v58 = vpop.xlane.xlu0 %10341 }
0x156c   :  { %v10435_v10 = vmul.f32 %v29432_v35, %v10413_v18  ;;  %26131 = vrsqrt.f32 %v10386_v59  ;;  %v10372_v8 = vmul.f32 0.03125, %v10342_v58 }
0x156d   :  { %v26122_v30 = vpop.eup %26121  ;;  %v10434_v13 = vmul.f32 %v29432_v35, %v10412_v27  ;;  %v10389_v42 = vadd.f32 1e-05, %v10373_v63 }
0x156e   :  { %v26124_v7 = vpop.eup %26123  ;;  %v10415_v46 = vmul.f32 %v26122_v30, %v29311_v48  ;;  %v10388_v25 = vadd.f32 1e-05, %v10372_v8  ;;  %v10351_v36 = vpop.xlane.xlu1 %10350  ;;  %v29455_v0 = vadd.f32 %v29445_v54, %v10435_v10 }
0x156f   :  { %v29451_v3 = vadd.f32 %v29445_v54, %v10434_v13  ;;  %v10414_v47 = vmul.f32 %v26124_v7, %v29315_v53  ;;  %26133 = vrsqrt.f32 %v10389_v42  ;;  %v10375_v15 = vmul.f32 0.03125, %v10351_v36  ;;  %v10348_v44 = vpop.xlane.xlu0 %10347 }
0x1570   :  { %v10437_v19 = vmul.f32 %v29432_v35, %v10415_v46  ;;  %26135 = vrsqrt.f32 %v10388_v25  ;;  %v10374_v49 = vmul.f32 0.03125, %v10348_v44 }
0x1571   :  { %v26126_v61 = vpop.eup %26125  ;;  %v10436_v48 = vmul.f32 %v29432_v35, %v10414_v47  ;;  %v10391_v31 = vadd.f32 1e-05, %v10375_v15  ;;  %23721 = vmatprep.mubr.msk.f32.mxu1 %vm282_vm1, %v29451_v3  ;;  %23753 = vmatprep.mubr.msk.f32.mxu0 %vm282_vm1, %v29451_v3 }
0x1572   :  { %v26128_v53 = vpop.eup %26127  ;;  %v10417_v32 = vmul.f32 %v26126_v61, %v29323_v55  ;;  %v10390_v29 = vadd.f32 1e-05, %v10374_v49  ;;  %v10357_v43 = vpop.xlane.xlu1 %10356  ;;  %23722 = vmatmul.mubr.msk.f32.vlgmr.msra.gmra.mrb[194].mxu1 %vm282_vm1, %v29455_v0  ;;  %23754 = vmatmul.mubr.msk.f32.vlgmr.msra.gmra.mrb[190].mxu0 %vm282_vm1, %v29455_v0  ;;  %v29474_v55 = vadd.f32 %v29445_v54, %v10437_v19 }
0x1573   :  { %v29469_v18 = vadd.f32 %v29445_v54, %v10436_v48  ;;  %v10416_v59 = vmul.f32 %v26128_v53, %v29327_v62  ;;  %26137 = vrsqrt.f32 %v10391_v31  ;;  %v10377_v50 = vmul.f32 0.03125, %v10357_v43  ;;  %v10354_v27 = vpop.xlane.xlu0 %10353  ;;  %25228 = vmatpush3.bf16.msra.mxu1 %v29426_v23 }
0x1574   :  { %v10439_v63 = vmul.f32 %v29432_v35, %v10417_v32  ;;  %26139 = vrsqrt.f32 %v10390_v29  ;;  %v10376_v58 = vmul.f32 0.03125, %v10354_v27  ;;  %25230 = vmatprep.subr.bf16.mxu1 %v25229_v21 }
0x1575   :  { %v26130_v33 = vpop.eup %26129  ;;  %v10438_v12 = vmul.f32 %v29432_v35, %v10416_v59  ;;  %v10393_v10 = vadd.f32 1e-05, %v10377_v50  ;;  %23724 = vmatprep.mubr.msk.f32.mxu1 %vm282_vm1, %v29469_v18  ;;  %23756 = vmatprep.mubr.msk.f32.mxu0 %vm282_vm1, %v29469_v18 }
0x1576   :  { %v26132_v62 = vpop.eup %26131  ;;  %v10419_v23 = vmul.f32 %v26130_v33, %v29335_v2  ;;  %v10392_v8 = vadd.f32 1e-05, %v10376_v58  ;;  %v10363_v30 = vpop.xlane.xlu1 %10362  ;;  %23725 = vmatmul.mubr.msk.f32.gmra.mrb[196].mxu1 %vm282_vm1, %v29474_v55  ;;  %23757 = vmatmul.mubr.msk.f32.gmra.mrb[192].mxu0 %vm282_vm1, %v29474_v55  ;;  %v29492_v25 = vadd.f32 %v29445_v54, %v10439_v63 }
0x1577   :  { %v29488_v13 = vadd.f32 %v29445_v54, %v10438_v12  ;;  %v10418_v42 = vmul.f32 %v26132_v62, %v29339_v28  ;;  %26141 = vrsqrt.f32 %v10393_v10  ;;  %v10379_v7 = vmul.f32 0.03125, %v10363_v30  ;;  %v10360_v46 = vpop.xlane.xlu0 %10359  ;;  %25232 = vmatpush3.bf16.msra.mxu1 %v25229_v21 }
0x1578   :  { %v10441_v2 = vmul.f32 %v29432_v35, %v10419_v23  ;;  %26143 = vrsqrt.f32 %v10392_v8  ;;  %v10378_v36 = vmul.f32 0.03125, %v10360_v46 }
0x1579   :  { %v26134_v47 = vpop.eup %26133  ;;  %v10440_v15 = vmul.f32 %v29432_v35, %v10418_v42  ;;  %v10395_v44 = vadd.f32 1e-05, %v10379_v7  ;;  %23727 = vmatprep.mubr.msk.f32.mxu1 %vm282_vm1, %v29488_v13  ;;  %23759 = vmatprep.mubr.msk.f32.mxu0 %vm282_vm1, %v29488_v13 }
0x157a   :  { %v26136_v28 = vpop.eup %26135  ;;  %v10421_v21 = vmul.f32 %v26134_v47, %v29347_v6  ;;  %v10394_v19 = vadd.f32 1e-05, %v10378_v36  ;;  %23728 = vmatmul.mubr.msk.f32.gmra.mrb[198].mxu1 %vm282_vm1, %v29492_v25  ;;  %23760 = vmatmul.mubr.msk.f32.gmra.mrb[194].mxu0 %vm282_vm1, %v29492_v25  ;;  %v29510_v48 = vadd.f32 %v29445_v54, %v10441_v2 }
0x157b   :  { %v29506_v49 = vadd.f32 %v29445_v54, %v10440_v15  ;;  %v10420_v61 = vmul.f32 %v26136_v28, %v29351_v57  ;;  %26145 = vrsqrt.f32 %v10395_v44 }
0x157c   :  { %v10443_v31 = vmul.f32 %v29432_v35, %v10421_v21  ;;  %26147 = vrsqrt.f32 %v10394_v19 }
0x157d   :  { %v26138_v6 = vpop.eup %26137  ;;  %v10442_v53 = vmul.f32 %v29432_v35, %v10420_v61  ;;  %23730 = vmatprep.mubr.msk.f32.mxu1 %vm282_vm1, %v29506_v49  ;;  %23762 = vmatprep.mubr.msk.f32.mxu0 %vm282_vm1, %v29506_v49 }
0x157e   :  { %v26140_v32 = vpop.eup %26139  ;;  %v10423_v29 = vmul.f32 %v26138_v6, %v29359_v40  ;;  %23731 = vmatmul.mubr.msk.f32.gmra.mrb[200].mxu1 %vm282_vm1, %v29510_v48  ;;  %23763 = vmatmul.mubr.msk.f32.gmra.mrb[196].mxu0 %vm282_vm1, %v29510_v48  ;;  %v29528_v59 = vadd.f32 %v29445_v54, %v10443_v31 }
0x157f   :  { %v29524_v57 = vadd.f32 %v29445_v54, %v10442_v53  ;;  %v10422_v43 = vmul.f32 %v26140_v32, %v29363_v24 }
0x1580   :  { %v10445_v50 = vmul.f32 %v29432_v35, %v10423_v29 }
0x1581   :  { %v26142_v27 = vpop.eup %26141  ;;  %v10444_v63 = vmul.f32 %v29432_v35, %v10422_v43  ;;  %23733 = vmatprep.mubr.msk.f32.mxu1 %vm282_vm1, %v29524_v57  ;;  %23765 = vmatprep.mubr.msk.f32.mxu0 %vm282_vm1, %v29524_v57 }
0x1582   :  { %v26144_v40 = vpop.eup %26143  ;;  %v10425_v58 = vmul.f32 %v26142_v27, %v29371_v26  ;;  %23734 = vmatmul.mubr.msk.f32.gmra.mrb[202].mxu1 %vm282_vm1, %v29528_v59  ;;  %23766 = vmatmul.mubr.msk.f32.gmra.mrb[198].mxu0 %vm282_vm1, %v29528_v59  ;;  %v29546_v12 = vadd.f32 %v29445_v54, %v10445_v50 }
0x1583   :  { %v29542_v24 = vadd.f32 %v29445_v54, %v10444_v63  ;;  %v10424_v33 = vmul.f32 %v26144_v40, %v29375_v60 }
0x1584   :  { %v10447_v10 = vmul.f32 %v29432_v35, %v10425_v58 }
0x1585   :  { %v26146_v62 = vpop.eup %26145  ;;  %v10446_v23 = vmul.f32 %v29432_v35, %v10424_v33  ;;  %23736 = vmatprep.mubr.msk.f32.mxu1 %vm282_vm1, %v29542_v24  ;;  %23768 = vmatprep.mubr.msk.f32.mxu0 %vm282_vm1, %v29542_v24 }
0x1586   :  { %v26148_v26 = vpop.eup %26147  ;;  %v10427_v8 = vmul.f32 %v26146_v62, %v29383_v52  ;;  %23737 = vmatmul.mubr.msk.f32.gmra.mrb[204].mxu1 %vm282_vm1, %v29546_v12  ;;  %23769 = vmatmul.mubr.msk.f32.gmra.mrb[200].mxu0 %vm282_vm1, %v29546_v12  ;;  %v29564_v42 = vadd.f32 %v29445_v54, %v10447_v10 }
0x1587   :  { %v29560_v60 = vadd.f32 %v29445_v54, %v10446_v23  ;;  %v10426_v30 = vmul.f32 %v26148_v26, %v29387_v14 }
0x1588   :  { %v10449_v7 = vmul.f32 %v29432_v35, %v10427_v8 }
0x1589   :  { %v10448_v46 = vmul.f32 %v29432_v35, %v10426_v30  ;;  %23739 = vmatprep.mubr.msk.f32.mxu1 %vm282_vm1, %v29560_v60  ;;  %23771 = vmatprep.mubr.msk.f32.mxu0 %vm282_vm1, %v29560_v60  ;;  %v29625_v35 = vld [vmem:[%s31817_s5 + $0x10] ss:$0 sm:$0xff] }
0x158a   :  { %23740 = vmatmul.mubr.msk.f32.gmra.mrb[206].mxu1 %vm282_vm1, %v29564_v42  ;;  %23772 = vmatmul.mubr.msk.f32.gmra.mrb[202].mxu0 %vm282_vm1, %v29564_v42  ;;  %v29580_v14 = vadd.f32 %v29445_v54, %v10449_v7 }
0x158b   :  { %v29577_v52 = vadd.f32 %v29445_v54, %v10448_v46  ;;  %v29630_v54 = vld [vmem:[%s31817_s5 + $0xc] ss:$0 sm:$0xff] }
0x158d   :  { %23742 = vmatprep.mubr.msk.f32.mxu1 %vm282_vm1, %v29577_v52  ;;  %23774 = vmatprep.mubr.msk.f32.mxu0 %vm282_vm1, %v29577_v52 }
0x158e   :  { %23743 = vmatmul.mubr.msk.f32.gmra.mrb[208].mxu1 %vm282_vm1, %v29580_v14  ;;  %23775 = vmatmul.mubr.msk.f32.gmra.mrb[204].mxu0 %vm282_vm1, %v29580_v14 }
0x158f   :  { %23785 = vmatprep.mubr.msk.f32.mxu1 %vm282_vm1, %v29451_v3 }
0x1592   :  { %23786 = vmatmul.mubr.msk.f32.vlgmr.msra.gmra.mrb[210].mxu1 %vm282_vm1, %v29455_v0 }
0x1593   :  { %23788 = vmatprep.mubr.msk.f32.mxu1 %vm282_vm1, %v29469_v18 }
0x1596   :  { %23789 = vmatmul.mubr.msk.f32.gmra.mrb[212].mxu1 %vm282_vm1, %v29474_v55 }
0x1597   :  { %23791 = vmatprep.mubr.msk.f32.mxu1 %vm282_vm1, %v29488_v13 }
0x159a   :  { %23792 = vmatmul.mubr.msk.f32.gmra.mrb[214].mxu1 %vm282_vm1, %v29492_v25 }
0x159b   :  { %23794 = vmatprep.mubr.msk.f32.mxu1 %vm282_vm1, %v29506_v49 }
0x159e   :  { %23795 = vmatmul.mubr.msk.f32.gmra.mrb[216].mxu1 %vm282_vm1, %v29510_v48 }
0x159f   :  { %23797 = vmatprep.mubr.msk.f32.mxu1 %vm282_vm1, %v29524_v57 }
0x15a2   :  { %23798 = vmatmul.mubr.msk.f32.gmra.mrb[218].mxu1 %vm282_vm1, %v29528_v59 }
0x15a3   :  { %23800 = vmatprep.mubr.msk.f32.mxu1 %vm282_vm1, %v29542_v24 }
0x15a6   :  { %23801 = vmatmul.mubr.msk.f32.gmra.mrb[220].mxu1 %vm282_vm1, %v29546_v12 }
0x15a7   :  { %23803 = vmatprep.mubr.msk.f32.mxu1 %vm282_vm1, %v29560_v60 }
0x15aa   :  { %23804 = vmatmul.mubr.msk.f32.gmra.mrb[222].mxu1 %vm282_vm1, %v29564_v42 }
0x15ab   :  { %23806 = vmatprep.mubr.msk.f32.mxu1 %vm282_vm1, %v29577_v52 }
0x15ae   :  { %23807 = vmatmul.mubr.msk.f32.gmra.mrb[224].mxu1 %vm282_vm1, %v29580_v14 }
0x1645   :  { %v23723_v2 = vpop.f32.mrb[194].mxu1  ;;  %v23755_v36 = vpop.f32.mrb[190].mxu0 }
0x1646   :  { %v10763_v47 = vadd.f32 %v23755_v36, %v29625_v35  ;;  %v10599_v15 = vpop.f32.mrb[195].mxu1  ;;  %v10757_v44 = vpop.f32.mrb[191].mxu0  ;;  %v10605_v62 = vadd.f32 %v23723_v2, %v29630_v54 }
0x1647   :  { %v10600_v28 = vadd.f32 %v29630_v54, %v10599_v15  ;;  %v10758_v21 = vadd.f32 %v29625_v35, %v10757_v44 }
0x1649   :  { %v25233_v19 = vpack.c.bf16 %v10763_v47, %v10758_v21  ;;  %v23726_v61 = vpop.f32.mrb[196].mxu1  ;;  %v23758_v31 = vpop.f32.mrb[192].mxu0  ;;  %23813 = vmatprep.mubr.msk.f32.mxu0 %vm1056_vm2, %v10600_v28 }
0x164a   :  { %v10773_v6 = vadd.f32 %v23758_v31, %v29625_v35  ;;  %v10609_v53 = vpop.f32.mrb[197].mxu1  ;;  %v10767_v32 = vpop.f32.mrb[193].mxu0  ;;  %v10615_v2 = vadd.f32 %v23726_v61, %v29630_v54 }
0x164b   :  { %v10610_v29 = vadd.f32 %v29630_v54, %v10609_v53  ;;  %v10768_v43 = vadd.f32 %v29625_v35, %v10767_v32  ;;  %25235 = vmatprep.subr.msk.bf16.mxu0 %vm27043_vm3, %v25233_v19 }
0x164c   :  { %25238 = vmatpush3.bf16.xpose.msk.msra.mxu0 %vm27043_vm3, %v25233_v19 }
0x164d   :  { %v25239_v50 = vpack.c.bf16 %v10773_v6, %v10768_v43  ;;  %v23729_v27 = vpop.f32.mrb[198].mxu1  ;;  %v23761_v63 = vpop.f32.mrb[194].mxu0  ;;  %23820 = vmatprep.mubr.msk.f32.mxu1 %vm1056_vm2, %v10610_v29 }
0x164e   :  { %v10783_v40 = vadd.f32 %v23761_v63, %v29625_v35  ;;  %v10619_v58 = vpop.f32.mrb[199].mxu1  ;;  %v10777_v33 = vpop.f32.mrb[195].mxu0  ;;  %v10625_v61 = vadd.f32 %v23729_v27, %v29630_v54 }
0x164f   :  { %v10778_v10 = vadd.f32 %v29625_v35, %v10777_v33  ;;  %25241 = vmatprep.subr.msk.bf16.mxu1 %vm27043_vm3, %v25239_v50  ;;  %v10620_v30 = vadd.f32 %v29630_v54, %v10619_v58 }
0x1650   :  { %25244 = vmatpush3.bf16.xpose.msk.msra.mxu1 %vm27043_vm3, %v25239_v50 }
0x1651   :  { %v25245_v23 = vpack.c.bf16 %v10783_v40, %v10778_v10  ;;  %v23732_v26 = vpop.f32.mrb[200].mxu1  ;;  %v23764_v8 = vpop.f32.mrb[196].mxu0 }
0x1652   :  { %v10793_v7 = vadd.f32 %v23764_v8, %v29625_v35  ;;  %v10629_v46 = vpop.f32.mrb[201].mxu1  ;;  %v10787_v36 = vpop.f32.mrb[197].mxu0  ;;  %v10635_v27 = vadd.f32 %v23732_v26, %v29630_v54 }
0x1653   :  { %v10788_v47 = vadd.f32 %v29625_v35, %v10787_v36  ;;  %23814 = vmatmul.mubr.msk.f32.vlgmr.msra.gmra.mrb[206].mxu0 %vm1056_vm2, %v10605_v62  ;;  %25247 = vmatprep.subr.msk.bf16.mxu0 %vm27043_vm3, %v25245_v23  ;;  %v10630_v21 = vadd.f32 %v29630_v54, %v10629_v46 }
0x1654   :  { %25250 = vmatpush3.bf16.xpose.msk.msra.mxu0 %vm27043_vm3, %v25245_v23  ;;  %23827 = vmatprep.mubr.msk.f32.mxu0 %vm1056_vm2, %v10620_v30 }
0x1655   :  { %v25251_v15 = vpack.c.bf16 %v10793_v7, %v10788_v47  ;;  %v23735_v44 = vpop.f32.mrb[202].mxu1  ;;  %v23767_v28 = vpop.f32.mrb[198].mxu0 }
0x1656   :  { %v10803_v19 = vadd.f32 %v23767_v28, %v29625_v35  ;;  %v10639_v31 = vpop.f32.mrb[203].mxu1  ;;  %v10797_v6 = vpop.f32.mrb[199].mxu0  ;;  %v10645_v26 = vadd.f32 %v23735_v44, %v29630_v54  ;;  %v20876_v44 = vld [vmem:[%s31817_s5 + $0x14] ss:$0 sm:$0xff] }
0x1657   :  { %v10798_v53 = vadd.f32 %v29625_v35, %v10797_v6  ;;  %23821 = vmatmul.mubr.msk.f32.vlgmr.msra.gmra.mrb[226].mxu1 %vm1056_vm2, %v10615_v2  ;;  %25253 = vmatprep.subr.msk.bf16.mxu1 %vm27043_vm3, %v25251_v15  ;;  %v10640_v50 = vadd.f32 %v29630_v54, %v10639_v31 }
0x1658   :  { %25256 = vmatpush3.bf16.xpose.msk.msra.mxu1 %vm27043_vm3, %v25251_v15  ;;  %23834 = vmatprep.mubr.msk.f32.mxu1 %vm1056_vm2, %v10630_v21 }
0x1659   :  { %v25257_v32 = vpack.c.bf16 %v10803_v19, %v10798_v53  ;;  %v23738_v29 = vpop.f32.mrb[204].mxu1  ;;  %v23770_v43 = vpop.f32.mrb[200].mxu0 }
0x165a   :  { %v10813_v63 = vadd.f32 %v23770_v43, %v29625_v35  ;;  %v10649_v40 = vpop.f32.mrb[205].mxu1  ;;  %v10807_v58 = vpop.f32.mrb[201].mxu0  ;;  %v10655_v53 = vadd.f32 %v23738_v29, %v29630_v54 }
0x165b   :  { %v10808_v33 = vadd.f32 %v29625_v35, %v10807_v58  ;;  %23828 = vmatmul.mubr.msk.f32.vlgmr.msra.gmra.mrb[208].mxu0 %vm1056_vm2, %v10625_v61  ;;  %25259 = vmatprep.subr.msk.bf16.mxu0 %vm27043_vm3, %v25257_v32  ;;  %v10650_v8 = vadd.f32 %v29630_v54, %v10649_v40 }
0x165c   :  { %25262 = vmatpush3.bf16.xpose.msk.msra.mxu0 %vm27043_vm3, %v25257_v32  ;;  %23841 = vmatprep.mubr.msk.f32.mxu0 %vm1056_vm2, %v10640_v50 }
0x165d   :  { %v25263_v10 = vpack.c.bf16 %v10813_v63, %v10808_v33  ;;  %v23741_v62 = vpop.f32.mrb[206].mxu1  ;;  %v23773_v23 = vpop.f32.mrb[202].mxu0 }
0x165e   :  { %v10823_v30 = vadd.f32 %v23773_v23, %v29625_v35  ;;  %v10659_v7 = vpop.f32.mrb[207].mxu1  ;;  %v10817_v46 = vpop.f32.mrb[203].mxu0  ;;  %v10665_v40 = vadd.f32 %v23741_v62, %v29630_v54 }
0x165f   :  { %v10818_v36 = vadd.f32 %v29625_v35, %v10817_v46  ;;  %23835 = vmatmul.mubr.msk.f32.vlgmr.msra.gmra.mrb[228].mxu1 %vm1056_vm2, %v10635_v27  ;;  %25265 = vmatprep.subr.msk.bf16.mxu1 %vm27043_vm3, %v25263_v10  ;;  %v10660_v28 = vadd.f32 %v29630_v54, %v10659_v7 }
0x1660   :  { %25268 = vmatpush3.bf16.xpose.msk.msra.mxu1 %vm27043_vm3, %v25263_v10  ;;  %23848 = vmatprep.mubr.msk.f32.mxu1 %vm1056_vm2, %v10650_v8 }
0x1661   :  { %v25269_v47 = vpack.c.bf16 %v10823_v30, %v10818_v36  ;;  %v23744_v2 = vpop.f32.mrb[208].mxu1  ;;  %v23776_v15 = vpop.f32.mrb[204].mxu0 }
0x1662   :  { %v10833_v21 = vadd.f32 %v23776_v15, %v29625_v35  ;;  %v10669_v19 = vpop.f32.mrb[209].mxu1  ;;  %v10827_v31 = vpop.f32.mrb[205].mxu0  ;;  %v10675_v23 = vadd.f32 %v23744_v2, %v29630_v54 }
0x1663   :  { %v10828_v6 = vadd.f32 %v29625_v35, %v10827_v31  ;;  %23842 = vmatmul.mubr.msk.f32.vlgmr.msra.gmra.mrb[210].mxu0 %vm1056_vm2, %v10645_v26  ;;  %25271 = vmatprep.subr.msk.bf16.mxu0 %vm27043_vm3, %v25269_v47  ;;  %v10670_v35 = vadd.f32 %v29630_v54, %v10669_v19 }
0x1664   :  { %25274 = vmatpush3.bf16.xpose.msk.msra.mxu0 %vm27043_vm3, %v25269_v47  ;;  %23855 = vmatprep.mubr.msk.f32.mxu0 %vm1056_vm2, %v10660_v28 }
0x1665   :  { %v25275_v61 = vpack.c.bf16 %v10833_v21, %v10828_v6  ;;  %v23787_v32 = vpop.f32.mrb[210].mxu1 }
0x1666   :  { %v10921_v43 = vadd.f32 %v23787_v32, %v20876_v44  ;;  %v10915_v50 = vpop.f32.mrb[211].mxu1 }
0x1667   :  { %v10916_v63 = vadd.f32 %v20876_v44, %v10915_v50  ;;  %23849 = vmatmul.mubr.msk.f32.vlgmr.msra.gmra.mrb[230].mxu1 %vm1056_vm2, %v10655_v53  ;;  %25277 = vmatprep.subr.msk.bf16.mxu1 %vm27043_vm3, %v25275_v61 }
0x1668   :  { %25280 = vmatpush3.bf16.xpose.msk.msra.mxu1 %vm27043_vm3, %v25275_v61  ;;  %23862 = vmatprep.mubr.msk.f32.mxu1 %vm1056_vm2, %v10670_v35 }
0x1669   :  { %v25281_v29 = vpack.c.bf16 %v10921_v43, %v10916_v63  ;;  %v23790_v58 = vpop.f32.mrb[212].mxu1 }
0x166a   :  { %v10931_v33 = vadd.f32 %v23790_v58, %v20876_v44  ;;  %v10925_v27 = vpop.f32.mrb[213].mxu1 }
0x166b   :  { %v10926_v10 = vadd.f32 %v20876_v44, %v10925_v27  ;;  %23856 = vmatmul.mubr.msk.f32.vlgmr.msra.gmra.mrb[212].mxu0 %vm1056_vm2, %v10665_v40  ;;  %25282 = vmatprep.subr.bf16.mxu0 %v25281_v29 }
0x166c   :  { %25284 = vmatpush3.bf16.msra.mxu0 %v25281_v29 }
0x166d   :  { %v29714_v8 = vpack.c.bf16 %v10931_v33, %v10926_v10  ;;  %v23793_v30 = vpop.f32.mrb[214].mxu1 }
0x166e   :  { %v10941_v7 = vadd.f32 %v23793_v30, %v20876_v44  ;;  %v10935_v46 = vpop.f32.mrb[215].mxu1 }
0x166f   :  { %v10936_v36 = vadd.f32 %v20876_v44, %v10935_v46  ;;  %23863 = vmatmul.mubr.msk.f32.vlgmr.msra.gmra.mrb[232].mxu1 %vm1056_vm2, %v10675_v23  ;;  %25286 = vmatprep.subr.bf16.mxu0 %v29714_v8 }
0x1671   :  { %v25289_v62 = vpack.c.bf16 %v10941_v7, %v10936_v36  ;;  %v23796_v26 = vpop.f32.mrb[216].mxu1 }
0x1672   :  { %v10951_v47 = vadd.f32 %v23796_v26, %v20876_v44  ;;  %v10945_v15 = vpop.f32.mrb[217].mxu1 }
0x1673   :  { %v10946_v28 = vadd.f32 %v20876_v44, %v10945_v15  ;;  %25290 = vmatprep.subr.bf16.mxu1 %v25289_v62 }
0x1674   :  { %25292 = vmatpush3.bf16.msra.mxu1 %v25289_v62 }
0x1675   :  { %v29718_v21 = vpack.c.bf16 %v10951_v47, %v10946_v28  ;;  %v23799_v54 = vpop.f32.mrb[218].mxu1 }
0x1676   :  { %v10961_v2 = vadd.f32 %v23799_v54, %v20876_v44  ;;  %v10955_v19 = vpop.f32.mrb[219].mxu1 }
0x1677   :  { %v10956_v31 = vadd.f32 %v20876_v44, %v10955_v19 }
0x1679   :  { %v29720_v6 = vpack.c.bf16 %v10961_v2, %v10956_v31  ;;  %v23802_v53 = vpop.f32.mrb[220].mxu1 }
0x167a   :  { %v10971_v61 = vadd.f32 %v23802_v53, %v20876_v44  ;;  %v10965_v32 = vpop.f32.mrb[221].mxu1 }
0x167b   :  { %v10966_v35 = vadd.f32 %v20876_v44, %v10965_v32  ;;  %25298 = vmatprep.subr.bf16.mxu1 %v29720_v6 }
0x167d   :  { %v29723_v43 = vpack.c.bf16 %v10971_v61, %v10966_v35  ;;  %v23805_v50 = vpop.f32.mrb[222].mxu1 }
0x167e   :  { %v10981_v63 = vadd.f32 %v23805_v50, %v20876_v44  ;;  %v10975_v40 = vpop.f32.mrb[223].mxu1 }
0x167f   :  { %v10976_v29 = vadd.f32 %v20876_v44, %v10975_v40 }
0x1681   :  { %v29725_v58 = vpack.c.bf16 %v10981_v63, %v10976_v29  ;;  %v23808_v33 = vpop.f32.mrb[224].mxu1 }
0x1682   :  { %v10991_v27 = vadd.f32 %v23808_v33, %v20876_v44  ;;  %v10985_v10 = vpop.f32.mrb[225].mxu1 }
0x1683   :  { %v10986_v23 = vadd.f32 %v20876_v44, %v10985_v10 }
0x1685   :  { %v29727_v30 = vpack.c.bf16 %v10991_v27, %v10986_v23 }
0x1726   :  { %v23815_v7 = vpop.f32.mrb[206].mxu0 }
0x1727   :  { %v29729_v46 = vmul.f32 0.35355338, %v23815_v7  ;;  %v11072_v36 = vpop.f32.mrb[207].mxu0 }
0x1728   :  { %v29731_v62 = vmul.f32 0.35355338, %v11072_v36 }
0x1729   :  { %v11709_v26 = vsel %vm1769_vm4, %v29729_v46, -inf }
0x172a   :  { %11710 = vmax.xlane.f32.xlu1 %v11709_v26  ;;  %v23822_v47 = vpop.f32.mrb[226].mxu1  ;;  %v11706_v15 = vsel %vm1769_vm4, %v29731_v62, -inf }
0x172b   :  { %v29737_v28 = vmul.f32 0.35355338, %v23822_v47  ;;  %11707 = vmax.xlane.f32.xlu0 %v11706_v15  ;;  %v11159_v44 = vpop.f32.mrb[227].mxu1 }
0x172c   :  { %v29739_v54 = vmul.f32 0.35355338, %v11159_v44 }
0x172d   :  { %v11715_v2 = vsel %vm1769_vm4, %v29737_v28, -inf }
0x172e   :  { %v23829_v19 = vpop.f32.mrb[208].mxu0  ;;  %11716 = vmax.xlane.f32.xlu1 %v11715_v2  ;;  %v11712_v31 = vsel %vm1769_vm4, %v29739_v54, -inf }
0x172f   :  { %v11246_v53 = vpop.f32.mrb[209].mxu0  ;;  %11713 = vmax.xlane.f32.xlu0 %v11712_v31 }
0x1732   :  { %v23836_v61 = vpop.f32.mrb[228].mxu1 }
0x1733   :  { %v29745_v32 = vmul.f32 0.35355338, %v23836_v61  ;;  %v11333_v35 = vpop.f32.mrb[229].mxu1 }
0x1734   :  { %v29747_v50 = vmul.f32 0.35355338, %v11333_v35  ;;  %v29765_v35 = vmul.f32 0.35355338, %v23829_v19 }
0x1735   :  { %v11727_v63 = vsel %vm1769_vm4, %v29745_v32, -inf }
0x1736   :  { %v23843_v40 = vpop.f32.mrb[210].mxu0  ;;  %11728 = vmax.xlane.f32.xlu1 %v11727_v63  ;;  %v11724_v29 = vsel %vm1769_vm4, %v29747_v50, -inf }
0x1737   :  { %v11420_v33 = vpop.f32.mrb[211].mxu0  ;;  %11725 = vmax.xlane.f32.xlu0 %v11724_v29  ;;  %v29769_v29 = vmul.f32 0.35355338, %v11246_v53 }
0x1739   :  { %v11718_v19 = vsel %vm1769_vm4, %v29769_v29, -inf }
0x173a   :  { %v23850_v27 = vpop.f32.mrb[230].mxu1 }
0x173b   :  { %v29753_v10 = vmul.f32 0.35355338, %v23850_v27  ;;  %v11507_v23 = vpop.f32.mrb[231].mxu1 }
0x173c   :  { %v29755_v7 = vmul.f32 0.35355338, %v11507_v23  ;;  %v29773_v23 = vmul.f32 0.35355338, %v23843_v40 }
0x173d   :  { %v11739_v36 = vsel %vm1769_vm4, %v29753_v10, -inf }
0x173e   :  { %v23857_v26 = vpop.f32.mrb[212].mxu0  ;;  %11740 = vmax.xlane.f32.xlu1 %v11739_v36  ;;  %v11736_v47 = vsel %vm1769_vm4, %v29755_v7, -inf  ;;  %v11721_v36 = vsel %vm1769_vm4, %v29765_v35, -inf  ;;  %v11733_v53 = vsel %vm1769_vm4, %v29773_v23, -inf }
0x173f   :  { %v11594_v15 = vpop.f32.mrb[213].mxu0  ;;  %11737 = vmax.xlane.f32.xlu0 %v11736_v47  ;;  %v29777_v47 = vmul.f32 0.35355338, %v11420_v33 }
0x1741   :  { %v11730_v40 = vsel %vm1769_vm4, %v29777_v47, -inf }
0x1742   :  { %v23864_v44 = vpop.f32.mrb[232].mxu1 }
0x1743   :  { %v29761_v2 = vmul.f32 0.35355338, %v23864_v44  ;;  %v11681_v31 = vpop.f32.mrb[233].mxu1  ;;  %v29781_v44 = vmul.f32 0.35355338, %v23857_v26 }
0x1744   :  { %v29763_v61 = vmul.f32 0.35355338, %v11681_v31  ;;  %v29785_v31 = vmul.f32 0.35355338, %v11594_v15 }
0x1745   :  { %v11751_v63 = vsel %vm1769_vm4, %v29761_v2, -inf  ;;  %v11745_v33 = vsel %vm1769_vm4, %v29781_v44, -inf }
0x1746   :  { %11752 = vmax.xlane.f32.xlu1 %v11751_v63  ;;  %v11748_v27 = vsel %vm1769_vm4, %v29763_v61, -inf  ;;  %v11742_v63 = vsel %vm1769_vm4, %v29785_v31, -inf }
0x1747   :  { %11749 = vmax.xlane.f32.xlu0 %v11748_v27 }
0x174a   :  { %11722 = vmax.xlane.f32.xlu1 %v11721_v36 }
0x174b   :  { %11719 = vmax.xlane.f32.xlu0 %v11718_v19 }
0x174e   :  { %11734 = vmax.xlane.f32.xlu1 %v11733_v53 }
0x174f   :  { %11731 = vmax.xlane.f32.xlu0 %v11730_v40 }
0x1752   :  { %11746 = vmax.xlane.f32.xlu1 %v11745_v33 }
0x1753   :  { %11743 = vmax.xlane.f32.xlu0 %v11742_v63 }
0x17b7   :  { %v11711_v26 = vpop.xlane.xlu1 %11710 }
0x17b8   :  { %v11755_v27 = vsub.f32 %v29729_v46, %v11711_v26  ;;  %v11708_v36 = vpop.xlane.xlu0 %11707 }
0x17b9   :  { %v11754_v15 = vsub.f32 %v29731_v62, %v11708_v36 }
0x17ba   :  { %v11772_v19 = vmul.f32 1.442695, %v11755_v27 }
0x17bb   :  { %v11770_v53 = vmul.f32 1.442695, %v11754_v15  ;;  %v11717_v34 = vpop.xlane.xlu1 %11716 }
0x17bc   :  { %26149 = vpow2.f32 %v11772_v19  ;;  %v11757_v40 = vsub.f32 %v29737_v28, %v11717_v34  ;;  %v11714_v56 = vpop.xlane.xlu0 %11713 }
0x17bd   :  { %26151 = vpow2.f32 %v11770_v53  ;;  %v11756_v33 = vsub.f32 %v29739_v54, %v11714_v56 }
0x17be   :  { %v11776_v37 = vmul.f32 1.442695, %v11757_v40 }
0x17bf   :  { %v11774_v1 = vmul.f32 1.442695, %v11756_v33 }
0x17c0   :  { %26153 = vpow2.f32 %v11776_v37 }
0x17c1   :  { %26155 = vpow2.f32 %v11774_v1 }
0x17c3   :  { %v11729_v63 = vpop.xlane.xlu1 %11728 }
0x17c4   :  { %v11761_v46 = vsub.f32 %v29745_v32, %v11729_v63  ;;  %v11726_v26 = vpop.xlane.xlu0 %11725 }
0x17c5   :  { %v11760_v62 = vsub.f32 %v29747_v50, %v11726_v26 }
0x17c6   :  { %v29799_v27 = vpop.eup %26149  ;;  %v11784_v36 = vmul.f32 1.442695, %v11761_v46 }
0x17c7   :  { %v29801_v15 = vpop.eup %26151  ;;  %v11782_v34 = vmul.f32 1.442695, %v11760_v62  ;;  %v11805_v28 = vsel %vm1769_vm4, %v29799_v27, 0.0 }
0x17c8   :  { %26157 = vpow2.f32 %v11784_v36  ;;  %11806 = vadd.xlane.f32.xlu1 %v11805_v28  ;;  %v11802_v1 = vsel %vm1769_vm4, %v29801_v15, 0.0 }
0x17c9   :  { %26159 = vpow2.f32 %v11782_v34  ;;  %11803 = vadd.xlane.f32.xlu0 %v11802_v1 }
0x17ca   :  { %v29807_v37 = vpop.eup %26153 }
0x17cb   :  { %v29809_v56 = vpop.eup %26155  ;;  %v11741_v54 = vpop.xlane.xlu1 %11740  ;;  %v11811_v32 = vsel %vm1769_vm4, %v29807_v37, 0.0 }
0x17cc   :  { %v11765_v50 = vsub.f32 %v29753_v10, %v11741_v54  ;;  %v11738_v19 = vpop.xlane.xlu0 %11737  ;;  %11812 = vadd.xlane.f32.xlu1 %v11811_v32  ;;  %v11808_v53 = vsel %vm1769_vm4, %v29809_v56, 0.0 }
0x17cd   :  { %v11764_v40 = vsub.f32 %v29755_v7, %v11738_v19  ;;  %11809 = vadd.xlane.f32.xlu0 %v11808_v53 }
0x17ce   :  { %v11792_v33 = vmul.f32 1.442695, %v11765_v50 }
0x17cf   :  { %v11790_v63 = vmul.f32 1.442695, %v11764_v40 }
0x17d0   :  { %26161 = vpow2.f32 %v11792_v33 }
0x17d1   :  { %26163 = vpow2.f32 %v11790_v63 }
0x17d2   :  { %v29817_v46 = vpop.eup %26157 }
0x17d3   :  { %v29819_v26 = vpop.eup %26159  ;;  %v11753_v62 = vpop.xlane.xlu1 %11752  ;;  %v11823_v10 = vsel %vm1769_vm4, %v29817_v46, 0.0 }
0x17d4   :  { %v11769_v36 = vsub.f32 %v29761_v2, %v11753_v62  ;;  %11824 = vadd.xlane.f32.xlu1 %v11823_v10  ;;  %v11750_v34 = vpop.xlane.xlu0 %11749  ;;  %v11820_v7 = vsel %vm1769_vm4, %v29819_v26, 0.0 }
0x17d5   :  { %v11768_v28 = vsub.f32 %v29763_v61, %v11750_v34  ;;  %11821 = vadd.xlane.f32.xlu0 %v11820_v7 }
0x17d6   :  { %v11800_v1 = vmul.f32 1.442695, %v11769_v36 }
0x17d7   :  { %v11798_v54 = vmul.f32 1.442695, %v11768_v28  ;;  %v11723_v32 = vpop.xlane.xlu1 %11722 }
0x17d8   :  { %26165 = vpow2.f32 %v11800_v1  ;;  %v11759_v50 = vsub.f32 %v29765_v35, %v11723_v32  ;;  %v11720_v19 = vpop.xlane.xlu0 %11719 }
0x17d9   :  { %26167 = vpow2.f32 %v11798_v54  ;;  %v11758_v53 = vsub.f32 %v29769_v29, %v11720_v19 }
0x17da   :  { %v29829_v40 = vpop.eup %26161  ;;  %v11780_v2 = vmul.f32 1.442695, %v11759_v50 }
0x17db   :  { %v29831_v33 = vpop.eup %26163  ;;  %v11778_v63 = vmul.f32 1.442695, %v11758_v53  ;;  %v11735_v62 = vpop.xlane.xlu1 %11734  ;;  %v11835_v61 = vsel %vm1769_vm4, %v29829_v40, 0.0 }
0x17dc   :  { %26169 = vpow2.f32 %v11780_v2  ;;  %v11763_v10 = vsub.f32 %v29773_v23, %v11735_v62  ;;  %11836 = vadd.xlane.f32.xlu1 %v11835_v61  ;;  %v11732_v36 = vpop.xlane.xlu0 %11731  ;;  %v11832_v35 = vsel %vm1769_vm4, %v29831_v33, 0.0 }
0x17dd   :  { %26171 = vpow2.f32 %v11778_v63  ;;  %v11762_v29 = vsub.f32 %v29777_v47, %v11732_v36  ;;  %11833 = vadd.xlane.f32.xlu0 %v11832_v35 }
0x17de   :  { %v11788_v34 = vmul.f32 1.442695, %v11763_v10 }
0x17df   :  { %v11786_v7 = vmul.f32 1.442695, %v11762_v29  ;;  %v11747_v28 = vpop.xlane.xlu1 %11746 }
0x17e0   :  { %26173 = vpow2.f32 %v11788_v34  ;;  %v11767_v1 = vsub.f32 %v29781_v44, %v11747_v28  ;;  %v11744_v54 = vpop.xlane.xlu0 %11743 }
0x17e1   :  { %26175 = vpow2.f32 %v11786_v7  ;;  %v11766_v32 = vsub.f32 %v29785_v31, %v11744_v54 }
0x17e2   :  { %v29841_v23 = vpop.eup %26165  ;;  %v11796_v50 = vmul.f32 1.442695, %v11767_v1 }
0x17e3   :  { %v29843_v19 = vpop.eup %26167  ;;  %v11794_v53 = vmul.f32 1.442695, %v11766_v32  ;;  %v11847_v47 = vsel %vm1769_vm4, %v29841_v23, 0.0 }
0x17e4   :  { %26177 = vpow2.f32 %v11796_v50  ;;  %11848 = vadd.xlane.f32.xlu1 %v11847_v47  ;;  %v11844_v2 = vsel %vm1769_vm4, %v29843_v19, 0.0 }
0x17e5   :  { %26179 = vpow2.f32 %v11794_v53  ;;  %11845 = vadd.xlane.f32.xlu0 %v11844_v2 }
0x17e6   :  { %v29849_v44 = vpop.eup %26169 }
0x17e7   :  { %v29851_v63 = vpop.eup %26171  ;;  %v11817_v31 = vsel %vm1769_vm4, %v29849_v44, 0.0 }
0x17e8   :  { %11818 = vadd.xlane.f32.xlu1 %v11817_v31  ;;  %v11814_v62 = vsel %vm1769_vm4, %v29851_v63, 0.0 }
0x17e9   :  { %11815 = vadd.xlane.f32.xlu0 %v11814_v62 }
0x17ea   :  { %v29857_v61 = vpop.eup %26173 }
0x17eb   :  { %v29859_v10 = vpop.eup %26175  ;;  %v11829_v36 = vsel %vm1769_vm4, %v29857_v61, 0.0 }
0x17ec   :  { %11830 = vadd.xlane.f32.xlu1 %v11829_v36  ;;  %v11826_v35 = vsel %vm1769_vm4, %v29859_v10, 0.0 }
0x17ed   :  { %11827 = vadd.xlane.f32.xlu0 %v11826_v35 }
0x17ee   :  { %v29865_v29 = vpop.eup %26177 }
0x17ef   :  { %v29867_v34 = vpop.eup %26179  ;;  %v11841_v7 = vsel %vm1769_vm4, %v29865_v29, 0.0 }
0x17f0   :  { %11842 = vadd.xlane.f32.xlu1 %v11841_v7  ;;  %v11838_v28 = vsel %vm1769_vm4, %v29867_v34, 0.0 }
0x17f1   :  { %11839 = vadd.xlane.f32.xlu0 %v11838_v28 }
0x1855   :  { %v11807_v1 = vpop.xlane.xlu1 %11806 }
0x1856   :  { %26181 = vrcp.f32 %v11807_v1  ;;  %v11804_v54 = vpop.xlane.xlu0 %11803 }
0x1857   :  { %26183 = vrcp.f32 %v11804_v54 }
0x1859   :  { %v11813_v32 = vpop.xlane.xlu1 %11812 }
0x185a   :  { %26185 = vrcp.f32 %v11813_v32  ;;  %v11810_v50 = vpop.xlane.xlu0 %11809 }
0x185b   :  { %26187 = vrcp.f32 %v11810_v50 }
0x1860   :  { %v26182_v53 = vpop.eup %26181 }
0x1861   :  { %v26184_v47 = vpop.eup %26183  ;;  %v11825_v2 = vpop.xlane.xlu1 %11824  ;;  %v11853_v36 = vmul.f32 %v26182_v53, %v29799_v27  ;;  %v20964_v53 = vld [vmem:[%s31815_s4 + $0x220] sm:$0xff] }
0x1862   :  { %26189 = vrcp.f32 %v11825_v2  ;;  %v11822_v31 = vpop.xlane.xlu0 %11821  ;;  %v11851_v62 = vmul.f32 %v26184_v47, %v29801_v15 }
0x1863   :  { %26191 = vrcp.f32 %v11822_v31 }
0x1864   :  { %v26186_v35 = vpop.eup %26185  ;;  %23869 = vmatprep.mubr.msk.f32.mxu0 %vm1769_vm4, %v11851_v62 }
0x1865   :  { %v26188_v7 = vpop.eup %26187  ;;  %23870 = vmatmul.mubr.msk.f32.vlgmr.msra.gmra.mrb[214].mxu0 %vm1769_vm4, %v11853_v36  ;;  %v11857_v1 = vmul.f32 %v26186_v35, %v29807_v37 }
0x1866   :  { %25288 = vmatpush3.bf16.msra.mxu0 %v29714_v8  ;;  %v11855_v28 = vmul.f32 %v26188_v7, %v29809_v56 }
0x1867   :  { %25294 = vmatprep.subr.bf16.mxu0 %v29718_v21 }
0x1868   :  { %23876 = vmatprep.mubr.msk.f32.mxu0 %vm1769_vm4, %v11855_v28 }
0x1869   :  { %v11837_v15 = vpop.xlane.xlu1 %11836  ;;  %23877 = vmatmul.mubr.msk.f32.vlgmr.msra.gmra.mrb[216].mxu0 %vm1769_vm4, %v11857_v1 }
0x186a   :  { %26193 = vrcp.f32 %v11837_v15  ;;  %25296 = vmatpush3.bf16.msra.mxu0 %v29718_v21  ;;  %v11834_v27 = vpop.xlane.xlu0 %11833 }
0x186b   :  { %25302 = vmatprep.subr.bf16.mxu0 %v29723_v43  ;;  %26195 = vrcp.f32 %v11834_v27 }
0x186c   :  { %v26190_v54 = vpop.eup %26189 }
0x186d   :  { %v26192_v8 = vpop.eup %26191  ;;  %v11865_v32 = vmul.f32 %v26190_v54, %v29817_v46  ;;  %v20965_v46 = vld [vmem:[%s31815_s4 + $0x228] sm:$0xff] }
0x186e   :  { %v11863_v56 = vmul.f32 %v26192_v8, %v29819_v26  ;;  %v25321_v62 = vpack.c.bf16 %v20965_v46, %v20964_v53 }
0x1870   :  { %23890 = vmatprep.mubr.msk.f32.mxu0 %vm1769_vm4, %v11863_v56 }
0x1871   :  { %v11849_v37 = vpop.xlane.xlu1 %11848  ;;  %23891 = vmatmul.mubr.msk.f32.vlgmr.msra.gmra.mrb[218].mxu0 %vm1769_vm4, %v11865_v32 }
0x1872   :  { %26197 = vrcp.f32 %v11849_v37  ;;  %25304 = vmatpush3.bf16.msra.mxu0 %v29723_v43  ;;  %v11846_v50 = vpop.xlane.xlu0 %11845 }
0x1873   :  { %25310 = vmatprep.subr.bf16.mxu0 %v29727_v30  ;;  %26199 = vrcp.f32 %v11846_v50  ;;  %v20943_v50 = vld [vmem:[%s31815_s4 + $0x1a8] sm:$0xff] }
0x1874   :  { %v26194_v21 = vpop.eup %26193 }
0x1875   :  { %v26196_v26 = vpop.eup %26195  ;;  %v11819_v47 = vpop.xlane.xlu1 %11818  ;;  %v11873_v43 = vmul.f32 %v26194_v21, %v29829_v40  ;;  %v20967_v40 = vld [vmem:[%s31815_s4 + $0x238] sm:$0xff] }
0x1876   :  { %26201 = vrcp.f32 %v11819_v47  ;;  %v11816_v2 = vpop.xlane.xlu0 %11815  ;;  %v11871_v31 = vmul.f32 %v26196_v26, %v29831_v33  ;;  %v20966_v33 = vld [vmem:[%s31815_s4 + $0x230] sm:$0xff]  ;;  %v20945_v47 = vld [vmem:[%s31815_s4 + $0x1b8] sm:$0xff] }
0x1877   :  { %26203 = vrcp.f32 %v11816_v2  ;;  %v25325_v54 = vpack.c.bf16 %v20967_v40, %v20966_v33  ;;  %v20944_v26 = vld [vmem:[%s31815_s4 + $0x1b0] sm:$0xff] }
0x1878   :  { %23904 = vmatprep.mubr.msk.f32.mxu0 %vm1769_vm4, %v11871_v31  ;;  %v25317_v2 = vpack.c.bf16 %v20945_v47, %v20944_v26  ;;  %v20986_v31 = vld [vmem:[%s31815_s4 + $0x2a0] sm:$0xff] }
0x1879   :  { %v11831_v36 = vpop.xlane.xlu1 %11830  ;;  %23905 = vmatmul.mubr.msk.f32.vlgmr.msra.gmra.mrb[220].mxu0 %vm1769_vm4, %v11873_v43  ;;  %v20987_v43 = vld [vmem:[%s31815_s4 + $0x2a8] sm:$0xff] }
0x187a   :  { %26205 = vrcp.f32 %v11831_v36  ;;  %25312 = vmatpush3.bf16.msra.mxu0 %v29727_v30  ;;  %v11828_v35 = vpop.xlane.xlu0 %11827 }
0x187b   :  { %26207 = vrcp.f32 %v11828_v35  ;;  %25322 = vmatprep.subr.bf16.mxu0 %v25321_v62 }
0x187c   :  { %v26198_v7 = vpop.eup %26197 }
0x187d   :  { %v26200_v28 = vpop.eup %26199  ;;  %v11843_v1 = vpop.xlane.xlu1 %11842  ;;  %v11881_v30 = vmul.f32 %v26198_v7, %v29841_v23  ;;  %v20942_v23 = vld [vmem:[%s31815_s4 + $0x1a0] sm:$0xff] }
0x187e   :  { %26209 = vrcp.f32 %v11843_v1  ;;  %v11840_v15 = vpop.xlane.xlu0 %11839  ;;  %v11879_v27 = vmul.f32 %v26200_v28, %v29843_v19  ;;  %v25313_v53 = vpack.c.bf16 %v20943_v50, %v20942_v23 }
0x187f   :  { %26211 = vrcp.f32 %v11840_v15 }
0x1880   :  { %v26202_v8 = vpop.eup %26201  ;;  %23918 = vmatprep.mubr.msk.f32.mxu0 %vm1769_vm4, %v11879_v27 }
0x1881   :  { %v26204_v56 = vpop.eup %26203  ;;  %23919 = vmatmul.mubr.msk.f32.vlgmr.msra.gmra.mrb[222].mxu0 %vm1769_vm4, %v11881_v30  ;;  %v11861_v37 = vmul.f32 %v26202_v8, %v29849_v44 }
0x1882   :  { %25324 = vmatpush3.bf16.msra.mxu0 %v25321_v62  ;;  %23961 = vmatprep.mubr.msk.f32.mxu0 %vm282_vm1, %v29451_v3  ;;  %v11859_v32 = vmul.f32 %v26204_v56, %v29851_v63  ;;  %v30074_v56 = vld [vmem:[%s31817_s5 + $0x11] ss:$0 sm:$0xff] }
0x1883   :  { %25326 = vmatprep.subr.bf16.mxu0 %v25325_v54 }
0x1884   :  { %v26206_v19 = vpop.eup %26205  ;;  %23883 = vmatprep.mubr.msk.f32.mxu1 %vm1769_vm4, %v11859_v32 }
0x1885   :  { %v26208_v21 = vpop.eup %26207  ;;  %23884 = vmatmul.mubr.msk.f32.vlgmr.msra.gmra.mrb[234].mxu1 %vm1769_vm4, %v11861_v37  ;;  %v11869_v44 = vmul.f32 %v26206_v19, %v29857_v61 }
0x1886   :  { %25300 = vmatpush3.bf16.msra.mxu1 %v29720_v6  ;;  %25328 = vmatpush3.bf16.msra.mxu0 %v25325_v54  ;;  %v11867_v63 = vmul.f32 %v26208_v21, %v29859_v10 }
0x1887   :  { %25306 = vmatprep.subr.bf16.mxu1 %v29725_v58 }
0x1888   :  { %v26210_v46 = vpop.eup %26209  ;;  %23897 = vmatprep.mubr.msk.f32.mxu1 %vm1769_vm4, %v11867_v63 }
0x1889   :  { %v26212_v6 = vpop.eup %26211  ;;  %23962 = vmatmul.mubr.msk.f32.vlgmr.msra.gmra.mrb[224].mxu0 %vm282_vm1, %v29455_v0  ;;  %23898 = vmatmul.mubr.msk.f32.vlgmr.msra.gmra.mrb[236].mxu1 %vm1769_vm4, %v11869_v44  ;;  %v11877_v10 = vmul.f32 %v26210_v46, %v29865_v29  ;;  %v20988_v29 = vld [vmem:[%s31815_s4 + $0x2b0] sm:$0xff] }
0x188a   :  { %25308 = vmatpush3.bf16.msra.mxu1 %v29725_v58  ;;  %23964 = vmatprep.mubr.msk.f32.mxu0 %vm282_vm1, %v29469_v18  ;;  %v11875_v61 = vmul.f32 %v26212_v6, %v29867_v34  ;;  %v25329_v58 = vpack.c.bf16 %v20987_v43, %v20986_v31  ;;  %v20989_v34 = vld [vmem:[%s31815_s4 + $0x2b8] sm:$0xff] }
0x188b   :  { %25314 = vmatprep.subr.bf16.mxu1 %v25313_v53  ;;  %v25333_v62 = vpack.c.bf16 %v20989_v34, %v20988_v29 }
0x188c   :  { %23911 = vmatprep.mubr.msk.f32.mxu1 %vm1769_vm4, %v11875_v61 }
0x188d   :  { %23965 = vmatmul.mubr.msk.f32.gmra.mrb[226].mxu0 %vm282_vm1, %v29474_v55  ;;  %23912 = vmatmul.mubr.msk.f32.vlgmr.msra.gmra.mrb[238].mxu1 %vm1769_vm4, %v11877_v10 }
0x188e   :  { %25316 = vmatpush3.bf16.msra.mxu1 %v25313_v53  ;;  %23967 = vmatprep.mubr.msk.f32.mxu0 %vm282_vm1, %v29488_v13 }
0x188f   :  { %23929 = vmatprep.mubr.msk.f32.mxu1 %vm282_vm1, %v29451_v3  ;;  %25318 = vmatprep.subr.bf16.mxu1 %v25317_v2 }
0x1891   :  { %23968 = vmatmul.mubr.msk.f32.gmra.mrb[228].mxu0 %vm282_vm1, %v29492_v25 }
0x1892   :  { %25320 = vmatpush3.bf16.msra.mxu1 %v25317_v2  ;;  %23970 = vmatprep.mubr.msk.f32.mxu0 %vm282_vm1, %v29506_v49 }
0x1893   :  { %25330 = vmatprep.subr.bf16.mxu1 %v25329_v58 }
0x1895   :  { %23930 = vmatmul.mubr.msk.f32.vlgmr.msra.gmra.mrb[240].mxu1 %vm282_vm1, %v29455_v0  ;;  %23971 = vmatmul.mubr.msk.f32.gmra.mrb[230].mxu0 %vm282_vm1, %v29510_v48 }
0x1896   :  { %23932 = vmatprep.mubr.msk.f32.mxu1 %vm282_vm1, %v29469_v18  ;;  %23973 = vmatprep.mubr.msk.f32.mxu0 %vm282_vm1, %v29524_v57 }
0x1897   :  { %25332 = vmatpush3.bf16.msra.mxu1 %v25329_v58  ;;  %v30099_v58 = vld [vmem:[%s31817_s5 + $0xd] ss:$0 sm:$0xff] }
0x1898   :  { %25334 = vmatprep.subr.bf16.mxu1 %v25333_v62 }
0x1899   :  { %23933 = vmatmul.mubr.msk.f32.gmra.mrb[242].mxu1 %vm282_vm1, %v29474_v55  ;;  %23974 = vmatmul.mubr.msk.f32.gmra.mrb[232].mxu0 %vm282_vm1, %v29528_v59 }
0x189a   :  { %23935 = vmatprep.mubr.msk.f32.mxu1 %vm282_vm1, %v29488_v13  ;;  %23976 = vmatprep.mubr.msk.f32.mxu0 %vm282_vm1, %v29542_v24 }
0x189b   :  { %25336 = vmatpush3.bf16.msra.mxu1 %v25333_v62 }
0x189d   :  { %23936 = vmatmul.mubr.msk.f32.gmra.mrb[244].mxu1 %vm282_vm1, %v29492_v25  ;;  %23977 = vmatmul.mubr.msk.f32.gmra.mrb[234].mxu0 %vm282_vm1, %v29546_v12 }
0x189e   :  { %23938 = vmatprep.mubr.msk.f32.mxu1 %vm282_vm1, %v29506_v49  ;;  %23979 = vmatprep.mubr.msk.f32.mxu0 %vm282_vm1, %v29560_v60 }
0x18a1   :  { %23939 = vmatmul.mubr.msk.f32.gmra.mrb[246].mxu1 %vm282_vm1, %v29510_v48  ;;  %23980 = vmatmul.mubr.msk.f32.gmra.mrb[236].mxu0 %vm282_vm1, %v29564_v42 }
0x18a2   :  { %23941 = vmatprep.mubr.msk.f32.mxu1 %vm282_vm1, %v29524_v57  ;;  %23982 = vmatprep.mubr.msk.f32.mxu0 %vm282_vm1, %v29577_v52 }
0x18a5   :  { %23942 = vmatmul.mubr.msk.f32.gmra.mrb[248].mxu1 %vm282_vm1, %v29528_v59  ;;  %23983 = vmatmul.mubr.msk.f32.gmra.mrb[238].mxu0 %vm282_vm1, %v29580_v14 }
0x18a6   :  { %23944 = vmatprep.mubr.msk.f32.mxu1 %vm282_vm1, %v29542_v24 }
0x18a9   :  { %23945 = vmatmul.mubr.msk.f32.gmra.mrb[250].mxu1 %vm282_vm1, %v29546_v12 }
0x18aa   :  { %23947 = vmatprep.mubr.msk.f32.mxu1 %vm282_vm1, %v29560_v60 }
0x18ad   :  { %23948 = vmatmul.mubr.msk.f32.gmra.mrb[252].mxu1 %vm282_vm1, %v29564_v42 }
0x18ae   :  { %23950 = vmatprep.mubr.msk.f32.mxu1 %vm282_vm1, %v29577_v52 }
0x18b1   :  { %23951 = vmatmul.mubr.msk.f32.gmra.mrb[254].mxu1 %vm282_vm1, %v29580_v14 }
0x18b2   :  { %23993 = vmatprep.mubr.msk.f32.mxu1 %vm282_vm1, %v29451_v3 }
0x18b5   :  { %23994 = vmatmul.mubr.msk.f32.vlgmr.msra.gmra.mrb[0].mxu1 %vm282_vm1, %v29455_v0 }
0x18b6   :  { %23996 = vmatprep.mubr.msk.f32.mxu1 %vm282_vm1, %v29469_v18 }
0x18b9   :  { %23997 = vmatmul.mubr.msk.f32.gmra.mrb[2].mxu1 %vm282_vm1, %v29474_v55 }
0x18ba   :  { %23999 = vmatprep.mubr.msk.f32.mxu1 %vm282_vm1, %v29488_v13 }
0x18bd   :  { %24000 = vmatmul.mubr.msk.f32.gmra.mrb[4].mxu1 %vm282_vm1, %v29492_v25 }
0x18be   :  { %24002 = vmatprep.mubr.msk.f32.mxu1 %vm282_vm1, %v29506_v49 }
0x18c1   :  { %24003 = vmatmul.mubr.msk.f32.gmra.mrb[6].mxu1 %vm282_vm1, %v29510_v48 }
0x18c2   :  { %24005 = vmatprep.mubr.msk.f32.mxu1 %vm282_vm1, %v29524_v57 }
0x18c5   :  { %24006 = vmatmul.mubr.msk.f32.gmra.mrb[8].mxu1 %vm282_vm1, %v29528_v59 }
0x18c6   :  { %24008 = vmatprep.mubr.msk.f32.mxu1 %vm282_vm1, %v29542_v24 }
0x18c9   :  { %24009 = vmatmul.mubr.msk.f32.gmra.mrb[10].mxu1 %vm282_vm1, %v29546_v12 }
0x18ca   :  { %24011 = vmatprep.mubr.msk.f32.mxu1 %vm282_vm1, %v29560_v60 }
0x18cd   :  { %24012 = vmatmul.mubr.msk.f32.gmra.mrb[12].mxu1 %vm282_vm1, %v29564_v42 }
0x18ce   :  { %24014 = vmatprep.mubr.msk.f32.mxu1 %vm282_vm1, %v29577_v52 }
0x18d1   :  { %24015 = vmatmul.mubr.msk.f32.gmra.mrb[14].mxu1 %vm282_vm1, %v29580_v14 }
0x1938   :  { %v30047_v36 = vpop.f32.mrb[214].mxu0 }
0x1939   :  { %v30049_v35 = vpop.f32.mrb[215].mxu0 }
0x193c   :  { %v30051_v7 = vpop.f32.mrb[216].mxu0 }
0x193d   :  { %v30053_v33 = vpop.f32.mrb[217].mxu0 }
0x1944   :  { %v30055_v40 = vpop.f32.mrb[218].mxu0 }
0x1945   :  { %v30057_v28 = vpop.f32.mrb[219].mxu0 }
0x194c   :  { %v30059_v1 = vpop.f32.mrb[220].mxu0 }
0x194d   :  { %v30061_v15 = vpop.f32.mrb[221].mxu0 }
0x1954   :  { %v30063_v27 = vpop.f32.mrb[222].mxu0 }
0x1955   :  { %31916 = vst [vmem:[#allocation8_spill] sm:$0xff] %v30063_v27  ;;  %v30065_v30 = vpop.f32.mrb[223].mxu0 }
0x1956   :  { %31917 = vst [vmem:[#allocation12_spill] sm:$0xff] %v30065_v30 }
0x1958   :  { %v30067_v54 = vpop.f32.mrb[234].mxu1 }
0x1959   :  { %v30069_v8 = vpop.f32.mrb[235].mxu1 }
0x195c   :  { %v23963_v32 = vpop.f32.mrb[224].mxu0  ;;  %v30076_v37 = vpop.f32.mrb[236].mxu1 }
0x195d   :  { %v12775_v19 = vadd.f32 %v23963_v32, %v30074_v56  ;;  %v12769_v23 = vpop.f32.mrb[225].mxu0  ;;  %v30079_v50 = vpop.f32.mrb[237].mxu1 }
0x195e   :  { %v12770_v21 = vadd.f32 %v30074_v56, %v12769_v23 }
0x1960   :  { %v25337_v63 = vpack.c.bf16 %v12775_v19, %v12770_v21  ;;  %v23966_v44 = vpop.f32.mrb[226].mxu0  ;;  %v30082_v53 = vpop.f32.mrb[238].mxu1 }
0x1961   :  { %31918 = vst [vmem:[#allocation10_spill] sm:$0xff] %v30082_v53  ;;  %v12785_v46 = vadd.f32 %v23966_v44, %v30074_v56  ;;  %v12779_v26 = vpop.f32.mrb[227].mxu0  ;;  %v30085_v47 = vpop.f32.mrb[239].mxu1 }
0x1962   :  { %v12780_v6 = vadd.f32 %v30074_v56, %v12779_v26  ;;  %25339 = vmatprep.subr.msk.bf16.mxu0 %vm27043_vm3, %v25337_v63 }
0x1963   :  { %25342 = vmatpush3.bf16.xpose.msk.msra.mxu0 %vm27043_vm3, %v25337_v63 }
0x1964   :  { %v25343_v61 = vpack.c.bf16 %v12785_v46, %v12780_v6  ;;  %v23969_v10 = vpop.f32.mrb[228].mxu0 }
0x1965   :  { %v12795_v2 = vadd.f32 %v23969_v10, %v30074_v56  ;;  %v12789_v31 = vpop.f32.mrb[229].mxu0 }
0x1966   :  { %v12790_v43 = vadd.f32 %v30074_v56, %v12789_v31  ;;  %25345 = vmatprep.subr.msk.bf16.mxu0 %vm27043_vm3, %v25343_v61 }
0x1968   :  { %v25349_v29 = vpack.c.bf16 %v12795_v2, %v12790_v43  ;;  %v23931_v34 = vpop.f32.mrb[240].mxu1  ;;  %v23972_v62 = vpop.f32.mrb[230].mxu0 }
0x1969   :  { %v12805_v32 = vadd.f32 %v23972_v62, %v30074_v56  ;;  %v12611_v19 = vpop.f32.mrb[241].mxu1  ;;  %v12799_v23 = vpop.f32.mrb[231].mxu0  ;;  %v12617_v44 = vadd.f32 %v23931_v34, %v30099_v58 }
0x196a   :  { %v12612_v21 = vadd.f32 %v30099_v58, %v12611_v19  ;;  %v12800_v63 = vadd.f32 %v30074_v56, %v12799_v23 }
0x196c   :  { %v25355_v46 = vpack.c.bf16 %v12805_v32, %v12800_v63  ;;  %v23934_v26 = vpop.f32.mrb[242].mxu1  ;;  %v23975_v6 = vpop.f32.mrb[232].mxu0  ;;  %24021 = vmatprep.mubr.msk.f32.mxu0 %vm1056_vm2, %v12612_v21 }
0x196d   :  { %v12815_v10 = vadd.f32 %v23975_v6, %v30074_v56  ;;  %v12621_v2 = vpop.f32.mrb[243].mxu1  ;;  %v12809_v31 = vpop.f32.mrb[233].mxu0  ;;  %24022 = vmatmul.mubr.msk.f32.vlgmr.msra.gmra.mrb[240].mxu0 %vm1056_vm2, %v12617_v44 }
0x196e   :  { %v12622_v43 = vadd.f32 %v30099_v58, %v12621_v2  ;;  %v12810_v62 = vadd.f32 %v30074_v56, %v12809_v31  ;;  %25348 = vmatpush3.bf16.xpose.msk.msra.mxu0 %vm27043_vm3, %v25343_v61  ;;  %v12627_v61 = vadd.f32 %v23934_v26, %v30099_v58 }
0x196f   :  { %25351 = vmatprep.subr.msk.bf16.mxu0 %vm27043_vm3, %v25349_v29 }
0x1970   :  { %v25361_v34 = vpack.c.bf16 %v12815_v10, %v12810_v62  ;;  %v23937_v32 = vpop.f32.mrb[244].mxu1  ;;  %v23978_v19 = vpop.f32.mrb[234].mxu0  ;;  %24028 = vmatprep.mubr.msk.f32.mxu0 %vm1056_vm2, %v12622_v43 }
0x1971   :  { %v12825_v23 = vadd.f32 %v23978_v19, %v30074_v56  ;;  %v12631_v21 = vpop.f32.mrb[245].mxu1  ;;  %v12819_v63 = vpop.f32.mrb[235].mxu0 }
0x1972   :  { %v12632_v44 = vadd.f32 %v30099_v58, %v12631_v21  ;;  %v12820_v6 = vadd.f32 %v30074_v56, %v12819_v63  ;;  %25363 = vmatprep.subr.msk.bf16.mxu1 %vm27043_vm3, %v25361_v34 }
0x1973   :  { %25366 = vmatpush3.bf16.xpose.msk.msra.mxu1 %vm27043_vm3, %v25361_v34 }
0x1974   :  { %v25367_v10 = vpack.c.bf16 %v12825_v23, %v12820_v6  ;;  %v23940_v2 = vpop.f32.mrb[246].mxu1  ;;  %v23981_v31 = vpop.f32.mrb[236].mxu0 }
0x1975   :  { %v12835_v43 = vadd.f32 %v23981_v31, %v30074_v56  ;;  %24029 = vmatmul.mubr.msk.f32.vlgmr.msra.gmra.mrb[242].mxu0 %vm1056_vm2, %v12627_v61  ;;  %v12641_v62 = vpop.f32.mrb[247].mxu1  ;;  %v12829_v19 = vpop.f32.mrb[237].mxu0 }
0x1976   :  { %v12830_v21 = vadd.f32 %v30074_v56, %v12829_v19  ;;  %25354 = vmatpush3.bf16.xpose.msk.msra.mxu0 %vm27043_vm3, %v25349_v29  ;;  %24035 = vmatprep.mubr.msk.f32.mxu0 %vm1056_vm2, %v12632_v44  ;;  %v12637_v29 = vadd.f32 %v23937_v32, %v30099_v58  ;;  %v12642_v19 = vadd.f32 %v30099_v58, %v12641_v62 }
0x1977   :  { %25357 = vmatprep.subr.msk.bf16.mxu0 %vm27043_vm3, %v25355_v46  ;;  %v12647_v62 = vadd.f32 %v23940_v2, %v30099_v58 }
0x1978   :  { %v25373_v26 = vpack.c.bf16 %v12835_v43, %v12830_v21  ;;  %v23943_v34 = vpop.f32.mrb[248].mxu1  ;;  %v23984_v23 = vpop.f32.mrb[238].mxu0 }
0x1979   :  { %v12845_v63 = vadd.f32 %v23984_v23, %v30074_v56  ;;  %v12651_v6 = vpop.f32.mrb[249].mxu1  ;;  %v12839_v31 = vpop.f32.mrb[239].mxu0  ;;  %v12657_v44 = vadd.f32 %v23943_v34, %v30099_v58 }
0x197a   :  { %v12652_v61 = vadd.f32 %v30099_v58, %v12651_v6  ;;  %v12840_v39 = vadd.f32 %v30074_v56, %v12839_v31  ;;  %25375 = vmatprep.subr.msk.bf16.mxu1 %vm27043_vm3, %v25373_v26 }
0x197c   :  { %v25379_v43 = vpack.c.bf16 %v12845_v63, %v12840_v39  ;;  %v23946_v21 = vpop.f32.mrb[250].mxu1  ;;  %24049 = vmatprep.mubr.msk.f32.mxu1 %vm1056_vm2, %v12652_v61 }
0x197d   :  { %24036 = vmatmul.mubr.msk.f32.vlgmr.msra.gmra.mrb[244].mxu0 %vm1056_vm2, %v12637_v29  ;;  %v12661_v23 = vpop.f32.mrb[251].mxu1  ;;  %24050 = vmatmul.mubr.msk.f32.vlgmr.msra.gmra.mrb[16].mxu1 %vm1056_vm2, %v12657_v44  ;;  %v12667_v44 = vadd.f32 %v23946_v21, %v30099_v58 }
0x197e   :  { %25360 = vmatpush3.bf16.xpose.msk.msra.mxu0 %vm27043_vm3, %v25355_v46  ;;  %24042 = vmatprep.mubr.msk.f32.mxu0 %vm1056_vm2, %v12642_v19  ;;  %v12662_v34 = vadd.f32 %v30099_v58, %v12661_v23 }
0x197f   :  { %25378 = vmatpush3.bf16.xpose.msk.msra.mxu1 %vm27043_vm3, %v25373_v26  ;;  %25369 = vmatprep.subr.msk.bf16.mxu0 %vm27043_vm3, %v25367_v10  ;;  %v20991_v26 = vld [vmem:[%s31817_s5 + $0x15] ss:$0 sm:$0xff] }
0x1980   :  { %v23949_v39 = vpop.f32.mrb[252].mxu1 }
0x1981   :  { %v12671_v56 = vpop.f32.mrb[253].mxu1  ;;  %v12677_v46 = vadd.f32 %v23949_v39, %v30099_v58 }
0x1982   :  { %v12672_v32 = vadd.f32 %v30099_v58, %v12671_v56 }
0x1984   :  { %v23952_v63 = vpop.f32.mrb[254].mxu1  ;;  %24063 = vmatprep.mubr.msk.f32.mxu1 %vm1056_vm2, %v12672_v32 }
0x1985   :  { %24043 = vmatmul.mubr.msk.f32.vlgmr.msra.gmra.mrb[246].mxu0 %vm1056_vm2, %v12647_v62  ;;  %v12681_v6 = vpop.f32.mrb[255].mxu1 }
0x1986   :  { %25372 = vmatpush3.bf16.xpose.msk.msra.mxu0 %vm27043_vm3, %v25367_v10  ;;  %24056 = vmatprep.mubr.msk.f32.mxu0 %vm1056_vm2, %v12662_v34  ;;  %v12682_v19 = vadd.f32 %v30099_v58, %v12681_v6  ;;  %v12687_v6 = vadd.f32 %v23952_v63, %v30099_v58 }
0x1987   :  { %24064 = vmatmul.mubr.msk.f32.vlgmr.msra.gmra.mrb[18].mxu1 %vm1056_vm2, %v12677_v46  ;;  %25381 = vmatprep.subr.msk.bf16.mxu0 %vm27043_vm3, %v25379_v43 }
0x1988   :  { %v23995_v2 = vpop.f32.mrb[0].mxu1 }
0x1989   :  { %v12933_v31 = vadd.f32 %v23995_v2, %v20991_v26  ;;  %v12927_v61 = vpop.f32.mrb[1].mxu1 }
0x198a   :  { %v12928_v29 = vadd.f32 %v20991_v26, %v12927_v61 }
0x198c   :  { %v25385_v10 = vpack.c.bf16 %v12933_v31, %v12928_v29  ;;  %v23998_v23 = vpop.f32.mrb[2].mxu1 }
0x198d   :  { %v12943_v39 = vadd.f32 %v23998_v23, %v20991_v26  ;;  %24057 = vmatmul.mubr.msk.f32.vlgmr.msra.gmra.mrb[248].mxu0 %vm1056_vm2, %v12667_v44  ;;  %v12937_v56 = vpop.f32.mrb[3].mxu1 }
0x198e   :  { %v12938_v32 = vadd.f32 %v20991_v26, %v12937_v56  ;;  %25384 = vmatpush3.bf16.xpose.msk.msra.mxu0 %vm27043_vm3, %v25379_v43  ;;  %24070 = vmatprep.mubr.msk.f32.mxu0 %vm1056_vm2, %v12682_v19 }
0x198f   :  { %25386 = vmatprep.subr.bf16.mxu1 %v25385_v10 }
0x1990   :  { %v25389_v62 = vpack.c.bf16 %v12943_v39, %v12938_v32  ;;  %25388 = vmatpush3.bf16.msra.mxu1 %v25385_v10  ;;  %v24001_v34 = vpop.f32.mrb[4].mxu1 }
0x1991   :  { %v12953_v46 = vadd.f32 %v24001_v34, %v20991_v26  ;;  %v12947_v21 = vpop.f32.mrb[5].mxu1 }
0x1992   :  { %v12948_v2 = vadd.f32 %v20991_v26, %v12947_v21  ;;  %25390 = vmatprep.subr.bf16.mxu0 %v25389_v62 }
0x1994   :  { %v30171_v31 = vpack.c.bf16 %v12953_v46, %v12948_v2  ;;  %v24004_v61 = vpop.f32.mrb[6].mxu1 }
0x1995   :  { %v12963_v29 = vadd.f32 %v24004_v61, %v20991_v26  ;;  %24071 = vmatmul.mubr.msk.f32.vlgmr.msra.gmra.mrb[250].mxu0 %vm1056_vm2, %v12687_v6  ;;  %v12957_v44 = vpop.f32.mrb[7].mxu1 }
0x1996   :  { %v12958_v43 = vadd.f32 %v20991_v26, %v12957_v44  ;;  %25392 = vmatpush3.bf16.msra.mxu0 %v25389_v62  ;;  %25394 = vmatprep.subr.bf16.mxu1 %v30171_v31 }
0x1998   :  { %v30175_v19 = vpack.c.bf16 %v12963_v29, %v12958_v43  ;;  %v24007_v10 = vpop.f32.mrb[8].mxu1 }
0x1999   :  { %v12973_v23 = vadd.f32 %v24007_v10, %v20991_v26  ;;  %v12967_v39 = vpop.f32.mrb[9].mxu1 }
0x199a   :  { %v12968_v56 = vadd.f32 %v20991_v26, %v12967_v39  ;;  %25398 = vmatprep.subr.bf16.mxu0 %v30175_v19 }
0x199c   :  { %v30178_v58 = vpack.c.bf16 %v12973_v23, %v12968_v56  ;;  %v24010_v63 = vpop.f32.mrb[10].mxu1 }
0x199d   :  { %v12983_v32 = vadd.f32 %v24010_v63, %v20991_v26  ;;  %v12977_v34 = vpop.f32.mrb[11].mxu1 }
0x199e   :  { %v12978_v46 = vadd.f32 %v20991_v26, %v12977_v34 }
0x19a0   :  { %v30180_v21 = vpack.c.bf16 %v12983_v32, %v12978_v46  ;;  %v24013_v2 = vpop.f32.mrb[12].mxu1 }
0x19a1   :  { %v12993_v62 = vadd.f32 %v24013_v2, %v20991_v26  ;;  %v12987_v6 = vpop.f32.mrb[13].mxu1 }
0x19a2   :  { %v12988_v61 = vadd.f32 %v20991_v26, %v12987_v6 }
0x19a4   :  { %v30182_v29 = vpack.c.bf16 %v12993_v62, %v12988_v61  ;;  %v24016_v44 = vpop.f32.mrb[14].mxu1 }
0x19a5   :  { %v13003_v43 = vadd.f32 %v24016_v44, %v20991_v26  ;;  %v12997_v10 = vpop.f32.mrb[15].mxu1 }
0x19a6   :  { %v12998_v39 = vadd.f32 %v20991_v26, %v12997_v10 }
0x19a8   :  { %v30184_v17 = vpack.c.bf16 %v13003_v43, %v12998_v39 }
0x1a40   :  { %v24023_v23 = vpop.f32.mrb[240].mxu0 }
0x1a41   :  { %v30186_v56 = vmul.f32 0.35355338, %v24023_v23  ;;  %v13084_v63 = vpop.f32.mrb[241].mxu0 }
0x1a42   :  { %v30188_v20 = vmul.f32 0.35355338, %v13084_v63 }
0x1a43   :  { %v13721_v32 = vsel %vm1769_vm4, %v30186_v56, -inf }
0x1a44   :  { %13722 = vmax.xlane.f32.xlu1 %v13721_v32  ;;  %v13718_v34 = vsel %vm1769_vm4, %v30188_v20, -inf }
0x1a45   :  { %13719 = vmax.xlane.f32.xlu0 %v13718_v34 }
0x1a48   :  { %v24030_v46 = vpop.f32.mrb[242].mxu0 }
0x1a49   :  { %v30194_v2 = vmul.f32 0.35355338, %v24030_v46  ;;  %v13171_v26 = vpop.f32.mrb[243].mxu0 }
0x1a4a   :  { %v30196_v62 = vmul.f32 0.35355338, %v13171_v26 }
0x1a4b   :  { %v13727_v6 = vsel %vm1769_vm4, %v30194_v2, -inf }
0x1a4c   :  { %13728 = vmax.xlane.f32.xlu1 %v13727_v6  ;;  %v13724_v61 = vsel %vm1769_vm4, %v30196_v62, -inf }
0x1a4d   :  { %13725 = vmax.xlane.f32.xlu0 %v13724_v61 }
0x1a50   :  { %v24037_v44 = vpop.f32.mrb[244].mxu0  ;;  %v24051_v43 = vpop.f32.mrb[16].mxu1 }
0x1a51   :  { %v30202_v10 = vmul.f32 0.35355338, %v24037_v44  ;;  %v13258_v39 = vpop.f32.mrb[245].mxu0  ;;  %v13432_v23 = vpop.f32.mrb[17].mxu1  ;;  %v30206_v32 = vmul.f32 0.35355338, %v24051_v43 }
0x1a52   :  { %v30204_v63 = vmul.f32 0.35355338, %v13258_v39  ;;  %v30210_v46 = vmul.f32 0.35355338, %v13432_v23 }
0x1a53   :  { %v13733_v34 = vsel %vm1769_vm4, %v30202_v10, -inf  ;;  %v13745_v6 = vsel %vm1769_vm4, %v30206_v32, -inf }
0x1a54   :  { %13734 = vmax.xlane.f32.xlu1 %v13733_v34  ;;  %v13730_v26 = vsel %vm1769_vm4, %v30204_v63, -inf  ;;  %v13742_v44 = vsel %vm1769_vm4, %v30210_v46, -inf }
0x1a55   :  { %13731 = vmax.xlane.f32.xlu0 %v13730_v26 }
0x1a58   :  { %13746 = vmax.xlane.f32.xlu1 %v13745_v6  ;;  %v24044_v61 = vpop.f32.mrb[246].mxu0 }
0x1a59   :  { %v30218_v43 = vmul.f32 0.35355338, %v24044_v61  ;;  %13743 = vmax.xlane.f32.xlu0 %v13742_v44  ;;  %v13345_v39 = vpop.f32.mrb[247].mxu0 }
0x1a5a   :  { %v24065_v51 = vpop.f32.mrb[18].mxu1  ;;  %v30220_v23 = vmul.f32 0.35355338, %v13345_v39 }
0x1a5b   :  { %v13606_v34 = vpop.f32.mrb[19].mxu1  ;;  %v13739_v5 = vsel %vm1769_vm4, %v30218_v43, -inf }
0x1a5c   :  { %13740 = vmax.xlane.f32.xlu1 %v13739_v5  ;;  %v13736_v26 = vsel %vm1769_vm4, %v30220_v23, -inf }
0x1a5d   :  { %13737 = vmax.xlane.f32.xlu0 %v13736_v26  ;;  %v30238_v26 = vmul.f32 0.35355338, %v24065_v51 }
0x1a60   :  { %v24058_v6 = vpop.f32.mrb[248].mxu0 }
0x1a61   :  { %v30226_v9 = vmul.f32 0.35355338, %v24058_v6  ;;  %v13519_v38 = vpop.f32.mrb[249].mxu0  ;;  %v30242_v6 = vmul.f32 0.35355338, %v13606_v34 }
0x1a62   :  { %v30228_v61 = vmul.f32 0.35355338, %v13519_v38 }
0x1a63   :  { %v13751_v44 = vsel %vm1769_vm4, %v30226_v9, -inf }
0x1a64   :  { %13752 = vmax.xlane.f32.xlu1 %v13751_v44  ;;  %v13748_v39 = vsel %vm1769_vm4, %v30228_v61, -inf }
0x1a65   :  { %13749 = vmax.xlane.f32.xlu0 %v13748_v39  ;;  %v13757_v39 = vsel %vm1769_vm4, %v30238_v26, -inf }
0x1a68   :  { %v24072_v16 = vpop.f32.mrb[250].mxu0 }
0x1a69   :  { %v30234_v5 = vmul.f32 0.35355338, %v24072_v16  ;;  %v13693_v22 = vpop.f32.mrb[251].mxu0 }
0x1a6a   :  { %v30236_v41 = vmul.f32 0.35355338, %v13693_v22  ;;  %v13754_v22 = vsel %vm1769_vm4, %v30242_v6, -inf }
0x1a6b   :  { %v13763_v38 = vsel %vm1769_vm4, %v30234_v5, -inf }
0x1a6c   :  { %13764 = vmax.xlane.f32.xlu1 %v13763_v38  ;;  %v13760_v44 = vsel %vm1769_vm4, %v30236_v41, -inf }
0x1a6d   :  { %13761 = vmax.xlane.f32.xlu0 %v13760_v44 }
0x1a70   :  { %13758 = vmax.xlane.f32.xlu1 %v13757_v39 }
0x1a71   :  { %13755 = vmax.xlane.f32.xlu0 %v13754_v22 }
0x1ad1   :  { %v13723_v16 = vpop.xlane.xlu1 %13722 }
0x1ad2   :  { %v13767_v51 = vsub.f32 %v30186_v56, %v13723_v16  ;;  %v13720_v11 = vpop.xlane.xlu0 %13719 }
0x1ad3   :  { %v13766_v34 = vsub.f32 %v30188_v20, %v13720_v11 }
0x1ad4   :  { %v13784_v45 = vmul.f32 1.442695, %v13767_v51 }
0x1ad5   :  { %v13782_v38 = vmul.f32 1.442695, %v13766_v34 }
0x1ad6   :  { %26213 = vpow2.f32 %v13784_v45 }
0x1ad7   :  { %26215 = vpow2.f32 %v13782_v38 }
0x1ad9   :  { %v13729_v4 = vpop.xlane.xlu1 %13728 }
0x1ada   :  { %v13769_v44 = vsub.f32 %v30194_v2, %v13729_v4  ;;  %v13726_v27 = vpop.xlane.xlu0 %13725 }
0x1adb   :  { %v13768_v39 = vsub.f32 %v30196_v62, %v13726_v27 }
0x1adc   :  { %v13788_v30 = vmul.f32 1.442695, %v13769_v44 }
0x1add   :  { %v13786_v53 = vmul.f32 1.442695, %v13768_v39 }
0x1ade   :  { %26217 = vpow2.f32 %v13788_v30 }
0x1adf   :  { %26219 = vpow2.f32 %v13786_v53 }
0x1ae0   :  { %v30254_v22 = vpop.eup %26213 }
0x1ae1   :  { %v30256_v56 = vpop.eup %26215  ;;  %v13735_v16 = vpop.xlane.xlu1 %13734  ;;  %v13817_v11 = vsel %vm1769_vm4, %v30254_v22, 0.0 }
0x1ae2   :  { %v13771_v45 = vsub.f32 %v30202_v10, %v13735_v16  ;;  %v13732_v20 = vpop.xlane.xlu0 %13731  ;;  %13818 = vadd.xlane.f32.xlu1 %v13817_v11  ;;  %v13814_v4 = vsel %vm1769_vm4, %v30256_v56, 0.0 }
0x1ae3   :  { %v13770_v27 = vsub.f32 %v30204_v63, %v13732_v20  ;;  %13815 = vadd.xlane.f32.xlu0 %v13814_v4 }
0x1ae4   :  { %v13792_v30 = vmul.f32 1.442695, %v13771_v45 }
0x1ae5   :  { %v13790_v53 = vmul.f32 1.442695, %v13770_v27  ;;  %v13747_v2 = vpop.xlane.xlu1 %13746 }
0x1ae6   :  { %26221 = vpow2.f32 %v13792_v30  ;;  %v13775_v62 = vsub.f32 %v30206_v32, %v13747_v2  ;;  %v13744_v51 = vpop.xlane.xlu0 %13743 }
0x1ae7   :  { %26223 = vpow2.f32 %v13790_v53  ;;  %v13774_v34 = vsub.f32 %v30210_v46, %v13744_v51 }
0x1ae8   :  { %v30266_v38 = vpop.eup %26217  ;;  %v13800_v10 = vmul.f32 1.442695, %v13775_v62 }
0x1ae9   :  { %v30268_v44 = vpop.eup %26219  ;;  %v13798_v39 = vmul.f32 1.442695, %v13774_v34  ;;  %v13741_v16 = vpop.xlane.xlu1 %13740  ;;  %v13823_v63 = vsel %vm1769_vm4, %v30266_v38, 0.0 }
0x1aea   :  { %26225 = vpow2.f32 %v13800_v10  ;;  %v13773_v11 = vsub.f32 %v30218_v43, %v13741_v16  ;;  %v13738_v45 = vpop.xlane.xlu0 %13737  ;;  %13824 = vadd.xlane.f32.xlu1 %v13823_v63  ;;  %v13820_v32 = vsel %vm1769_vm4, %v30268_v44, 0.0 }
0x1aeb   :  { %26227 = vpow2.f32 %v13798_v39  ;;  %v13772_v46 = vsub.f32 %v30220_v23, %v13738_v45  ;;  %13821 = vadd.xlane.f32.xlu0 %v13820_v32 }
0x1aec   :  { %v13796_v20 = vmul.f32 1.442695, %v13773_v11 }
0x1aed   :  { %v13794_v4 = vmul.f32 1.442695, %v13772_v46 }
0x1aee   :  { %26229 = vpow2.f32 %v13796_v20 }
0x1aef   :  { %26231 = vpow2.f32 %v13794_v4 }
0x1af0   :  { %v30276_v27 = vpop.eup %26221 }
0x1af1   :  { %v30278_v30 = vpop.eup %26223  ;;  %v13753_v53 = vpop.xlane.xlu1 %13752  ;;  %v13829_v43 = vsel %vm1769_vm4, %v30276_v27, 0.0 }
0x1af2   :  { %v13777_v2 = vsub.f32 %v30226_v9, %v13753_v53  ;;  %v13750_v62 = vpop.xlane.xlu0 %13749  ;;  %13830 = vadd.xlane.f32.xlu1 %v13829_v43  ;;  %v13826_v23 = vsel %vm1769_vm4, %v30278_v30, 0.0 }
0x1af3   :  { %v13776_v51 = vsub.f32 %v30228_v61, %v13750_v62  ;;  %13827 = vadd.xlane.f32.xlu0 %v13826_v23 }
0x1af4   :  { %v30286_v34 = vpop.eup %26225  ;;  %v13804_v10 = vmul.f32 1.442695, %v13777_v2 }
0x1af5   :  { %v30288_v39 = vpop.eup %26227  ;;  %v13802_v16 = vmul.f32 1.442695, %v13776_v51  ;;  %v13841_v63 = vsel %vm1769_vm4, %v30286_v34, 0.0 }
0x1af6   :  { %26233 = vpow2.f32 %v13804_v10  ;;  %13842 = vadd.xlane.f32.xlu1 %v13841_v63  ;;  %v13838_v9 = vsel %vm1769_vm4, %v30288_v39, 0.0 }
0x1af7   :  { %26235 = vpow2.f32 %v13802_v16  ;;  %13839 = vadd.xlane.f32.xlu0 %v13838_v9 }
0x1af8   :  { %v30294_v11 = vpop.eup %26229 }
0x1af9   :  { %v30296_v61 = vpop.eup %26231  ;;  %v13765_v45 = vpop.xlane.xlu1 %13764  ;;  %v13835_v32 = vsel %vm1769_vm4, %v30294_v11, 0.0 }
0x1afa   :  { %v13781_v46 = vsub.f32 %v30234_v5, %v13765_v45  ;;  %13836 = vadd.xlane.f32.xlu1 %v13835_v32  ;;  %v13762_v20 = vpop.xlane.xlu0 %13761  ;;  %v13832_v4 = vsel %vm1769_vm4, %v30296_v61, 0.0 }
0x1afb   :  { %v13780_v53 = vsub.f32 %v30236_v41, %v13762_v20  ;;  %13833 = vadd.xlane.f32.xlu0 %v13832_v4 }
0x1afc   :  { %v13812_v43 = vmul.f32 1.442695, %v13781_v46 }
0x1afd   :  { %v13810_v2 = vmul.f32 1.442695, %v13780_v53  ;;  %v13759_v62 = vpop.xlane.xlu1 %13758 }
0x1afe   :  { %26237 = vpow2.f32 %v13812_v43  ;;  %v13779_v23 = vsub.f32 %v30238_v26, %v13759_v62  ;;  %v13756_v51 = vpop.xlane.xlu0 %13755 }
0x1aff   :  { %26239 = vpow2.f32 %v13810_v2  ;;  %v13778_v10 = vsub.f32 %v30242_v6, %v13756_v51 }
0x1b00   :  { %v30306_v16 = vpop.eup %26233  ;;  %v13808_v5 = vmul.f32 1.442695, %v13779_v23 }
0x1b01   :  { %v30308_v63 = vpop.eup %26235  ;;  %v13806_v9 = vmul.f32 1.442695, %v13778_v10  ;;  %v13847_v41 = vsel %vm1769_vm4, %v30306_v16, 0.0 }
0x1b02   :  { %26241 = vpow2.f32 %v13808_v5  ;;  %13848 = vadd.xlane.f32.xlu1 %v13847_v41  ;;  %v13844_v45 = vsel %vm1769_vm4, %v30308_v63, 0.0 }
0x1b03   :  { %26243 = vpow2.f32 %v13806_v9  ;;  %13845 = vadd.xlane.f32.xlu0 %v13844_v45 }
0x1b08   :  { %v30314_v26 = vpop.eup %26237 }
0x1b09   :  { %v30316_v32 = vpop.eup %26239  ;;  %v13859_v6 = vsel %vm1769_vm4, %v30314_v26, 0.0 }
0x1b0a   :  { %13860 = vadd.xlane.f32.xlu1 %v13859_v6  ;;  %v13856_v46 = vsel %vm1769_vm4, %v30316_v32, 0.0 }
0x1b0b   :  { %13857 = vadd.xlane.f32.xlu0 %v13856_v46 }
0x1b0c   :  { %v30322_v20 = vpop.eup %26241 }
0x1b0d   :  { %v30324_v4 = vpop.eup %26243  ;;  %v13853_v53 = vsel %vm1769_vm4, %v30322_v20, 0.0 }
0x1b0e   :  { %13854 = vadd.xlane.f32.xlu1 %v13853_v53  ;;  %v13850_v43 = vsel %vm1769_vm4, %v30324_v4, 0.0 }
0x1b0f   :  { %13851 = vadd.xlane.f32.xlu0 %v13850_v43 }
0x1b6f   :  { %v13819_v2 = vpop.xlane.xlu1 %13818 }
0x1b70   :  { %26245 = vrcp.f32 %v13819_v2  ;;  %v13816_v62 = vpop.xlane.xlu0 %13815 }
0x1b71   :  { %26247 = vrcp.f32 %v13816_v62 }
0x1b77   :  { %v13825_v23 = vpop.xlane.xlu1 %13824 }
0x1b78   :  { %26249 = vrcp.f32 %v13825_v23  ;;  %v13822_v51 = vpop.xlane.xlu0 %13821 }
0x1b79   :  { %26251 = vrcp.f32 %v13822_v51 }
0x1b7a   :  { %v26246_v10 = vpop.eup %26245 }
0x1b7b   :  { %v26248_v5 = vpop.eup %26247  ;;  %v13865_v41 = vmul.f32 %v26246_v10, %v30254_v22 }
0x1b7c   :  { %v13863_v9 = vmul.f32 %v26248_v5, %v30256_v56 }
0x1b7e   :  { %24077 = vmatprep.mubr.msk.f32.mxu1 %vm1769_vm4, %v13863_v9 }
0x1b7f   :  { %v13831_v45 = vpop.xlane.xlu1 %13830  ;;  %24078 = vmatmul.mubr.msk.f32.vlgmr.msra.gmra.mrb[20].mxu1 %vm1769_vm4, %v13865_v41 }
0x1b80   :  { %26253 = vrcp.f32 %v13831_v45  ;;  %25396 = vmatpush3.bf16.msra.mxu1 %v30171_v31  ;;  %v13828_v6 = vpop.xlane.xlu0 %13827 }
0x1b81   :  { %26255 = vrcp.f32 %v13828_v6  ;;  %25402 = vmatprep.subr.bf16.mxu1 %v30178_v58 }
0x1b82   :  { %v26250_v46 = vpop.eup %26249 }
0x1b83   :  { %v26252_v53 = vpop.eup %26251  ;;  %v13843_v43 = vpop.xlane.xlu1 %13842  ;;  %v13869_v22 = vmul.f32 %v26250_v46, %v30266_v38 }
0x1b84   :  { %26257 = vrcp.f32 %v13843_v43  ;;  %v13840_v2 = vpop.xlane.xlu0 %13839  ;;  %v13867_v56 = vmul.f32 %v26252_v53, %v30268_v44 }
0x1b85   :  { %26259 = vrcp.f32 %v13840_v2 }
0x1b86   :  { %24084 = vmatprep.mubr.msk.f32.mxu0 %vm1769_vm4, %v13867_v56 }
0x1b87   :  { %v13837_v62 = vpop.xlane.xlu1 %13836  ;;  %24085 = vmatmul.mubr.msk.f32.vlgmr.msra.gmra.mrb[252].mxu0 %vm1769_vm4, %v13869_v22 }
0x1b88   :  { %26261 = vrcp.f32 %v13837_v62  ;;  %25400 = vmatpush3.bf16.msra.mxu0 %v30175_v19  ;;  %v13834_v31 = vpop.xlane.xlu0 %13833  ;;  %v21091_v62 = vld [vmem:[%s31815_s4 + $0x1d0] sm:$0xff] }
0x1b89   :  { %25406 = vmatprep.subr.bf16.mxu0 %v30180_v21  ;;  %26263 = vrcp.f32 %v13834_v31 }
0x1b8a   :  { %v26254_v23 = vpop.eup %26253 }
0x1b8b   :  { %v26256_v51 = vpop.eup %26255  ;;  %v13873_v44 = vmul.f32 %v26254_v23, %v30276_v27 }
0x1b8c   :  { %v13871_v10 = vmul.f32 %v26256_v51, %v30278_v30 }
0x1b8e   :  { %v26258_v5 = vpop.eup %26257  ;;  %24091 = vmatprep.mubr.msk.f32.mxu1 %vm1769_vm4, %v13871_v10 }
0x1b8f   :  { %v26260_v38 = vpop.eup %26259  ;;  %v13849_v9 = vpop.xlane.xlu1 %13848  ;;  %24092 = vmatmul.mubr.msk.f32.vlgmr.msra.gmra.mrb[22].mxu1 %vm1769_vm4, %v13873_v44  ;;  %v13881_v45 = vmul.f32 %v26258_v5, %v30286_v34  ;;  %v21112_v44 = vld [vmem:[%s31815_s4 + $0x248] sm:$0xff] }
0x1b90   :  { %26265 = vrcp.f32 %v13849_v9  ;;  %25404 = vmatpush3.bf16.msra.mxu1 %v30178_v58  ;;  %v13846_v19 = vpop.xlane.xlu0 %13845  ;;  %v13879_v41 = vmul.f32 %v26260_v38, %v30288_v39  ;;  %v21113_v9 = vld [vmem:[%s31815_s4 + $0x250] sm:$0xff] }
0x1b91   :  { %25410 = vmatprep.subr.bf16.mxu1 %v30182_v29  ;;  %26267 = vrcp.f32 %v13846_v19  ;;  %v21114_v19 = vld [vmem:[%s31815_s4 + $0x258] sm:$0xff] }
0x1b92   :  { %v26262_v30 = vpop.eup %26261  ;;  %24105 = vmatprep.mubr.msk.f32.mxu1 %vm1769_vm4, %v13879_v41  ;;  %v25429_v41 = vpack.c.bf16 %v21114_v19, %v21113_v9 }
0x1b93   :  { %v26264_v27 = vpop.eup %26263  ;;  %24106 = vmatmul.mubr.msk.f32.vlgmr.msra.gmra.mrb[24].mxu1 %vm1769_vm4, %v13881_v45  ;;  %v13877_v58 = vmul.f32 %v26262_v30, %v30294_v11  ;;  %v21090_v11 = vld [vmem:[%s31815_s4 + $0x1c8] sm:$0xff]  ;;  %v21133_v45 = vld [vmem:[%s31815_s4 + $0x2c0] sm:$0xff] }
0x1b94   :  { %25412 = vmatpush3.bf16.msra.mxu1 %v30182_v29  ;;  %v13875_v6 = vmul.f32 %v26264_v27, %v30296_v61  ;;  %v21089_v29 = vld [vmem:[%s31815_s4 + $0x1c0] sm:$0xff]  ;;  %v21134_v30 = vld [vmem:[%s31815_s4 + $0x2c8] sm:$0xff] }
0x1b95   :  { %v25417_v56 = vpack.c.bf16 %v21090_v11, %v21089_v29 }
0x1b96   :  { %24098 = vmatprep.mubr.msk.f32.mxu0 %vm1769_vm4, %v13875_v6 }
0x1b97   :  { %v13861_v39 = vpop.xlane.xlu1 %13860  ;;  %24099 = vmatmul.mubr.msk.f32.vlgmr.msra.gmra.mrb[254].mxu0 %vm1769_vm4, %v13877_v58  ;;  %v25433_v58 = vpack.c.bf16 %v21134_v30, %v21133_v45 }
0x1b98   :  { %26269 = vrcp.f32 %v13861_v39  ;;  %25408 = vmatpush3.bf16.msra.mxu0 %v30180_v21  ;;  %v13858_v34 = vpop.xlane.xlu0 %13857 }
0x1b99   :  { %25414 = vmatprep.subr.bf16.mxu0 %v30184_v17  ;;  %26271 = vrcp.f32 %v13858_v34 }
0x1b9a   :  { %v26266_v46 = vpop.eup %26265 }
0x1b9b   :  { %v26268_v61 = vpop.eup %26267  ;;  %v13855_v53 = vpop.xlane.xlu1 %13854  ;;  %v13885_v21 = vmul.f32 %v26266_v46, %v30306_v16 }
0x1b9c   :  { %26273 = vrcp.f32 %v13855_v53  ;;  %v13852_v43 = vpop.xlane.xlu0 %13851  ;;  %v13883_v2 = vmul.f32 %v26268_v61, %v30308_v63  ;;  %v21092_v63 = vld [vmem:[%s31815_s4 + $0x1d8] sm:$0xff] }
0x1b9d   :  { %26275 = vrcp.f32 %v13852_v43  ;;  %v25421_v51 = vpack.c.bf16 %v21092_v63, %v21091_v62 }
0x1b9e   :  { %24112 = vmatprep.mubr.msk.f32.mxu0 %vm1769_vm4, %v13883_v2 }
0x1b9f   :  { %24113 = vmatmul.mubr.msk.f32.vlgmr.msra.gmra.mrb[0].mxu0 %vm1769_vm4, %v13885_v21 }
0x1ba0   :  { %25416 = vmatpush3.bf16.msra.mxu0 %v30184_v17  ;;  %v21111_v17 = vld [vmem:[%s31815_s4 + $0x240] sm:$0xff] }
0x1ba1   :  { %25418 = vmatprep.subr.bf16.mxu0 %v25417_v56  ;;  %v25425_v38 = vpack.c.bf16 %v21112_v44, %v21111_v17  ;;  %v21136_v17 = vld [vmem:[%s31815_s4 + $0x2d8] sm:$0xff] }
0x1ba2   :  { %v26270_v22 = vpop.eup %26269 }
0x1ba3   :  { %v26272_v31 = vpop.eup %26271  ;;  %v13893_v23 = vmul.f32 %v26270_v22, %v30314_v26 }
0x1ba4   :  { %v13891_v16 = vmul.f32 %v26272_v31, %v30316_v32  ;;  %v30489_v31 = vld [vmem:[%s31817_s5 + $0xe] ss:$0 sm:$0xff] }
0x1ba6   :  { %v26274_v10 = vpop.eup %26273  ;;  %24126 = vmatprep.mubr.msk.f32.mxu0 %vm1769_vm4, %v13891_v16 }
0x1ba7   :  { %v26276_v5 = vpop.eup %26275  ;;  %24127 = vmatmul.mubr.msk.f32.vlgmr.msra.gmra.mrb[2].mxu0 %vm1769_vm4, %v13893_v23  ;;  %v13889_v32 = vmul.f32 %v26274_v10, %v30322_v20  ;;  %v21056_v20 = vld [vmem:[%s31818_s6 + $0x28] sm:$0xff]  ;;  %v21135_v10 = vld [vmem:[%s31815_s4 + $0x2d0] sm:$0xff] }
0x1ba8   :  { %25420 = vmatpush3.bf16.msra.mxu0 %v25417_v56  ;;  %24189 = vmatprep.mubr.msk.f32.mxu0 %vm282_vm1, %v29451_v3  ;;  %v13887_v26 = vmul.f32 %v26276_v5, %v30324_v4  ;;  %v20941_v4 = vld [vmem:[%s31818_s6 + $0x20] sm:$0xff] }
0x1ba9   :  { %25422 = vmatprep.subr.bf16.mxu0 %v25421_v51  ;;  %24129 = vmatprep.subr.mxu1 %v21056_v20 }
0x1baa   :  { %24119 = vmatprep.mubr.msk.f32.mxu1 %vm1769_vm4, %v13887_v26  ;;  %v25437_v26 = vpack.c.bf16 %v21136_v17, %v21135_v10 }
0x1bab   :  { %24120 = vmatmul.mubr.msk.f32.vlgmr.msra.gmra.mrb[26].mxu1 %vm1769_vm4, %v13889_v32 }
0x1bac   :  { %25424 = vmatpush3.bf16.msra.mxu0 %v25421_v51  ;;  %24130 = vmatpush3.msra.mxu1 %v21056_v20 }
0x1bad   :  { %25426 = vmatprep.subr.bf16.mxu0 %v25425_v38  ;;  %24155 = vmatprep.subr.mxu1 %v20941_v4 }
0x1baf   :  { %24190 = vmatmul.mubr.msk.f32.vlgmr.msra.gmra.mrb[4].mxu0 %vm282_vm1, %v29455_v0 }
0x1bb0   :  { %24192 = vmatprep.mubr.msk.f32.mxu0 %vm282_vm1, %v29469_v18  ;;  %25428 = vmatpush3.bf16.msra.mxu0 %v25425_v38 }
0x1bb1   :  { %25430 = vmatprep.subr.bf16.mxu0 %v25429_v41 }
0x1bb3   :  { %24193 = vmatmul.mubr.msk.f32.gmra.mrb[6].mxu0 %vm282_vm1, %v29474_v55 }
0x1bb4   :  { %24195 = vmatprep.mubr.msk.f32.mxu0 %vm282_vm1, %v29488_v13  ;;  %25432 = vmatpush3.bf16.msra.mxu0 %v25429_v41 }
0x1bb7   :  { %24196 = vmatmul.mubr.msk.f32.gmra.mrb[8].mxu0 %vm282_vm1, %v29492_v25 }
0x1bb8   :  { %24198 = vmatprep.mubr.msk.f32.mxu0 %vm282_vm1, %v29506_v49 }
0x1bbb   :  { %24199 = vmatmul.mubr.msk.f32.gmra.mrb[10].mxu0 %vm282_vm1, %v29510_v48 }
0x1bbc   :  { %24201 = vmatprep.mubr.msk.f32.mxu0 %vm282_vm1, %v29524_v57 }
0x1bbf   :  { %24202 = vmatmul.mubr.msk.f32.gmra.mrb[12].mxu0 %vm282_vm1, %v29528_v59 }
0x1bc0   :  { %24204 = vmatprep.mubr.msk.f32.mxu0 %vm282_vm1, %v29542_v24 }
0x1bc3   :  { %24205 = vmatmul.mubr.msk.f32.gmra.mrb[14].mxu0 %vm282_vm1, %v29546_v12 }
0x1bc4   :  { %24207 = vmatprep.mubr.msk.f32.mxu0 %vm282_vm1, %v29560_v60 }
0x1bc7   :  { %24208 = vmatmul.mubr.msk.f32.gmra.mrb[16].mxu0 %vm282_vm1, %v29564_v42 }
0x1bc8   :  { %24210 = vmatprep.mubr.msk.f32.mxu0 %vm282_vm1, %v29577_v52 }
0x1bcb   :  { %24211 = vmatmul.mubr.msk.f32.gmra.mrb[18].mxu0 %vm282_vm1, %v29580_v14 }
0x1bcc   :  { %24221 = vmatprep.mubr.msk.f32.mxu0 %vm282_vm1, %v29451_v3 }
0x1bcf   :  { %24222 = vmatmul.mubr.msk.f32.vlgmr.msra.gmra.mrb[20].mxu0 %vm282_vm1, %v29455_v0 }
0x1bd0   :  { %24224 = vmatprep.mubr.msk.f32.mxu0 %vm282_vm1, %v29469_v18 }
0x1bd3   :  { %24225 = vmatmul.mubr.msk.f32.gmra.mrb[22].mxu0 %vm282_vm1, %v29474_v55 }
0x1bd4   :  { %24227 = vmatprep.mubr.msk.f32.mxu0 %vm282_vm1, %v29488_v13 }
0x1bd7   :  { %24228 = vmatmul.mubr.msk.f32.gmra.mrb[24].mxu0 %vm282_vm1, %v29492_v25 }
0x1bd8   :  { %24230 = vmatprep.mubr.msk.f32.mxu0 %vm282_vm1, %v29506_v49 }
0x1bdb   :  { %24231 = vmatmul.mubr.msk.f32.gmra.mrb[26].mxu0 %vm282_vm1, %v29510_v48 }
0x1bdc   :  { %24233 = vmatprep.mubr.msk.f32.mxu0 %vm282_vm1, %v29524_v57 }
0x1bdf   :  { %24234 = vmatmul.mubr.msk.f32.gmra.mrb[28].mxu0 %vm282_vm1, %v29528_v59 }
0x1be0   :  { %24236 = vmatprep.mubr.msk.f32.mxu0 %vm282_vm1, %v29542_v24 }
0x1be3   :  { %24237 = vmatmul.mubr.msk.f32.gmra.mrb[30].mxu0 %vm282_vm1, %v29546_v12 }
0x1be4   :  { %24239 = vmatprep.mubr.msk.f32.mxu0 %vm282_vm1, %v29560_v60 }
0x1be7   :  { %24240 = vmatmul.mubr.msk.f32.gmra.mrb[32].mxu0 %vm282_vm1, %v29564_v42 }
0x1be8   :  { %24242 = vmatprep.mubr.msk.f32.mxu0 %vm282_vm1, %v29577_v52 }
0x1beb   :  { %24243 = vmatmul.mubr.msk.f32.gmra.mrb[34].mxu0 %vm282_vm1, %v29580_v14 }
0x1c52   :  { %v24079_v27 = vpop.f32.mrb[20].mxu1 }
0x1c53   :  { %v13966_v6 = vpop.f32.mrb[21].mxu1 }
0x1c54   :  { %24131 = vmatprep.mubr.msk.f32.mxu1 %vm1056_vm2, %v13966_v6  ;;  %v30569_v6 = vld [vmem:[%s31817_s5 + $0x12] ss:$0 sm:$0xff] }
0x1c55   :  { %24132 = vmatmul.mubr.msk.f32.vlgmr.msra.gmra.mrb[28].mxu1 %vm1056_vm2, %v24079_v27 }
0x1c56   :  { %24156 = vmatpush3.msra.mxu1 %v20941_v4 }
0x1c57   :  { %25434 = vmatprep.subr.bf16.mxu1 %v25433_v58 }
0x1c5a   :  { %v24086_v39 = vpop.f32.mrb[252].mxu0 }
0x1c5b   :  { %v14047_v34 = vpop.f32.mrb[253].mxu0 }
0x1c5c   :  { %24134 = vmatprep.mubr.msk.f32.mxu1 %vm1056_vm2, %v14047_v34 }
0x1c5d   :  { %24135 = vmatmul.mubr.msk.f32.gmra.mrb[30].mxu1 %vm1056_vm2, %v24086_v39  ;;  %v31920_v39 = vld [vmem:[#allocation12_spill] sm:$0xff] }
0x1c62   :  { %v24093_v46 = vpop.f32.mrb[22].mxu1 }
0x1c63   :  { %v14128_v29 = vpop.f32.mrb[23].mxu1 }
0x1c64   :  { %24137 = vmatprep.mubr.msk.f32.mxu1 %vm1056_vm2, %v14128_v29  ;;  %v31921_v29 = vld [vmem:[#allocation8_spill] sm:$0xff] }
0x1c65   :  { %24138 = vmatmul.mubr.msk.f32.gmra.mrb[32].mxu1 %vm1056_vm2, %v24093_v46 }
0x1c66   :  { %v24107_v11 = vpop.f32.mrb[24].mxu1 }
0x1c67   :  { %v14290_v61 = vpop.f32.mrb[25].mxu1 }
0x1c6a   :  { %v24100_v53 = vpop.f32.mrb[254].mxu0 }
0x1c6b   :  { %v14209_v43 = vpop.f32.mrb[255].mxu0 }
0x1c6c   :  { %24140 = vmatprep.mubr.msk.f32.mxu1 %vm1056_vm2, %v14209_v43 }
0x1c6d   :  { %24141 = vmatmul.mubr.msk.f32.gmra.mrb[34].mxu1 %vm1056_vm2, %v24100_v53 }
0x1c6e   :  { %24143 = vmatprep.mubr.msk.f32.mxu1 %vm1056_vm2, %v14290_v61 }
0x1c71   :  { %24144 = vmatmul.mubr.msk.f32.gmra.mrb[36].mxu1 %vm1056_vm2, %v24107_v11 }
0x1c72   :  { %v24114_v2 = vpop.f32.mrb[0].mxu0 }
0x1c73   :  { %v14371_v21 = vpop.f32.mrb[1].mxu0 }
0x1c74   :  { %24146 = vmatprep.mubr.msk.f32.mxu1 %vm1056_vm2, %v14371_v21 }
0x1c75   :  { %24147 = vmatmul.mubr.msk.f32.gmra.mrb[38].mxu1 %vm1056_vm2, %v24114_v2 }
0x1c7a   :  { %v24128_v56 = vpop.f32.mrb[2].mxu0 }
0x1c7b   :  { %v14533_v22 = vpop.f32.mrb[3].mxu0 }
0x1c7e   :  { %v24121_v62 = vpop.f32.mrb[26].mxu1 }
0x1c7f   :  { %v14452_v63 = vpop.f32.mrb[27].mxu1 }
0x1c80   :  { %24149 = vmatprep.mubr.msk.f32.mxu1 %vm1056_vm2, %v14452_v63 }
0x1c81   :  { %24150 = vmatmul.mubr.msk.f32.gmra.mrb[40].mxu1 %vm1056_vm2, %v24121_v62 }
0x1c82   :  { %v30491_v16 = vpop.f32.mrb[4].mxu0  ;;  %24152 = vmatprep.mubr.msk.f32.mxu1 %vm1056_vm2, %v14533_v22 }
0x1c83   :  { %v15009_v23 = vpop.f32.mrb[5].mxu0 }
0x1c84   :  { %v15010_v51 = vadd.f32 %v30489_v31, %v15009_v23 }
0x1c85   :  { %24153 = vmatmul.mubr.msk.f32.gmra.mrb[42].mxu1 %vm1056_vm2, %v24128_v56 }
0x1c86   :  { %v30502_v44 = vpop.f32.mrb[6].mxu0  ;;  %24281 = vmatprep.mubr.msk.f32.mxu0 %vm1056_vm2, %v15010_v51  ;;  %24157 = vmatprep.mubr.msk.f32.mxu1 %vm1056_vm2, %v30049_v35  ;;  %v15015_v51 = vadd.f32 %v30491_v16, %v30489_v31 }
0x1c87   :  { %v30507_v5 = vpop.f32.mrb[7].mxu0 }
0x1c89   :  { %24158 = vmatmul.mubr.msk.f32.vlgmr.msra.gmra.mrb[28].mxu1 %vm1056_vm2, %v30047_v36 }
0x1c8a   :  { %v30511_v32 = vpop.f32.mrb[8].mxu0  ;;  %24160 = vmatprep.mubr.msk.f32.mxu1 %vm1056_vm2, %v30053_v33  ;;  %25436 = vmatpush3.bf16.msra.mxu1 %v25433_v58  ;;  %v31919_v58 = vld [vmem:[#allocation10_spill] sm:$0xff] }
0x1c8b   :  { %v30515_v38 = vpop.f32.mrb[9].mxu0  ;;  %25438 = vmatprep.subr.bf16.mxu1 %v25437_v26 }
0x1c8d   :  { %24161 = vmatmul.mubr.msk.f32.gmra.mrb[30].mxu1 %vm1056_vm2, %v30051_v7 }
0x1c8e   :  { %v24200_v9 = vpop.f32.mrb[10].mxu0  ;;  %24163 = vmatprep.mubr.msk.f32.mxu1 %vm1056_vm2, %v30069_v8  ;;  %25440 = vmatpush3.bf16.msra.mxu1 %v25437_v26  ;;  %v15020_v26 = vadd.f32 %v30489_v31, %v30507_v5 }
0x1c8f   :  { %v30522_v35 = vadd.f32 %v24200_v9, %v30489_v31  ;;  %v30524_v36 = vpop.f32.mrb[11].mxu0 }
0x1c91   :  { %24164 = vmatmul.mubr.msk.f32.gmra.mrb[32].mxu1 %vm1056_vm2, %v30067_v54 }
0x1c92   :  { %v24203_v33 = vpop.f32.mrb[12].mxu0  ;;  %24166 = vmatprep.mubr.msk.f32.mxu1 %vm1056_vm2, %v30057_v28 }
0x1c93   :  { %v30531_v19 = vadd.f32 %v24203_v33, %v30489_v31  ;;  %v15049_v7 = vpop.f32.mrb[13].mxu0 }
0x1c94   :  { %v30534_v41 = vadd.f32 %v30489_v31, %v15049_v7 }
0x1c95   :  { %24167 = vmatmul.mubr.msk.f32.gmra.mrb[34].mxu1 %vm1056_vm2, %v30055_v40 }
0x1c96   :  { %v24206_v8 = vpop.f32.mrb[14].mxu0  ;;  %24169 = vmatprep.mubr.msk.f32.mxu1 %vm1056_vm2, %v30079_v50 }
0x1c97   :  { %v30541_v54 = vadd.f32 %v24206_v8, %v30489_v31  ;;  %v15059_v20 = vpop.f32.mrb[15].mxu0 }
0x1c98   :  { %v30544_v28 = vadd.f32 %v30489_v31, %v15059_v20 }
0x1c99   :  { %24170 = vmatmul.mubr.msk.f32.gmra.mrb[36].mxu1 %vm1056_vm2, %v30076_v37 }
0x1c9a   :  { %v24209_v4 = vpop.f32.mrb[16].mxu0  ;;  %24172 = vmatprep.mubr.msk.f32.mxu1 %vm1056_vm2, %v30061_v15 }
0x1c9b   :  { %v30551_v40 = vadd.f32 %v24209_v4, %v30489_v31  ;;  %v15069_v45 = vpop.f32.mrb[17].mxu0 }
0x1c9c   :  { %v30554_v50 = vadd.f32 %v30489_v31, %v15069_v45  ;;  %v15025_v45 = vadd.f32 %v30502_v44, %v30489_v31 }
0x1c9d   :  { %24173 = vmatmul.mubr.msk.f32.gmra.mrb[38].mxu1 %vm1056_vm2, %v30059_v1 }
0x1c9e   :  { %v24212_v30 = vpop.f32.mrb[18].mxu0  ;;  %24175 = vmatprep.mubr.msk.f32.mxu1 %vm1056_vm2, %v30085_v47 }
0x1c9f   :  { %v30561_v37 = vadd.f32 %v24212_v30, %v30489_v31  ;;  %v15079_v27 = vpop.f32.mrb[19].mxu0 }
0x1ca0   :  { %v30564_v15 = vadd.f32 %v30489_v31, %v15079_v27 }
0x1ca1   :  { %24176 = vmatmul.mubr.msk.f32.gmra.mrb[40].mxu1 %vm1056_vm2, %v31919_v58  ;;  %v15030_v58 = vadd.f32 %v30489_v31, %v30515_v38 }
0x1ca2   :  { %v24223_v1 = vpop.f32.mrb[20].mxu0  ;;  %24178 = vmatprep.mubr.msk.f32.mxu1 %vm1056_vm2, %v31920_v39 }
0x1ca3   :  { %v15173_v47 = vadd.f32 %v24223_v1, %v30569_v6  ;;  %v15167_v34 = vpop.f32.mrb[21].mxu0 }
0x1ca4   :  { %v15168_v46 = vadd.f32 %v30569_v6, %v15167_v34 }
0x1ca5   :  { %24179 = vmatmul.mubr.msk.f32.gmra.mrb[42].mxu1 %vm1056_vm2, %v31921_v29 }
0x1ca6   :  { %v25441_v11 = vpack.c.bf16 %v15173_v47, %v15168_v46  ;;  %v24226_v61 = vpop.f32.mrb[22].mxu0  ;;  %24253 = vmatprep.mubr.msk.f32.mxu1 %vm282_vm1, %v29451_v3 }
0x1ca7   :  { %v15183_v53 = vadd.f32 %v24226_v61, %v30569_v6  ;;  %v15177_v43 = vpop.f32.mrb[23].mxu0 }
0x1ca8   :  { %v15178_v2 = vadd.f32 %v30569_v6, %v15177_v43  ;;  %25443 = vmatprep.subr.msk.bf16.mxu0 %vm27043_vm3, %v25441_v11 }
0x1ca9   :  { %25446 = vmatpush3.bf16.xpose.msk.msra.mxu0 %vm27043_vm3, %v25441_v11  ;;  %24254 = vmatmul.mubr.msk.f32.vlgmr.msra.gmra.mrb[44].mxu1 %vm282_vm1, %v29455_v0  ;;  %v15035_v11 = vadd.f32 %v30511_v32, %v30489_v31 }
0x1caa   :  { %v25447_v56 = vpack.c.bf16 %v15183_v53, %v15178_v2  ;;  %v24229_v22 = vpop.f32.mrb[24].mxu0  ;;  %24256 = vmatprep.mubr.msk.f32.mxu1 %vm282_vm1, %v29469_v18 }
0x1cab   :  { %v15193_v62 = vadd.f32 %v24229_v22, %v30569_v6  ;;  %v15187_v63 = vpop.f32.mrb[25].mxu0 }
0x1cac   :  { %v15188_v23 = vadd.f32 %v30569_v6, %v15187_v63  ;;  %25449 = vmatprep.subr.msk.bf16.mxu0 %vm27043_vm3, %v25447_v56 }
0x1cad   :  { %24257 = vmatmul.mubr.msk.f32.gmra.mrb[46].mxu1 %vm282_vm1, %v29474_v55 }
0x1cae   :  { %v25453_v10 = vpack.c.bf16 %v15193_v62, %v15188_v23  ;;  %v24232_v17 = vpop.f32.mrb[26].mxu0  ;;  %24259 = vmatprep.mubr.msk.f32.mxu1 %vm282_vm1, %v29488_v13 }
0x1caf   :  { %v15203_v9 = vadd.f32 %v24232_v17, %v30569_v6  ;;  %v15197_v33 = vpop.f32.mrb[27].mxu0 }
0x1cb0   :  { %v15198_v7 = vadd.f32 %v30569_v6, %v15197_v33  ;;  %24282 = vmatmul.mubr.msk.f32.vlgmr.msra.gmra.mrb[36].mxu0 %vm1056_vm2, %v15015_v51 }
0x1cb1   :  { %25452 = vmatpush3.bf16.xpose.msk.msra.mxu0 %vm27043_vm3, %v25447_v56  ;;  %24288 = vmatprep.mubr.msk.f32.mxu0 %vm1056_vm2, %v15020_v26  ;;  %v15040_v56 = vadd.f32 %v30489_v31, %v30524_v36  ;;  %v30696_v31 = vld [vmem:[%s31817_s5 + $0x16] ss:$0 sm:$0xff] }
0x1cb2   :  { %v25459_v16 = vpack.c.bf16 %v15203_v9, %v15198_v7  ;;  %v24235_v8 = vpop.f32.mrb[28].mxu0  ;;  %24260 = vmatmul.mubr.msk.f32.gmra.mrb[48].mxu1 %vm282_vm1, %v29492_v25  ;;  %25455 = vmatprep.subr.msk.bf16.mxu0 %vm27043_vm3, %v25453_v10 }
0x1cb3   :  { %v15213_v5 = vadd.f32 %v24235_v8, %v30569_v6  ;;  %v15207_v20 = vpop.f32.mrb[29].mxu0  ;;  %24262 = vmatprep.mubr.msk.f32.mxu1 %vm282_vm1, %v29506_v49 }
0x1cb4   :  { %v15208_v4 = vadd.f32 %v30569_v6, %v15207_v20 }
0x1cb6   :  { %v25465_v30 = vpack.c.bf16 %v15213_v5, %v15208_v4  ;;  %v24238_v27 = vpop.f32.mrb[30].mxu0  ;;  %24263 = vmatmul.mubr.msk.f32.gmra.mrb[50].mxu1 %vm282_vm1, %v29510_v48 }
0x1cb7   :  { %v15223_v1 = vadd.f32 %v24238_v27, %v30569_v6  ;;  %v15217_v39 = vpop.f32.mrb[31].mxu0  ;;  %24265 = vmatprep.mubr.msk.f32.mxu1 %vm282_vm1, %v29524_v57 }
0x1cb8   :  { %v15218_v47 = vadd.f32 %v30569_v6, %v15217_v39  ;;  %24289 = vmatmul.mubr.msk.f32.vlgmr.msra.gmra.mrb[38].mxu0 %vm1056_vm2, %v15025_v45  ;;  %25467 = vmatprep.subr.msk.bf16.mxu1 %vm27043_vm3, %v25465_v30 }
0x1cb9   :  { %25458 = vmatpush3.bf16.xpose.msk.msra.mxu0 %vm27043_vm3, %v25453_v10  ;;  %24295 = vmatprep.mubr.msk.f32.mxu0 %vm1056_vm2, %v15030_v58 }
0x1cba   :  { %v25471_v44 = vpack.c.bf16 %v15223_v1, %v15218_v47  ;;  %25470 = vmatpush3.bf16.xpose.msk.msra.mxu1 %vm27043_vm3, %v25465_v30  ;;  %v24241_v38 = vpop.f32.mrb[32].mxu0  ;;  %25461 = vmatprep.subr.msk.bf16.mxu0 %vm27043_vm3, %v25459_v16 }
0x1cbb   :  { %v15233_v34 = vadd.f32 %v24241_v38, %v30569_v6  ;;  %24266 = vmatmul.mubr.msk.f32.gmra.mrb[52].mxu1 %vm282_vm1, %v29528_v59  ;;  %v15227_v46 = vpop.f32.mrb[33].mxu0 }
0x1cbc   :  { %v15228_v29 = vadd.f32 %v30569_v6, %v15227_v46  ;;  %24268 = vmatprep.mubr.msk.f32.mxu1 %vm282_vm1, %v29542_v24 }
0x1cbe   :  { %v25477_v61 = vpack.c.bf16 %v15233_v34, %v15228_v29  ;;  %v24244_v53 = vpop.f32.mrb[34].mxu0 }
0x1cbf   :  { %v15243_v43 = vadd.f32 %v24244_v53, %v30569_v6  ;;  %24269 = vmatmul.mubr.msk.f32.gmra.mrb[54].mxu1 %vm282_vm1, %v29546_v12  ;;  %v15237_v2 = vpop.f32.mrb[35].mxu0 }
0x1cc0   :  { %v15238_v22 = vadd.f32 %v30569_v6, %v15237_v2  ;;  %24271 = vmatprep.mubr.msk.f32.mxu1 %vm282_vm1, %v29560_v60  ;;  %24296 = vmatmul.mubr.msk.f32.vlgmr.msra.gmra.mrb[40].mxu0 %vm1056_vm2, %v15035_v11 }
0x1cc1   :  { %25479 = vmatprep.subr.msk.bf16.mxu1 %vm27043_vm3, %v25477_v61  ;;  %25464 = vmatpush3.bf16.xpose.msk.msra.mxu0 %vm27043_vm3, %v25459_v16 }
0x1cc2   :  { %v25483_v32 = vpack.c.bf16 %v15243_v43, %v15238_v22  ;;  %24302 = vmatprep.mubr.msk.f32.mxu0 %vm1056_vm2, %v15040_v56  ;;  %25473 = vmatprep.subr.msk.bf16.mxu0 %vm27043_vm3, %v25471_v44 }
0x1cc3   :  { %24272 = vmatmul.mubr.msk.f32.gmra.mrb[56].mxu1 %vm282_vm1, %v29564_v42 }
0x1cc4   :  { %24274 = vmatprep.mubr.msk.f32.mxu1 %vm282_vm1, %v29577_v52 }
0x1cc7   :  { %24275 = vmatmul.mubr.msk.f32.gmra.mrb[58].mxu1 %vm282_vm1, %v29580_v14 }
0x1cc8   :  { %24309 = vmatprep.mubr.msk.f32.mxu1 %vm1056_vm2, %v30534_v41  ;;  %24303 = vmatmul.mubr.msk.f32.vlgmr.msra.gmra.mrb[42].mxu0 %vm1056_vm2, %v30522_v35 }
0x1cc9   :  { %25476 = vmatpush3.bf16.xpose.msk.msra.mxu0 %vm27043_vm3, %v25471_v44  ;;  %24316 = vmatprep.mubr.msk.f32.mxu0 %vm1056_vm2, %v30544_v28 }
0x1cca   :  { %25485 = vmatprep.subr.msk.bf16.mxu0 %vm27043_vm3, %v25483_v32 }
0x1ccb   :  { %24310 = vmatmul.mubr.msk.f32.vlgmr.msra.gmra.mrb[60].mxu1 %vm1056_vm2, %v30531_v19 }
0x1ccc   :  { %25482 = vmatpush3.bf16.xpose.msk.msra.mxu1 %vm27043_vm3, %v25477_v61  ;;  %24323 = vmatprep.mubr.msk.f32.mxu1 %vm1056_vm2, %v30554_v50 }
0x1cd0   :  { %24317 = vmatmul.mubr.msk.f32.vlgmr.msra.gmra.mrb[44].mxu0 %vm1056_vm2, %v30541_v54 }
0x1cd1   :  { %25488 = vmatpush3.bf16.xpose.msk.msra.mxu0 %vm27043_vm3, %v25483_v32  ;;  %24330 = vmatprep.mubr.msk.f32.mxu0 %vm1056_vm2, %v30564_v15 }
0x1cd3   :  { %24324 = vmatmul.mubr.msk.f32.vlgmr.msra.gmra.mrb[62].mxu1 %vm1056_vm2, %v30551_v40 }
0x1cd8   :  { %24331 = vmatmul.mubr.msk.f32.vlgmr.msra.gmra.mrb[46].mxu0 %vm1056_vm2, %v30561_v37 }
0x1d7c   :  { %v24255_v35 = vpop.f32.mrb[44].mxu1 }
0x1d7d   :  { %v15331_v36 = vadd.f32 %v24255_v35, %v30696_v31  ;;  %v15325_v19 = vpop.f32.mrb[45].mxu1 }
0x1d7e   :  { %v15326_v41 = vadd.f32 %v30696_v31, %v15325_v19 }
0x1d80   :  { %v25489_v54 = vpack.c.bf16 %v15331_v36, %v15326_v41  ;;  %v24258_v28 = vpop.f32.mrb[46].mxu1 }
0x1d81   :  { %v15341_v50 = vadd.f32 %v24258_v28, %v30696_v31  ;;  %v15335_v15 = vpop.f32.mrb[47].mxu1 }
0x1d82   :  { %v15336_v40 = vadd.f32 %v30696_v31, %v15335_v15  ;;  %25490 = vmatprep.subr.bf16.mxu1 %v25489_v54 }
0x1d83   :  { %v24283_v37 = vpop.f32.mrb[36].mxu0  ;;  %25492 = vmatpush3.bf16.msra.mxu1 %v25489_v54 }
0x1d84   :  { %v30702_v6 = vpack.c.bf16 %v15341_v50, %v15336_v40  ;;  %v30704_v62 = vmul.f32 0.35355338, %v24283_v37  ;;  %v15482_v63 = vpop.f32.mrb[37].mxu0 }
0x1d85   :  { %v30706_v23 = vmul.f32 0.35355338, %v15482_v63  ;;  %v24261_v51 = vpop.f32.mrb[48].mxu1 }
0x1d86   :  { %v15351_v10 = vadd.f32 %v24261_v51, %v30696_v31  ;;  %v15345_v17 = vpop.f32.mrb[49].mxu1  ;;  %v16119_v26 = vsel %vm1769_vm4, %v30704_v62, -inf  ;;  %25494 = vmatprep.subr.bf16.mxu1 %v30702_v6 }
0x1d87   :  { %v15346_v9 = vadd.f32 %v30696_v31, %v15345_v17  ;;  %16120 = vmax.xlane.f32.xlu1 %v16119_v26  ;;  %v16116_v33 = vsel %vm1769_vm4, %v30706_v23, -inf }
0x1d88   :  { %16117 = vmax.xlane.f32.xlu0 %v16116_v33 }
0x1d89   :  { %v25497_v7 = vpack.c.bf16 %v15351_v10, %v15346_v9  ;;  %v24264_v16 = vpop.f32.mrb[50].mxu1 }
0x1d8a   :  { %v15361_v8 = vadd.f32 %v24264_v16, %v30696_v31  ;;  %v15355_v5 = vpop.f32.mrb[51].mxu1 }
0x1d8b   :  { %v15356_v20 = vadd.f32 %v30696_v31, %v15355_v5  ;;  %v24290_v4 = vpop.f32.mrb[38].mxu0  ;;  %25498 = vmatprep.subr.bf16.mxu0 %v25497_v7 }
0x1d8c   :  { %v30717_v45 = vmul.f32 0.35355338, %v24290_v4  ;;  %v15569_v30 = vpop.f32.mrb[39].mxu0  ;;  %25500 = vmatpush3.bf16.msra.mxu0 %v25497_v7 }
0x1d8d   :  { %v30719_v27 = vpack.c.bf16 %v15361_v8, %v15356_v20  ;;  %v30721_v58 = vmul.f32 0.35355338, %v15569_v30 }
0x1d8e   :  { %v24267_v1 = vpop.f32.mrb[52].mxu1  ;;  %v16125_v39 = vsel %vm1769_vm4, %v30717_v45, -inf }
0x1d8f   :  { %v15371_v47 = vadd.f32 %v24267_v1, %v30696_v31  ;;  %v15365_v44 = vpop.f32.mrb[53].mxu1  ;;  %16126 = vmax.xlane.f32.xlu1 %v16125_v39  ;;  %v16122_v38 = vsel %vm1769_vm4, %v30721_v58, -inf }
0x1d90   :  { %v15366_v34 = vadd.f32 %v30696_v31, %v15365_v44  ;;  %16123 = vmax.xlane.f32.xlu0 %v16122_v38 }
0x1d92   :  { %v30729_v46 = vpack.c.bf16 %v15371_v47, %v15366_v34  ;;  %v24270_v29 = vpop.f32.mrb[54].mxu1 }
0x1d93   :  { %v15381_v11 = vadd.f32 %v24270_v29, %v30696_v31  ;;  %v15375_v61 = vpop.f32.mrb[55].mxu1  ;;  %v24297_v53 = vpop.f32.mrb[40].mxu0 }
0x1d94   :  { %v15376_v43 = vadd.f32 %v30696_v31, %v15375_v61  ;;  %v30733_v2 = vmul.f32 0.35355338, %v24297_v53  ;;  %25506 = vmatprep.subr.bf16.mxu0 %v30729_v46  ;;  %v15656_v56 = vpop.f32.mrb[41].mxu0 }
0x1d95   :  { %v30736_v22 = vmul.f32 0.35355338, %v15656_v56 }
0x1d96   :  { %v30738_v32 = vpack.c.bf16 %v15381_v11, %v15376_v43  ;;  %v24273_v35 = vpop.f32.mrb[56].mxu1  ;;  %v16131_v36 = vsel %vm1769_vm4, %v30733_v2, -inf }
0x1d97   :  { %v15391_v19 = vadd.f32 %v24273_v35, %v30696_v31  ;;  %v15385_v41 = vpop.f32.mrb[57].mxu1  ;;  %16132 = vmax.xlane.f32.xlu1 %v16131_v36  ;;  %v16128_v54 = vsel %vm1769_vm4, %v30736_v22, -inf }
0x1d98   :  { %v15386_v28 = vadd.f32 %v30696_v31, %v15385_v41  ;;  %16129 = vmax.xlane.f32.xlu0 %v16128_v54 }
0x1d9a   :  { %v30746_v50 = vpack.c.bf16 %v15391_v19, %v15386_v28  ;;  %v24276_v15 = vpop.f32.mrb[58].mxu1 }
0x1d9b   :  { %v15401_v40 = vadd.f32 %v24276_v15, %v30696_v31  ;;  %v15395_v37 = vpop.f32.mrb[59].mxu1  ;;  %v24304_v63 = vpop.f32.mrb[42].mxu0 }
0x1d9c   :  { %v15396_v51 = vadd.f32 %v30696_v31, %v15395_v37  ;;  %v30750_v10 = vmul.f32 0.35355338, %v24304_v63  ;;  %v15743_v17 = vpop.f32.mrb[43].mxu0 }
0x1d9d   :  { %v30752_v26 = vmul.f32 0.35355338, %v15743_v17 }
0x1d9e   :  { %v30754_v9 = vpack.c.bf16 %v15401_v40, %v15396_v51  ;;  %v24311_v33 = vpop.f32.mrb[60].mxu1  ;;  %v16137_v7 = vsel %vm1769_vm4, %v30750_v10, -inf }
0x1d9f   :  { %v30758_v16 = vmul.f32 0.35355338, %v24311_v33  ;;  %v15830_v8 = vpop.f32.mrb[61].mxu1  ;;  %16138 = vmax.xlane.f32.xlu1 %v16137_v7  ;;  %v16134_v5 = vsel %vm1769_vm4, %v30752_v26, -inf }
0x1da0   :  { %v30762_v20 = vmul.f32 0.35355338, %v15830_v8  ;;  %16135 = vmax.xlane.f32.xlu0 %v16134_v5 }
0x1da1   :  { %v16143_v31 = vsel %vm1769_vm4, %v30758_v16, -inf }
0x1da2   :  { %v16140_v30 = vsel %vm1769_vm4, %v30762_v20, -inf }
0x1da3   :  { %v24318_v4 = vpop.f32.mrb[44].mxu0  ;;  %16144 = vmax.xlane.f32.xlu1 %v16143_v31 }
0x1da4   :  { %v30768_v1 = vmul.f32 0.35355338, %v24318_v4  ;;  %v15917_v39 = vpop.f32.mrb[45].mxu0  ;;  %16141 = vmax.xlane.f32.xlu0 %v16140_v30 }
0x1da5   :  { %v30770_v47 = vmul.f32 0.35355338, %v15917_v39 }
0x1da6   :  { %v24325_v44 = vpop.f32.mrb[62].mxu1  ;;  %v16149_v38 = vsel %vm1769_vm4, %v30768_v1, -inf }
0x1da7   :  { %v30774_v34 = vmul.f32 0.35355338, %v24325_v44  ;;  %v16004_v29 = vpop.f32.mrb[63].mxu1  ;;  %16150 = vmax.xlane.f32.xlu1 %v16149_v38  ;;  %v16146_v11 = vsel %vm1769_vm4, %v30770_v47, -inf }
0x1da8   :  { %v30778_v61 = vmul.f32 0.35355338, %v16004_v29  ;;  %16147 = vmax.xlane.f32.xlu0 %v16146_v11 }
0x1da9   :  { %v16155_v53 = vsel %vm1769_vm4, %v30774_v34, -inf }
0x1daa   :  { %v16152_v56 = vsel %vm1769_vm4, %v30778_v61, -inf }
0x1dab   :  { %v24332_v43 = vpop.f32.mrb[46].mxu0  ;;  %16156 = vmax.xlane.f32.xlu1 %v16155_v53 }
0x1dac   :  { %v30784_v35 = vmul.f32 0.35355338, %v24332_v43  ;;  %v16091_v36 = vpop.f32.mrb[47].mxu0  ;;  %16153 = vmax.xlane.f32.xlu0 %v16152_v56 }
0x1dad   :  { %v30786_v19 = vmul.f32 0.35355338, %v16091_v36 }
0x1dae   :  { %v16161_v41 = vsel %vm1769_vm4, %v30784_v35, -inf }
0x1daf   :  { %16162 = vmax.xlane.f32.xlu1 %v16161_v41  ;;  %v16158_v54 = vsel %vm1769_vm4, %v30786_v19, -inf }
0x1db0   :  { %16159 = vmax.xlane.f32.xlu0 %v16158_v54 }
0x1e14   :  { %v16121_v28 = vpop.xlane.xlu1 %16120 }
0x1e15   :  { %v16165_v15 = vsub.f32 %v30704_v62, %v16121_v28  ;;  %v16118_v40 = vpop.xlane.xlu0 %16117 }
0x1e16   :  { %v16164_v37 = vsub.f32 %v30706_v23, %v16118_v40 }
0x1e17   :  { %v16182_v63 = vmul.f32 1.442695, %v16165_v15 }
0x1e18   :  { %v16180_v51 = vmul.f32 1.442695, %v16164_v37 }
0x1e19   :  { %26277 = vpow2.f32 %v16182_v63 }
0x1e1a   :  { %26279 = vpow2.f32 %v16180_v51 }
0x1e1c   :  { %v16127_v17 = vpop.xlane.xlu1 %16126 }
0x1e1d   :  { %v16167_v33 = vsub.f32 %v30717_v45, %v16127_v17  ;;  %v16124_v7 = vpop.xlane.xlu0 %16123 }
0x1e1e   :  { %v16166_v8 = vsub.f32 %v30721_v58, %v16124_v7 }
0x1e1f   :  { %v16186_v5 = vmul.f32 1.442695, %v16167_v33 }
0x1e20   :  { %v16184_v31 = vmul.f32 1.442695, %v16166_v8 }
0x1e21   :  { %26281 = vpow2.f32 %v16186_v5 }
0x1e22   :  { %26283 = vpow2.f32 %v16184_v31 }
0x1e23   :  { %v30796_v4 = vpop.eup %26277 }
0x1e24   :  { %v30798_v62 = vpop.eup %26279  ;;  %v16133_v30 = vpop.xlane.xlu1 %16132  ;;  %v16215_v23 = vsel %vm1769_vm4, %v30796_v4, 0.0 }
0x1e25   :  { %v16169_v39 = vsub.f32 %v30733_v2, %v16133_v30  ;;  %16216 = vadd.xlane.f32.xlu1 %v16215_v23  ;;  %v16130_v44 = vpop.xlane.xlu0 %16129  ;;  %v16212_v45 = vsel %vm1769_vm4, %v30798_v62, 0.0 }
0x1e26   :  { %v16168_v58 = vsub.f32 %v30736_v22, %v16130_v44  ;;  %16213 = vadd.xlane.f32.xlu0 %v16212_v45 }
0x1e27   :  { %v16190_v38 = vmul.f32 1.442695, %v16169_v39 }
0x1e28   :  { %v16188_v29 = vmul.f32 1.442695, %v16168_v58 }
0x1e29   :  { %26285 = vpow2.f32 %v16190_v38 }
0x1e2a   :  { %26287 = vpow2.f32 %v16188_v29 }
0x1e2b   :  { %v30806_v11 = vpop.eup %26281 }
0x1e2c   :  { %v30808_v53 = vpop.eup %26283  ;;  %v16139_v43 = vpop.xlane.xlu1 %16138  ;;  %v16221_v2 = vsel %vm1769_vm4, %v30806_v11, 0.0 }
0x1e2d   :  { %v16171_v56 = vsub.f32 %v30750_v10, %v16139_v43  ;;  %16222 = vadd.xlane.f32.xlu1 %v16221_v2  ;;  %v16136_v36 = vpop.xlane.xlu0 %16135  ;;  %v16218_v22 = vsel %vm1769_vm4, %v30808_v53, 0.0 }
0x1e2e   :  { %v16170_v41 = vsub.f32 %v30752_v26, %v16136_v36  ;;  %16219 = vadd.xlane.f32.xlu0 %v16218_v22 }
0x1e2f   :  { %v16194_v54 = vmul.f32 1.442695, %v16171_v56 }
0x1e30   :  { %v16192_v28 = vmul.f32 1.442695, %v16170_v41  ;;  %v16145_v15 = vpop.xlane.xlu1 %16144 }
0x1e31   :  { %26289 = vpow2.f32 %v16194_v54  ;;  %v16173_v40 = vsub.f32 %v30758_v16, %v16145_v15  ;;  %v16142_v37 = vpop.xlane.xlu0 %16141 }
0x1e32   :  { %26291 = vpow2.f32 %v16192_v28  ;;  %v16172_v63 = vsub.f32 %v30762_v20, %v16142_v37 }
0x1e33   :  { %v30818_v51 = vpop.eup %26285  ;;  %v16198_v10 = vmul.f32 1.442695, %v16173_v40 }
0x1e34   :  { %v30820_v17 = vpop.eup %26287  ;;  %v16196_v33 = vmul.f32 1.442695, %v16172_v63  ;;  %v16151_v7 = vpop.xlane.xlu1 %16150  ;;  %v16227_v26 = vsel %vm1769_vm4, %v30818_v51, 0.0 }
0x1e35   :  { %26293 = vpow2.f32 %v16198_v10  ;;  %v16175_v8 = vsub.f32 %v30768_v1, %v16151_v7  ;;  %16228 = vadd.xlane.f32.xlu1 %v16227_v26  ;;  %v16148_v5 = vpop.xlane.xlu0 %16147  ;;  %v16224_v16 = vsel %vm1769_vm4, %v30820_v17, 0.0 }
0x1e36   :  { %26295 = vpow2.f32 %v16196_v33  ;;  %v16174_v20 = vsub.f32 %v30770_v47, %v16148_v5  ;;  %16225 = vadd.xlane.f32.xlu0 %v16224_v16 }
0x1e37   :  { %v16202_v31 = vmul.f32 1.442695, %v16175_v8 }
0x1e38   :  { %v16200_v30 = vmul.f32 1.442695, %v16174_v20  ;;  %v16157_v23 = vpop.xlane.xlu1 %16156 }
0x1e39   :  { %26297 = vpow2.f32 %v16202_v31  ;;  %v16177_v39 = vsub.f32 %v30774_v34, %v16157_v23  ;;  %v16154_v44 = vpop.xlane.xlu0 %16153 }
0x1e3a   :  { %26299 = vpow2.f32 %v16200_v30  ;;  %v16176_v45 = vsub.f32 %v30778_v61, %v16154_v44 }
0x1e3b   :  { %v30830_v1 = vpop.eup %26289  ;;  %v16206_v58 = vmul.f32 1.442695, %v16177_v39 }
0x1e3c   :  { %v30832_v38 = vpop.eup %26291  ;;  %v16204_v29 = vmul.f32 1.442695, %v16176_v45  ;;  %v16163_v43 = vpop.xlane.xlu1 %16162  ;;  %v16233_v47 = vsel %vm1769_vm4, %v30830_v1, 0.0 }
0x1e3d   :  { %26301 = vpow2.f32 %v16206_v58  ;;  %v16179_v2 = vsub.f32 %v30784_v35, %v16163_v43  ;;  %16234 = vadd.xlane.f32.xlu1 %v16233_v47  ;;  %v16160_v56 = vpop.xlane.xlu0 %16159  ;;  %v16230_v34 = vsel %vm1769_vm4, %v30832_v38, 0.0 }
0x1e3e   :  { %26303 = vpow2.f32 %v16204_v29  ;;  %v16178_v61 = vsub.f32 %v30786_v19, %v16160_v56  ;;  %16231 = vadd.xlane.f32.xlu0 %v16230_v34 }
0x1e3f   :  { %v30840_v36 = vpop.eup %26293  ;;  %v16210_v22 = vmul.f32 1.442695, %v16179_v2 }
0x1e40   :  { %v30842_v41 = vpop.eup %26295  ;;  %v16208_v54 = vmul.f32 1.442695, %v16178_v61  ;;  %v16239_v28 = vsel %vm1769_vm4, %v30840_v36, 0.0 }
0x1e41   :  { %26305 = vpow2.f32 %v16210_v22  ;;  %16240 = vadd.xlane.f32.xlu1 %v16239_v28  ;;  %v16236_v35 = vsel %vm1769_vm4, %v30842_v41, 0.0 }
0x1e42   :  { %26307 = vpow2.f32 %v16208_v54  ;;  %16237 = vadd.xlane.f32.xlu0 %v16236_v35 }
0x1e43   :  { %v30848_v15 = vpop.eup %26297 }
0x1e44   :  { %v30850_v19 = vpop.eup %26299  ;;  %v16245_v40 = vsel %vm1769_vm4, %v30848_v15, 0.0 }
0x1e45   :  { %16246 = vadd.xlane.f32.xlu1 %v16245_v40  ;;  %v16242_v37 = vsel %vm1769_vm4, %v30850_v19, 0.0 }
0x1e46   :  { %16243 = vadd.xlane.f32.xlu0 %v16242_v37 }
0x1e47   :  { %v30856_v63 = vpop.eup %26301 }
0x1e48   :  { %v30858_v10 = vpop.eup %26303  ;;  %v16251_v33 = vsel %vm1769_vm4, %v30856_v63, 0.0 }
0x1e49   :  { %16252 = vadd.xlane.f32.xlu1 %v16251_v33  ;;  %v16248_v7 = vsel %vm1769_vm4, %v30858_v10, 0.0 }
0x1e4a   :  { %16249 = vadd.xlane.f32.xlu0 %v16248_v7 }
0x1e4b   :  { %v30864_v26 = vpop.eup %26305 }
0x1e4c   :  { %v30866_v8 = vpop.eup %26307  ;;  %v16257_v5 = vsel %vm1769_vm4, %v30864_v26, 0.0 }
0x1e4d   :  { %16258 = vadd.xlane.f32.xlu1 %v16257_v5  ;;  %v16254_v16 = vsel %vm1769_vm4, %v30866_v8, 0.0  ;;  %v21221_v5 = vld [vmem:[%s31815_s4 + $0x1e8] sm:$0xff] }
0x1e4e   :  { %16255 = vadd.xlane.f32.xlu0 %v16254_v16 }
0x1eb2   :  { %v16217_v20 = vpop.xlane.xlu1 %16216 }
0x1eb3   :  { %26309 = vrcp.f32 %v16217_v20  ;;  %v16214_v31 = vpop.xlane.xlu0 %16213 }
0x1eb4   :  { %26311 = vrcp.f32 %v16214_v31 }
0x1eba   :  { %v16223_v30 = vpop.xlane.xlu1 %16222 }
0x1ebb   :  { %26313 = vrcp.f32 %v16223_v30  ;;  %v16220_v23 = vpop.xlane.xlu0 %16219 }
0x1ebc   :  { %26315 = vrcp.f32 %v16220_v23 }
0x1ebd   :  { %v26310_v39 = vpop.eup %26309 }
0x1ebe   :  { %v26312_v44 = vpop.eup %26311  ;;  %v16263_v58 = vmul.f32 %v26310_v39, %v30796_v4 }
0x1ebf   :  { %v16261_v45 = vmul.f32 %v26312_v44, %v30798_v62 }
0x1ec1   :  { %24337 = vmatprep.mubr.msk.f32.mxu1 %vm1769_vm4, %v16261_v45  ;;  %v21223_v45 = vld [vmem:[%s31815_s4 + $0x1f8] sm:$0xff] }
0x1ec2   :  { %v16229_v29 = vpop.xlane.xlu1 %16228  ;;  %24338 = vmatmul.mubr.msk.f32.vlgmr.msra.gmra.mrb[64].mxu1 %vm1769_vm4, %v16263_v58 }
0x1ec3   :  { %26317 = vrcp.f32 %v16229_v29  ;;  %25496 = vmatpush3.bf16.msra.mxu1 %v30702_v6  ;;  %v16226_v43 = vpop.xlane.xlu0 %16225 }
0x1ec4   :  { %25502 = vmatprep.subr.bf16.mxu1 %v30719_v27  ;;  %26319 = vrcp.f32 %v16226_v43  ;;  %v21264_v43 = vld [vmem:[%s31815_s4 + $0x2e0] sm:$0xff] }
0x1ec5   :  { %v26314_v47 = vpop.eup %26313 }
0x1ec6   :  { %v26316_v2 = vpop.eup %26315  ;;  %v16267_v62 = vmul.f32 %v26314_v47, %v30806_v11  ;;  %v21265_v47 = vld [vmem:[%s31815_s4 + $0x2e8] sm:$0xff] }
0x1ec7   :  { %v16265_v56 = vmul.f32 %v26316_v2, %v30808_v53 }
0x1ec9   :  { %24344 = vmatprep.mubr.msk.f32.mxu1 %vm1769_vm4, %v16265_v56  ;;  %v21266_v56 = vld [vmem:[%s31815_s4 + $0x2f0] sm:$0xff] }
0x1eca   :  { %v16235_v4 = vpop.xlane.xlu1 %16234  ;;  %24345 = vmatmul.mubr.msk.f32.vlgmr.msra.gmra.mrb[66].mxu1 %vm1769_vm4, %v16267_v62  ;;  %v21267_v62 = vld [vmem:[%s31815_s4 + $0x2f8] sm:$0xff] }
0x1ecb   :  { %26321 = vrcp.f32 %v16235_v4  ;;  %25504 = vmatpush3.bf16.msra.mxu1 %v30719_v27  ;;  %v16232_v34 = vpop.xlane.xlu0 %16231  ;;  %v25541_v4 = vpack.c.bf16 %v21267_v62, %v21266_v56 }
0x1ecc   :  { %25510 = vmatprep.subr.bf16.mxu1 %v30738_v32  ;;  %26323 = vrcp.f32 %v16232_v34  ;;  %v21243_v34 = vld [vmem:[%s31815_s4 + $0x268] sm:$0xff] }
0x1ecd   :  { %v26318_v6 = vpop.eup %26317 }
0x1ece   :  { %v26320_v61 = vpop.eup %26319  ;;  %v16241_v22 = vpop.xlane.xlu1 %16240  ;;  %v16271_v11 = vmul.f32 %v26318_v6, %v30818_v51 }
0x1ecf   :  { %26325 = vrcp.f32 %v16241_v22  ;;  %v16238_v54 = vpop.xlane.xlu0 %16237  ;;  %v16269_v53 = vmul.f32 %v26320_v61, %v30820_v17  ;;  %v21244_v61 = vld [vmem:[%s31815_s4 + $0x270] sm:$0xff]  ;;  %v21245_v22 = vld [vmem:[%s31815_s4 + $0x278] sm:$0xff] }
0x1ed0   :  { %26327 = vrcp.f32 %v16238_v54 }
0x1ed1   :  { %24351 = vmatprep.mubr.msk.f32.mxu0 %vm1769_vm4, %v16269_v53 }
0x1ed2   :  { %v16247_v28 = vpop.xlane.xlu1 %16246  ;;  %24352 = vmatmul.mubr.msk.f32.vlgmr.msra.gmra.mrb[48].mxu0 %vm1769_vm4, %v16271_v11  ;;  %v25533_v11 = vpack.c.bf16 %v21245_v22, %v21244_v61 }
0x1ed3   :  { %26329 = vrcp.f32 %v16247_v28  ;;  %25508 = vmatpush3.bf16.msra.mxu0 %v30729_v46  ;;  %v16244_v27 = vpop.xlane.xlu0 %16243  ;;  %v21220_v46 = vld [vmem:[%s31815_s4 + $0x1e0] sm:$0xff] }
0x1ed4   :  { %25514 = vmatprep.subr.bf16.mxu0 %v30746_v50  ;;  %26331 = vrcp.f32 %v16244_v27  ;;  %v25521_v30 = vpack.c.bf16 %v21221_v5, %v21220_v46 }
0x1ed5   :  { %v26322_v35 = vpop.eup %26321 }
0x1ed6   :  { %v26324_v40 = vpop.eup %26323  ;;  %v16253_v37 = vpop.xlane.xlu1 %16252  ;;  %v16275_v33 = vmul.f32 %v26322_v35, %v30830_v1 }
0x1ed7   :  { %26333 = vrcp.f32 %v16253_v37  ;;  %v16250_v17 = vpop.xlane.xlu0 %16249  ;;  %v16273_v51 = vmul.f32 %v26324_v40, %v30832_v38 }
0x1ed8   :  { %26335 = vrcp.f32 %v16250_v17 }
0x1ed9   :  { %v26326_v7 = vpop.eup %26325  ;;  %24358 = vmatprep.mubr.msk.f32.mxu1 %vm1769_vm4, %v16273_v51 }
0x1eda   :  { %v26328_v16 = vpop.eup %26327  ;;  %v16259_v20 = vpop.xlane.xlu1 %16258  ;;  %24359 = vmatmul.mubr.msk.f32.vlgmr.msra.gmra.mrb[68].mxu1 %vm1769_vm4, %v16275_v33  ;;  %v16279_v31 = vmul.f32 %v26326_v7, %v30840_v36  ;;  %v21222_v36 = vld [vmem:[%s31815_s4 + $0x1f0] sm:$0xff] }
0x1edb   :  { %26337 = vrcp.f32 %v16259_v20  ;;  %25512 = vmatpush3.bf16.msra.mxu1 %v30738_v32  ;;  %v16256_v1 = vpop.xlane.xlu0 %16255  ;;  %v16277_v38 = vmul.f32 %v26328_v16, %v30842_v41 }
0x1edc   :  { %25518 = vmatprep.subr.bf16.mxu1 %v30754_v9  ;;  %26339 = vrcp.f32 %v16256_v1 }
0x1edd   :  { %v26330_v23 = vpop.eup %26329  ;;  %24365 = vmatprep.mubr.msk.f32.mxu0 %vm1769_vm4, %v16277_v38  ;;  %v21225_v38 = vld [vmem:[%s31817_s5 + $0xf] ss:$0 sm:$0xff] }
0x1ede   :  { %v26332_v39 = vpop.eup %26331  ;;  %24366 = vmatmul.mubr.msk.f32.vlgmr.msra.gmra.mrb[50].mxu0 %vm1769_vm4, %v16279_v31  ;;  %v16283_v32 = vmul.f32 %v26330_v23, %v30848_v15 }
0x1edf   :  { %25516 = vmatpush3.bf16.msra.mxu0 %v30746_v50  ;;  %v16281_v44 = vmul.f32 %v26332_v39, %v30850_v19  ;;  %v25525_v19 = vpack.c.bf16 %v21223_v45, %v21222_v36 }
0x1ee0   :  { %25522 = vmatprep.subr.bf16.mxu0 %v25521_v30 }
0x1ee1   :  { %v26334_v41 = vpop.eup %26333  ;;  %24372 = vmatprep.mubr.msk.f32.mxu1 %vm1769_vm4, %v16281_v44 }
0x1ee2   :  { %v26336_v58 = vpop.eup %26335  ;;  %24373 = vmatmul.mubr.msk.f32.vlgmr.msra.gmra.mrb[70].mxu1 %vm1769_vm4, %v16283_v32  ;;  %v16287_v15 = vmul.f32 %v26334_v41, %v30856_v63 }
0x1ee3   :  { %25520 = vmatpush3.bf16.msra.mxu1 %v30754_v9  ;;  %v16285_v50 = vmul.f32 %v26336_v58, %v30858_v10  ;;  %v25537_v10 = vpack.c.bf16 %v21265_v47, %v21264_v43 }
0x1ee5   :  { %v26338_v29 = vpop.eup %26337  ;;  %24379 = vmatprep.mubr.msk.f32.mxu0 %vm1769_vm4, %v16285_v50 }
0x1ee6   :  { %v26340_v2 = vpop.eup %26339  ;;  %24380 = vmatmul.mubr.msk.f32.vlgmr.msra.gmra.mrb[52].mxu0 %vm1769_vm4, %v16287_v15  ;;  %v16291_v63 = vmul.f32 %v26338_v29, %v30864_v26  ;;  %v21203_v26 = vld [vmem:[%s31818_s6 + $0x30] sm:$0xff] }
0x1ee7   :  { %25524 = vmatpush3.bf16.msra.mxu0 %v25521_v30  ;;  %24423 = vmatprep.mubr.msk.f32.mxu0 %vm282_vm1, %v29451_v3  ;;  %v16289_v9 = vmul.f32 %v26340_v2, %v30866_v8  ;;  %v21242_v8 = vld [vmem:[%s31815_s4 + $0x260] sm:$0xff] }
0x1ee8   :  { %25526 = vmatprep.subr.bf16.mxu0 %v25525_v19  ;;  %24389 = vmatprep.subr.mxu1 %v21203_v26  ;;  %v25529_v6 = vpack.c.bf16 %v21243_v34, %v21242_v8 }
0x1ee9   :  { %24386 = vmatprep.mubr.msk.f32.mxu1 %vm1769_vm4, %v16289_v9 }
0x1eea   :  { %24387 = vmatmul.mubr.msk.f32.vlgmr.msra.gmra.mrb[72].mxu1 %vm1769_vm4, %v16291_v63 }
0x1eeb   :  { %25528 = vmatpush3.bf16.msra.mxu0 %v25525_v19  ;;  %24390 = vmatpush3.msra.mxu1 %v21203_v26 }
0x1eec   :  { %25538 = vmatprep.subr.bf16.mxu0 %v25537_v10  ;;  %25530 = vmatprep.subr.bf16.mxu1 %v25529_v6 }
0x1eee   :  { %24424 = vmatmul.mubr.msk.f32.vlgmr.msra.gmra.mrb[54].mxu0 %vm282_vm1, %v29455_v0 }
0x1eef   :  { %24426 = vmatprep.mubr.msk.f32.mxu0 %vm282_vm1, %v29469_v18  ;;  %25540 = vmatpush3.bf16.msra.mxu0 %v25537_v10 }
0x1ef0   :  { %25542 = vmatprep.subr.bf16.mxu0 %v25541_v4 }
0x1ef2   :  { %24427 = vmatmul.mubr.msk.f32.gmra.mrb[56].mxu0 %vm282_vm1, %v29474_v55 }
0x1ef3   :  { %24429 = vmatprep.mubr.msk.f32.mxu0 %vm282_vm1, %v29488_v13  ;;  %25544 = vmatpush3.bf16.msra.mxu0 %v25541_v4 }
0x1ef6   :  { %24430 = vmatmul.mubr.msk.f32.gmra.mrb[58].mxu0 %vm282_vm1, %v29492_v25 }
0x1ef7   :  { %24432 = vmatprep.mubr.msk.f32.mxu0 %vm282_vm1, %v29506_v49 }
0x1efa   :  { %24433 = vmatmul.mubr.msk.f32.gmra.mrb[60].mxu0 %vm282_vm1, %v29510_v48 }
0x1efb   :  { %24435 = vmatprep.mubr.msk.f32.mxu0 %vm282_vm1, %v29524_v57 }
0x1efe   :  { %24436 = vmatmul.mubr.msk.f32.gmra.mrb[62].mxu0 %vm282_vm1, %v29528_v59 }
0x1eff   :  { %24438 = vmatprep.mubr.msk.f32.mxu0 %vm282_vm1, %v29542_v24 }
0x1f02   :  { %24439 = vmatmul.mubr.msk.f32.gmra.mrb[64].mxu0 %vm282_vm1, %v29546_v12 }
0x1f03   :  { %24441 = vmatprep.mubr.msk.f32.mxu0 %vm282_vm1, %v29560_v60 }
0x1f06   :  { %24442 = vmatmul.mubr.msk.f32.gmra.mrb[66].mxu0 %vm282_vm1, %v29564_v42 }
0x1f07   :  { %24444 = vmatprep.mubr.msk.f32.mxu0 %vm282_vm1, %v29577_v52 }
0x1f0a   :  { %24445 = vmatmul.mubr.msk.f32.gmra.mrb[68].mxu0 %vm282_vm1, %v29580_v14 }
0x1f0b   :  { %24487 = vmatprep.mubr.msk.f32.mxu0 %vm282_vm1, %v29451_v3 }
0x1f0e   :  { %24488 = vmatmul.mubr.msk.f32.vlgmr.msra.gmra.mrb[70].mxu0 %vm282_vm1, %v29455_v0 }
0x1f0f   :  { %24490 = vmatprep.mubr.msk.f32.mxu0 %vm282_vm1, %v29469_v18 }
0x1f12   :  { %24491 = vmatmul.mubr.msk.f32.gmra.mrb[72].mxu0 %vm282_vm1, %v29474_v55 }
0x1f13   :  { %24493 = vmatprep.mubr.msk.f32.mxu0 %vm282_vm1, %v29488_v13 }
0x1f16   :  { %24494 = vmatmul.mubr.msk.f32.gmra.mrb[74].mxu0 %vm282_vm1, %v29492_v25 }
0x1f17   :  { %24496 = vmatprep.mubr.msk.f32.mxu0 %vm282_vm1, %v29506_v49 }
0x1f1a   :  { %24497 = vmatmul.mubr.msk.f32.gmra.mrb[76].mxu0 %vm282_vm1, %v29510_v48 }
0x1f1b   :  { %24499 = vmatprep.mubr.msk.f32.mxu0 %vm282_vm1, %v29524_v57 }
0x1f1e   :  { %24500 = vmatmul.mubr.msk.f32.gmra.mrb[78].mxu0 %vm282_vm1, %v29528_v59 }
0x1f1f   :  { %24502 = vmatprep.mubr.msk.f32.mxu0 %vm282_vm1, %v29542_v24 }
0x1f22   :  { %24503 = vmatmul.mubr.msk.f32.gmra.mrb[80].mxu0 %vm282_vm1, %v29546_v12 }
0x1f23   :  { %24505 = vmatprep.mubr.msk.f32.mxu0 %vm282_vm1, %v29560_v60 }
0x1f26   :  { %24506 = vmatmul.mubr.msk.f32.gmra.mrb[82].mxu0 %vm282_vm1, %v29564_v42 }
0x1f27   :  { %24508 = vmatprep.mubr.msk.f32.mxu0 %vm282_vm1, %v29577_v52 }
0x1f2a   :  { %24509 = vmatmul.mubr.msk.f32.gmra.mrb[84].mxu0 %vm282_vm1, %v29580_v14 }
0x1f95   :  { %v24339_v54 = vpop.f32.mrb[64].mxu1 }
0x1f96   :  { %v16364_v53 = vpop.f32.mrb[65].mxu1 }
0x1f97   :  { %24391 = vmatprep.mubr.msk.f32.mxu1 %vm1056_vm2, %v16364_v53 }
0x1f98   :  { %24392 = vmatmul.mubr.msk.f32.vlgmr.msra.gmra.mrb[28].mxu1 %vm1056_vm2, %v24339_v54 }
0x1f99   :  { %25532 = vmatpush3.bf16.msra.mxu1 %v25529_v6 }
0x1f9a   :  { %25534 = vmatprep.subr.bf16.mxu1 %v25533_v11 }
0x1f9d   :  { %v24346_v28 = vpop.f32.mrb[66].mxu1  ;;  %25536 = vmatpush3.bf16.msra.mxu1 %v25533_v11 }
0x1f9e   :  { %v16445_v27 = vpop.f32.mrb[67].mxu1 }
0x1f9f   :  { %24394 = vmatprep.mubr.msk.f32.mxu1 %vm1056_vm2, %v16445_v27 }
0x1fa0   :  { %24395 = vmatmul.mubr.msk.f32.gmra.mrb[30].mxu1 %vm1056_vm2, %v24346_v28 }
0x1fa5   :  { %v24353_v35 = vpop.f32.mrb[48].mxu0 }
0x1fa6   :  { %v16526_v40 = vpop.f32.mrb[49].mxu0 }
0x1fa7   :  { %24397 = vmatprep.mubr.msk.f32.mxu1 %vm1056_vm2, %v16526_v40 }
0x1fa8   :  { %24398 = vmatmul.mubr.msk.f32.gmra.mrb[32].mxu1 %vm1056_vm2, %v24353_v35 }
0x1fad   :  { %v24360_v37 = vpop.f32.mrb[68].mxu1 }
0x1fae   :  { %v16607_v17 = vpop.f32.mrb[69].mxu1 }
0x1faf   :  { %24400 = vmatprep.mubr.msk.f32.mxu1 %vm1056_vm2, %v16607_v17 }
0x1fb0   :  { %24401 = vmatmul.mubr.msk.f32.gmra.mrb[34].mxu1 %vm1056_vm2, %v24360_v37 }
0x1fb1   :  { %v24367_v51 = vpop.f32.mrb[50].mxu0 }
0x1fb2   :  { %v16688_v33 = vpop.f32.mrb[51].mxu0 }
0x1fb3   :  { %24403 = vmatprep.mubr.msk.f32.mxu1 %vm1056_vm2, %v16688_v33 }
0x1fb4   :  { %24404 = vmatmul.mubr.msk.f32.gmra.mrb[36].mxu1 %vm1056_vm2, %v24367_v51 }
0x1fb5   :  { %v24374_v7 = vpop.f32.mrb[70].mxu1 }
0x1fb6   :  { %v16769_v46 = vpop.f32.mrb[71].mxu1 }
0x1fb7   :  { %24406 = vmatprep.mubr.msk.f32.mxu1 %vm1056_vm2, %v16769_v46 }
0x1fb8   :  { %24407 = vmatmul.mubr.msk.f32.gmra.mrb[38].mxu1 %vm1056_vm2, %v24374_v7 }
0x1fb9   :  { %v24381_v5 = vpop.f32.mrb[52].mxu0 }
0x1fba   :  { %v16850_v16 = vpop.f32.mrb[53].mxu0 }
0x1fbb   :  { %24409 = vmatprep.mubr.msk.f32.mxu1 %vm1056_vm2, %v16850_v16 }
0x1fbc   :  { %24410 = vmatmul.mubr.msk.f32.gmra.mrb[40].mxu1 %vm1056_vm2, %v24381_v5 }
0x1fbd   :  { %v24388_v20 = vpop.f32.mrb[72].mxu1 }
0x1fbe   :  { %v16931_v1 = vpop.f32.mrb[73].mxu1 }
0x1fbf   :  { %24412 = vmatprep.mubr.msk.f32.mxu1 %vm1056_vm2, %v16931_v1 }
0x1fc0   :  { %24413 = vmatmul.mubr.msk.f32.gmra.mrb[42].mxu1 %vm1056_vm2, %v24388_v20 }
0x1fc1   :  { %v24425_v31 = vpop.f32.mrb[54].mxu0  ;;  %24455 = vmatprep.mubr.msk.f32.mxu1 %vm282_vm1, %v29451_v3 }
0x1fc2   :  { %v31038_v30 = vadd.f32 %v24425_v31, %v21225_v38  ;;  %v17230_v23 = vpop.f32.mrb[55].mxu0 }
0x1fc4   :  { %24456 = vmatmul.mubr.msk.f32.vlgmr.msra.gmra.mrb[74].mxu1 %vm282_vm1, %v29455_v0 }
0x1fc5   :  { %v24428_v39 = vpop.f32.mrb[56].mxu0  ;;  %24458 = vmatprep.mubr.msk.f32.mxu1 %vm282_vm1, %v29469_v18 }
0x1fc6   :  { %v31044_v44 = vadd.f32 %v24428_v39, %v21225_v38  ;;  %v17240_v32 = vpop.f32.mrb[57].mxu0 }
0x1fc7   :  { %v17241_v41 = vadd.f32 %v21225_v38, %v17240_v32 }
0x1fc8   :  { %24459 = vmatmul.mubr.msk.f32.gmra.mrb[76].mxu1 %vm282_vm1, %v29474_v55 }
0x1fc9   :  { %v24431_v36 = vpop.f32.mrb[58].mxu0  ;;  %24522 = vmatprep.mubr.msk.f32.mxu0 %vm1056_vm2, %v17241_v41  ;;  %24461 = vmatprep.mubr.msk.f32.mxu1 %vm282_vm1, %v29488_v13 }
0x1fca   :  { %v31051_v3 = vadd.f32 %v24431_v36, %v21225_v38  ;;  %v17250_v0 = vpop.f32.mrb[59].mxu0 }
0x1fcb   :  { %v31053_v45 = vadd.f32 %v21225_v38, %v17250_v0 }
0x1fcc   :  { %24462 = vmatmul.mubr.msk.f32.gmra.mrb[78].mxu1 %vm282_vm1, %v29492_v25 }
0x1fcd   :  { %v24434_v18 = vpop.f32.mrb[60].mxu0  ;;  %24464 = vmatprep.mubr.msk.f32.mxu1 %vm282_vm1, %v29506_v49 }
0x1fce   :  { %v31059_v58 = vadd.f32 %v24434_v18, %v21225_v38  ;;  %v17260_v55 = vpop.f32.mrb[61].mxu0 }
0x1fcf   :  { %v31061_v50 = vadd.f32 %v21225_v38, %v17260_v55 }
0x1fd0   :  { %24465 = vmatmul.mubr.msk.f32.gmra.mrb[80].mxu1 %vm282_vm1, %v29510_v48 }
0x1fd1   :  { %v24437_v13 = vpop.f32.mrb[62].mxu0  ;;  %24467 = vmatprep.mubr.msk.f32.mxu1 %vm282_vm1, %v29524_v57 }
0x1fd2   :  { %v31067_v15 = vadd.f32 %v24437_v13, %v21225_v38  ;;  %v17270_v19 = vpop.f32.mrb[63].mxu0 }
0x1fd3   :  { %v31069_v25 = vadd.f32 %v21225_v38, %v17270_v19  ;;  %v21247_v19 = vld [vmem:[%s31817_s5 + $0x13] ss:$0 sm:$0xff] }
0x1fd4   :  { %24468 = vmatmul.mubr.msk.f32.gmra.mrb[82].mxu1 %vm282_vm1, %v29528_v59 }
0x1fd5   :  { %v24440_v49 = vpop.f32.mrb[64].mxu0  ;;  %24470 = vmatprep.mubr.msk.f32.mxu1 %vm282_vm1, %v29542_v24 }
0x1fd6   :  { %v31075_v29 = vadd.f32 %v24440_v49, %v21225_v38  ;;  %v17280_v43 = vpop.f32.mrb[65].mxu0 }
0x1fd7   :  { %v31077_v48 = vadd.f32 %v21225_v38, %v17280_v43 }
0x1fd8   :  { %24471 = vmatmul.mubr.msk.f32.gmra.mrb[84].mxu1 %vm282_vm1, %v29546_v12  ;;  %v17231_v12 = vadd.f32 %v21225_v38, %v17230_v23 }
0x1fd9   :  { %v24443_v57 = vpop.f32.mrb[66].mxu0  ;;  %24473 = vmatprep.mubr.msk.f32.mxu1 %vm282_vm1, %v29560_v60  ;;  %v21269_v60 = vld [vmem:[%s31817_s5 + $0x17] ss:$0 sm:$0xff] }
0x1fda   :  { %v31083_v47 = vadd.f32 %v24443_v57, %v21225_v38  ;;  %v17290_v2 = vpop.f32.mrb[67].mxu0 }
0x1fdb   :  { %v31085_v59 = vadd.f32 %v21225_v38, %v17290_v2 }
0x1fdc   :  { %24474 = vmatmul.mubr.msk.f32.gmra.mrb[86].mxu1 %vm282_vm1, %v29564_v42 }
0x1fdd   :  { %v24446_v24 = vpop.f32.mrb[68].mxu0  ;;  %24476 = vmatprep.mubr.msk.f32.mxu1 %vm282_vm1, %v29577_v52 }
0x1fde   :  { %v31091_v9 = vadd.f32 %v24446_v24, %v21225_v38  ;;  %v17300_v63 = vpop.f32.mrb[69].mxu0 }
0x1fdf   :  { %v31093_v10 = vadd.f32 %v21225_v38, %v17300_v63 }
0x1fe0   :  { %24477 = vmatmul.mubr.msk.f32.gmra.mrb[88].mxu1 %vm282_vm1, %v29580_v14 }
0x1fe1   :  { %v24489_v56 = vpop.f32.mrb[70].mxu0  ;;  %24515 = vmatprep.mubr.msk.f32.mxu1 %vm1056_vm2, %v17231_v12 }
0x1fe2   :  { %v17552_v42 = vadd.f32 %v24489_v56, %v21269_v60  ;;  %v17546_v62 = vpop.f32.mrb[71].mxu0 }
0x1fe3   :  { %v17547_v4 = vadd.f32 %v21269_v60, %v17546_v62 }
0x1fe5   :  { %v31101_v52 = vpack.c.bf16 %v17552_v42, %v17547_v4  ;;  %v24492_v26 = vpop.f32.mrb[72].mxu0 }
0x1fe6   :  { %v17562_v8 = vadd.f32 %v24492_v26, %v21269_v60  ;;  %v17556_v34 = vpop.f32.mrb[73].mxu0 }
0x1fe7   :  { %v17557_v6 = vadd.f32 %v21269_v60, %v17556_v34 }
0x1fe9   :  { %v31103_v61 = vpack.c.bf16 %v17562_v8, %v17557_v6  ;;  %v24495_v22 = vpop.f32.mrb[74].mxu0 }
0x1fea   :  { %v17572_v54 = vadd.f32 %v24495_v22, %v21269_v60  ;;  %v17566_v53 = vpop.f32.mrb[75].mxu0 }
0x1feb   :  { %v17567_v11 = vadd.f32 %v21269_v60, %v17566_v53 }
0x1fed   :  { %v31105_v28 = vpack.c.bf16 %v17572_v54, %v17567_v11  ;;  %v24498_v14 = vpop.f32.mrb[76].mxu0 }
0x1fee   :  { %v17582_v27 = vadd.f32 %v24498_v14, %v21269_v60  ;;  %v17576_v35 = vpop.f32.mrb[77].mxu0 }
0x1fef   :  { %v17577_v40 = vadd.f32 %v21269_v60, %v17576_v35 }
0x1ff1   :  { %v31107_v37 = vpack.c.bf16 %v17582_v27, %v17577_v40  ;;  %v24501_v17 = vpop.f32.mrb[78].mxu0 }
0x1ff2   :  { %v17592_v51 = vadd.f32 %v24501_v17, %v21269_v60  ;;  %v17586_v33 = vpop.f32.mrb[79].mxu0 }
0x1ff3   :  { %v17587_v7 = vadd.f32 %v21269_v60, %v17586_v33 }
0x1ff5   :  { %v31109_v46 = vpack.c.bf16 %v17592_v51, %v17587_v7  ;;  %v24504_v5 = vpop.f32.mrb[80].mxu0 }
0x1ff6   :  { %v17602_v16 = vadd.f32 %v24504_v5, %v21269_v60  ;;  %v17596_v20 = vpop.f32.mrb[81].mxu0 }
0x1ff7   :  { %v17597_v1 = vadd.f32 %v21269_v60, %v17596_v20 }
0x1ff9   :  { %v31111_v38 = vpack.c.bf16 %v17602_v16, %v17597_v1  ;;  %v24507_v31 = vpop.f32.mrb[82].mxu0 }
0x1ffa   :  { %v17612_v23 = vadd.f32 %v24507_v31, %v21269_v60  ;;  %v17606_v39 = vpop.f32.mrb[83].mxu0 }
0x1ffb   :  { %v17607_v32 = vadd.f32 %v21269_v60, %v17606_v39 }
0x1ffd   :  { %v31113_v41 = vpack.c.bf16 %v17612_v23, %v17607_v32  ;;  %v24510_v36 = vpop.f32.mrb[84].mxu0 }
0x1ffe   :  { %v17622_v0 = vadd.f32 %v24510_v36, %v21269_v60  ;;  %v17616_v18 = vpop.f32.mrb[85].mxu0 }
0x1fff   :  { %v17617_v55 = vadd.f32 %v21269_v60, %v17616_v18 }
0x2001   :  { %v31115_v13 = vpack.c.bf16 %v17622_v0, %v17617_v55 }
0x2097   :  { %v24457_v49 = vpop.f32.mrb[74].mxu1 }
0x2098   :  { %v17394_v43 = vadd.f32 %v24457_v49, %v21247_v19  ;;  %v17388_v57 = vpop.f32.mrb[75].mxu1 }
0x2099   :  { %v17389_v2 = vadd.f32 %v21247_v19, %v17388_v57 }
0x209b   :  { %v25545_v24 = vpack.c.bf16 %v17394_v43, %v17389_v2  ;;  %v24460_v63 = vpop.f32.mrb[76].mxu1 }
0x209c   :  { %v17404_v12 = vadd.f32 %v24460_v63, %v21247_v19  ;;  %v17398_v56 = vpop.f32.mrb[77].mxu1 }
0x209d   :  { %v17399_v42 = vadd.f32 %v21247_v19, %v17398_v56  ;;  %25547 = vmatprep.subr.msk.bf16.mxu1 %vm27043_vm3, %v25545_v24 }
0x209e   :  { %25550 = vmatpush3.bf16.xpose.msk.msra.mxu1 %vm27043_vm3, %v25545_v24 }
0x209f   :  { %v25551_v60 = vpack.c.bf16 %v17404_v12, %v17399_v42  ;;  %v24463_v62 = vpop.f32.mrb[78].mxu1 }
0x20a0   :  { %v17414_v4 = vadd.f32 %v24463_v62, %v21247_v19  ;;  %v17408_v26 = vpop.f32.mrb[79].mxu1 }
0x20a1   :  { %v17409_v8 = vadd.f32 %v21247_v19, %v17408_v26  ;;  %25553 = vmatprep.subr.msk.bf16.mxu0 %vm27043_vm3, %v25551_v60 }
0x20a2   :  { %25556 = vmatpush3.bf16.xpose.msk.msra.mxu0 %vm27043_vm3, %v25551_v60 }
0x20a3   :  { %v25557_v34 = vpack.c.bf16 %v17414_v4, %v17409_v8  ;;  %v24466_v6 = vpop.f32.mrb[80].mxu1 }
0x20a4   :  { %v17424_v22 = vadd.f32 %v24466_v6, %v21247_v19  ;;  %v17418_v54 = vpop.f32.mrb[81].mxu1 }
0x20a5   :  { %v17419_v53 = vadd.f32 %v21247_v19, %v17418_v54  ;;  %24516 = vmatmul.mubr.msk.f32.vlgmr.msra.gmra.mrb[90].mxu1 %vm1056_vm2, %v31038_v30  ;;  %25559 = vmatprep.subr.msk.bf16.mxu1 %vm27043_vm3, %v25557_v34 }
0x20a6   :  { %25562 = vmatpush3.bf16.xpose.msk.msra.mxu1 %vm27043_vm3, %v25557_v34  ;;  %24529 = vmatprep.mubr.msk.f32.mxu1 %vm1056_vm2, %v31053_v45 }
0x20a7   :  { %v25563_v11 = vpack.c.bf16 %v17424_v22, %v17419_v53  ;;  %v24469_v14 = vpop.f32.mrb[82].mxu1 }
0x20a8   :  { %v17434_v27 = vadd.f32 %v24469_v14, %v21247_v19  ;;  %v17428_v35 = vpop.f32.mrb[83].mxu1 }
0x20a9   :  { %v17429_v40 = vadd.f32 %v21247_v19, %v17428_v35  ;;  %24523 = vmatmul.mubr.msk.f32.vlgmr.msra.gmra.mrb[86].mxu0 %vm1056_vm2, %v31044_v44  ;;  %25565 = vmatprep.subr.msk.bf16.mxu0 %vm27043_vm3, %v25563_v11 }
0x20aa   :  { %25568 = vmatpush3.bf16.xpose.msk.msra.mxu0 %vm27043_vm3, %v25563_v11  ;;  %24536 = vmatprep.mubr.msk.f32.mxu0 %vm1056_vm2, %v31061_v50 }
0x20ab   :  { %v25569_v30 = vpack.c.bf16 %v17434_v27, %v17429_v40  ;;  %v24472_v17 = vpop.f32.mrb[84].mxu1 }
0x20ac   :  { %v17444_v45 = vadd.f32 %v24472_v17, %v21247_v19  ;;  %v17438_v51 = vpop.f32.mrb[85].mxu1 }
0x20ad   :  { %v17439_v33 = vadd.f32 %v21247_v19, %v17438_v51  ;;  %24530 = vmatmul.mubr.msk.f32.vlgmr.msra.gmra.mrb[92].mxu1 %vm1056_vm2, %v31051_v3  ;;  %25571 = vmatprep.subr.msk.bf16.mxu1 %vm27043_vm3, %v25569_v30 }
0x20ae   :  { %25574 = vmatpush3.bf16.xpose.msk.msra.mxu1 %vm27043_vm3, %v25569_v30  ;;  %24543 = vmatprep.mubr.msk.f32.mxu1 %vm1056_vm2, %v31069_v25 }
0x20af   :  { %v25575_v44 = vpack.c.bf16 %v17444_v45, %v17439_v33  ;;  %v24475_v7 = vpop.f32.mrb[86].mxu1 }
0x20b0   :  { %v17454_v50 = vadd.f32 %v24475_v7, %v21247_v19  ;;  %v17448_v5 = vpop.f32.mrb[87].mxu1 }
0x20b1   :  { %v17449_v16 = vadd.f32 %v21247_v19, %v17448_v5  ;;  %24537 = vmatmul.mubr.msk.f32.vlgmr.msra.gmra.mrb[88].mxu0 %vm1056_vm2, %v31059_v58  ;;  %25577 = vmatprep.subr.msk.bf16.mxu0 %vm27043_vm3, %v25575_v44 }
0x20b2   :  { %25580 = vmatpush3.bf16.xpose.msk.msra.mxu0 %vm27043_vm3, %v25575_v44  ;;  %24550 = vmatprep.mubr.msk.f32.mxu0 %vm1056_vm2, %v31077_v48 }
0x20b3   :  { %v25581_v3 = vpack.c.bf16 %v17454_v50, %v17449_v16  ;;  %v24478_v20 = vpop.f32.mrb[88].mxu1 }
0x20b4   :  { %v17464_v25 = vadd.f32 %v24478_v20, %v21247_v19  ;;  %v17458_v1 = vpop.f32.mrb[89].mxu1 }
0x20b5   :  { %v17459_v31 = vadd.f32 %v21247_v19, %v17458_v1  ;;  %24544 = vmatmul.mubr.msk.f32.vlgmr.msra.gmra.mrb[94].mxu1 %vm1056_vm2, %v31067_v15  ;;  %25583 = vmatprep.subr.msk.bf16.mxu1 %vm27043_vm3, %v25581_v3 }
0x20b6   :  { %25586 = vmatpush3.bf16.xpose.msk.msra.mxu1 %vm27043_vm3, %v25581_v3  ;;  %24557 = vmatprep.mubr.msk.f32.mxu1 %vm1056_vm2, %v31085_v59 }
0x20b7   :  { %v25587_v58 = vpack.c.bf16 %v17464_v25, %v17459_v31  ;;  %25594 = vmatprep.subr.bf16.mxu1 %v31101_v52 }
0x20b9   :  { %24551 = vmatmul.mubr.msk.f32.vlgmr.msra.gmra.mrb[90].mxu0 %vm1056_vm2, %v31075_v29  ;;  %25589 = vmatprep.subr.msk.bf16.mxu0 %vm27043_vm3, %v25587_v58 }
0x20ba   :  { %25592 = vmatpush3.bf16.xpose.msk.msra.mxu0 %vm27043_vm3, %v25587_v58  ;;  %24564 = vmatprep.mubr.msk.f32.mxu0 %vm1056_vm2, %v31093_v10 }
0x20bb   :  { %25598 = vmatprep.subr.bf16.mxu0 %v31103_v61 }
0x20bd   :  { %24558 = vmatmul.mubr.msk.f32.vlgmr.msra.gmra.mrb[96].mxu1 %vm1056_vm2, %v31083_v47 }
0x20be   :  { %25596 = vmatpush3.bf16.msra.mxu1 %v31101_v52 }
0x20bf   :  { %25602 = vmatprep.subr.bf16.mxu1 %v31105_v28 }
0x20c1   :  { %24565 = vmatmul.mubr.msk.f32.vlgmr.msra.gmra.mrb[92].mxu0 %vm1056_vm2, %v31091_v9 }
0x20c2   :  { %25600 = vmatpush3.bf16.msra.mxu0 %v31103_v61 }
0x20c3   :  { %25606 = vmatprep.subr.bf16.mxu0 %v31107_v37 }
0x2178   :  { %v24517_v21 = vpop.f32.mrb[90].mxu1 }
0x2179   :  { %v31186_v15 = vmul.f32 0.35355338, %v24517_v21  ;;  %v17703_v29 = vpop.f32.mrb[91].mxu1 }
0x217a   :  { %v31188_v48 = vmul.f32 0.35355338, %v17703_v29 }
0x217b   :  { %v18340_v47 = vsel %vm1769_vm4, %v31186_v15, -inf }
0x217c   :  { %v24524_v59 = vpop.f32.mrb[86].mxu0  ;;  %18341 = vmax.xlane.f32.xlu1 %v18340_v47  ;;  %v18337_v10 = vsel %vm1769_vm4, %v31188_v48, -inf }
0x217d   :  { %v31194_v52 = vmul.f32 0.35355338, %v24524_v59  ;;  %v17790_v9 = vpop.f32.mrb[87].mxu0  ;;  %18338 = vmax.xlane.f32.xlu0 %v18337_v10 }
0x217e   :  { %v31196_v61 = vmul.f32 0.35355338, %v17790_v9 }
0x217f   :  { %v18346_v23 = vsel %vm1769_vm4, %v31194_v52, -inf }
0x2180   :  { %18347 = vmax.xlane.f32.xlu1 %v18346_v23  ;;  %v24531_v39 = vpop.f32.mrb[92].mxu1  ;;  %v18343_v32 = vsel %vm1769_vm4, %v31196_v61, -inf }
0x2181   :  { %v31202_v36 = vmul.f32 0.35355338, %v24531_v39  ;;  %18344 = vmax.xlane.f32.xlu0 %v18343_v32  ;;  %v17877_v0 = vpop.f32.mrb[93].mxu1 }
0x2182   :  { %v31204_v18 = vmul.f32 0.35355338, %v17877_v0 }
0x2183   :  { %v18352_v55 = vsel %vm1769_vm4, %v31202_v36, -inf }
0x2184   :  { %v24538_v19 = vpop.f32.mrb[88].mxu0  ;;  %18353 = vmax.xlane.f32.xlu1 %v18352_v55  ;;  %v18349_v49 = vsel %vm1769_vm4, %v31204_v18, -inf }
0x2185   :  { %v31210_v43 = vmul.f32 0.35355338, %v24538_v19  ;;  %v17964_v57 = vpop.f32.mrb[89].mxu0  ;;  %18350 = vmax.xlane.f32.xlu0 %v18349_v49 }
0x2186   :  { %v31212_v2 = vmul.f32 0.35355338, %v17964_v57 }
0x2187   :  { %v18358_v24 = vsel %vm1769_vm4, %v31210_v43, -inf }
0x2188   :  { %18359 = vmax.xlane.f32.xlu1 %v18358_v24  ;;  %v24545_v63 = vpop.f32.mrb[94].mxu1  ;;  %v18355_v12 = vsel %vm1769_vm4, %v31212_v2, -inf }
0x2189   :  { %v31218_v56 = vmul.f32 0.35355338, %v24545_v63  ;;  %18356 = vmax.xlane.f32.xlu0 %v18355_v12  ;;  %v18051_v42 = vpop.f32.mrb[95].mxu1 }
0x218a   :  { %v31220_v60 = vmul.f32 0.35355338, %v18051_v42 }
0x218b   :  { %v18364_v62 = vsel %vm1769_vm4, %v31218_v56, -inf }
0x218c   :  { %v24552_v4 = vpop.f32.mrb[90].mxu0  ;;  %18365 = vmax.xlane.f32.xlu1 %v18364_v62  ;;  %v18361_v26 = vsel %vm1769_vm4, %v31220_v60, -inf }
0x218d   :  { %v31226_v8 = vmul.f32 0.35355338, %v24552_v4  ;;  %v18138_v34 = vpop.f32.mrb[91].mxu0  ;;  %18362 = vmax.xlane.f32.xlu0 %v18361_v26 }
0x218e   :  { %v31228_v6 = vmul.f32 0.35355338, %v18138_v34 }
0x218f   :  { %v18370_v22 = vsel %vm1769_vm4, %v31226_v8, -inf }
0x2190   :  { %18371 = vmax.xlane.f32.xlu1 %v18370_v22  ;;  %v24559_v54 = vpop.f32.mrb[96].mxu1  ;;  %v18367_v53 = vsel %vm1769_vm4, %v31228_v6, -inf }
0x2191   :  { %v31234_v11 = vmul.f32 0.35355338, %v24559_v54  ;;  %18368 = vmax.xlane.f32.xlu0 %v18367_v53  ;;  %v18225_v14 = vpop.f32.mrb[97].mxu1 }
0x2192   :  { %v31236_v27 = vmul.f32 0.35355338, %v18225_v14 }
0x2193   :  { %v18376_v35 = vsel %vm1769_vm4, %v31234_v11, -inf }
0x2194   :  { %v24566_v40 = vpop.f32.mrb[92].mxu0  ;;  %18377 = vmax.xlane.f32.xlu1 %v18376_v35  ;;  %v18373_v30 = vsel %vm1769_vm4, %v31236_v27, -inf }
0x2195   :  { %v31242_v17 = vmul.f32 0.35355338, %v24566_v40  ;;  %v18312_v45 = vpop.f32.mrb[93].mxu0  ;;  %18374 = vmax.xlane.f32.xlu0 %v18373_v30 }
0x2196   :  { %v31244_v51 = vmul.f32 0.35355338, %v18312_v45 }
0x2197   :  { %v18382_v33 = vsel %vm1769_vm4, %v31242_v17, -inf }
0x2198   :  { %18383 = vmax.xlane.f32.xlu1 %v18382_v33  ;;  %v18379_v44 = vsel %vm1769_vm4, %v31244_v51, -inf }
0x2199   :  { %18380 = vmax.xlane.f32.xlu0 %v18379_v44 }
0x2209   :  { %v18342_v7 = vpop.xlane.xlu1 %18341 }
0x220a   :  { %v18386_v50 = vsub.f32 %v31186_v15, %v18342_v7  ;;  %v18339_v5 = vpop.xlane.xlu0 %18338 }
0x220b   :  { %v18385_v16 = vsub.f32 %v31188_v48, %v18339_v5 }
0x220c   :  { %v18403_v3 = vmul.f32 1.442695, %v18386_v50 }
0x220d   :  { %v18401_v20 = vmul.f32 1.442695, %v18385_v16  ;;  %v18348_v25 = vpop.xlane.xlu1 %18347 }
0x220e   :  { %26341 = vpow2.f32 %v18403_v3  ;;  %v18388_v1 = vsub.f32 %v31194_v52, %v18348_v25  ;;  %v18345_v31 = vpop.xlane.xlu0 %18344 }
0x220f   :  { %26343 = vpow2.f32 %v18401_v20  ;;  %v18387_v58 = vsub.f32 %v31196_v61, %v18345_v31 }
0x2210   :  { %v18407_v21 = vmul.f32 1.442695, %v18388_v1 }
0x2211   :  { %v18405_v29 = vmul.f32 1.442695, %v18387_v58  ;;  %v18354_v47 = vpop.xlane.xlu1 %18353 }
0x2212   :  { %26345 = vpow2.f32 %v18407_v21  ;;  %v18390_v59 = vsub.f32 %v31202_v36, %v18354_v47  ;;  %v18351_v15 = vpop.xlane.xlu0 %18350 }
0x2213   :  { %26347 = vpow2.f32 %v18405_v29  ;;  %v18389_v48 = vsub.f32 %v31204_v18, %v18351_v15 }
0x2214   :  { %v18411_v10 = vmul.f32 1.442695, %v18390_v59 }
0x2215   :  { %v18409_v9 = vmul.f32 1.442695, %v18389_v48  ;;  %v18360_v23 = vpop.xlane.xlu1 %18359 }
0x2216   :  { %26349 = vpow2.f32 %v18411_v10  ;;  %v18392_v52 = vsub.f32 %v31210_v43, %v18360_v23  ;;  %v18357_v39 = vpop.xlane.xlu0 %18356 }
0x2217   :  { %26351 = vpow2.f32 %v18409_v9  ;;  %v18391_v61 = vsub.f32 %v31212_v2, %v18357_v39 }
0x2218   :  { %v31258_v32 = vpop.eup %26341  ;;  %v18415_v0 = vmul.f32 1.442695, %v18392_v52 }
0x2219   :  { %v31260_v55 = vpop.eup %26343  ;;  %v18413_v36 = vmul.f32 1.442695, %v18391_v61  ;;  %v18366_v19 = vpop.xlane.xlu1 %18365  ;;  %v18436_v18 = vsel %vm1769_vm4, %v31258_v32, 0.0 }
0x221a   :  { %26353 = vpow2.f32 %v18415_v0  ;;  %v18394_v49 = vsub.f32 %v31218_v56, %v18366_v19  ;;  %v18363_v57 = vpop.xlane.xlu0 %18362  ;;  %18437 = vadd.xlane.f32.xlu1 %v18436_v18  ;;  %v18433_v43 = vsel %vm1769_vm4, %v31260_v55, 0.0 }
0x221b   :  { %26355 = vpow2.f32 %v18413_v36  ;;  %v18393_v2 = vsub.f32 %v31220_v60, %v18363_v57  ;;  %18434 = vadd.xlane.f32.xlu0 %v18433_v43 }
0x221c   :  { %v31268_v24 = vpop.eup %26345  ;;  %v18419_v63 = vmul.f32 1.442695, %v18394_v49 }
0x221d   :  { %v31270_v12 = vpop.eup %26347  ;;  %v18417_v42 = vmul.f32 1.442695, %v18393_v2  ;;  %v18372_v62 = vpop.xlane.xlu1 %18371  ;;  %v18442_v4 = vsel %vm1769_vm4, %v31268_v24, 0.0 }
0x221e   :  { %26357 = vpow2.f32 %v18419_v63  ;;  %v18396_v56 = vsub.f32 %v31226_v8, %v18372_v62  ;;  %v18369_v26 = vpop.xlane.xlu0 %18368  ;;  %18443 = vadd.xlane.f32.xlu1 %v18442_v4  ;;  %v18439_v34 = vsel %vm1769_vm4, %v31270_v12, 0.0 }
0x221f   :  { %26359 = vpow2.f32 %v18417_v42  ;;  %v18395_v60 = vsub.f32 %v31228_v6, %v18369_v26  ;;  %18440 = vadd.xlane.f32.xlu0 %v18439_v34 }
0x2220   :  { %v31278_v22 = vpop.eup %26349  ;;  %v18423_v54 = vmul.f32 1.442695, %v18396_v56 }
0x2221   :  { %v31280_v53 = vpop.eup %26351  ;;  %v18421_v14 = vmul.f32 1.442695, %v18395_v60  ;;  %v18378_v35 = vpop.xlane.xlu1 %18377  ;;  %v18448_v40 = vsel %vm1769_vm4, %v31278_v22, 0.0 }
0x2222   :  { %26361 = vpow2.f32 %v18423_v54  ;;  %v18398_v8 = vsub.f32 %v31234_v11, %v18378_v35  ;;  %18449 = vadd.xlane.f32.xlu1 %v18448_v40  ;;  %v18375_v30 = vpop.xlane.xlu0 %18374  ;;  %v18445_v45 = vsel %vm1769_vm4, %v31280_v53, 0.0 }
0x2223   :  { %26363 = vpow2.f32 %v18421_v14  ;;  %v18397_v6 = vsub.f32 %v31236_v27, %v18375_v30  ;;  %18446 = vadd.xlane.f32.xlu0 %v18445_v45 }
0x2224   :  { %v31288_v33 = vpop.eup %26353  ;;  %v18427_v44 = vmul.f32 1.442695, %v18398_v8 }
0x2225   :  { %v31290_v7 = vpop.eup %26355  ;;  %v18425_v50 = vmul.f32 1.442695, %v18397_v6  ;;  %v18384_v5 = vpop.xlane.xlu1 %18383  ;;  %v18454_v16 = vsel %vm1769_vm4, %v31288_v33, 0.0 }
0x2226   :  { %26365 = vpow2.f32 %v18427_v44  ;;  %v18400_v11 = vsub.f32 %v31242_v17, %v18384_v5  ;;  %18455 = vadd.xlane.f32.xlu1 %v18454_v16  ;;  %v18381_v3 = vpop.xlane.xlu0 %18380  ;;  %v18451_v20 = vsel %vm1769_vm4, %v31290_v7, 0.0 }
0x2227   :  { %26367 = vpow2.f32 %v18425_v50  ;;  %v18399_v27 = vsub.f32 %v31244_v51, %v18381_v3  ;;  %18452 = vadd.xlane.f32.xlu0 %v18451_v20 }
0x2228   :  { %v31298_v25 = vpop.eup %26357  ;;  %v18431_v1 = vmul.f32 1.442695, %v18400_v11 }
0x2229   :  { %v31300_v31 = vpop.eup %26359  ;;  %v18429_v58 = vmul.f32 1.442695, %v18399_v27  ;;  %v18460_v21 = vsel %vm1769_vm4, %v31298_v25, 0.0 }
0x222a   :  { %26369 = vpow2.f32 %v18431_v1  ;;  %18461 = vadd.xlane.f32.xlu1 %v18460_v21  ;;  %v18457_v17 = vsel %vm1769_vm4, %v31300_v31, 0.0 }
0x222b   :  { %26371 = vpow2.f32 %v18429_v58  ;;  %18458 = vadd.xlane.f32.xlu0 %v18457_v17 }
0x222c   :  { %v31306_v29 = vpop.eup %26361 }
0x222d   :  { %v31308_v51 = vpop.eup %26363  ;;  %v18466_v47 = vsel %vm1769_vm4, %v31306_v29, 0.0 }
0x222e   :  { %18467 = vadd.xlane.f32.xlu1 %v18466_v47  ;;  %v18463_v59 = vsel %vm1769_vm4, %v31308_v51, 0.0 }
0x222f   :  { %18464 = vadd.xlane.f32.xlu0 %v18463_v59 }
0x2230   :  { %v31314_v15 = vpop.eup %26365 }
0x2231   :  { %v31316_v48 = vpop.eup %26367  ;;  %v18472_v10 = vsel %vm1769_vm4, %v31314_v15, 0.0 }
0x2232   :  { %18473 = vadd.xlane.f32.xlu1 %v18472_v10  ;;  %v18469_v9 = vsel %vm1769_vm4, %v31316_v48, 0.0 }
0x2233   :  { %18470 = vadd.xlane.f32.xlu0 %v18469_v9 }
0x2234   :  { %v31322_v23 = vpop.eup %26369 }
0x2235   :  { %v31324_v52 = vpop.eup %26371  ;;  %v18478_v39 = vsel %vm1769_vm4, %v31322_v23, 0.0 }
0x2236   :  { %18479 = vadd.xlane.f32.xlu1 %v18478_v39  ;;  %v18475_v61 = vsel %vm1769_vm4, %v31324_v52, 0.0 }
0x2237   :  { %18476 = vadd.xlane.f32.xlu0 %v18475_v61 }
0x22a7   :  { %v18438_v0 = vpop.xlane.xlu1 %18437 }
0x22a8   :  { %26373 = vrcp.f32 %v18438_v0  ;;  %v18435_v36 = vpop.xlane.xlu0 %18434 }
0x22a9   :  { %26375 = vrcp.f32 %v18435_v36  ;;  %v31394_v36 = vld [vmem:[%s31816_s3 + $0xa] ss:$0 sm:$0xff] }
0x22ab   :  { %v18444_v19 = vpop.xlane.xlu1 %18443 }
0x22ac   :  { %26377 = vrcp.f32 %v18444_v19  ;;  %v18441_v18 = vpop.xlane.xlu0 %18440 }
0x22ad   :  { %26379 = vrcp.f32 %v18441_v18  ;;  %v31923_v18 = vld [vmem:[#allocation21_spill] sm:$0xff] }
0x22af   :  { %v18450_v49 = vpop.xlane.xlu1 %18449 }
0x22b0   :  { %26381 = vrcp.f32 %v18450_v49  ;;  %v18447_v57 = vpop.xlane.xlu0 %18446 }
0x22b1   :  { %26383 = vrcp.f32 %v18447_v57 }
0x22b2   :  { %v26374_v43 = vpop.eup %26373 }
0x22b3   :  { %v26376_v2 = vpop.eup %26375  ;;  %v18456_v63 = vpop.xlane.xlu1 %18455  ;;  %v18484_v4 = vmul.f32 %v26374_v43, %v31258_v32  ;;  %v31924_v43 = vld [vmem:[#allocation20_spill] sm:$0xff] }
0x22b4   :  { %26385 = vrcp.f32 %v18456_v63  ;;  %v18453_v42 = vpop.xlane.xlu0 %18452  ;;  %v18482_v62 = vmul.f32 %v26376_v2, %v31260_v55 }
0x22b5   :  { %26387 = vrcp.f32 %v18453_v42 }
0x22b6   :  { %v26378_v56 = vpop.eup %26377  ;;  %24571 = vmatprep.mubr.msk.f32.mxu1 %vm1769_vm4, %v18482_v62 }
0x22b7   :  { %v26380_v26 = vpop.eup %26379  ;;  %v18462_v34 = vpop.xlane.xlu1 %18461  ;;  %24572 = vmatmul.mubr.msk.f32.vlgmr.msra.gmra.mrb[98].mxu1 %vm1769_vm4, %v18484_v4  ;;  %v18488_v14 = vmul.f32 %v26378_v56, %v31268_v24  ;;  %v31925_v4 = vld [vmem:[#allocation19_spill] sm:$0xff] }
0x22b8   :  { %26389 = vrcp.f32 %v18462_v34  ;;  %25604 = vmatpush3.bf16.msra.mxu1 %v31105_v28  ;;  %v18459_v60 = vpop.xlane.xlu0 %18458  ;;  %v18486_v54 = vmul.f32 %v26380_v26, %v31270_v12 }
0x22b9   :  { %25610 = vmatprep.subr.bf16.mxu1 %v31109_v46  ;;  %26391 = vrcp.f32 %v18459_v60  ;;  %v31926_v60 = vld [vmem:[#allocation13_spill] sm:$0xff] }
0x22ba   :  { %v26382_v32 = vpop.eup %26381  ;;  %24578 = vmatprep.mubr.msk.f32.mxu0 %vm1769_vm4, %v18486_v54 }
0x22bb   :  { %v26384_v55 = vpop.eup %26383  ;;  %v18468_v35 = vpop.xlane.xlu1 %18467  ;;  %24579 = vmatmul.mubr.msk.f32.vlgmr.msra.gmra.mrb[94].mxu0 %vm1769_vm4, %v18488_v14  ;;  %v18492_v12 = vmul.f32 %v26382_v32, %v31278_v22 }
0x22bc   :  { %26393 = vrcp.f32 %v18468_v35  ;;  %25608 = vmatpush3.bf16.msra.mxu0 %v31107_v37  ;;  %v18465_v40 = vpop.xlane.xlu0 %18464  ;;  %v18490_v28 = vmul.f32 %v26384_v55, %v31280_v53 }
0x22bd   :  { %25614 = vmatprep.subr.bf16.mxu0 %v31111_v38  ;;  %26395 = vrcp.f32 %v18465_v40  ;;  %v31927_v40 = vld [vmem:[#allocation11_spill] sm:$0xff] }
0x22be   :  { %v26386_v24 = vpop.eup %26385  ;;  %24585 = vmatprep.mubr.msk.f32.mxu1 %vm1769_vm4, %v18490_v28 }
0x22bf   :  { %v26388_v8 = vpop.eup %26387  ;;  %v18474_v30 = vpop.xlane.xlu1 %18473  ;;  %24586 = vmatmul.mubr.msk.f32.vlgmr.msra.gmra.mrb[100].mxu1 %vm1769_vm4, %v18492_v12  ;;  %v18496_v53 = vmul.f32 %v26386_v24, %v31288_v33 }
0x22c0   :  { %26397 = vrcp.f32 %v18474_v30  ;;  %25612 = vmatpush3.bf16.msra.mxu1 %v31109_v46  ;;  %v18471_v45 = vpop.xlane.xlu0 %18470  ;;  %v18494_v37 = vmul.f32 %v26388_v8, %v31290_v7  ;;  %v31928_v8 = vld [vmem:[#allocation15_spill] sm:$0xff] }
0x22c1   :  { %25618 = vmatprep.subr.bf16.mxu1 %v31113_v41  ;;  %26399 = vrcp.f32 %v18471_v45 }
0x22c2   :  { %v26390_v22 = vpop.eup %26389  ;;  %24592 = vmatprep.mubr.msk.f32.mxu0 %vm1769_vm4, %v18494_v37 }
0x22c3   :  { %v26392_v6 = vpop.eup %26391  ;;  %v18480_v44 = vpop.xlane.xlu1 %18479  ;;  %24593 = vmatmul.mubr.msk.f32.vlgmr.msra.gmra.mrb[112].mxu0 %vm1769_vm4, %v18496_v53  ;;  %v18500_v7 = vmul.f32 %v26390_v22, %v31298_v25 }
0x22c4   :  { %26401 = vrcp.f32 %v18480_v44  ;;  %25616 = vmatpush3.bf16.msra.mxu0 %v31111_v38  ;;  %v18477_v50 = vpop.xlane.xlu0 %18476  ;;  %v18498_v46 = vmul.f32 %v26392_v6, %v31300_v31  ;;  %v31929_v6 = vld [vmem:[#allocation14_spill] sm:$0xff] }
0x22c5   :  { %25622 = vmatprep.subr.bf16.mxu0 %v31115_v13  ;;  %26403 = vrcp.f32 %v18477_v50 }
0x22c6   :  { %v26394_v33 = vpop.eup %26393  ;;  %24599 = vmatprep.mubr.msk.f32.mxu1 %vm1769_vm4, %v18498_v46 }
0x22c7   :  { %v26396_v5 = vpop.eup %26395  ;;  %24600 = vmatmul.mubr.msk.f32.vlgmr.msra.gmra.mrb[102].mxu1 %vm1769_vm4, %v18500_v7  ;;  %v18504_v38 = vmul.f32 %v26394_v33, %v31306_v29  ;;  %v31930_v7 = vld [vmem:[#allocation17_spill] sm:$0xff] }
0x22c8   :  { %25620 = vmatpush3.bf16.msra.mxu1 %v31113_v41  ;;  %v18502_v16 = vmul.f32 %v26396_v5, %v31308_v51 }
0x22ca   :  { %v26398_v11 = vpop.eup %26397  ;;  %24606 = vmatprep.mubr.msk.f32.mxu0 %vm1769_vm4, %v18502_v16 }
0x22cb   :  { %v26400_v3 = vpop.eup %26399  ;;  %24607 = vmatmul.mubr.msk.f32.vlgmr.msra.gmra.mrb[114].mxu0 %vm1769_vm4, %v18504_v38  ;;  %v18508_v27 = vmul.f32 %v26398_v11, %v31314_v15 }
0x22cc   :  { %25624 = vmatpush3.bf16.msra.mxu0 %v31115_v13  ;;  %v18506_v20 = vmul.f32 %v26400_v3, %v31316_v48  ;;  %v21334_v13 = vld [vmem:[%s31818_s6 + $0x38] sm:$0xff]  ;;  %v31931_v3 = vld [vmem:[#allocation16_spill] sm:$0xff] }
0x22cd   :  { %24623 = vmatprep.subr.mxu1 %v21334_v13 }
0x22ce   :  { %v26402_v25 = vpop.eup %26401  ;;  %24613 = vmatprep.mubr.msk.f32.mxu1 %vm1769_vm4, %v18506_v20 }
0x22cf   :  { %v26404_v41 = vpop.eup %26403  ;;  %24614 = vmatmul.mubr.msk.f32.vlgmr.msra.gmra.mrb[104].mxu1 %vm1769_vm4, %v18508_v27  ;;  %v18512_v31 = vmul.f32 %v26402_v25, %v31322_v23 }
0x22d0   :  { %v18510_v1 = vmul.f32 %v26404_v41, %v31324_v52  ;;  %24624 = vmatpush3.msra.mxu1 %v21334_v13  ;;  %v31932_v41 = vld [vmem:[#allocation3_spill] sm:$0xff] }
0x22d2   :  { %24620 = vmatprep.mubr.msk.f32.mxu0 %vm1769_vm4, %v18510_v1 }
0x22d3   :  { %24621 = vmatmul.mubr.msk.f32.vlgmr.msra.gmra.mrb[116].mxu0 %vm1769_vm4, %v18512_v31 }
0x238a   :  { %v24573_v58 = vpop.f32.mrb[98].mxu1 }
0x238b   :  { %v18585_v21 = vpop.f32.mrb[99].mxu1 }
0x238c   :  { %24625 = vmatprep.mubr.msk.f32.mxu1 %vm1056_vm2, %v18585_v21 }
0x238d   :  { %24626 = vmatmul.mubr.msk.f32.vlgmr.msra.gmra.mrb[28].mxu1 %vm1056_vm2, %v24573_v58 }
0x238e   :  { %v24580_v17 = vpop.f32.mrb[94].mxu0 }
0x238f   :  { %v18666_v29 = vpop.f32.mrb[95].mxu0 }
0x2390   :  { %24628 = vmatprep.mubr.msk.f32.mxu1 %vm1056_vm2, %v18666_v29 }
0x2391   :  { %24629 = vmatmul.mubr.msk.f32.gmra.mrb[30].mxu1 %vm1056_vm2, %v24580_v17  ;;  %v31933_v17 = vld [vmem:[#allocation2_spill] sm:$0xff] }
0x2392   :  { %v24587_v51 = vpop.f32.mrb[100].mxu1 }
0x2393   :  { %v18747_v47 = vpop.f32.mrb[101].mxu1 }
0x2394   :  { %24631 = vmatprep.mubr.msk.f32.mxu1 %vm1056_vm2, %v18747_v47 }
0x2395   :  { %24632 = vmatmul.mubr.msk.f32.gmra.mrb[32].mxu1 %vm1056_vm2, %v24587_v51 }
0x2396   :  { %v24594_v59 = vpop.f32.mrb[112].mxu0 }
0x2397   :  { %v18828_v15 = vpop.f32.mrb[113].mxu0 }
0x2398   :  { %24634 = vmatprep.mubr.msk.f32.mxu1 %vm1056_vm2, %v18828_v15 }
0x2399   :  { %24635 = vmatmul.mubr.msk.f32.gmra.mrb[34].mxu1 %vm1056_vm2, %v24594_v59  ;;  %v31934_v59 = vld [vmem:[#allocation5_spill] sm:$0xff] }
0x239a   :  { %v24601_v48 = vpop.f32.mrb[102].mxu1 }
0x239b   :  { %v18909_v10 = vpop.f32.mrb[103].mxu1 }
0x239c   :  { %24637 = vmatprep.mubr.msk.f32.mxu1 %vm1056_vm2, %v18909_v10 }
0x239d   :  { %24638 = vmatmul.mubr.msk.f32.gmra.mrb[36].mxu1 %vm1056_vm2, %v24601_v48 }
0x239e   :  { %v24608_v9 = vpop.f32.mrb[114].mxu0 }
0x239f   :  { %v18990_v23 = vpop.f32.mrb[115].mxu0 }
0x23a0   :  { %24640 = vmatprep.mubr.msk.f32.mxu1 %vm1056_vm2, %v18990_v23 }
0x23a1   :  { %24641 = vmatmul.mubr.msk.f32.gmra.mrb[38].mxu1 %vm1056_vm2, %v24608_v9 }
0x23a2   :  { %v24615_v52 = vpop.f32.mrb[104].mxu1 }
0x23a3   :  { %v19071_v39 = vpop.f32.mrb[105].mxu1 }
0x23a4   :  { %24643 = vmatprep.mubr.msk.f32.mxu1 %vm1056_vm2, %v19071_v39 }
0x23a5   :  { %24644 = vmatmul.mubr.msk.f32.gmra.mrb[40].mxu1 %vm1056_vm2, %v24615_v52  ;;  %v31935_v52 = vld [vmem:[#allocation4_spill] sm:$0xff] }
0x23a6   :  { %v24622_v61 = vpop.f32.mrb[116].mxu0 }
0x23a7   :  { %v19152_v0 = vpop.f32.mrb[117].mxu0 }
0x23a8   :  { %24646 = vmatprep.mubr.msk.f32.mxu1 %vm1056_vm2, %v19152_v0 }
0x23a9   :  { %24647 = vmatmul.mubr.msk.f32.gmra.mrb[42].mxu1 %vm1056_vm2, %v24622_v61 }
0x2460   :  { %v24627_v19 = vpop.f32.mrb[28].mxu1 }
0x2461   :  { %v19373_v49 = vadd.f32 %v24627_v19, %v31923_v18  ;;  %v19277_v57 = vpop.f32.mrb[29].mxu1  ;;  %v31936_v19 = vld [vmem:[#allocation7_spill] sm:$0xff] }
0x2462   :  { %v19372_v2 = vadd.f32 %v19277_v57, %v31924_v43 }
0x2463   :  { %v31399_v63 = vadd.f32 %v31394_v36, %v19373_v49 }
0x2464   :  { %v31402_v42 = vadd.f32 %v31394_v36, %v19372_v2  ;;  %v24630_v62 = vpop.f32.mrb[30].mxu1 }
0x2465   :  { %v19375_v56 = vadd.f32 %v24630_v62, %v31925_v4  ;;  %v19287_v26 = vpop.f32.mrb[31].mxu1  ;;  %v19413_v34 = vsel %vm282_vm1, %v31399_v63, 0.0  ;;  %v31937_v62 = vld [vmem:[#allocation6_spill] sm:$0xff] }
0x2466   :  { %v19374_v54 = vadd.f32 %v19287_v26, %v31926_v60  ;;  %19414 = vadd.xlane.f32.xlu1 %v19413_v34  ;;  %v19410_v14 = vsel %vm282_vm1, %v31402_v42, 0.0  ;;  %v31938_v34 = vld [vmem:[#allocation9_spill] sm:$0xff] }
0x2467   :  { %v31411_v32 = vadd.f32 %v31394_v36, %v19375_v56  ;;  %19411 = vadd.xlane.f32.xlu0 %v19410_v14 }
0x2468   :  { %v31414_v55 = vadd.f32 %v31394_v36, %v19374_v54  ;;  %v24633_v35 = vpop.f32.mrb[32].mxu1 }
0x2469   :  { %v19377_v28 = vadd.f32 %v24633_v35, %v31927_v40  ;;  %v19297_v12 = vpop.f32.mrb[33].mxu1  ;;  %v19419_v24 = vsel %vm282_vm1, %v31411_v32, 0.0 }
0x246a   :  { %v19376_v30 = vadd.f32 %v19297_v12, %v31928_v8  ;;  %19420 = vadd.xlane.f32.xlu1 %v19419_v24  ;;  %v19416_v45 = vsel %vm282_vm1, %v31414_v55, 0.0 }
0x246b   :  { %v31423_v37 = vadd.f32 %v31394_v36, %v19377_v28  ;;  %19417 = vadd.xlane.f32.xlu0 %v19416_v45 }
0x246c   :  { %v31426_v53 = vadd.f32 %v31394_v36, %v19376_v30  ;;  %v24636_v22 = vpop.f32.mrb[34].mxu1 }
0x246d   :  { %v19379_v44 = vadd.f32 %v24636_v22, %v31929_v6  ;;  %v19307_v50 = vpop.f32.mrb[35].mxu1  ;;  %v19425_v46 = vsel %vm282_vm1, %v31423_v37, 0.0 }
0x246e   :  { %v19378_v33 = vadd.f32 %v19307_v50, %v31930_v7  ;;  %19426 = vadd.xlane.f32.xlu1 %v19425_v46  ;;  %v19422_v5 = vsel %vm282_vm1, %v31426_v53, 0.0 }
0x246f   :  { %v31435_v16 = vadd.f32 %v31394_v36, %v19379_v44  ;;  %19423 = vadd.xlane.f32.xlu0 %v19422_v5 }
0x2470   :  { %v31438_v38 = vadd.f32 %v31394_v36, %v19378_v33  ;;  %v24639_v11 = vpop.f32.mrb[36].mxu1 }
0x2471   :  { %v19381_v20 = vadd.f32 %v24639_v11, %v31931_v3  ;;  %v19317_v27 = vpop.f32.mrb[37].mxu1  ;;  %v19431_v25 = vsel %vm282_vm1, %v31435_v16, 0.0 }
0x2472   :  { %v19380_v1 = vadd.f32 %v19317_v27, %v31932_v41  ;;  %19432 = vadd.xlane.f32.xlu1 %v19431_v25  ;;  %v19428_v31 = vsel %vm282_vm1, %v31438_v38, 0.0 }
0x2473   :  { %v31447_v13 = vadd.f32 %v31394_v36, %v19381_v20  ;;  %19429 = vadd.xlane.f32.xlu0 %v19428_v31 }
0x2474   :  { %v31450_v58 = vadd.f32 %v31394_v36, %v19380_v1  ;;  %v24642_v21 = vpop.f32.mrb[38].mxu1 }
0x2475   :  { %v19383_v29 = vadd.f32 %v24642_v21, %v31933_v17  ;;  %v19327_v51 = vpop.f32.mrb[39].mxu1  ;;  %v19437_v47 = vsel %vm282_vm1, %v31447_v13, 0.0 }
0x2476   :  { %v19382_v15 = vadd.f32 %v19327_v51, %v31934_v59  ;;  %19438 = vadd.xlane.f32.xlu1 %v19437_v47  ;;  %v19434_v48 = vsel %vm282_vm1, %v31450_v58, 0.0 }
0x2477   :  { %v31459_v10 = vadd.f32 %v31394_v36, %v19383_v29  ;;  %19435 = vadd.xlane.f32.xlu0 %v19434_v48 }
0x2478   :  { %v31462_v9 = vadd.f32 %v31394_v36, %v19382_v15  ;;  %v24645_v23 = vpop.f32.mrb[40].mxu1 }
0x2479   :  { %v19385_v39 = vadd.f32 %v24645_v23, %v31935_v52  ;;  %v19337_v61 = vpop.f32.mrb[41].mxu1  ;;  %v19443_v0 = vsel %vm282_vm1, %v31459_v10, 0.0 }
0x247a   :  { %v19384_v18 = vadd.f32 %v19337_v61, %v31936_v19  ;;  %19444 = vadd.xlane.f32.xlu1 %v19443_v0  ;;  %v19440_v49 = vsel %vm282_vm1, %v31462_v9, 0.0 }
0x247b   :  { %v31471_v57 = vadd.f32 %v31394_v36, %v19385_v39  ;;  %19441 = vadd.xlane.f32.xlu0 %v19440_v49 }
0x247c   :  { %v31474_v43 = vadd.f32 %v31394_v36, %v19384_v18  ;;  %v24648_v2 = vpop.f32.mrb[42].mxu1 }
0x247d   :  { %v19387_v4 = vadd.f32 %v24648_v2, %v31937_v62  ;;  %v19347_v56 = vpop.f32.mrb[43].mxu1  ;;  %v19449_v26 = vsel %vm282_vm1, %v31471_v57, 0.0 }
0x247e   :  { %v19386_v60 = vadd.f32 %v19347_v56, %v31938_v34  ;;  %19450 = vadd.xlane.f32.xlu1 %v19449_v26  ;;  %v19446_v54 = vsel %vm282_vm1, %v31474_v43, 0.0 }
0x247f   :  { %v31483_v14 = vadd.f32 %v31394_v36, %v19387_v4  ;;  %19447 = vadd.xlane.f32.xlu0 %v19446_v54 }
0x2480   :  { %v31486_v35 = vadd.f32 %v31394_v36, %v19386_v60 }
0x2481   :  { %v19455_v40 = vsel %vm282_vm1, %v31483_v14, 0.0 }
0x2482   :  { %19456 = vadd.xlane.f32.xlu1 %v19455_v40  ;;  %v19452_v28 = vsel %vm282_vm1, %v31486_v35, 0.0 }
0x2483   :  { %19453 = vadd.xlane.f32.xlu0 %v19452_v28 }
0x24f3   :  { %v19415_v12 = vpop.xlane.xlu1 %19414 }
0x24f4   :  { %v19459_v24 = vmul.f32 0.03125, %v19415_v12  ;;  %v19412_v8 = vpop.xlane.xlu0 %19411 }
0x24f5   :  { %v19458_v30 = vmul.f32 0.03125, %v19412_v8 }
0x24f6   :  { %v31493_v45 = vsub.f32 %v31399_v63, %v19459_v24 }
0x24f7   :  { %v31496_v22 = vsub.f32 %v31402_v42, %v19458_v30  ;;  %v19421_v36 = vpop.xlane.xlu1 %19420 }
0x24f8   :  { %v19461_v6 = vmul.f32 0.03125, %v19421_v36  ;;  %v19418_v44 = vpop.xlane.xlu0 %19417  ;;  %v19491_v50 = vmul.f32 %v31493_v45, %v31493_v45 }
0x24f9   :  { %v19460_v46 = vmul.f32 0.03125, %v19418_v44  ;;  %v19490_v7 = vmul.f32 %v31496_v22, %v31496_v22 }
0x24fa   :  { %v31503_v33 = vsub.f32 %v31411_v32, %v19461_v6  ;;  %v19509_v5 = vsel %vm282_vm1, %v19491_v50, 0.0 }
0x24fb   :  { %v31507_v11 = vsub.f32 %v31414_v55, %v19460_v46  ;;  %v19427_v3 = vpop.xlane.xlu1 %19426  ;;  %19510 = vadd.xlane.f32.xlu1 %v19509_v5  ;;  %v19506_v20 = vsel %vm282_vm1, %v19490_v7, 0.0 }
0x24fc   :  { %v19463_v27 = vmul.f32 0.03125, %v19427_v3  ;;  %19507 = vadd.xlane.f32.xlu0 %v19506_v20  ;;  %v19424_v25 = vpop.xlane.xlu0 %19423  ;;  %v19493_v41 = vmul.f32 %v31503_v33, %v31503_v33 }
0x24fd   :  { %v19462_v1 = vmul.f32 0.03125, %v19424_v25  ;;  %v19492_v31 = vmul.f32 %v31507_v11, %v31507_v11 }
0x24fe   :  { %v31515_v21 = vsub.f32 %v31423_v37, %v19463_v27  ;;  %v19515_v17 = vsel %vm282_vm1, %v19493_v41, 0.0 }
0x24ff   :  { %v31519_v29 = vsub.f32 %v31426_v53, %v19462_v1  ;;  %v19433_v51 = vpop.xlane.xlu1 %19432  ;;  %19516 = vadd.xlane.f32.xlu1 %v19515_v17  ;;  %v19512_v47 = vsel %vm282_vm1, %v19492_v31, 0.0 }
0x2500   :  { %v19465_v59 = vmul.f32 0.03125, %v19433_v51  ;;  %19513 = vadd.xlane.f32.xlu0 %v19512_v47  ;;  %v19430_v15 = vpop.xlane.xlu0 %19429  ;;  %v19495_v48 = vmul.f32 %v31515_v21, %v31515_v21 }
0x2501   :  { %v19464_v23 = vmul.f32 0.03125, %v19430_v15  ;;  %v19494_v52 = vmul.f32 %v31519_v29, %v31519_v29 }
0x2502   :  { %v31527_v39 = vsub.f32 %v31435_v16, %v19465_v59  ;;  %v19521_v61 = vsel %vm282_vm1, %v19495_v48, 0.0 }
0x2503   :  { %v31531_v0 = vsub.f32 %v31438_v38, %v19464_v23  ;;  %v19439_v19 = vpop.xlane.xlu1 %19438  ;;  %19522 = vadd.xlane.f32.xlu1 %v19521_v61  ;;  %v19518_v18 = vsel %vm282_vm1, %v19494_v52, 0.0 }
0x2504   :  { %v19467_v49 = vmul.f32 0.03125, %v19439_v19  ;;  %19519 = vadd.xlane.f32.xlu0 %v19518_v18  ;;  %v19436_v2 = vpop.xlane.xlu0 %19435  ;;  %v19497_v62 = vmul.f32 %v31527_v39, %v31527_v39 }
0x2505   :  { %v19466_v4 = vmul.f32 0.03125, %v19436_v2  ;;  %v19496_v56 = vmul.f32 %v31531_v0, %v31531_v0 }
0x2506   :  { %v31539_v26 = vsub.f32 %v31447_v13, %v19467_v49  ;;  %v19527_v34 = vsel %vm282_vm1, %v19497_v62, 0.0 }
0x2507   :  { %v31543_v60 = vsub.f32 %v31450_v58, %v19466_v4  ;;  %v19445_v54 = vpop.xlane.xlu1 %19444  ;;  %19528 = vadd.xlane.f32.xlu1 %v19527_v34  ;;  %v19524_v40 = vsel %vm282_vm1, %v19496_v56, 0.0  ;;  %v21354_v4 = vld [vmem:[%s31819_s7 + $0x20] sm:$0xff]  ;;  %v21355_v56 = vld [vmem:[%s31819_s7 + $0x28] sm:$0xff] }
0x2508   :  { %v19469_v28 = vmul.f32 0.03125, %v19445_v54  ;;  %19525 = vadd.xlane.f32.xlu0 %v19524_v40  ;;  %v19442_v12 = vpop.xlane.xlu0 %19441  ;;  %v19499_v24 = vmul.f32 %v31539_v26, %v31539_v26  ;;  %v25625_v34 = vpack.c.bf16 %v21355_v56, %v21354_v4  ;;  %v21356_v54 = vld [vmem:[%s31819_s7 + $0x30] sm:$0xff]  ;;  %v21357_v40 = vld [vmem:[%s31819_s7 + $0x38] sm:$0xff] }
0x2509   :  { %v19468_v8 = vmul.f32 0.03125, %v19442_v12  ;;  %v19498_v30 = vmul.f32 %v31543_v60, %v31543_v60  ;;  %v21376_v12 = vld [vmem:[%s31820_s9 + $0x80] sm:$0xff] }
0x250a   :  { %v31551_v36 = vsub.f32 %v31459_v10, %v19469_v28  ;;  %v19533_v6 = vsel %vm282_vm1, %v19499_v24, 0.0  ;;  %25626 = vmatprep.subr.bf16.mxu0 %v25625_v34  ;;  %v25629_v28 = vpack.c.bf16 %v21357_v40, %v21356_v54  ;;  %v21377_v24 = vld [vmem:[%s31820_s9 + $0x88] sm:$0xff] }
0x250b   :  { %v31555_v44 = vsub.f32 %v31462_v9, %v19468_v8  ;;  %v19451_v50 = vpop.xlane.xlu1 %19450  ;;  %19534 = vadd.xlane.f32.xlu1 %v19533_v6  ;;  %v19530_v46 = vsel %vm282_vm1, %v19498_v30, 0.0  ;;  %25628 = vmatpush3.bf16.msra.mxu0 %v25625_v34  ;;  %v21378_v8 = vld [vmem:[%s31820_s9 + $0x90] sm:$0xff]  ;;  %v25633_v30 = vpack.c.bf16 %v21377_v24, %v21376_v12  ;;  %v21379_v6 = vld [vmem:[%s31820_s9 + $0x98] sm:$0xff]  ;;  %v31621_v12 = vld [vmem:[%s31816_s3 + $0x8] ss:$0 sm:$0xff] }
0x250c   :  { %v19471_v7 = vmul.f32 0.03125, %v19451_v50  ;;  %19531 = vadd.xlane.f32.xlu0 %v19530_v46  ;;  %v19448_v5 = vpop.xlane.xlu0 %19447  ;;  %v19501_v3 = vmul.f32 %v31551_v36, %v31551_v36  ;;  %25630 = vmatprep.subr.bf16.mxu0 %v25629_v28  ;;  %v25637_v50 = vpack.c.bf16 %v21379_v6, %v21378_v8  ;;  %v21380_v46 = vld [vmem:[%s31820_s9 + $0xa0] sm:$0xff] }
0x250d   :  { %v19470_v20 = vmul.f32 0.03125, %v19448_v5  ;;  %v19500_v27 = vmul.f32 %v31555_v44, %v31555_v44  ;;  %25634 = vmatprep.subr.bf16.mxu1 %v25633_v30 }
0x250e   :  { %v31563_v25 = vsub.f32 %v31471_v57, %v19471_v7  ;;  %v19539_v41 = vsel %vm282_vm1, %v19501_v3, 0.0  ;;  %v21381_v7 = vld [vmem:[%s31820_s9 + $0xa8] sm:$0xff]  ;;  %25636 = vmatpush3.bf16.msra.mxu1 %v25633_v30 }
0x250f   :  { %v31567_v1 = vsub.f32 %v31474_v43, %v19470_v20  ;;  %19540 = vadd.xlane.f32.xlu1 %v19539_v41  ;;  %v19457_v31 = vpop.xlane.xlu1 %19456  ;;  %v19536_v17 = vsel %vm282_vm1, %v19500_v27, 0.0  ;;  %25632 = vmatpush3.bf16.msra.mxu0 %v25629_v28  ;;  %v25641_v5 = vpack.c.bf16 %v21381_v7, %v21380_v46 }
0x2510   :  { %v19473_v51 = vmul.f32 0.03125, %v19457_v31  ;;  %19537 = vadd.xlane.f32.xlu0 %v19536_v17  ;;  %v19454_v47 = vpop.xlane.xlu0 %19453  ;;  %v19503_v59 = vmul.f32 %v31563_v25, %v31563_v25  ;;  %25638 = vmatprep.subr.bf16.mxu1 %v25637_v50 }
0x2511   :  { %v19472_v15 = vmul.f32 0.03125, %v19454_v47  ;;  %v19502_v48 = vmul.f32 %v31567_v1, %v31567_v1 }
0x2512   :  { %v31575_v23 = vsub.f32 %v31483_v14, %v19473_v51  ;;  %v19545_v52 = vsel %vm282_vm1, %v19503_v59, 0.0  ;;  %25640 = vmatpush3.bf16.msra.mxu1 %v25637_v50 }
0x2513   :  { %v31579_v61 = vsub.f32 %v31486_v35, %v19472_v15  ;;  %19546 = vadd.xlane.f32.xlu1 %v19545_v52  ;;  %v19542_v19 = vsel %vm282_vm1, %v19502_v48, 0.0  ;;  %25642 = vmatprep.subr.bf16.mxu1 %v25641_v5 }
0x2514   :  { %19543 = vadd.xlane.f32.xlu0 %v19542_v19  ;;  %v19505_v18 = vmul.f32 %v31575_v23, %v31575_v23 }
0x2515   :  { %v19504_v49 = vmul.f32 %v31579_v61, %v31579_v61 }
0x2516   :  { %v19551_v2 = vsel %vm282_vm1, %v19505_v18, 0.0  ;;  %25644 = vmatpush3.bf16.msra.mxu1 %v25641_v5 }
0x2517   :  { %19552 = vadd.xlane.f32.xlu1 %v19551_v2  ;;  %v19548_v62 = vsel %vm282_vm1, %v19504_v49, 0.0 }
0x2518   :  { %19549 = vadd.xlane.f32.xlu0 %v19548_v62 }
0x2588   :  { %v19511_v3 = vpop.xlane.xlu1 %19510 }
0x2589   :  { %v19555_v20 = vmul.f32 0.03125, %v19511_v3  ;;  %v19508_v27 = vpop.xlane.xlu0 %19507  ;;  %v31628_v3 = vld [vmem:[%s31816_s3 + $0x9] ss:$0 sm:$0xff] }
0x258a   :  { %v19554_v41 = vmul.f32 0.03125, %v19508_v27 }
0x258b   :  { %v19571_v31 = vadd.f32 1e-05, %v19555_v20 }
0x258c   :  { %v19570_v17 = vadd.f32 1e-05, %v19554_v41  ;;  %v19517_v51 = vpop.xlane.xlu1 %19516 }
0x258d   :  { %26405 = vrsqrt.f32 %v19571_v31  ;;  %v19557_v47 = vmul.f32 0.03125, %v19517_v51  ;;  %v19514_v59 = vpop.xlane.xlu0 %19513 }
0x258e   :  { %26407 = vrsqrt.f32 %v19570_v17  ;;  %v19556_v15 = vmul.f32 0.03125, %v19514_v59 }
0x258f   :  { %v19573_v48 = vadd.f32 1e-05, %v19557_v47 }
0x2590   :  { %v19572_v52 = vadd.f32 1e-05, %v19556_v15  ;;  %v19523_v19 = vpop.xlane.xlu1 %19522 }
0x2591   :  { %26409 = vrsqrt.f32 %v19573_v48  ;;  %v19559_v18 = vmul.f32 0.03125, %v19523_v19  ;;  %v19520_v49 = vpop.xlane.xlu0 %19519 }
0x2592   :  { %26411 = vrsqrt.f32 %v19572_v52  ;;  %v19558_v2 = vmul.f32 0.03125, %v19520_v49 }
0x2593   :  { %v19575_v62 = vadd.f32 1e-05, %v19559_v18 }
0x2594   :  { %v19574_v4 = vadd.f32 1e-05, %v19558_v2  ;;  %v19529_v56 = vpop.xlane.xlu1 %19528 }
0x2595   :  { %26413 = vrsqrt.f32 %v19575_v62  ;;  %v19561_v34 = vmul.f32 0.03125, %v19529_v56  ;;  %v19526_v54 = vpop.xlane.xlu0 %19525 }
0x2596   :  { %26415 = vrsqrt.f32 %v19574_v4  ;;  %v19560_v40 = vmul.f32 0.03125, %v19526_v54 }
0x2597   :  { %v26406_v28 = vpop.eup %26405  ;;  %v19577_v24 = vadd.f32 1e-05, %v19561_v34 }
0x2598   :  { %v26408_v8 = vpop.eup %26407  ;;  %v19603_v30 = vmul.f32 %v26406_v28, %v31493_v45  ;;  %v19576_v6 = vadd.f32 1e-05, %v19560_v40  ;;  %v19535_v50 = vpop.xlane.xlu1 %19534 }
0x2599   :  { %26417 = vrsqrt.f32 %v19577_v24  ;;  %v19563_v46 = vmul.f32 0.03125, %v19535_v50  ;;  %v19532_v7 = vpop.xlane.xlu0 %19531  ;;  %v19602_v5 = vmul.f32 %v26408_v8, %v31496_v22 }
0x259a   :  { %v19625_v20 = vmul.f32 %v31621_v12, %v19603_v30  ;;  %26419 = vrsqrt.f32 %v19576_v6  ;;  %v19562_v27 = vmul.f32 0.03125, %v19532_v7 }
0x259b   :  { %v26410_v41 = vpop.eup %26409  ;;  %v19579_v31 = vadd.f32 1e-05, %v19563_v46  ;;  %v19624_v45 = vmul.f32 %v31621_v12, %v19602_v5 }
0x259c   :  { %v26412_v17 = vpop.eup %26411  ;;  %v19605_v51 = vmul.f32 %v26410_v41, %v31503_v33  ;;  %v19578_v47 = vadd.f32 1e-05, %v19562_v27  ;;  %v19541_v59 = vpop.xlane.xlu1 %19540  ;;  %v19647_v19 = vadd.f32 %v31628_v3, %v19625_v20 }
0x259d   :  { %26421 = vrsqrt.f32 %v19579_v31  ;;  %v19565_v22 = vmul.f32 0.03125, %v19541_v59  ;;  %v19538_v15 = vpop.xlane.xlu0 %19537  ;;  %v19646_v48 = vadd.f32 %v31628_v3, %v19624_v45  ;;  %v19604_v52 = vmul.f32 %v26412_v17, %v31507_v11 }
0x259e   :  { %v19627_v18 = vmul.f32 %v31621_v12, %v19605_v51  ;;  %26423 = vrsqrt.f32 %v19578_v47  ;;  %v19564_v49 = vmul.f32 0.03125, %v19538_v15 }
0x259f   :  { %v26414_v2 = vpop.eup %26413  ;;  %v19581_v62 = vadd.f32 1e-05, %v19565_v22  ;;  %24657 = vmatprep.mubr.msk.f32.mxu0 %vm282_vm1, %v19646_v48  ;;  %v19626_v33 = vmul.f32 %v31621_v12, %v19604_v52 }
0x25a0   :  { %v26416_v4 = vpop.eup %26415  ;;  %v19607_v56 = vmul.f32 %v26414_v2, %v31515_v21  ;;  %v19580_v34 = vadd.f32 1e-05, %v19564_v49  ;;  %v19547_v54 = vpop.xlane.xlu1 %19546  ;;  %24658 = vmatmul.mubr.msk.f32.vlgmr.msra.gmra.mrb[118].mxu0 %vm282_vm1, %v19647_v19  ;;  %v19649_v8 = vadd.f32 %v31628_v3, %v19627_v18 }
0x25a1   :  { %26425 = vrsqrt.f32 %v19581_v62  ;;  %v19567_v11 = vmul.f32 0.03125, %v19547_v54  ;;  %v19544_v40 = vpop.xlane.xlu0 %19543  ;;  %v19648_v28 = vadd.f32 %v31628_v3, %v19626_v33  ;;  %v19606_v24 = vmul.f32 %v26416_v4, %v31519_v29 }
0x25a2   :  { %v19629_v30 = vmul.f32 %v31621_v12, %v19607_v56  ;;  %26427 = vrsqrt.f32 %v19580_v34  ;;  %v19566_v6 = vmul.f32 0.03125, %v19544_v40 }
0x25a3   :  { %v26418_v50 = vpop.eup %26417  ;;  %v19583_v46 = vadd.f32 1e-05, %v19567_v11  ;;  %24660 = vmatprep.mubr.msk.f32.mxu0 %vm282_vm1, %v19648_v28  ;;  %v19628_v21 = vmul.f32 %v31621_v12, %v19606_v24 }
0x25a4   :  { %v26420_v7 = vpop.eup %26419  ;;  %v19609_v5 = vmul.f32 %v26418_v50, %v31527_v39  ;;  %v19582_v20 = vadd.f32 1e-05, %v19566_v6  ;;  %v19553_v27 = vpop.xlane.xlu1 %19552  ;;  %24661 = vmatmul.mubr.msk.f32.gmra.mrb[120].mxu0 %vm282_vm1, %v19649_v8  ;;  %v19651_v17 = vadd.f32 %v31628_v3, %v19629_v30 }
0x25a5   :  { %26429 = vrsqrt.f32 %v19583_v46  ;;  %v19569_v29 = vmul.f32 0.03125, %v19553_v27  ;;  %v19550_v41 = vpop.xlane.xlu0 %19549  ;;  %v19650_v31 = vadd.f32 %v31628_v3, %v19628_v21  ;;  %v19608_v45 = vmul.f32 %v26420_v7, %v31531_v0  ;;  %v21383_v27 = vld [vmem:[%s31820_s9 + $0xb8] sm:$0xff] }
0x25a6   :  { %v19631_v51 = vmul.f32 %v31621_v12, %v19609_v5  ;;  %26431 = vrsqrt.f32 %v19582_v20  ;;  %v19568_v47 = vmul.f32 0.03125, %v19550_v41 }
0x25a7   :  { %v26422_v59 = vpop.eup %26421  ;;  %v19585_v22 = vadd.f32 1e-05, %v19569_v29  ;;  %24663 = vmatprep.mubr.msk.f32.mxu0 %vm282_vm1, %v19650_v31  ;;  %v19630_v39 = vmul.f32 %v31621_v12, %v19608_v45  ;;  %v21386_v31 = vld [vmem:[%s31820_s9 + $0xd0] sm:$0xff]  ;;  %v21387_v45 = vld [vmem:[%s31820_s9 + $0xd8] sm:$0xff] }
0x25a8   :  { %v26424_v15 = vpop.eup %26423  ;;  %v19611_v48 = vmul.f32 %v26422_v59, %v31539_v26  ;;  %v19584_v52 = vadd.f32 1e-05, %v19568_v47  ;;  %24664 = vmatmul.mubr.msk.f32.gmra.mrb[122].mxu0 %vm282_vm1, %v19651_v17  ;;  %v19653_v18 = vadd.f32 %v31628_v3, %v19631_v51  ;;  %v25653_v17 = vpack.c.bf16 %v21387_v45, %v21386_v31  ;;  %v21388_v51 = vld [vmem:[%s31820_s9 + $0xe0] sm:$0xff]  ;;  %v21389_v47 = vld [vmem:[%s31820_s9 + $0xe8] sm:$0xff] }
0x25a9   :  { %26433 = vrsqrt.f32 %v19585_v22  ;;  %v19652_v0 = vadd.f32 %v31628_v3, %v19630_v39  ;;  %v19610_v19 = vmul.f32 %v26424_v15, %v31543_v60  ;;  %v25657_v59 = vpack.c.bf16 %v21389_v47, %v21388_v51  ;;  %v21390_v22 = vld [vmem:[%s31820_s9 + $0xf0] sm:$0xff]  ;;  %v21391_v39 = vld [vmem:[%s31820_s9 + $0xf8] sm:$0xff] }
0x25aa   :  { %v19633_v49 = vmul.f32 %v31621_v12, %v19611_v48  ;;  %26435 = vrsqrt.f32 %v19584_v52  ;;  %v25661_v15 = vpack.c.bf16 %v21391_v39, %v21390_v22  ;;  %v31725_v48 = vld [vmem:[%s31821_s8 + $0x1] ss:$0 sm:$0xff] }
0x25ab   :  { %v26426_v2 = vpop.eup %26425  ;;  %24666 = vmatprep.mubr.msk.f32.mxu0 %vm282_vm1, %v19652_v0  ;;  %v19632_v62 = vmul.f32 %v31621_v12, %v19610_v19 }
0x25ac   :  { %v26428_v33 = vpop.eup %26427  ;;  %v19613_v26 = vmul.f32 %v26426_v2, %v31551_v36  ;;  %24667 = vmatmul.mubr.msk.f32.gmra.mrb[124].mxu0 %vm282_vm1, %v19653_v18  ;;  %v19655_v60 = vadd.f32 %v31628_v3, %v19633_v49 }
0x25ad   :  { %v19654_v4 = vadd.f32 %v31628_v3, %v19632_v62  ;;  %v19612_v56 = vmul.f32 %v26428_v33, %v31555_v44 }
0x25ae   :  { %v19635_v34 = vmul.f32 %v31621_v12, %v19613_v26 }
0x25af   :  { %v26430_v54 = vpop.eup %26429  ;;  %24669 = vmatprep.mubr.msk.f32.mxu0 %vm282_vm1, %v19654_v4  ;;  %v19634_v11 = vmul.f32 %v31621_v12, %v19612_v56 }
0x25b0   :  { %v26432_v40 = vpop.eup %26431  ;;  %v19615_v28 = vmul.f32 %v26430_v54, %v31563_v25  ;;  %24670 = vmatmul.mubr.msk.f32.gmra.mrb[126].mxu0 %vm282_vm1, %v19655_v60  ;;  %v19657_v44 = vadd.f32 %v31628_v3, %v19635_v34 }
0x25b1   :  { %v19656_v36 = vadd.f32 %v31628_v3, %v19634_v11  ;;  %v19614_v24 = vmul.f32 %v26432_v40, %v31567_v1 }
0x25b2   :  { %v19637_v8 = vmul.f32 %v31621_v12, %v19615_v28 }
0x25b3   :  { %v26434_v30 = vpop.eup %26433  ;;  %24672 = vmatprep.mubr.msk.f32.mxu0 %vm282_vm1, %v19656_v36  ;;  %v19636_v6 = vmul.f32 %v31621_v12, %v19614_v24 }
0x25b4   :  { %v26436_v50 = vpop.eup %26435  ;;  %v19617_v46 = vmul.f32 %v26434_v30, %v31575_v23  ;;  %24673 = vmatmul.mubr.msk.f32.gmra.mrb[128].mxu0 %vm282_vm1, %v19657_v44  ;;  %v19659_v1 = vadd.f32 %v31628_v3, %v19637_v8 }
0x25b5   :  { %v19658_v25 = vadd.f32 %v31628_v3, %v19636_v6  ;;  %v19616_v21 = vmul.f32 %v26436_v50, %v31579_v61  ;;  %v21382_v61 = vld [vmem:[%s31820_s9 + $0xb0] sm:$0xff] }
0x25b6   :  { %v19639_v7 = vmul.f32 %v31621_v12, %v19617_v46  ;;  %v25645_v29 = vpack.c.bf16 %v21383_v27, %v21382_v61 }
0x25b7   :  { %24675 = vmatprep.mubr.msk.f32.mxu0 %vm282_vm1, %v19658_v25  ;;  %v19638_v5 = vmul.f32 %v31621_v12, %v19616_v21  ;;  %v21384_v12 = vld [vmem:[%s31820_s9 + $0xc0] sm:$0xff] }
0x25b8   :  { %24676 = vmatmul.mubr.msk.f32.gmra.mrb[130].mxu0 %vm282_vm1, %v19659_v1  ;;  %v19661_v23 = vadd.f32 %v31628_v3, %v19639_v7  ;;  %25646 = vmatprep.subr.bf16.mxu1 %v25645_v29 }
0x25b9   :  { %v19660_v20 = vadd.f32 %v31628_v3, %v19638_v5  ;;  %25648 = vmatpush3.bf16.msra.mxu1 %v25645_v29  ;;  %v21385_v3 = vld [vmem:[%s31820_s9 + $0xc8] sm:$0xff] }
0x25ba   :  { %v25649_v41 = vpack.c.bf16 %v21385_v3, %v21384_v12 }
0x25bb   :  { %24678 = vmatprep.mubr.msk.f32.mxu0 %vm282_vm1, %v19660_v20 }
0x25bc   :  { %24679 = vmatmul.mubr.msk.f32.gmra.mrb[132].mxu0 %vm282_vm1, %v19661_v23  ;;  %25650 = vmatprep.subr.bf16.mxu1 %v25649_v41 }
0x25bd   :  { %25652 = vmatpush3.bf16.msra.mxu1 %v25649_v41 }
0x25be   :  { %25654 = vmatprep.subr.bf16.mxu1 %v25653_v17 }
0x25c1   :  { %25656 = vmatpush3.bf16.msra.mxu1 %v25653_v17 }
0x25c2   :  { %25658 = vmatprep.subr.bf16.mxu1 %v25657_v59 }
0x25c5   :  { %25660 = vmatpush3.bf16.msra.mxu1 %v25657_v59 }
0x25c6   :  { %25662 = vmatprep.subr.bf16.mxu1 %v25661_v15 }
0x25c9   :  { %25664 = vmatpush3.bf16.msra.mxu1 %v25661_v15 }
0x2673   :  { %v24659_v52 = vpop.f32.mrb[118].mxu0 }
0x2674   :  { %v19795_v0 = vadd.f32 %v24659_v52, %v31725_v48  ;;  %v19789_v19 = vpop.f32.mrb[119].mxu0 }
0x2675   :  { %v19790_v18 = vadd.f32 %v31725_v48, %v19789_v19 }
0x2676   :  { %v19885_v49 = vmul.f32 0.70710677, %v19795_v0  ;;  %v19869_v61 = vmul.f32 0.5, %v19795_v0 }
0x2677   :  { %v19884_v2 = vmul.f32 0.70710677, %v19790_v18  ;;  %v24662_v62 = vpop.f32.mrb[120].mxu0  ;;  %v19868_v7 = vmul.f32 0.5, %v19790_v18 }
0x2678   :  { %26437 = verf.f32 %v19885_v49  ;;  %v19805_v33 = vadd.f32 %v24662_v62, %v31725_v48  ;;  %v19799_v26 = vpop.f32.mrb[121].mxu0 }
0x2679   :  { %26439 = verf.f32 %v19884_v2  ;;  %v19800_v4 = vadd.f32 %v31725_v48, %v19799_v26 }
0x267a   :  { %v19887_v56 = vmul.f32 0.70710677, %v19805_v33  ;;  %v19871_v15 = vmul.f32 0.5, %v19805_v33 }
0x267b   :  { %v19886_v60 = vmul.f32 0.70710677, %v19800_v4  ;;  %v24665_v34 = vpop.f32.mrb[122].mxu0  ;;  %v19870_v47 = vmul.f32 0.5, %v19800_v4 }
0x267c   :  { %26441 = verf.f32 %v19887_v56  ;;  %v19815_v54 = vadd.f32 %v24665_v34, %v31725_v48  ;;  %v19809_v11 = vpop.f32.mrb[123].mxu0 }
0x267d   :  { %26443 = verf.f32 %v19886_v60  ;;  %v19810_v40 = vadd.f32 %v31725_v48, %v19809_v11 }
0x267e   :  { %v19889_v28 = vmul.f32 0.70710677, %v19815_v54  ;;  %v19873_v33 = vmul.f32 0.5, %v19815_v54 }
0x267f   :  { %v19888_v36 = vmul.f32 0.70710677, %v19810_v40  ;;  %v24668_v24 = vpop.f32.mrb[124].mxu0  ;;  %v19872_v56 = vmul.f32 0.5, %v19810_v40 }
0x2680   :  { %26445 = verf.f32 %v19889_v28  ;;  %v31734_v44 = vadd.f32 %v24668_v24, %v31725_v48  ;;  %v19819_v8 = vpop.f32.mrb[125].mxu0 }
0x2681   :  { %26447 = verf.f32 %v19888_v36  ;;  %v19820_v30 = vadd.f32 %v31725_v48, %v19819_v8 }
0x2682   :  { %v26438_v6 = vpop.eup %26437  ;;  %v19891_v50 = vmul.f32 0.70710677, %v31734_v44  ;;  %v19875_v54 = vmul.f32 0.5, %v31734_v44 }
0x2683   :  { %v26440_v46 = vpop.eup %26439  ;;  %v19917_v25 = vadd.f32 1.0, %v26438_v6  ;;  %v19890_v21 = vmul.f32 0.70710677, %v19820_v30  ;;  %v24671_v1 = vpop.f32.mrb[126].mxu0  ;;  %v19874_v40 = vmul.f32 0.5, %v19820_v30 }
0x2684   :  { %v19916_v5 = vadd.f32 1.0, %v26440_v46  ;;  %26449 = verf.f32 %v19891_v50  ;;  %v31739_v20 = vadd.f32 %v24671_v1, %v31725_v48  ;;  %v19829_v23 = vpop.f32.mrb[127].mxu0 }
0x2685   :  { %26451 = verf.f32 %v19890_v21  ;;  %v19830_v27 = vadd.f32 %v31725_v48, %v19829_v23  ;;  %v19933_v31 = vmul.f32 %v19917_v25, %v19869_v61 }
0x2686   :  { %v26442_v29 = vpop.eup %26441  ;;  %v19893_v12 = vmul.f32 0.70710677, %v31739_v20  ;;  %v19932_v3 = vmul.f32 %v19916_v5, %v19868_v7 }
0x2687   :  { %v26444_v41 = vpop.eup %26443  ;;  %v19919_v45 = vadd.f32 1.0, %v26442_v29  ;;  %v19892_v17 = vmul.f32 0.70710677, %v19830_v27  ;;  %v24674_v51 = vpop.f32.mrb[128].mxu0  ;;  %v19876_v30 = vmul.f32 0.5, %v19830_v27 }
0x2688   :  { %v19918_v59 = vadd.f32 1.0, %v26444_v41  ;;  %26453 = verf.f32 %v19893_v12  ;;  %v31744_v22 = vadd.f32 %v24674_v51, %v31725_v48  ;;  %v19839_v39 = vpop.f32.mrb[129].mxu0  ;;  %24713 = vmatprep.mubr.f32.mxu1 %v19932_v3  ;;  %v19877_v51 = vmul.f32 0.5, %v31739_v20 }
0x2689   :  { %26455 = verf.f32 %v19892_v17  ;;  %v19840_v52 = vadd.f32 %v31725_v48, %v19839_v39  ;;  %24714 = vmatmul.mubr.f32.vlgmr.msra.gmra.mrb[106].mxu1 %v19933_v31  ;;  %v19935_v2 = vmul.f32 %v19919_v45, %v19871_v15 }
0x268a   :  { %v26446_v0 = vpop.eup %26445  ;;  %v19895_v19 = vmul.f32 0.70710677, %v31744_v22  ;;  %v19934_v18 = vmul.f32 %v19918_v59, %v19870_v47 }
0x268b   :  { %v26448_v49 = vpop.eup %26447  ;;  %v19921_v62 = vadd.f32 1.0, %v26446_v0  ;;  %v19894_v26 = vmul.f32 0.70710677, %v19840_v52  ;;  %v24677_v4 = vpop.f32.mrb[130].mxu0  ;;  %v19878_v15 = vmul.f32 0.5, %v19840_v52 }
0x268c   :  { %v19920_v60 = vadd.f32 1.0, %v26448_v49  ;;  %26457 = verf.f32 %v19895_v19  ;;  %v19855_v34 = vadd.f32 %v24677_v4, %v31725_v48  ;;  %v19849_v11 = vpop.f32.mrb[131].mxu0  ;;  %24716 = vmatprep.mubr.f32.mxu1 %v19934_v18  ;;  %v19879_v19 = vmul.f32 0.5, %v31744_v22 }
0x268d   :  { %26459 = verf.f32 %v19894_v26  ;;  %v19850_v28 = vadd.f32 %v31725_v48, %v19849_v11  ;;  %24717 = vmatmul.mubr.f32.gmra.mrb[108].mxu1 %v19935_v2  ;;  %v19937_v50 = vmul.f32 %v19921_v62, %v19873_v33 }
0x268e   :  { %v26450_v36 = vpop.eup %26449  ;;  %v19897_v24 = vmul.f32 0.70710677, %v19855_v34  ;;  %v19936_v8 = vmul.f32 %v19920_v60, %v19872_v56  ;;  %v19881_v4 = vmul.f32 0.5, %v19855_v34 }
0x268f   :  { %v26452_v6 = vpop.eup %26451  ;;  %v19923_v46 = vadd.f32 1.0, %v26450_v36  ;;  %v19896_v25 = vmul.f32 0.70710677, %v19850_v28  ;;  %v24680_v21 = vpop.f32.mrb[132].mxu0  ;;  %v19880_v26 = vmul.f32 0.5, %v19850_v28 }
0x2690   :  { %v19922_v1 = vadd.f32 1.0, %v26452_v6  ;;  %26461 = verf.f32 %v19897_v24  ;;  %v19865_v7 = vadd.f32 %v24680_v21, %v31725_v48  ;;  %v19859_v5 = vpop.f32.mrb[133].mxu0  ;;  %24719 = vmatprep.mubr.f32.mxu1 %v19936_v8  ;;  %v31758_v28 = vld [vmem:[%s31816_s3 + $0xb] ss:$0 sm:$0xff] }
0x2691   :  { %26463 = verf.f32 %v19896_v25  ;;  %v19860_v23 = vadd.f32 %v31725_v48, %v19859_v5  ;;  %24720 = vmatmul.mubr.f32.gmra.mrb[110].mxu1 %v19937_v50  ;;  %v19939_v41 = vmul.f32 %v19923_v46, %v19875_v54 }
0x2692   :  { %v26454_v61 = vpop.eup %26453  ;;  %v19899_v29 = vmul.f32 0.70710677, %v19865_v7  ;;  %v19938_v12 = vmul.f32 %v19922_v1, %v19874_v40  ;;  %v19883_v22 = vmul.f32 0.5, %v19865_v7 }
0x2693   :  { %v26456_v3 = vpop.eup %26455  ;;  %v19925_v31 = vadd.f32 1.0, %v26454_v61  ;;  %v19898_v45 = vmul.f32 0.70710677, %v19860_v23  ;;  %v19882_v36 = vmul.f32 0.5, %v19860_v23 }
0x2694   :  { %v19924_v17 = vadd.f32 1.0, %v26456_v3  ;;  %26465 = verf.f32 %v19899_v29  ;;  %24722 = vmatprep.mubr.f32.mxu1 %v19938_v12 }
0x2695   :  { %26467 = verf.f32 %v19898_v45  ;;  %24723 = vmatmul.mubr.f32.gmra.mrb[112].mxu1 %v19939_v41  ;;  %v19941_v48 = vmul.f32 %v19925_v31, %v19877_v51 }
0x2696   :  { %v26458_v44 = vpop.eup %26457  ;;  %v19940_v47 = vmul.f32 %v19924_v17, %v19876_v30 }
0x2697   :  { %v26460_v59 = vpop.eup %26459  ;;  %v19927_v39 = vadd.f32 1.0, %v26458_v44 }
0x2698   :  { %v19926_v0 = vadd.f32 1.0, %v26460_v59  ;;  %24725 = vmatprep.mubr.f32.mxu1 %v19940_v47 }
0x2699   :  { %24726 = vmatmul.mubr.f32.gmra.mrb[114].mxu1 %v19941_v48  ;;  %v19943_v2 = vmul.f32 %v19927_v39, %v19879_v19 }
0x269a   :  { %v26462_v18 = vpop.eup %26461  ;;  %v19942_v27 = vmul.f32 %v19926_v0, %v19878_v15 }
0x269b   :  { %v26464_v49 = vpop.eup %26463  ;;  %v19929_v62 = vadd.f32 1.0, %v26462_v18 }
0x269c   :  { %v19928_v20 = vadd.f32 1.0, %v26464_v49  ;;  %24728 = vmatprep.mubr.f32.mxu1 %v19942_v27 }
0x269d   :  { %24729 = vmatmul.mubr.f32.gmra.mrb[116].mxu1 %v19943_v2  ;;  %v19945_v33 = vmul.f32 %v19929_v62, %v19881_v4 }
0x269e   :  { %v26466_v56 = vpop.eup %26465  ;;  %v19944_v60 = vmul.f32 %v19928_v20, %v19880_v26 }
0x269f   :  { %v26468_v11 = vpop.eup %26467  ;;  %v19931_v52 = vadd.f32 1.0, %v26466_v56 }
0x26a0   :  { %v19930_v24 = vadd.f32 1.0, %v26468_v11  ;;  %24731 = vmatprep.mubr.f32.mxu1 %v19944_v60 }
0x26a1   :  { %24732 = vmatmul.mubr.f32.gmra.mrb[118].mxu1 %v19945_v33  ;;  %v19947_v6 = vmul.f32 %v19931_v52, %v19883_v22 }
0x26a2   :  { %v19946_v8 = vmul.f32 %v19930_v24, %v19882_v36 }
0x26a4   :  { %24734 = vmatprep.mubr.f32.mxu1 %v19946_v8 }
0x26a5   :  { %24735 = vmatmul.mubr.f32.gmra.mrb[120].mxu1 %v19947_v6 }
0x275c   :  { %v24715_v34 = vpop.f32.mrb[106].mxu1 }
0x275d   :  { %v20111_v50 = vadd.f32 %v24715_v34, %v31399_v63  ;;  %v20031_v46 = vpop.f32.mrb[107].mxu1 }
0x275e   :  { %v20110_v25 = vadd.f32 %v20031_v46, %v31402_v42 }
0x275f   :  { %v20133_v21 = vadd.f32 %v31758_v28, %v20111_v50 }
0x2760   :  { %v20132_v40 = vadd.f32 %v31758_v28, %v20110_v25  ;;  %v24718_v1 = vpop.f32.mrb[108].mxu1 }
0x2761   :  { %v20149_v7 = vsel %vm282_vm1, %v20133_v21, 0.0  ;;  %v20113_v5 = vadd.f32 %v24718_v1, %v31411_v32  ;;  %v20041_v54 = vpop.f32.mrb[109].mxu1 }
0x2762   :  { %v20148_v23 = vsel %vm282_vm1, %v20132_v40, 0.0  ;;  %v20112_v61 = vadd.f32 %v20041_v54, %v31414_v55 }
0x2763   :  { %v20150_v29 = vadd.f32 %v20149_v7, %v20148_v23  ;;  %v20135_v63 = vadd.f32 %v31758_v28, %v20113_v5 }
0x2764   :  { %v20134_v12 = vadd.f32 %v31758_v28, %v20112_v61  ;;  %v24721_v42 = vpop.f32.mrb[110].mxu1 }
0x2765   :  { %v20151_v3 = vrot.slane %v20150_v29, 4  ;;  %v20158_v41 = vsel %vm282_vm1, %v20135_v63, 0.0  ;;  %v20115_v31 = vadd.f32 %v24721_v42, %v31423_v37  ;;  %v20051_v45 = vpop.f32.mrb[111].mxu1 }
0x2766   :  { %v20157_v30 = vsel %vm282_vm1, %v20134_v12, 0.0  ;;  %v20114_v32 = vadd.f32 %v20051_v45, %v31426_v53 }
0x2767   :  { %v20152_v17 = vadd.f32 %v20151_v3, %v20150_v29  ;;  %v20159_v51 = vadd.f32 %v20158_v41, %v20157_v30  ;;  %v20137_v55 = vadd.f32 %v31758_v28, %v20115_v31 }
0x2768   :  { %v20136_v44 = vadd.f32 %v31758_v28, %v20114_v32  ;;  %v24724_v47 = vpop.f32.mrb[112].mxu1 }
0x2769   :  { %v20153_v59 = vrot.slane %v20152_v17, 2  ;;  %v20160_v48 = vrot.slane %v20159_v51, 4  ;;  %v20167_v39 = vsel %vm282_vm1, %v20137_v55, 0.0  ;;  %v20117_v15 = vadd.f32 %v24724_v47, %v31435_v16  ;;  %v20061_v0 = vpop.f32.mrb[113].mxu1 }
0x276a   :  { %v20166_v37 = vsel %vm282_vm1, %v20136_v44, 0.0  ;;  %v20116_v19 = vadd.f32 %v20061_v0, %v31438_v38 }
0x276b   :  { %v20154_v18 = vadd.f32 %v20153_v59, %v20152_v17  ;;  %v20161_v53 = vadd.f32 %v20160_v48, %v20159_v51  ;;  %v20168_v27 = vadd.f32 %v20167_v39, %v20166_v37  ;;  %v20139_v49 = vadd.f32 %v31758_v28, %v20117_v15 }
0x276c   :  { %v20138_v2 = vadd.f32 %v31758_v28, %v20116_v19  ;;  %v24727_v62 = vpop.f32.mrb[114].mxu1 }
0x276d   :  { %v20155_v26 = vrot.slane %v20154_v18, 1  ;;  %v20162_v20 = vrot.slane %v20161_v53, 2  ;;  %v20169_v4 = vrot.slane %v20168_v27, 4  ;;  %v20176_v56 = vsel %vm282_vm1, %v20139_v49, 0.0  ;;  %v20071_v60 = vpop.f32.mrb[115].mxu1 }
0x276e   :  { %v20175_v16 = vsel %vm282_vm1, %v20138_v2, 0.0  ;;  %v20119_v11 = vadd.f32 %v24727_v62, %v31447_v13  ;;  %v20118_v38 = vadd.f32 %v20071_v60, %v31450_v58 }
0x276f   :  { %v20163_v33 = vadd.f32 %v20162_v20, %v20161_v53  ;;  %v20170_v52 = vadd.f32 %v20169_v4, %v20168_v27  ;;  %v20177_v36 = vadd.f32 %v20176_v56, %v20175_v16  ;;  %v20156_v24 = vadd.f32 %v20155_v26, %v20154_v18 }
0x2770   :  { %v20141_v22 = vadd.f32 %v31758_v28, %v20119_v11  ;;  %v20140_v8 = vadd.f32 %v31758_v28, %v20118_v38  ;;  %v24730_v6 = vpop.f32.mrb[116].mxu1 }
0x2771   :  { %v20164_v34 = vrot.slane %v20163_v33, 1  ;;  %v20171_v50 = vrot.slane %v20170_v52, 2  ;;  %v20178_v46 = vrot.slane %v20177_v36, 4  ;;  %v20081_v25 = vpop.f32.mrb[117].mxu1  ;;  %v20121_v13 = vadd.f32 %v24730_v6, %v31459_v10 }
0x2772   :  { %v20185_v21 = vsel %vm282_vm1, %v20141_v22, 0.0  ;;  %v20184_v40 = vsel %vm282_vm1, %v20140_v8, 0.0  ;;  %v20120_v58 = vadd.f32 %v20081_v25, %v31462_v9  ;;  %v20221_v23 = vmul.f32 0.0625, %v20156_v24 }
0x2773   :  { %v20165_v1 = vadd.f32 %v20164_v34, %v20163_v33  ;;  %v20172_v7 = vadd.f32 %v20171_v50, %v20170_v52  ;;  %v20179_v5 = vadd.f32 %v20178_v46, %v20177_v36  ;;  %v20186_v54 = vadd.f32 %v20185_v21, %v20184_v40 }
0x2774   :  { %v20143_v61 = vadd.f32 %v31758_v28, %v20121_v13  ;;  %v20142_v29 = vadd.f32 %v31758_v28, %v20120_v58  ;;  %v24733_v63 = vpop.f32.mrb[118].mxu1 }
0x2775   :  { %v20222_v12 = vmul.f32 0.0625, %v20165_v1  ;;  %v20173_v42 = vrot.slane %v20172_v7, 1  ;;  %v20180_v3 = vrot.slane %v20179_v5, 2  ;;  %v20187_v41 = vrot.slane %v20186_v54, 4  ;;  %v20091_v31 = vpop.f32.mrb[119].mxu1 }
0x2776   :  { %v20194_v10 = vsel %vm282_vm1, %v20143_v61, 0.0  ;;  %v20193_v9 = vsel %vm282_vm1, %v20142_v29, 0.0  ;;  %v20123_v45 = vadd.f32 %v24733_v63, %v31471_v57  ;;  %v20122_v30 = vadd.f32 %v20091_v31, %v31474_v43 }
0x2777   :  { %v20238_v32 = vsel %vm20237_vm5, %v20222_v12, %v20221_v23  ;;  %v20174_v17 = vadd.f32 %v20173_v42, %v20172_v7  ;;  %v20181_v51 = vadd.f32 %v20180_v3, %v20179_v5  ;;  %v20188_v55 = vadd.f32 %v20187_v41, %v20186_v54 }
0x2778   :  { %v20195_v44 = vadd.f32 %v20194_v10, %v20193_v9  ;;  %v20145_v47 = vadd.f32 %v31758_v28, %v20123_v45  ;;  %v20144_v59 = vadd.f32 %v31758_v28, %v20122_v30  ;;  %v24736_v48 = vpop.f32.mrb[120].mxu1 }
0x2779   :  { %v20223_v39 = vmul.f32 0.0625, %v20174_v17  ;;  %v20182_v15 = vrot.slane %v20181_v51, 1  ;;  %v20189_v0 = vrot.slane %v20188_v55, 2  ;;  %v20125_v37 = vadd.f32 %v24736_v48, %v31483_v14  ;;  %v20101_v19 = vpop.f32.mrb[121].mxu1 }
0x277a   :  { %v20196_v57 = vrot.slane %v20195_v44, 4  ;;  %v20203_v43 = vsel %vm282_vm1, %v20145_v47, 0.0  ;;  %v20202_v18 = vsel %vm282_vm1, %v20144_v59, 0.0  ;;  %v20124_v53 = vadd.f32 %v20101_v19, %v31486_v35 }
0x277b   :  { %v20240_v27 = vsel %vm20239_vm6, %v20223_v39, %v20238_v32  ;;  %v20183_v49 = vadd.f32 %v20182_v15, %v20181_v51  ;;  %v20190_v2 = vadd.f32 %v20189_v0, %v20188_v55  ;;  %v20204_v62 = vadd.f32 %v20203_v43, %v20202_v18 }
0x277c   :  { %v20197_v26 = vadd.f32 %v20196_v57, %v20195_v44  ;;  %v20147_v20 = vadd.f32 %v31758_v28, %v20125_v37  ;;  %v20146_v4 = vadd.f32 %v31758_v28, %v20124_v53 }
0x277d   :  { %v20224_v56 = vmul.f32 0.0625, %v20183_v49  ;;  %v20191_v14 = vrot.slane %v20190_v2, 1  ;;  %v20205_v60 = vrot.slane %v20204_v62, 4 }
0x277e   :  { %v20198_v16 = vrot.slane %v20197_v26, 2  ;;  %v20212_v11 = vsel %vm282_vm1, %v20147_v20, 0.0  ;;  %v20211_v38 = vsel %vm282_vm1, %v20146_v4, 0.0 }
0x277f   :  { %v20242_v33 = vsel %vm20241_vm7, %v20224_v56, %v20240_v27  ;;  %v20192_v35 = vadd.f32 %v20191_v14, %v20190_v2  ;;  %v20206_v52 = vadd.f32 %v20205_v60, %v20204_v62  ;;  %v20213_v36 = vadd.f32 %v20212_v11, %v20211_v38 }
0x2780   :  { %v20199_v24 = vadd.f32 %v20198_v16, %v20197_v26 }
0x2781   :  { %v20225_v22 = vmul.f32 0.0625, %v20192_v35  ;;  %v20207_v8 = vrot.slane %v20206_v52, 2  ;;  %v20214_v6 = vrot.slane %v20213_v36, 4 }
0x2782   :  { %v20200_v34 = vrot.slane %v20199_v24, 1 }
0x2783   :  { %v20244_v50 = vsel %vm20243_vm8, %v20225_v22, %v20242_v33  ;;  %v20208_v28 = vadd.f32 %v20207_v8, %v20206_v52  ;;  %v20215_v46 = vadd.f32 %v20214_v6, %v20213_v36 }
0x2784   :  { %v20201_v25 = vadd.f32 %v20200_v34, %v20199_v24 }
0x2785   :  { %v20209_v21 = vrot.slane %v20208_v28, 1  ;;  %v20216_v40 = vrot.slane %v20215_v46, 2 }
0x2786   :  { %v20226_v13 = vmul.f32 0.0625, %v20201_v25 }
0x2787   :  { %v20210_v58 = vadd.f32 %v20209_v21, %v20208_v28  ;;  %v20217_v1 = vadd.f32 %v20216_v40, %v20215_v46 }
0x2788   :  { %v20246_v7 = vsel %vm20245_vm9, %v20226_v13, %v20244_v50 }
0x2789   :  { %v20227_v5 = vmul.f32 0.0625, %v20210_v58  ;;  %v20218_v54 = vrot.slane %v20217_v1, 1 }
0x278b   :  { %v20248_v23 = vsel %vm20247_vm10, %v20227_v5, %v20246_v7  ;;  %v20219_v61 = vadd.f32 %v20218_v54, %v20217_v1 }
0x278d   :  { %v20228_v29 = vmul.f32 0.0625, %v20219_v61 }
0x278f   :  { %v20250_v63 = vsel %vm20249_vm11, %v20228_v29, %v20248_v23 }
0x2790   :  { %20252 = vst.msk [vmem:[%s31822_s10] sm:$0xff] %vm282_vm1, %v20250_v63 }

</bundles_post_ra>
